<compile_context>
chip_gen: v5e
topology: v5e:2x2
jax: 0.10.0
libtpu: 0.0.40
codegen_flags: <defaults>
</compile_context>

<pallas_src>
import functools

import jax
import jax.numpy as jnp
from jax.experimental import pallas as pl
from jax.experimental.pallas import tpu as pltpu


def _temporal_attn_kernel(x_ref, ec_ref, pos_ref, wqv_ref, wk_ref, wlin_ref,
                          b_ref, out_ref, st_ref, acc_ref,
                          *, n_heads, num_time_steps, residual, mm_dtype):
    NB, T, F = x_ref.shape
    d = F // n_heads
    scale = 1.0 / (num_time_steps ** 0.5)

    # position embedding added identically to every node (f32 elementwise)
    temporal = x_ref[...] + pos_ref[...][None]          # (NB, T, F) f32
    t2 = temporal.reshape(NB * T, F)                    # big-M LHS for MXU
    e2 = ec_ref[...].reshape(NB * T, F)

    # fused Q|V projection (one MXU pass over [F, 2F]) + K projection.
    qv = jnp.dot(t2.astype(mm_dtype), wqv_ref[...],
                 preferred_element_type=jnp.float32)    # (NB*T, 2F) f32
    k = jnp.dot(e2.astype(mm_dtype), wk_ref[...],
                preferred_element_type=jnp.float32)     # (NB*T, F)  f32

    qv3 = qv.reshape(NB, T, 2 * F)
    k3 = k.reshape(NB, T, F)

    # static (unrolled) head loop; heads slice-write into st_ref / acc scratch,
    # no concatenate / relayout.
    for h in range(n_heads):
        qh = qv3[:, :, h * d:(h + 1) * d].astype(mm_dtype)          # (NB, T, d)
        vh = qv3[:, :, F + h * d:F + (h + 1) * d].astype(mm_dtype)  # (NB, T, d)
        kh = k3[:, :, h * d:(h + 1) * d].astype(mm_dtype)           # (NB, T, d)

        # batched over the NB node axis
        s = jnp.einsum('ntd,nsd->nts', qh, kh,
                       preferred_element_type=jnp.float32) * scale  # (NB, T, T)

        # numerically-stable softmax over keys (f32; reciprocal on the EUP)
        m = jnp.max(s, axis=-1, keepdims=True)
        e = jnp.exp(s - m)
        p = e * pl.reciprocal(jnp.sum(e, axis=-1, keepdims=True), approx=True)

        st_ref[:, :, h * T:(h + 1) * T] = p                          # head h cols
        acc_ref[:, :, h * d:(h + 1) * d] = jnp.einsum(
            'nts,nsd->ntd', p.astype(mm_dtype), vh,
            preferred_element_type=jnp.float32)                      # (NB, T, d)

    attn = acc_ref[...].reshape(NB * T, F)                           # f32

    # feedforward: relu(Linear(x)) + x   (Wlin stored as [in, out])
    lin = jnp.dot(attn.astype(mm_dtype), wlin_ref[...],
                  preferred_element_type=jnp.float32) + b_ref[...]
    ff = jnp.maximum(lin, 0.0) + attn
    if residual:
        ff = ff + t2

    out_ref[...] = jnp.mean(ff.reshape(NB, T, F), axis=1)            # (NB, F)


def transform_model_forward(x, ec, params, *, n_heads, residual,
                            node_block=32, matmul_dtype=jnp.float32):
    """x, ec: [N, T, F] float32.

    Returns (temporal_out [N, F], ST_dependency [N, T, H*T]).
    matmul_dtype=jnp.bfloat16 feeds the MXU bf16 operands (recommended on
    v6e / v7x); element-wise math stays float32 either way.
    """
    N, T, F = x.shape
    HT = n_heads * T

    NB = min(node_block, N)
    num_blocks = -(-N // NB)
    N_pad = num_blocks * NB
    if N_pad != N:
        pad = N_pad - N
        x = jnp.pad(x, ((0, pad), (0, 0), (0, 0)))
        ec = jnp.pad(ec, ((0, pad), (0, 0), (0, 0)))

    # fuse Wq | Wv (same LHS) and cast weights to the MXU dtype once.
    wqv = jnp.concatenate([params["wq"], params["wv"]], axis=1).astype(matmul_dtype)
    wk = params["wk"].astype(matmul_dtype)
    wlin = params["wlin"].astype(matmul_dtype)
    bias = params["bias"].astype(jnp.float32)
    pos = params["pos"].astype(jnp.float32)

    kernel = functools.partial(
        _temporal_attn_kernel,
        n_heads=n_heads, num_time_steps=T, residual=residual,
        mm_dtype=matmul_dtype)

    # advisory cost estimate for XLA's scheduler
    flops = N_pad * (8 * T * F * F + 4 * T * T * F)
    transcendentals = N_pad * n_heads * T * T
    bytes_accessed = 4 * (2 * N_pad * T * F + T * F + 4 * F * F + F
                          + N_pad * F + N_pad * T * HT)

    out_mean, st_dep = pl.pallas_call(
        kernel,
        out_shape=(
            jax.ShapeDtypeStruct((N_pad, F), jnp.float32),
            jax.ShapeDtypeStruct((N_pad, T, HT), jnp.float32),
        ),
        grid_spec=pltpu.PrefetchScalarGridSpec(
            num_scalar_prefetch=0,
            grid=(num_blocks,),
            in_specs=[
                pl.BlockSpec((NB, T, F), lambda n: (n, 0, 0)),   # x
                pl.BlockSpec((NB, T, F), lambda n: (n, 0, 0)),   # EC
                pl.BlockSpec((T, F), lambda n: (0, 0)),          # pos emb
                pl.BlockSpec((F, 2 * F), lambda n: (0, 0)),      # Wq|Wv fused
                pl.BlockSpec((F, F), lambda n: (0, 0)),          # Wk
                pl.BlockSpec((F, F), lambda n: (0, 0)),          # Wlin ([in, out])
                pl.BlockSpec((1, F), lambda n: (0, 0)),          # bias
            ],
            out_specs=[
                pl.BlockSpec((NB, F), lambda n: (n, 0)),         # mean over T
                pl.BlockSpec((NB, T, HT), lambda n: (n, 0, 0)),  # ST dependency
            ],
            scratch_shapes=[pltpu.VMEM((NB, T, F), jnp.float32)],
        ),
        compiler_params=pltpu.CompilerParams(dimension_semantics=("parallel",)),
        cost_estimate=pl.CostEstimate(flops=flops,
                                      transcendentals=transcendentals,
                                      bytes_accessed=bytes_accessed),
    )(x, ec, pos, wqv, wk, wlin, bias)

    if N_pad != N:
        out_mean = out_mean[:N]
        st_dep = st_dep[:N]
    return out_mean, st_dep


def _reference_forward(x, ec, params, *, n_heads, residual):
    """Pure-JAX reference mirroring the PyTorch module (eval mode)."""
    N, T, F = x.shape
    d = F // n_heads
    temporal = x + params["pos"][None]                        # [N, T, F]
    q = jnp.einsum("ntf,fg->ntg", temporal, params["wq"])
    k = jnp.einsum("ntf,fg->ntg", ec, params["wk"])
    v = jnp.einsum("ntf,fg->ntg", temporal, params["wv"])
    qh = q.reshape(N, T, n_heads, d).transpose(2, 0, 1, 3)    # [H, N, T, d]
    kh = k.reshape(N, T, n_heads, d).transpose(2, 0, 1, 3)
    vh = v.reshape(N, T, n_heads, d).transpose(2, 0, 1, 3)
    s = jnp.einsum("hntd,hnsd->hnts", qh, kh) / (T ** 0.5)
    s = jax.nn.softmax(s, axis=-1)                            # [H, N, T, T]
    st = s.transpose(1, 2, 0, 3).reshape(N, T, n_heads * T)   # cat heads on dim 2
    o = jnp.einsum("hnts,hnsd->hntd", s, vh)
    o = o.transpose(1, 2, 0, 3).reshape(N, T, F)
    lin = jnp.einsum("ntf,fg->ntg", o, params["wlin"]) + params["bias"][0]
    ff = jax.nn.relu(lin) + o
    if residual:
        ff = ff + temporal
    return jnp.mean(ff, axis=1), st


def init_params(key, T, F):
    """Deterministic xavier-uniform-style init (matches module's shapes)."""
    ks = jax.random.split(key, 6)

    def xavier(k, shape):
        fan_in, fan_out = shape[-2], shape[-1]
        lim = (6.0 / (fan_in + fan_out)) ** 0.5
        return jax.random.uniform(k, shape, jnp.float32, -lim, lim)

    return {
        "pos": xavier(ks[0], (T, F)),
        "wq": xavier(ks[1], (F, F)),
        "wk": xavier(ks[2], (F, F)),
        "wv": xavier(ks[3], (F, F)),
        # nn.Linear stores weight [out, in]; we store the transpose [in, out]
        "wlin": xavier(ks[4], (F, F)),
        "bias": jax.random.uniform(ks[5], (1, F), jnp.float32, -0.1, 0.1),
    }


if __name__ == "__main__":
    # TransformModel(gcn_out_fea=32, time_length=8, head_num="4",
    #                transform_layer="32", temporal_drop=0.1, residual=True)
    # eval mode (dropout is identity).  N sized so a 32-node block gives
    # NB*T = 256 MXU rows and the grid has >= 2 parallel steps (v7x 2-TC).
    N, T, F = 128, 8, 32
    n_heads = 4
    residual = True

    key = jax.random.PRNGKey(0)
    kx, kec, kp = jax.random.split(key, 3)
    x = jax.random.normal(kx, (N, T, F), jnp.float32)
    ec = jax.random.normal(kec, (N, T, F), jnp.float32)
    params = init_params(kp, T, F)

    ref_out, ref_st = _reference_forward(x, ec, params, n_heads=n_heads,
                                         residual=residual)

    # f32 MXU operands (works on every generation)
    out_f32, st_f32 = transform_model_forward(
        x, ec, params, n_heads=n_heads, residual=residual,
        node_block=32, matmul_dtype=jnp.float32)
    jax.block_until_ready((out_f32, st_f32))
    assert out_f32.shape == (N, F)
    assert st_f32.shape == (N, T, n_heads * T)
    assert jnp.allclose(out_f32, ref_out, rtol=1e-2, atol=1e-2)
    assert jnp.allclose(st_f32, ref_st, rtol=1e-2, atol=1e-2)

    # bf16 MXU operands (recommended on v6e / v7x); elementwise math stays f32,
    # so tolerance is relaxed only for the matmul precision drop.
    out_bf16, st_bf16 = transform_model_forward(
        x, ec, params, n_heads=n_heads, residual=residual,
        node_block=32, matmul_dtype=jnp.bfloat16)
    jax.block_until_ready((out_bf16, st_bf16))
    assert jnp.allclose(out_bf16, ref_out, rtol=5e-2, atol=5e-2)
    assert jnp.allclose(st_bf16, ref_st, rtol=5e-2, atol=5e-2)

    print("KERNEL_OK")
</pallas_src>

<mosaic_0001>
module attributes {stable_mosaic.version = 11 : i64} {
  func.func @_temporal_attn_kernel(%arg0: i32, %arg1: memref<32x8x32xf32, #tpu.memory_space<vmem>>, %arg2: memref<32x8x32xf32, #tpu.memory_space<vmem>>, %arg3: memref<8x32xf32, #tpu.memory_space<vmem>>, %arg4: memref<32x64xf32, #tpu.memory_space<vmem>>, %arg5: memref<32x32xf32, #tpu.memory_space<vmem>>, %arg6: memref<32x32xf32, #tpu.memory_space<vmem>>, %arg7: memref<1x32xf32, #tpu.memory_space<vmem>>, %arg8: memref<32x32xf32, #tpu.memory_space<vmem>>, %arg9: memref<32x8x32xf32, #tpu.memory_space<vmem>>, %arg10: memref<32x8x32xf32, #tpu.memory_space<vmem>>) attributes {dimension_semantics = [#tpu.dimension_semantics<parallel>], iteration_bounds = array<i64: 4>, scalar_prefetch = 0 : i64, scratch_operands = 1 : i64, tpu.core_type = #tpu.core_type<tc>, window_params = [{transform_indices = @transform_0, window_bounds = array<i64: 32, 8, 32>}, {transform_indices = @transform_1, window_bounds = array<i64: 32, 8, 32>}, {pipeline_mode = #tpu.pipeline_mode<synchronous>, transform_indices = @transform_2, window_bounds = array<i64: 8, 32>}, {pipeline_mode = #tpu.pipeline_mode<synchronous>, transform_indices = @transform_3, window_bounds = array<i64: 32, 64>}, {pipeline_mode = #tpu.pipeline_mode<synchronous>, transform_indices = @transform_4, window_bounds = array<i64: 32, 32>}, {pipeline_mode = #tpu.pipeline_mode<synchronous>, transform_indices = @transform_5, window_bounds = array<i64: 32, 32>}, {pipeline_mode = #tpu.pipeline_mode<synchronous>, transform_indices = @transform_6, window_bounds = array<i64: 1, 32>}, {transform_indices = @transform_7, window_bounds = array<i64: 32, 32>}, {transform_indices = @transform_8, window_bounds = array<i64: 32, 8, 32>}]} {
    %c0 = arith.constant 0 : index
    %c0_0 = arith.constant 0 : index
    %c0_1 = arith.constant 0 : index
    %0 = vector.load %arg1[%c0, %c0_0, %c0_1] : memref<32x8x32xf32, #tpu.memory_space<vmem>>, vector<32x8x32xf32>
    %c0_2 = arith.constant 0 : index
    %c0_3 = arith.constant 0 : index
    %1 = vector.load %arg3[%c0_2, %c0_3] : memref<8x32xf32, #tpu.memory_space<vmem>>, vector<8x32xf32>
    %2 = vector.shape_cast %1 : vector<8x32xf32> to vector<1x8x32xf32>
    %3 = vector.broadcast %2 : vector<1x8x32xf32> to vector<32x8x32xf32>
    %4 = arith.addf %0, %3 : vector<32x8x32xf32>
    %5 = vector.shape_cast %4 : vector<32x8x32xf32> to vector<256x32xf32>
    %c0_4 = arith.constant 0 : index
    %c0_5 = arith.constant 0 : index
    %c0_6 = arith.constant 0 : index
    %6 = vector.load %arg2[%c0_4, %c0_5, %c0_6] : memref<32x8x32xf32, #tpu.memory_space<vmem>>, vector<32x8x32xf32>
    %7 = vector.shape_cast %6 : vector<32x8x32xf32> to vector<256x32xf32>
    %c0_7 = arith.constant 0 : index
    %c0_8 = arith.constant 0 : index
    %8 = vector.load %arg4[%c0_7, %c0_8] : memref<32x64xf32, #tpu.memory_space<vmem>>, vector<32x64xf32>
    %cst = arith.constant dense<0.000000e+00> : vector<256x64xf32>
    %9 = tpu.matmul %5, %8, %cst {dimension_numbers = #tpu.dot_dimension_numbers<[1], [0], [0], [1], [0, 0, 1, 1], [], []>} : vector<256x32xf32>, vector<32x64xf32>, vector<256x64xf32> -> vector<256x64xf32>
    %c0_9 = arith.constant 0 : index
    %c0_10 = arith.constant 0 : index
    %10 = vector.load %arg5[%c0_9, %c0_10] : memref<32x32xf32, #tpu.memory_space<vmem>>, vector<32x32xf32>
    %cst_11 = arith.constant dense<0.000000e+00> : vector<256x32xf32>
    %11 = tpu.matmul %7, %10, %cst_11 {dimension_numbers = #tpu.dot_dimension_numbers<[1], [0], [0], [1], [0, 0, 1, 1], [], []>} : vector<256x32xf32>, vector<32x32xf32>, vector<256x32xf32> -> vector<256x32xf32>
    %12 = vector.shape_cast %9 : vector<256x64xf32> to vector<32x8x64xf32>
    %13 = vector.shape_cast %11 : vector<256x32xf32> to vector<32x8x32xf32>
    %14 = vector.extract_strided_slice %12 {offsets = [0, 0, 0], sizes = [32, 8, 8], strides = [1, 1, 1]} : vector<32x8x64xf32> to vector<32x8x8xf32>
    %15 = vector.extract_strided_slice %12 {offsets = [0, 0, 32], sizes = [32, 8, 8], strides = [1, 1, 1]} : vector<32x8x64xf32> to vector<32x8x8xf32>
    %16 = vector.extract_strided_slice %13 {offsets = [0, 0, 0], sizes = [32, 8, 8], strides = [1, 1, 1]} : vector<32x8x32xf32> to vector<32x8x8xf32>
    "tpu.trace_start"() <{level = 10 : i32, message = "ntd,nsd->nts"}> : () -> ()
    %cst_12 = arith.constant dense<0.000000e+00> : vector<32x8x8xf32>
    %17 = tpu.matmul %14, %16, %cst_12 {dimension_numbers = #tpu.dot_dimension_numbers<[2], [2], [1], [1], [0, 0, 0, 1, 1, 1], [0], [0]>} : vector<32x8x8xf32>, vector<32x8x8xf32>, vector<32x8x8xf32> -> vector<32x8x8xf32>
    "tpu.trace_stop"() : () -> ()
    %cst_13 = arith.constant 0.353553385 : f32
    %18 = vector.broadcast %cst_13 : f32 to vector<32x8x8xf32>
    %19 = arith.mulf %17, %18 : vector<32x8x8xf32>
    %cst_14 = arith.constant dense<0xFF800000> : vector<32x8xf32>
    %20 = vector.multi_reduction <maximumf>, %19, %cst_14 [2] : vector<32x8x8xf32> to vector<32x8xf32>
    %21 = vector.shape_cast %20 : vector<32x8xf32> to vector<32x8x1xf32>
    %22 = vector.broadcast %21 : vector<32x8x1xf32> to vector<32x8x8xf32>
    %23 = arith.subf %19, %22 : vector<32x8x8xf32>
    %24 = math.exp %23 : vector<32x8x8xf32>
    %cst_15 = arith.constant dense<0.000000e+00> : vector<32x8xf32>
    %25 = vector.multi_reduction <add>, %24, %cst_15 [2] : vector<32x8x8xf32> to vector<32x8xf32>
    %26 = vector.shape_cast %25 : vector<32x8xf32> to vector<32x8x1xf32>
    %27 = tpu.reciprocal %26 {approx = true} : vector<32x8x1xf32> -> vector<32x8x1xf32>
    %28 = vector.broadcast %27 : vector<32x8x1xf32> to vector<32x8x8xf32>
    %29 = arith.mulf %24, %28 : vector<32x8x8xf32>
    %c0_16 = arith.constant 0 : index
    %c0_17 = arith.constant 0 : index
    %c0_18 = arith.constant 0 : index
    %30 = vector.load %arg9[%c0_16, %c0_17, %c0_18] : memref<32x8x32xf32, #tpu.memory_space<vmem>>, vector<32x8x8xf32>
    tpu.vector_store %arg9[%c0_16, %c0_17, %c0_18], %29 {strides = array<i32>} : memref<32x8x32xf32, #tpu.memory_space<vmem>>, vector<32x8x8xf32>,
    "tpu.trace_start"() <{level = 10 : i32, message = "nts,nsd->ntd"}> : () -> ()
    %cst_19 = arith.constant dense<0.000000e+00> : vector<32x8x8xf32>
    %31 = tpu.matmul %29, %15, %cst_19 {dimension_numbers = #tpu.dot_dimension_numbers<[2], [1], [1], [2], [0, 0, 0, 1, 1, 2], [0], [0]>} : vector<32x8x8xf32>, vector<32x8x8xf32>, vector<32x8x8xf32> -> vector<32x8x8xf32>
    "tpu.trace_stop"() : () -> ()
    %c0_20 = arith.constant 0 : index
    %c0_21 = arith.constant 0 : index
    %c0_22 = arith.constant 0 : index
    %32 = vector.load %arg10[%c0_20, %c0_21, %c0_22] : memref<32x8x32xf32, #tpu.memory_space<vmem>>, vector<32x8x8xf32>
    tpu.vector_store %arg10[%c0_20, %c0_21, %c0_22], %31 {strides = array<i32>} : memref<32x8x32xf32, #tpu.memory_space<vmem>>, vector<32x8x8xf32>,
    %33 = vector.extract_strided_slice %12 {offsets = [0, 0, 8], sizes = [32, 8, 8], strides = [1, 1, 1]} : vector<32x8x64xf32> to vector<32x8x8xf32>
    %34 = vector.extract_strided_slice %12 {offsets = [0, 0, 40], sizes = [32, 8, 8], strides = [1, 1, 1]} : vector<32x8x64xf32> to vector<32x8x8xf32>
    %35 = vector.extract_strided_slice %13 {offsets = [0, 0, 8], sizes = [32, 8, 8], strides = [1, 1, 1]} : vector<32x8x32xf32> to vector<32x8x8xf32>
    "tpu.trace_start"() <{level = 10 : i32, message = "ntd,nsd->nts"}> : () -> ()
    %cst_23 = arith.constant dense<0.000000e+00> : vector<32x8x8xf32>
    %36 = tpu.matmul %33, %35, %cst_23 {dimension_numbers = #tpu.dot_dimension_numbers<[2], [2], [1], [1], [0, 0, 0, 1, 1, 1], [0], [0]>} : vector<32x8x8xf32>, vector<32x8x8xf32>, vector<32x8x8xf32> -> vector<32x8x8xf32>
    "tpu.trace_stop"() : () -> ()
    %cst_24 = arith.constant 0.353553385 : f32
    %37 = vector.broadcast %cst_24 : f32 to vector<32x8x8xf32>
    %38 = arith.mulf %36, %37 : vector<32x8x8xf32>
    %cst_25 = arith.constant dense<0xFF800000> : vector<32x8xf32>
    %39 = vector.multi_reduction <maximumf>, %38, %cst_25 [2] : vector<32x8x8xf32> to vector<32x8xf32>
    %40 = vector.shape_cast %39 : vector<32x8xf32> to vector<32x8x1xf32>
    %41 = vector.broadcast %40 : vector<32x8x1xf32> to vector<32x8x8xf32>
    %42 = arith.subf %38, %41 : vector<32x8x8xf32>
    %43 = math.exp %42 : vector<32x8x8xf32>
    %cst_26 = arith.constant dense<0.000000e+00> : vector<32x8xf32>
    %44 = vector.multi_reduction <add>, %43, %cst_26 [2] : vector<32x8x8xf32> to vector<32x8xf32>
    %45 = vector.shape_cast %44 : vector<32x8xf32> to vector<32x8x1xf32>
    %46 = tpu.reciprocal %45 {approx = true} : vector<32x8x1xf32> -> vector<32x8x1xf32>
    %47 = vector.broadcast %46 : vector<32x8x1xf32> to vector<32x8x8xf32>
    %48 = arith.mulf %43, %47 : vector<32x8x8xf32>
    %c0_27 = arith.constant 0 : index
    %c0_28 = arith.constant 0 : index
    %c8 = arith.constant 8 : index
    %49 = vector.load %arg9[%c0_27, %c0_28, %c8] : memref<32x8x32xf32, #tpu.memory_space<vmem>>, vector<32x8x8xf32>
    tpu.vector_store %arg9[%c0_27, %c0_28, %c8], %48 {strides = array<i32>} : memref<32x8x32xf32, #tpu.memory_space<vmem>>, vector<32x8x8xf32>,
    "tpu.trace_start"() <{level = 10 : i32, message = "nts,nsd->ntd"}> : () -> ()
    %cst_29 = arith.constant dense<0.000000e+00> : vector<32x8x8xf32>
    %50 = tpu.matmul %48, %34, %cst_29 {dimension_numbers = #tpu.dot_dimension_numbers<[2], [1], [1], [2], [0, 0, 0, 1, 1, 2], [0], [0]>} : vector<32x8x8xf32>, vector<32x8x8xf32>, vector<32x8x8xf32> -> vector<32x8x8xf32>
    "tpu.trace_stop"() : () -> ()
    %c0_30 = arith.constant 0 : index
    %c0_31 = arith.constant 0 : index
    %c8_32 = arith.constant 8 : index
    %51 = vector.load %arg10[%c0_30, %c0_31, %c8_32] : memref<32x8x32xf32, #tpu.memory_space<vmem>>, vector<32x8x8xf32>
    tpu.vector_store %arg10[%c0_30, %c0_31, %c8_32], %50 {strides = array<i32>} : memref<32x8x32xf32, #tpu.memory_space<vmem>>, vector<32x8x8xf32>,
    %52 = vector.extract_strided_slice %12 {offsets = [0, 0, 16], sizes = [32, 8, 8], strides = [1, 1, 1]} : vector<32x8x64xf32> to vector<32x8x8xf32>
    %53 = vector.extract_strided_slice %12 {offsets = [0, 0, 48], sizes = [32, 8, 8], strides = [1, 1, 1]} : vector<32x8x64xf32> to vector<32x8x8xf32>
    %54 = vector.extract_strided_slice %13 {offsets = [0, 0, 16], sizes = [32, 8, 8], strides = [1, 1, 1]} : vector<32x8x32xf32> to vector<32x8x8xf32>
    "tpu.trace_start"() <{level = 10 : i32, message = "ntd,nsd->nts"}> : () -> ()
    %cst_33 = arith.constant dense<0.000000e+00> : vector<32x8x8xf32>
    %55 = tpu.matmul %52, %54, %cst_33 {dimension_numbers = #tpu.dot_dimension_numbers<[2], [2], [1], [1], [0, 0, 0, 1, 1, 1], [0], [0]>} : vector<32x8x8xf32>, vector<32x8x8xf32>, vector<32x8x8xf32> -> vector<32x8x8xf32>
    "tpu.trace_stop"() : () -> ()
    %cst_34 = arith.constant 0.353553385 : f32
    %56 = vector.broadcast %cst_34 : f32 to vector<32x8x8xf32>
    %57 = arith.mulf %55, %56 : vector<32x8x8xf32>
    %cst_35 = arith.constant dense<0xFF800000> : vector<32x8xf32>
    %58 = vector.multi_reduction <maximumf>, %57, %cst_35 [2] : vector<32x8x8xf32> to vector<32x8xf32>
    %59 = vector.shape_cast %58 : vector<32x8xf32> to vector<32x8x1xf32>
    %60 = vector.broadcast %59 : vector<32x8x1xf32> to vector<32x8x8xf32>
    %61 = arith.subf %57, %60 : vector<32x8x8xf32>
    %62 = math.exp %61 : vector<32x8x8xf32>
    %cst_36 = arith.constant dense<0.000000e+00> : vector<32x8xf32>
    %63 = vector.multi_reduction <add>, %62, %cst_36 [2] : vector<32x8x8xf32> to vector<32x8xf32>
    %64 = vector.shape_cast %63 : vector<32x8xf32> to vector<32x8x1xf32>
    %65 = tpu.reciprocal %64 {approx = true} : vector<32x8x1xf32> -> vector<32x8x1xf32>
    %66 = vector.broadcast %65 : vector<32x8x1xf32> to vector<32x8x8xf32>
    %67 = arith.mulf %62, %66 : vector<32x8x8xf32>
    %c0_37 = arith.constant 0 : index
    %c0_38 = arith.constant 0 : index
    %c16 = arith.constant 16 : index
    %68 = vector.load %arg9[%c0_37, %c0_38, %c16] : memref<32x8x32xf32, #tpu.memory_space<vmem>>, vector<32x8x8xf32>
    tpu.vector_store %arg9[%c0_37, %c0_38, %c16], %67 {strides = array<i32>} : memref<32x8x32xf32, #tpu.memory_space<vmem>>, vector<32x8x8xf32>,
    "tpu.trace_start"() <{level = 10 : i32, message = "nts,nsd->ntd"}> : () -> ()
    %cst_39 = arith.constant dense<0.000000e+00> : vector<32x8x8xf32>
    %69 = tpu.matmul %67, %53, %cst_39 {dimension_numbers = #tpu.dot_dimension_numbers<[2], [1], [1], [2], [0, 0, 0, 1, 1, 2], [0], [0]>} : vector<32x8x8xf32>, vector<32x8x8xf32>, vector<32x8x8xf32> -> vector<32x8x8xf32>
    "tpu.trace_stop"() : () -> ()
    %c0_40 = arith.constant 0 : index
    %c0_41 = arith.constant 0 : index
    %c16_42 = arith.constant 16 : index
    %70 = vector.load %arg10[%c0_40, %c0_41, %c16_42] : memref<32x8x32xf32, #tpu.memory_space<vmem>>, vector<32x8x8xf32>
    tpu.vector_store %arg10[%c0_40, %c0_41, %c16_42], %69 {strides = array<i32>} : memref<32x8x32xf32, #tpu.memory_space<vmem>>, vector<32x8x8xf32>,
    %71 = vector.extract_strided_slice %12 {offsets = [0, 0, 24], sizes = [32, 8, 8], strides = [1, 1, 1]} : vector<32x8x64xf32> to vector<32x8x8xf32>
    %72 = vector.extract_strided_slice %12 {offsets = [0, 0, 56], sizes = [32, 8, 8], strides = [1, 1, 1]} : vector<32x8x64xf32> to vector<32x8x8xf32>
    %73 = vector.extract_strided_slice %13 {offsets = [0, 0, 24], sizes = [32, 8, 8], strides = [1, 1, 1]} : vector<32x8x32xf32> to vector<32x8x8xf32>
    "tpu.trace_start"() <{level = 10 : i32, message = "ntd,nsd->nts"}> : () -> ()
    %cst_43 = arith.constant dense<0.000000e+00> : vector<32x8x8xf32>
    %74 = tpu.matmul %71, %73, %cst_43 {dimension_numbers = #tpu.dot_dimension_numbers<[2], [2], [1], [1], [0, 0, 0, 1, 1, 1], [0], [0]>} : vector<32x8x8xf32>, vector<32x8x8xf32>, vector<32x8x8xf32> -> vector<32x8x8xf32>
    "tpu.trace_stop"() : () -> ()
    %cst_44 = arith.constant 0.353553385 : f32
    %75 = vector.broadcast %cst_44 : f32 to vector<32x8x8xf32>
    %76 = arith.mulf %74, %75 : vector<32x8x8xf32>
    %cst_45 = arith.constant dense<0xFF800000> : vector<32x8xf32>
    %77 = vector.multi_reduction <maximumf>, %76, %cst_45 [2] : vector<32x8x8xf32> to vector<32x8xf32>
    %78 = vector.shape_cast %77 : vector<32x8xf32> to vector<32x8x1xf32>
    %79 = vector.broadcast %78 : vector<32x8x1xf32> to vector<32x8x8xf32>
    %80 = arith.subf %76, %79 : vector<32x8x8xf32>
    %81 = math.exp %80 : vector<32x8x8xf32>
    %cst_46 = arith.constant dense<0.000000e+00> : vector<32x8xf32>
    %82 = vector.multi_reduction <add>, %81, %cst_46 [2] : vector<32x8x8xf32> to vector<32x8xf32>
    %83 = vector.shape_cast %82 : vector<32x8xf32> to vector<32x8x1xf32>
    %84 = tpu.reciprocal %83 {approx = true} : vector<32x8x1xf32> -> vector<32x8x1xf32>
    %85 = vector.broadcast %84 : vector<32x8x1xf32> to vector<32x8x8xf32>
    %86 = arith.mulf %81, %85 : vector<32x8x8xf32>
    %c0_47 = arith.constant 0 : index
    %c0_48 = arith.constant 0 : index
    %c24 = arith.constant 24 : index
    %87 = vector.load %arg9[%c0_47, %c0_48, %c24] : memref<32x8x32xf32, #tpu.memory_space<vmem>>, vector<32x8x8xf32>
    tpu.vector_store %arg9[%c0_47, %c0_48, %c24], %86 {strides = array<i32>} : memref<32x8x32xf32, #tpu.memory_space<vmem>>, vector<32x8x8xf32>,
    "tpu.trace_start"() <{level = 10 : i32, message = "nts,nsd->ntd"}> : () -> ()
    %cst_49 = arith.constant dense<0.000000e+00> : vector<32x8x8xf32>
    %88 = tpu.matmul %86, %72, %cst_49 {dimension_numbers = #tpu.dot_dimension_numbers<[2], [1], [1], [2], [0, 0, 0, 1, 1, 2], [0], [0]>} : vector<32x8x8xf32>, vector<32x8x8xf32>, vector<32x8x8xf32> -> vector<32x8x8xf32>
    "tpu.trace_stop"() : () -> ()
    %c0_50 = arith.constant 0 : index
    %c0_51 = arith.constant 0 : index
    %c24_52 = arith.constant 24 : index
    %89 = vector.load %arg10[%c0_50, %c0_51, %c24_52] : memref<32x8x32xf32, #tpu.memory_space<vmem>>, vector<32x8x8xf32>
    tpu.vector_store %arg10[%c0_50, %c0_51, %c24_52], %88 {strides = array<i32>} : memref<32x8x32xf32, #tpu.memory_space<vmem>>, vector<32x8x8xf32>,
    %c0_53 = arith.constant 0 : index
    %c0_54 = arith.constant 0 : index
    %c0_55 = arith.constant 0 : index
    %90 = vector.load %arg10[%c0_53, %c0_54, %c0_55] : memref<32x8x32xf32, #tpu.memory_space<vmem>>, vector<32x8x32xf32>
    %91 = vector.shape_cast %90 : vector<32x8x32xf32> to vector<256x32xf32>
    %c0_56 = arith.constant 0 : index
    %c0_57 = arith.constant 0 : index
    %92 = vector.load %arg6[%c0_56, %c0_57] : memref<32x32xf32, #tpu.memory_space<vmem>>, vector<32x32xf32>
    %cst_58 = arith.constant dense<0.000000e+00> : vector<256x32xf32>
    %93 = tpu.matmul %91, %92, %cst_58 {dimension_numbers = #tpu.dot_dimension_numbers<[1], [0], [0], [1], [0, 0, 1, 1], [], []>} : vector<256x32xf32>, vector<32x32xf32>, vector<256x32xf32> -> vector<256x32xf32>
    %c0_59 = arith.constant 0 : index
    %c0_60 = arith.constant 0 : index
    %94 = vector.load %arg7[%c0_59, %c0_60] : memref<1x32xf32, #tpu.memory_space<vmem>>, vector<1x32xf32>
    %95 = vector.broadcast %94 : vector<1x32xf32> to vector<256x32xf32>
    %96 = arith.addf %93, %95 : vector<256x32xf32>
    %cst_61 = arith.constant 0.000000e+00 : f32
    %97 = vector.broadcast %cst_61 : f32 to vector<256x32xf32>
    %98 = arith.maximumf %96, %97 : vector<256x32xf32>
    %99 = arith.addf %98, %91 : vector<256x32xf32>
    %100 = arith.addf %99, %5 : vector<256x32xf32>
    %101 = vector.shape_cast %100 : vector<256x32xf32> to vector<32x8x32xf32>
    %cst_62 = arith.constant dense<0.000000e+00> : vector<32x32xf32>
    %102 = vector.multi_reduction <add>, %101, %cst_62 [1] : vector<32x8x32xf32> to vector<32x32xf32>
    %cst_63 = arith.constant 8.000000e+00 : f32
    %103 = vector.broadcast %cst_63 : f32 to vector<32x32xf32>
    %104 = arith.divf %102, %103 : vector<32x32xf32>
    %c0_64 = arith.constant 0 : index
    %c0_65 = arith.constant 0 : index
    %105 = vector.load %arg8[%c0_64, %c0_65] : memref<32x32xf32, #tpu.memory_space<vmem>>, vector<32x32xf32>
    tpu.vector_store %arg8[%c0_64, %c0_65], %104 {strides = array<i32>} : memref<32x32xf32, #tpu.memory_space<vmem>>, vector<32x32xf32>,
    return
  }
  func.func @transform_0(%arg0: i32) -> (i32, i32, i32) {
    %c0_i32 = arith.constant 0 : i32
    %c0_i32_0 = arith.constant 0 : i32
    %c0_i32_1 = arith.constant 0 : i32
    return %arg0, %c0_i32, %c0_i32_0 : i32, i32, i32
  }
  func.func @transform_1(%arg0: i32) -> (i32, i32, i32) {
    %c0_i32 = arith.constant 0 : i32
    %c0_i32_0 = arith.constant 0 : i32
    %c0_i32_1 = arith.constant 0 : i32
    return %arg0, %c0_i32, %c0_i32_0 : i32, i32, i32
  }
  func.func @transform_2(%arg0: i32) -> (i32, i32) {
    %c0_i32 = arith.constant 0 : i32
    %c0_i32_0 = arith.constant 0 : i32
    %c0_i32_1 = arith.constant 0 : i32
    return %c0_i32, %c0_i32_0 : i32, i32
  }
  func.func @transform_3(%arg0: i32) -> (i32, i32) {
    %c0_i32 = arith.constant 0 : i32
    %c0_i32_0 = arith.constant 0 : i32
    %c0_i32_1 = arith.constant 0 : i32
    return %c0_i32, %c0_i32_0 : i32, i32
  }
  func.func @transform_4(%arg0: i32) -> (i32, i32) {
    %c0_i32 = arith.constant 0 : i32
    %c0_i32_0 = arith.constant 0 : i32
    %c0_i32_1 = arith.constant 0 : i32
    return %c0_i32, %c0_i32_0 : i32, i32
  }
  func.func @transform_5(%arg0: i32) -> (i32, i32) {
    %c0_i32 = arith.constant 0 : i32
    %c0_i32_0 = arith.constant 0 : i32
    %c0_i32_1 = arith.constant 0 : i32
    return %c0_i32, %c0_i32_0 : i32, i32
  }
  func.func @transform_6(%arg0: i32) -> (i32, i32) {
    %c0_i32 = arith.constant 0 : i32
    %c0_i32_0 = arith.constant 0 : i32
    %c0_i32_1 = arith.constant 0 : i32
    return %c0_i32, %c0_i32_0 : i32, i32
  }
  func.func @transform_7(%arg0: i32) -> (i32, i32) {
    %c0_i32 = arith.constant 0 : i32
    %c0_i32_0 = arith.constant 0 : i32
    return %arg0, %c0_i32 : i32, i32
  }
  func.func @transform_8(%arg0: i32) -> (i32, i32, i32) {
    %c0_i32 = arith.constant 0 : i32
    %c0_i32_0 = arith.constant 0 : i32
    %c0_i32_1 = arith.constant 0 : i32
    return %arg0, %c0_i32, %c0_i32_0 : i32, i32, i32
  }
}

</mosaic_0001>

<bundles_post_ra>
// kernel: tpu_custom_call.1
= control target key start
LH: loop header
LB: loop body
LE: loop exit
PB: predicated region body
PF: predicated region fallthrough
CT: control target
= control target key end

     0   :  { %s12390_s27 = smov 0   ;;  %s17600_s0 = inlined_call_operand.vmem [shape: f32[128,8,32], index: 0, kind: input, shape index: {}]   ;;  %s17601_s1 = inlined_call_operand.vmem [shape: f32[128,8,32], index: 1, kind: input, shape index: {}]   ;;  %s17602_s2 = inlined_call_operand.vmem [shape: f32[8,32], index: 2, kind: input, shape index: {}]   ;;  %s17603_s3 = inlined_call_operand.vmem [shape: f32[32,64], index: 3, kind: input, shape index: {}]   ;;  %s17604_s4 = inlined_call_operand.vmem [shape: f32[32,32], index: 4, kind: input, shape index: {}]   ;;  %s17605_s5 = inlined_call_operand.vmem [shape: f32[32,32], index: 5, kind: input, shape index: {}]   ;;  %s17606_s6 = inlined_call_operand.vmem [shape: f32[1,32], index: 6, kind: input, shape index: {}]   ;;  %s17607_s7 = inlined_call_operand.vmem [shape: f32[128,32], index: 7, kind: output, shape index: {0}]   ;;  %s17608_s8 = inlined_call_operand.vmem [shape: f32[128,8,32], index: 8, kind: output, shape index: {1}]  }
   0x1 LB: > { %s10970_s28 = sadd.s32 4294967295, %s12332_s27   ;;  %p10974_p0 = scmp.ge.s32.totalorder %s12332_s27, 1  ;;  %s12332_s27 = sphi %s12390_s27, %s19_s27  }
   0x2   : > { %p277_p1 = scmp.lt.s32.totalorder %s12332_s27, 5 }
   0x4   : > { %p278_p2 = pnand %p10974_p0, %p277_p1 }
   0x6   : > { %281 = sbr.rel (%p278_p2) target bundleno = 3977 (0xf89), region = 48 }
   0xb   : > { %v445_v0 = vld [vmem:[%s17603_s3 + $0x18] sm:$0xff]  ;;  %v444_v1 = vld [vmem:[%s17603_s3 + $0x10] sm:$0xff]  ;;  %s10975_s11 = sshll.u32 %s10970_s28, 5  ;;  %v443_v2 = vld [vmem:[%s17603_s3 + $0x8] sm:$0xff]  ;;  %vm446_vm0 = vcmask 261120   ;;  %s12334_s13 = smov 120  }
   0xc   : > { %555 = vmatpush.msra.mxu0 %v445_v0  ;;  %11465 = vmatpush.msra.mxu1 %v445_v0  ;;  %p322_p3 = scmp.lt.s32.totalorder %s10975_s11, 127  ;;  %v442_v3 = vld [vmem:[%s17603_s3] sm:$0xff]  ;;  %v659_v13 = vld [vmem:[%s17604_s4 + $0x18] sm:$0xff]  ;;  %v658_v14 = vld [vmem:[%s17604_s4 + $0x10] sm:$0xff]  ;;  %s12335_s14 = smov 112   ;;  %vm869_vm1 = vcmask 64512  }
   0xd   : > { %v12417_v4 = vld [vmem:[%s17602_s2] sm:$0xff]  ;;  %v657_v17 = vld [vmem:[%s17604_s4 + $0x8] sm:$0xff]  ;;  %s12336_s15 = smov 88   ;;  %s12337_s17 = smov 96   ;;  %vm4390_vm2 = vcmask 130112   ;;  %vm6791_vm3 = vcmask 195712  }
   0xe   : > { %556 = vmatpush.msra.mxu0 %v444_v1  ;;  %11466 = vmatpush.msra.mxu1 %v444_v1  ;;  %s18419_s11 = smov (!%p322_p3, %s10975_s11), 127  ;;  %v656_v20 = vld [vmem:[%s17604_s4] sm:$0xff]  ;;  %s12340_s22 = smov 104   ;;  %vm9192_vm4 = vcmask 261312   ;;  %vm10825_vm6 = vcmask 1041409   ;;  %vm10827_vm7 = vcmask 1042434  }
   0xf   : > { %s12412_s16 = sshll.u32 %s18419_s11, 3  ;;  %s12341_s23 = smov 72   ;;  %vm10829_vm8 = vcmask 1043459   ;;  %vm10831_vm9 = vcmask 1044484   ;;  %vm10833_vm10 = vcmask 1045509   ;;  %vm10835_vm11 = vcmask 1046534  }
  0x10   : > { %557 = vmatpush.msra.mxu0 %v443_v2  ;;  %11467 = vmatpush.msra.mxu1 %v443_v2  ;;  %s12423_s21 = scalar_lea.vmem %s17600_s0, %s12412_s16  ;;  %s12514_s12 = scalar_lea.vmem %s17601_s1, %s12412_s16  ;;  %vm10837_vm12 = vcmask 1047559  }
  0x11   : > { %v345_v5 = vld [vmem:[%s12423_s21] sm:$0xff]  ;;  %v371_v6 = vld [vmem:[%s12423_s21 + $0xd0] sm:$0xff]  ;;  %v346_v9 = vld [vmem:[%s12423_s21 + $0x8] sm:$0xff]  ;;  %s13813_s20 = scalar_lea.vmem %s17608_s8, %s12412_s16  ;;  %s12338_s16 = smov 8  }
  0x12   : > { %558 = vmatpush.msra.mxu0 %v442_v3  ;;  %11468 = vmatpush.msra.mxu1 %v442_v3  ;;  %v12428_v7 = vadd.f32 %v12417_v4, %v345_v5  ;;  %v12431_v8 = vadd.f32 %v12417_v4, %v371_v6  ;;  %v372_v10 = vld [vmem:[%s12423_s21 + $0xd8] sm:$0xff]  ;;  %v12440_v11 = vadd.f32 %v12417_v4, %v346_v9  ;;  %v347_v15 = vld [vmem:[%s12423_s21 + $0x10] sm:$0xff]  ;;  %v373_v16 = vld [vmem:[%s12423_s21 + $0xe0] sm:$0xff]  ;;  %s12342_s24 = smov 16   ;;  %s12343_s25 = smov 24  }
  0x13   : > { %v12443_v12 = vadd.f32 %v12417_v4, %v372_v10  ;;  %v12461_v18 = vadd.f32 %v12417_v4, %v347_v15  ;;  %v12464_v19 = vadd.f32 %v12417_v4, %v373_v16  ;;  %v348_v21 = vld [vmem:[%s12423_s21 + $0x18] sm:$0xff]  ;;  %v374_v22 = vld [vmem:[%s12423_s21 + $0xe8] sm:$0xff]  ;;  %v349_v25 = vld [vmem:[%s12423_s21 + $0x20] sm:$0xff] }
  0x14   : > { %17812 = vst [vmem:[#allocation3_spill] sm:$0xff] %v12428_v7  ;;  %10983 = vmatmul.msk.f32.vlgmr.msra.gmra.mxu0 %vm446_vm0, %v12428_v7  ;;  %11009 = vmatmul.msk.f32.vlgmr.msra.gmra.mxu1 %vm446_vm0, %v12431_v8  ;;  %v12476_v23 = vadd.f32 %v12417_v4, %v348_v21  ;;  %v12479_v24 = vadd.f32 %v12417_v4, %v374_v22  ;;  %v375_v26 = vld [vmem:[%s12423_s21 + $0xf0] sm:$0xff]  ;;  %v350_v29 = vld [vmem:[%s12423_s21 + $0x28] sm:$0xff]  ;;  %v376_v30 = vld [vmem:[%s12423_s21 + $0xf8] sm:$0xff] }
  0x15   : > { %17813 = vst [vmem:[#allocation4_spill] sm:$0xff] %v12431_v8  ;;  %768 = vmatpush.msrb.mxu1 %v659_v13  ;;  %v12488_v27 = vadd.f32 %v12417_v4, %v349_v25  ;;  %v12491_v28 = vadd.f32 %v12417_v4, %v375_v26  ;;  %v12500_v31 = vadd.f32 %v12417_v4, %v350_v29  ;;  %v351_v33 = vld [vmem:[%s12423_s21 + $0x30] sm:$0xff]  ;;  %v410_v35 = vld [vmem:[%s12514_s12] sm:$0xff]  ;;  %v352_v36 = vld [vmem:[%s12423_s21 + $0x38] sm:$0xff] }
  0x16   : > { %17814 = vst [vmem:[#allocation5_spill] sm:$0xff] %v12440_v11  ;;  %v12503_v32 = vadd.f32 %v12417_v4, %v376_v30  ;;  %v12517_v34 = vadd.f32 %v12417_v4, %v351_v33  ;;  %v12525_v37 = vadd.f32 %v12417_v4, %v352_v36  ;;  %v411_v38 = vld [vmem:[%s12514_s12 + $0x8] sm:$0xff]  ;;  %v353_v39 = vld [vmem:[%s12423_s21 + $0x40] sm:$0xff]  ;;  %v412_v41 = vld [vmem:[%s12514_s12 + $0x10] sm:$0xff] }
  0x17   : > { %17815 = vst [vmem:[#allocation6_spill] sm:$0xff] %v12443_v12  ;;  %769 = vmatpush.msrb.mxu1 %v658_v14  ;;  %v12533_v40 = vadd.f32 %v12417_v4, %v353_v39  ;;  %v354_v42 = vld [vmem:[%s12423_s21 + $0x48] sm:$0xff]  ;;  %v413_v44 = vld [vmem:[%s12514_s12 + $0x18] sm:$0xff]  ;;  %v355_v45 = vld [vmem:[%s12423_s21 + $0x50] sm:$0xff] }
  0x18   : > { %17816 = vst [vmem:[#allocation7_spill] sm:$0xff] %v12461_v18  ;;  %v12541_v43 = vadd.f32 %v12417_v4, %v354_v42  ;;  %v12549_v46 = vadd.f32 %v12417_v4, %v355_v45  ;;  %v414_v47 = vld [vmem:[%s12514_s12 + $0x20] sm:$0xff]  ;;  %v356_v48 = vld [vmem:[%s12423_s21 + $0x58] sm:$0xff]  ;;  %v415_v50 = vld [vmem:[%s12514_s12 + $0x28] sm:$0xff] }
  0x19   : > { %17817 = vst [vmem:[#allocation8_spill] sm:$0xff] %v12464_v19  ;;  %770 = vmatpush.msrb.mxu1 %v657_v17  ;;  %v12557_v49 = vadd.f32 %v12417_v4, %v356_v48  ;;  %v357_v51 = vld [vmem:[%s12423_s21 + $0x60] sm:$0xff]  ;;  %v416_v53 = vld [vmem:[%s12514_s12 + $0x30] sm:$0xff]  ;;  %v358_v54 = vld [vmem:[%s12423_s21 + $0x68] sm:$0xff] }
  0x1a   : > { %17818 = vst [vmem:[#allocation9_spill] sm:$0xff] %v12476_v23  ;;  %v12565_v52 = vadd.f32 %v12417_v4, %v357_v51  ;;  %v12573_v55 = vadd.f32 %v12417_v4, %v358_v54  ;;  %v417_v56 = vld [vmem:[%s12514_s12 + $0x38] sm:$0xff]  ;;  %v359_v57 = vld [vmem:[%s12423_s21 + $0x70] sm:$0xff]  ;;  %v418_v59 = vld [vmem:[%s12514_s12 + $0x40] sm:$0xff] }
  0x1b   : > { %771 = vmatpush.msrb.mxu1 %v656_v20  ;;  %17819 = vst [vmem:[#allocation10_spill] sm:$0xff] %v12479_v24  ;;  %v12581_v58 = vadd.f32 %v12417_v4, %v359_v57  ;;  %v360_v60 = vld [vmem:[%s12423_s21 + $0x78] sm:$0xff]  ;;  %v419_v62 = vld [vmem:[%s12514_s12 + $0x48] sm:$0xff]  ;;  %v361_v63 = vld [vmem:[%s12423_s21 + $0x80] sm:$0xff] }
  0x1c   : > { %10984 = vmatmul.msk.f32.gmra.mxu0 %vm446_vm0, %v12440_v11  ;;  %11010 = vmatmul.msk.f32.gmra.mxu1 %vm446_vm0, %v12443_v12  ;;  %17820 = vst [vmem:[#allocation11_spill] sm:$0xff] %v12488_v27  ;;  %v12589_v61 = vadd.f32 %v12417_v4, %v360_v60  ;;  %v12597_v0 = vadd.f32 %v12417_v4, %v361_v63  ;;  %v420_v3 = vld [vmem:[%s12514_s12 + $0x50] sm:$0xff]  ;;  %v362_v5 = vld [vmem:[%s12423_s21 + $0x88] sm:$0xff]  ;;  %v421_v13 = vld [vmem:[%s12514_s12 + $0x58] sm:$0xff] }
  0x1d   : > { %17821 = vst [vmem:[#allocation12_spill] sm:$0xff] %v12491_v28  ;;  %v12613_v6 = vadd.f32 %v12417_v4, %v362_v5  ;;  %v363_v16 = vld [vmem:[%s12423_s21 + $0x90] sm:$0xff]  ;;  %v422_v20 = vld [vmem:[%s12514_s12 + $0x60] sm:$0xff]  ;;  %v364_v25 = vld [vmem:[%s12423_s21 + $0x98] sm:$0xff] }
  0x1e   : > { %17822 = vst [vmem:[#allocation13_spill] sm:$0xff] %v12500_v31  ;;  %v12642_v21 = vadd.f32 %v12417_v4, %v363_v16  ;;  %v423_v29 = vld [vmem:[%s12514_s12 + $0x68] sm:$0xff]  ;;  %v12660_v30 = vadd.f32 %v12417_v4, %v364_v25  ;;  %v425_v45 = vld [vmem:[%s12514_s12 + $0x78] sm:$0xff]  ;;  %v367_v60 = vld [vmem:[%s12423_s21 + $0xb0] sm:$0xff] }
  0x1f   : > { %17823 = vst [vmem:[#allocation14_spill] sm:$0xff] %v12503_v32  ;;  %v366_v51 = vld [vmem:[%s12423_s21 + $0xa8] sm:$0xff]  ;;  %v428_v5 = vld [vmem:[%s12514_s12 + $0x90] sm:$0xff] }
  0x20   : > { %17824 = vst [vmem:[#allocation15_spill] sm:$0xff] %v12517_v34  ;;  %v436_v8 = vld [vmem:[%s12514_s12 + $0xd0] sm:$0xff] }
  0x21   : > { %17825 = vst [vmem:[#allocation16_spill] sm:$0xff] %v12525_v37 }
  0x22   : > { %17826 = vst [vmem:[#allocation17_spill] sm:$0xff] %v12533_v40 }
  0x23   : > { %17827 = vst [vmem:[#allocation18_spill] sm:$0xff] %v12541_v43 }
  0x24   : > { %10985 = vmatmul.msk.f32.gmra.mxu0 %vm446_vm0, %v12461_v18  ;;  %11011 = vmatmul.msk.f32.gmra.mxu1 %vm446_vm0, %v12464_v19  ;;  %17828 = vst [vmem:[#allocation19_spill] sm:$0xff] %v12549_v46  ;;  %v439_v18 = vld [vmem:[%s12514_s12 + $0xe8] sm:$0xff] }
  0x25   : > { %17829 = vst [vmem:[#allocation20_spill] sm:$0xff] %v12557_v49 }
  0x26   : > { %17830 = vst [vmem:[#allocation21_spill] sm:$0xff] %v12565_v52 }
  0x27   : > { %17831 = vst [vmem:[#allocation22_spill] sm:$0xff] %v12573_v55 }
  0x28   : > { %17832 = vst [vmem:[#allocation23_spill] sm:$0xff] %v12581_v58 }
  0x29   : > { %17833 = vst [vmem:[#allocation24_spill] sm:$0xff] %v12589_v61 }
  0x2a   : > { %17834 = vst [vmem:[#allocation25_spill] sm:$0xff] %v12597_v0 }
  0x2b   : > { %17837 = vst [vmem:[#allocation28_spill] sm:$0xff] %v12613_v6 }
  0x2c   : > { %10986 = vmatmul.msk.f32.gmra.mxu0 %vm446_vm0, %v12476_v23  ;;  %11012 = vmatmul.msk.f32.gmra.mxu1 %vm446_vm0, %v12479_v24  ;;  %17843 = vst [vmem:[#allocation34_spill] sm:$0xff] %v12642_v21 }
  0x2d   : > { %17846 = vst [vmem:[#allocation37_spill] sm:$0xff] %v12660_v30 }
  0x34   : > { %10987 = vmatmul.msk.f32.gmra.mxu0 %vm446_vm0, %v12488_v27  ;;  %11013 = vmatmul.msk.f32.gmra.mxu1 %vm446_vm0, %v12491_v28  ;;  %v433_v28 = vld [vmem:[%s12514_s12 + $0xb8] sm:$0xff] }
  0x3c   : > { %10988 = vmatmul.msk.f32.gmra.mxu0 %vm446_vm0, %v12500_v31  ;;  %11014 = vmatmul.msk.f32.gmra.mxu1 %vm446_vm0, %v12503_v32 }
  0x44   : > { %10989 = vmatmul.msk.f32.gmra.mxu0 %vm446_vm0, %v12517_v34  ;;  %11015 = vmatmul.msk.f32.vlgmr.msrb.gmra.mxu1 %vm446_vm0, %v410_v35  ;;  %v365_v35 = vld [vmem:[%s12423_s21 + $0xa0] sm:$0xff] }
  0x45   : > { %v12680_v39 = vadd.f32 %v12417_v4, %v365_v35  ;;  %v369_v35 = vld [vmem:[%s12423_s21 + $0xc0] sm:$0xff] }
  0x46   : > { %v438_v34 = vld [vmem:[%s12514_s12 + $0xe0] sm:$0xff] }
  0x47   : > { %17849 = vst [vmem:[#allocation40_spill] sm:$0xff] %v12680_v39 }
  0x4c   : > { %10990 = vmatmul.msk.f32.gmra.mxu0 %vm446_vm0, %v12525_v37  ;;  %11016 = vmatmul.msk.f32.gmra.mxu1 %vm446_vm0, %v411_v38  ;;  %v424_v38 = vld [vmem:[%s12514_s12 + $0x70] sm:$0xff] }
  0x54   : > { %10991 = vmatmul.msk.f32.gmra.mxu0 %vm446_vm0, %v12533_v40  ;;  %11017 = vmatmul.msk.f32.gmra.mxu1 %vm446_vm0, %v412_v41 }
  0x5c   : > { %10992 = vmatmul.msk.f32.gmra.mxu0 %vm446_vm0, %v12541_v43  ;;  %11018 = vmatmul.msk.f32.gmra.mxu1 %vm446_vm0, %v413_v44 }
  0x64   : > { %10993 = vmatmul.msk.f32.gmra.mxu0 %vm446_vm0, %v12549_v46  ;;  %11019 = vmatmul.msk.f32.gmra.mxu1 %vm446_vm0, %v414_v47  ;;  %v435_v46 = vld [vmem:[%s12514_s12 + $0xc8] sm:$0xff] }
  0x6c   : > { %10994 = vmatmul.msk.f32.gmra.mxu0 %vm446_vm0, %v12557_v49  ;;  %11020 = vmatmul.msk.f32.gmra.mxu1 %vm446_vm0, %v415_v50  ;;  %v426_v50 = vld [vmem:[%s12514_s12 + $0x80] sm:$0xff] }
  0x74   : > { %10995 = vmatmul.msk.f32.gmra.mxu0 %vm446_vm0, %v12565_v52  ;;  %11021 = vmatmul.msk.f32.gmra.mxu1 %vm446_vm0, %v416_v53  ;;  %v12718_v53 = vadd.f32 %v12417_v4, %v366_v51  ;;  %v430_v51 = vld [vmem:[%s12514_s12 + $0xa0] sm:$0xff] }
  0x76   : > { %17855 = vst [vmem:[#allocation46_spill] sm:$0xff] %v12718_v53 }
  0x7c   : > { %11022 = vmatmul.msk.f32.gmra.mxu1 %vm446_vm0, %v417_v56  ;;  %10996 = vmatmul.msk.f32.gmra.mxu0 %vm446_vm0, %v12573_v55  ;;  %v370_v55 = vld [vmem:[%s12423_s21 + $0xc8] sm:$0xff] }
  0x7d   : > { %v12853_v32 = vadd.f32 %v12417_v4, %v370_v55 }
  0x7f   : > { %17874 = vst [vmem:[#allocation65_spill] sm:$0xff] %v12853_v32 }
  0x84   : > { %11023 = vmatmul.msk.f32.gmra.mxu1 %vm446_vm0, %v418_v59  ;;  %10997 = vmatmul.msk.f32.gmra.mxu0 %vm446_vm0, %v12581_v58  ;;  %v427_v59 = vld [vmem:[%s12514_s12 + $0x88] sm:$0xff] }
  0x8c   : > { %11024 = vmatmul.msk.f32.gmra.mxu1 %vm446_vm0, %v419_v62  ;;  %10998 = vmatmul.msk.f32.gmra.mxu0 %vm446_vm0, %v12589_v61  ;;  %v12742_v62 = vadd.f32 %v12417_v4, %v367_v60 }
  0x8e   : > { %17859 = vst [vmem:[#allocation50_spill] sm:$0xff] %v12742_v62 }
  0x91   : > { %v12599_v1 = vpop.f32.mrf.mxu0  ;;  %v12601_v2 = vpop.f32.mrf.mxu1 }
  0x92   : > { %17835 = vst [vmem:[#allocation26_spill] sm:$0xff] %v12599_v1  ;;  %2982 = vrot.lane.b32.xlu1 %v12599_v1, %s12334_s13  ;;  %3710 = vrot.lane.b32.xlu0 %v12601_v2, %s12334_s13 }
  0x93   : > { %17836 = vst [vmem:[#allocation27_spill] sm:$0xff] %v12601_v2 }
  0x94   : > { %11025 = vmatmul.msk.f32.gmra.mxu1 %vm446_vm0, %v420_v3  ;;  %10999 = vmatmul.msk.f32.gmra.mxu0 %vm446_vm0, %v12597_v0 }
  0x99   : > { %v12615_v9 = vpop.f32.mrf.mxu0  ;;  %v12617_v10 = vpop.f32.mrf.mxu1 }
  0x9a   : > { %17838 = vst [vmem:[#allocation29_spill] sm:$0xff] %v12615_v9  ;;  %5383 = vrot.lane.b32.xlu1 %v12599_v1, %s12335_s14  ;;  %3010 = vrot.lane.b32.xlu2 %v12615_v9, %s12334_s13  ;;  %v12631_v14 = vpack.i.bf16 %v12617_v10, %v12601_v2  ;;  %v12635_v15 = vpack.i.bf16 %v12615_v9, %v12599_v1 }
  0x9b   : > { %17839 = vst [vmem:[#allocation30_spill] sm:$0xff] %v12617_v10  ;;  %5411 = vrot.lane.b32.xlu0 %v12615_v9, %s12335_s14 }
  0x9c   : > { %11026 = vmatmul.msk.f32.gmra.mxu1 %vm446_vm0, %v421_v13  ;;  %11000 = vmatmul.msk.f32.gmra.mxu0 %vm446_vm0, %v12613_v6  ;;  %17840 = vst [vmem:[#allocation31_spill] sm:$0xff] %v12631_v14  ;;  %v368_v13 = vld [vmem:[%s12423_s21 + $0xb8] sm:$0xff]  ;;  %s12339_s21 = smov 80  }
  0x9d   : > { %17841 = vst [vmem:[#allocation32_spill] sm:$0xff] %v12635_v15  ;;  %v12766_v16 = vadd.f32 %v12417_v4, %v368_v13  ;;  %v437_v6 = vld [vmem:[%s12514_s12 + $0xd8] sm:$0xff] }
  0x9f   : > { %17862 = vst [vmem:[#allocation53_spill] sm:$0xff] %v12766_v16 }
  0xa1   : > { %v12638_v17 = vpop.f32.mrf.mxu1  ;;  %v12644_v22 = vpop.f32.mrf.mxu0 }
  0xa2   : > { %17842 = vst [vmem:[#allocation33_spill] sm:$0xff] %v12638_v17  ;;  %11512 = vrot.lane.b32.xlu2 %v12631_v14, %s12336_s15  ;;  %11497 = vrot.lane.b32.xlu1 %v12635_v15, %s12337_s17 }
  0xa3   : > { %17844 = vst [vmem:[#allocation35_spill] sm:$0xff] %v12644_v22  ;;  %3038 = vrot.lane.b32.xlu0 %v12644_v22, %s12334_s13 }
  0xa4   : > { %11027 = vmatmul.msk.f32.gmra.mxu1 %vm446_vm0, %v422_v20  ;;  %11001 = vmatmul.msk.f32.gmra.mxu0 %vm446_vm0, %v12642_v21 }
  0xa9   : > { %v12656_v26 = vpop.f32.mrf.mxu1  ;;  %v12686_v41 = vpop.f32.mrf.mxu0 }
  0xaa   : > { %17845 = vst [vmem:[#allocation36_spill] sm:$0xff] %v12656_v26  ;;  %3766 = vrot.lane.b32.xlu2 %v12638_v17, %s12334_s13  ;;  %11502 = vrot.lane.b32.xlu1 %v12631_v14, %s12337_s17  ;;  %v12668_v33 = vpack.i.bf16 %v12656_v26, %v12638_v17  ;;  %v12695_v42 = vpack.i.bf16 %v12686_v41, %v12644_v22 }
  0xab   : > { %17850 = vst [vmem:[#allocation41_spill] sm:$0xff] %v12686_v41 }
  0xac   : > { %17847 = vst [vmem:[#allocation38_spill] sm:$0xff] %v12668_v33  ;;  %11028 = vmatmul.msk.f32.gmra.mxu1 %vm446_vm0, %v423_v29  ;;  %11522 = vrot.lane.b32.xlu0 %v12668_v33, %s12337_s17  ;;  %v429_v29 = vld [vmem:[%s12514_s12 + $0x98] sm:$0xff] }
  0xad   : > { %11002 = vmatmul.msk.f32.gmra.mxu0 %vm446_vm0, %v12660_v30  ;;  %17851 = vst [vmem:[#allocation42_spill] sm:$0xff] %v12695_v42 }
  0xb1   : > { %v12676_v36 = vpop.f32.mrf.mxu1  ;;  %v12707_v47 = vpop.f32.mrf.mxu0 }
  0xb2   : > { %17848 = vst [vmem:[#allocation39_spill] sm:$0xff] %v12676_v36  ;;  %3738 = vrot.lane.b32.xlu1 %v12617_v10, %s12334_s13  ;;  %5439 = vrot.lane.b32.xlu2 %v12644_v22, %s12335_s14 }
  0xb3   : > { %17853 = vst [vmem:[#allocation44_spill] sm:$0xff] %v12707_v47 }
  0xb4   : > { %11029 = vmatmul.msk.f32.gmra.mxu1 %vm446_vm0, %v424_v38  ;;  %3794 = vrot.lane.b32.xlu0 %v12656_v26, %s12334_s13  ;;  %v12788_v38 = vadd.f32 %v12417_v4, %v369_v35  ;;  %v432_v35 = vld [vmem:[%s12514_s12 + $0xb0] sm:$0xff] }
  0xb5   : > { %11003 = vmatmul.msk.f32.gmra.mxu0 %vm446_vm0, %v12680_v39 }
  0xb6   : > { %17865 = vst [vmem:[#allocation56_spill] sm:$0xff] %v12788_v38 }
  0xb9   : > { %v12697_v44 = vpop.f32.mrf.mxu1  ;;  %v12727_v54 = vpop.f32.mrf.mxu0 }
  0xba   : > { %17852 = vst [vmem:[#allocation43_spill] sm:$0xff] %v12697_v44  ;;  %11507 = vrot.lane.b32.xlu1 %v12635_v15, %s12336_s15  ;;  %11517 = vrot.lane.b32.xlu2 %v12695_v42, %s12337_s17  ;;  %v12731_v56 = vpack.i.bf16 %v12727_v54, %v12707_v47  ;;  %v12753_v63 = vpack.i.bf16 %v12697_v44, %v12676_v36 }
  0xbb   : > { %17856 = vst [vmem:[#allocation47_spill] sm:$0xff] %v12727_v54 }
  0xbc   : > { %11030 = vmatmul.msk.f32.gmra.mxu1 %vm446_vm0, %v425_v45  ;;  %11532 = vrot.lane.b32.xlu0 %v12668_v33, %s12336_s15  ;;  %17857 = vst [vmem:[#allocation48_spill] sm:$0xff] %v12731_v56 }
  0xbd   : > { %11004 = vmatmul.msk.f32.gmra.mxu0 %vm446_vm0, %v12718_v53  ;;  %17860 = vst [vmem:[#allocation51_spill] sm:$0xff] %v12753_v63  ;;  %v434_v53 = vld [vmem:[%s12514_s12 + $0xc0] sm:$0xff] }
  0xc1   : > { %v12709_v48 = vpop.f32.mrf.mxu1  ;;  %v12768_v20 = vpop.f32.mrf.mxu0 }
  0xc2   : > { %17854 = vst [vmem:[#allocation45_spill] sm:$0xff] %v12709_v48  ;;  %3066 = vrot.lane.b32.xlu1 %v12686_v41, %s12334_s13  ;;  %11527 = vrot.lane.b32.xlu2 %v12695_v42, %s12336_s15 }
  0xc3   : > { %11047 = vmatpush.xpose.msk.msra.mxu1 %vm869_vm1, %v12709_v48  ;;  %17863 = vst [vmem:[#allocation54_spill] sm:$0xff] %v12768_v20 }
  0xc4   : > { %11031 = vmatmul.msk.f32.gmra.mxu1 %vm446_vm0, %v426_v50  ;;  %5495 = vrot.lane.b32.xlu0 %v12707_v47, %s12335_s14 }
  0xc5   : > { %11005 = vmatmul.msk.f32.gmra.mxu0 %vm446_vm0, %v12742_v62 }
  0xc9   : > { %v12733_v57 = vpop.f32.mrf.mxu1  ;;  %v12797_v45 = vpop.f32.mrf.mxu0 }
  0xca   : > { %17858 = vst [vmem:[#allocation49_spill] sm:$0xff] %v12733_v57  ;;  %5467 = vrot.lane.b32.xlu1 %v12686_v41, %s12335_s14  ;;  %3094 = vrot.lane.b32.xlu2 %v12707_v47, %s12334_s13 }
  0xcb   : > { %11049 = vmatpush.xpose.msk.msrb.mxu1 %vm869_vm1, %v12733_v57  ;;  %17866 = vst [vmem:[#allocation57_spill] sm:$0xff] %v12797_v45 }
  0xcc   : > { %11032 = vmatmul.msk.f32.gmra.mxu1 %vm446_vm0, %v427_v59  ;;  %11537 = vrot.lane.b32.xlu0 %v12731_v56, %s12337_s17 }
  0xcd   : > { %11006 = vmatmul.msk.f32.gmra.mxu0 %vm446_vm0, %v12766_v16 }
  0xd1   : > { %v12755_v3 = vpop.f32.mrf.mxu1  ;;  %v12813_v59 = vpop.f32.mrf.mxu0 }
  0xd2   : > { %17861 = vst [vmem:[#allocation52_spill] sm:$0xff] %v12755_v3  ;;  %11051 = vmatpush.xpose.msk.msra.mxu2 %vm869_vm1, %v12755_v3  ;;  %3822 = vrot.lane.b32.xlu1 %v12676_v36, %s12334_s13 }
  0xd3   : > { %11542 = vrot.lane.b32.xlu2 %v12753_v63, %s12337_s17  ;;  %17868 = vst [vmem:[#allocation59_spill] sm:$0xff] %v12813_v59 }
  0xd4   : > { %11033 = vmatmul.msk.f32.gmra.mxu1 %vm446_vm0, %v428_v5  ;;  %3122 = vrot.lane.b32.xlu0 %v12727_v54, %s12334_s13  ;;  %v431_v5 = vld [vmem:[%s12514_s12 + $0xa8] sm:$0xff] }
  0xd5   : > { %11052 = vmatmul.msk.f32.vlgmr.msra.gmra.mxu2 %vm869_vm1, %v12644_v22  ;;  %11007 = vmatmul.msk.f32.gmra.mxu0 %vm446_vm0, %v12788_v38  ;;  %v440_v22 = vld [vmem:[%s12514_s12 + $0xf0] sm:$0xff] }
  0xd9   : > { %v12777_v25 = vpop.f32.mrf.mxu1 }
  0xda   : > { %17864 = vst [vmem:[#allocation55_spill] sm:$0xff] %v12777_v25  ;;  %11053 = vmatpush.xpose.msk.msra.mxu3 %vm869_vm1, %v12777_v25  ;;  %11552 = vrot.lane.b32.xlu1 %v12753_v63, %s12336_s15 }
  0xdb   : > { %3850 = vrot.lane.b32.xlu2 %v12697_v44, %s12334_s13 }
  0xdc   : > { %11034 = vmatmul.msk.f32.gmra.mxu1 %vm446_vm0, %v429_v29  ;;  %11547 = vrot.lane.b32.xlu0 %v12731_v56, %s12336_s15  ;;  %v12833_v29 = vpack.i.bf16 %v12797_v45, %v12768_v20 }
  0xdd   : > { %11054 = vmatmul.msk.f32.vlgmr.msra.gmra.mxu3 %vm869_vm1, %v12686_v41  ;;  %11008 = vmatmul.msk.f32.gmra.mxu0 %vm446_vm0, %v12853_v32 }
  0xde   : > { %17871 = vst [vmem:[#allocation62_spill] sm:$0xff] %v12833_v29 }
  0xe1   : > { %v12799_v50 = vpop.f32.mrf.mxu1 }
  0xe2   : > { %17867 = vst [vmem:[#allocation58_spill] sm:$0xff] %v12799_v50  ;;  %11055 = vmatpush.xpose.msk.msrb.mxu2 %vm869_vm1, %v12799_v50  ;;  %3150 = vrot.lane.b32.xlu1 %v12768_v20, %s12334_s13 }
  0xe3   : > { %5523 = vrot.lane.b32.xlu2 %v12727_v54, %s12335_s14 }
  0xe4   : > { %11035 = vmatmul.msk.f32.gmra.mxu1 %vm446_vm0, %v430_v51  ;;  %2984 = vrot.lane.b32.xlu0 %v12709_v48, %s12334_s13  ;;  %v12836_v51 = vpop.f32.mrf.mxu0 }
  0xe5   : > { %11056 = vmatmul.msk.f32.vlgmr.msrb.gmra.mxu2 %vm869_vm1, %v12707_v47  ;;  %17872 = vst [vmem:[#allocation63_spill] sm:$0xff] %v12836_v51  ;;  %v12899_v39 = vpack.i.bf16 %v12836_v51, %v12813_v59 }
  0xe7   : > { %17882 = vst [vmem:[#allocation73_spill] sm:$0xff] %v12899_v39 }
  0xe9   : > { %v12815_v60 = vpop.f32.mrf.mxu1 }
  0xea   : > { %17869 = vst [vmem:[#allocation60_spill] sm:$0xff] %v12815_v60  ;;  %11057 = vmatpush.xpose.msk.msrb.mxu3 %vm869_vm1, %v12815_v60  ;;  %5551 = vrot.lane.b32.xlu1 %v12768_v20, %s12335_s14 }
  0xeb   : > { %5385 = vrot.lane.b32.xlu2 %v12709_v48, %s12335_s14 }
  0xec   : > { %11036 = vmatmul.msk.f32.gmra.mxu1 %vm446_vm0, %v431_v5  ;;  %5579 = vrot.lane.b32.xlu0 %v12797_v45, %s12335_s14 }
  0xed   : > { %11058 = vmatmul.msk.f32.vlgmr.msrb.gmra.mxu3 %vm869_vm1, %v12727_v54 }
  0xf1   : > { %v12829_v13 = vpop.f32.mrf.mxu1 }
  0xf2   : > { %17870 = vst [vmem:[#allocation61_spill] sm:$0xff] %v12829_v13  ;;  %11059 = vmatpush.xpose.msk.msra.mxu2 %vm869_vm1, %v12829_v13  ;;  %3012 = vrot.lane.b32.xlu1 %v12733_v57, %s12334_s13 }
  0xf3   : > { %11557 = vrot.lane.b32.xlu2 %v12833_v29, %s12337_s17 }
  0xf4   : > { %11037 = vmatmul.msk.f32.gmra.mxu1 %vm446_vm0, %v432_v35  ;;  %v12845_v5 = vpop.permute.xlu2 %3010  ;;  %3206 = vrot.lane.b32.xlu0 %v12813_v59, %s12334_s13  ;;  %v12866_v35 = vpop.f32.mrf.mxu0 }
  0xf5   : > { %17873 = vst [vmem:[#allocation64_spill] sm:$0xff] %v12845_v5  ;;  %11060 = vmatmul.msk.f32.vlgmr.msra.gmra.mxu2 %vm869_vm1, %v12768_v20 }
  0xf6   : > { %17876 = vst [vmem:[#allocation67_spill] sm:$0xff] %v12866_v35 }
  0xf9   : > { %v12857_v62 = vpop.f32.mrf.mxu1 }
  0xfa   : > { %17875 = vst [vmem:[#allocation66_spill] sm:$0xff] %v12857_v62  ;;  %11061 = vmatpush.xpose.msk.msra.mxu3 %vm869_vm1, %v12857_v62  ;;  %11562 = vrot.lane.b32.xlu1 %v12833_v29, %s12336_s15 }
  0xfb   : > { %3178 = vrot.lane.b32.xlu2 %v12797_v45, %s12334_s13 }
  0xfc   : > { %11038 = vmatmul.msk.f32.gmra.mxu1 %vm446_vm0, %v433_v28  ;;  %v12869_v4 = vpop.permute.xlu2 %11512  ;;  %5441 = vrot.lane.b32.xlu0 %v12755_v3, %s12335_s14  ;;  %v12895_v24 = vpop.f32.mrf.mxu0 }
  0xfd   : > { %17877 = vst [vmem:[#allocation68_spill] sm:$0xff] %v12869_v4  ;;  %11062 = vmatmul.msk.f32.vlgmr.msra.gmra.mxu3 %vm869_vm1, %v12797_v45  ;;  %v12925_v43 = vpack.i.bf16 %v12895_v24, %v12866_v35 }
  0xfe   : > { %17881 = vst [vmem:[#allocation72_spill] sm:$0xff] %v12895_v24 }
  0xff   : > { %17888 = vst [vmem:[#allocation79_spill] sm:$0xff] %v12925_v43 }
 0x101   : > { %v12875_v55 = vpop.f32.mrf.mxu1 }
 0x102   : > { %17878 = vst [vmem:[#allocation69_spill] sm:$0xff] %v12875_v55  ;;  %11063 = vmatpush.xpose.msk.msrb.mxu2 %vm869_vm1, %v12875_v55  ;;  %5413 = vrot.lane.b32.xlu1 %v12733_v57, %s12335_s14 }
 0x103   : > { %3040 = vrot.lane.b32.xlu2 %v12755_v3, %s12334_s13 }
 0x104   : > { %11039 = vmatmul.msk.f32.gmra.mxu1 %vm446_vm0, %v434_v53  ;;  %v12885_v28 = vpop.permute.xlu1 %2982  ;;  %v12887_v52 = vpop.permute.xlu2 %3766  ;;  %3068 = vrot.lane.b32.xlu0 %v12777_v25, %s12334_s13 }
 0x105   : > { %17879 = vst [vmem:[#allocation70_spill] sm:$0xff] %v12885_v28  ;;  %11064 = vmatmul.msk.f32.vlgmr.msrb.gmra.mxu2 %vm869_vm1, %v12813_v59  ;;  %v12893_v49 = vpop.permute.xlu0 %3710  ;;  %v12921_v21 = vpop.f32.mrf.mxu0 }
 0x106   : > { %17880 = vst [vmem:[#allocation71_spill] sm:$0xff] %v12887_v52 }
 0x107   : > { %17887 = vst [vmem:[#allocation78_spill] sm:$0xff] %v12921_v21 }
 0x109   : > { %v12901_v53 = vpop.f32.mrf.mxu1 }
 0x10a   : > { %17883 = vst [vmem:[#allocation74_spill] sm:$0xff] %v12901_v53  ;;  %11065 = vmatpush.xpose.msk.msrb.mxu3 %vm869_vm1, %v12901_v53  ;;  %11567 = vrot.lane.b32.xlu1 %v12899_v39, %s12337_s17 }
 0x10b   : > { %5607 = vrot.lane.b32.xlu2 %v12813_v59, %s12335_s14 }
 0x10c   : > { %11040 = vmatmul.msk.f32.gmra.mxu1 %vm446_vm0, %v435_v46  ;;  %v12911_v19 = vpop.permute.xlu1 %5383  ;;  %v12913_v30 = vpop.permute.xlu2 %5439  ;;  %5663 = vrot.lane.b32.xlu0 %v12866_v35, %s12335_s14 }
 0x10d   : > { %17884 = vst [vmem:[#allocation75_spill] sm:$0xff] %v12911_v19  ;;  %11066 = vmatmul.msk.f32.vlgmr.msrb.gmra.mxu3 %vm869_vm1, %v12836_v51  ;;  %v12919_v12 = vpop.permute.xlu0 %5411  ;;  %v12947_v61 = vpop.f32.mrf.mxu0 }
 0x10e   : > { %17885 = vst [vmem:[#allocation76_spill] sm:$0xff] %v12913_v30 }
 0x10f   : > { %17886 = vst [vmem:[#allocation77_spill] sm:$0xff] %v12919_v12 }
 0x110   : > { %17890 = vst [vmem:[#allocation81_spill] sm:$0xff] %v12947_v61 }
 0x111   : > { %v12927_v46 = vpop.f32.mrf.mxu1 }
 0x112   : > { %17889 = vst [vmem:[#allocation80_spill] sm:$0xff] %v12927_v46  ;;  %3234 = vrot.lane.b32.xlu1 %v12836_v51, %s12334_s13  ;;  %11067 = vmatpush.xpose.msk.msra.mxu2 %vm869_vm1, %v12927_v46 }
 0x113   : > { %11572 = vrot.lane.b32.xlu2 %v12899_v39, %s12336_s15 }
 0x114   : > { %11041 = vmatmul.msk.f32.gmra.mxu1 %vm446_vm0, %v436_v8  ;;  %v12937_v40 = vpop.permute.xlu1 %11497  ;;  %v12939_v32 = vpop.permute.xlu2 %11517  ;;  %11577 = vrot.lane.b32.xlu0 %v12925_v43, %s12337_s17 }
 0x115   : > { %v12943_v38 = vpop.permute.xlu0 %3038  ;;  %11068 = vmatmul.msk.f32.vlgmr.msra.gmra.mxu2 %vm869_vm1, %v12866_v35  ;;  %v12972_v31 = vpop.f32.mrf.mxu0 }
 0x116   : > { %17895 = vst [vmem:[#allocation86_spill] sm:$0xff] %v12972_v31 }
 0x119   : > { %v12949_v0 = vpop.f32.mrf.mxu1 }
 0x11a   : > { %17891 = vst [vmem:[#allocation82_spill] sm:$0xff] %v12949_v0  ;;  %5635 = vrot.lane.b32.xlu1 %v12836_v51, %s12335_s14  ;;  %11069 = vmatpush.xpose.msk.msra.mxu3 %vm869_vm1, %v12949_v0 }
 0x11b   : > { %5469 = vrot.lane.b32.xlu2 %v12777_v25, %s12335_s14 }
 0x11c   : > { %11042 = vmatmul.msk.f32.gmra.mxu1 %vm446_vm0, %v437_v6  ;;  %v12959_v8 = vpop.permute.xlu1 %11502  ;;  %v12961_v16 = vpop.permute.xlu2 %11527  ;;  %3290 = vrot.lane.b32.xlu0 %v12895_v24, %s12334_s13 }
 0x11d   : > { %17892 = vst [vmem:[#allocation83_spill] sm:$0xff] %v12959_v8  ;;  %11070 = vmatmul.msk.f32.vlgmr.msra.gmra.mxu3 %vm869_vm1, %v12895_v24 }
 0x11e   : > { %v12967_v58 = vpop.permute.xlu0 %11522 }
 0x11f   : > { %17893 = vst [vmem:[#allocation84_spill] sm:$0xff] %v12967_v58 }
 0x121   : > { %v12969_v37 = vpop.f32.mrf.mxu1 }
 0x122   : > { %17894 = vst [vmem:[#allocation85_spill] sm:$0xff] %v12969_v37  ;;  %3096 = vrot.lane.b32.xlu1 %v12799_v50, %s12334_s13  ;;  %11071 = vmatpush.xpose.msk.msrb.mxu2 %vm869_vm1, %v12969_v37 }
 0x123   : > { %3262 = vrot.lane.b32.xlu2 %v12866_v35, %s12334_s13 }
 0x124   : > { %11043 = vmatmul.msk.f32.gmra.mxu1 %vm446_vm0, %v438_v34  ;;  %v12981_v6 = vpop.permute.xlu1 %3738  ;;  %v12983_v27 = vpop.permute.xlu2 %3094  ;;  %11582 = vrot.lane.b32.xlu0 %v12925_v43, %s12336_s15 }
 0x125   : > { %17896 = vst [vmem:[#allocation87_spill] sm:$0xff] %v12983_v27  ;;  %11072 = vmatmul.msk.f32.vlgmr.msrb.gmra.mxu2 %vm869_vm1, %v12921_v21  ;;  %v13000_v34 = vpop.f32.mrf.mxu0 }
 0x126   : > { %v12989_v23 = vpop.permute.xlu0 %3794  ;;  %17899 = vst [vmem:[#allocation90_spill] sm:$0xff] %v13000_v34 }
 0x127   : > { %17897 = vst [vmem:[#allocation88_spill] sm:$0xff] %v12989_v23 }
 0x129   : > { %v12991_v7 = vpop.f32.mrf.mxu1 }
 0x12a   : > { %17898 = vst [vmem:[#allocation89_spill] sm:$0xff] %v12991_v7  ;;  %5497 = vrot.lane.b32.xlu1 %v12799_v50, %s12335_s14  ;;  %11073 = vmatpush.xpose.msk.msrb.mxu3 %vm869_vm1, %v12991_v7 }
 0x12b   : > { %3124 = vrot.lane.b32.xlu2 %v12815_v60, %s12334_s13 }
 0x12c   : > { %11044 = vmatmul.msk.f32.gmra.mxu1 %vm446_vm0, %v439_v18  ;;  %v13003_v11 = vpop.permute.xlu1 %11507  ;;  %5525 = vrot.lane.b32.xlu0 %v12815_v60, %s12335_s14  ;;  %v441_v60 = vld [vmem:[%s12514_s12 + $0xf8] sm:$0xff] }
 0x12d   : > { %17900 = vst [vmem:[#allocation91_spill] sm:$0xff] %v13003_v11  ;;  %v13007_v12 = vpop.permute.xlu2 %11542  ;;  %11074 = vmatmul.msk.f32.vlgmr.msrb.gmra.mxu3 %vm869_vm1, %v12947_v61  ;;  %v13031_v51 = vpop.f32.mrf.mxu0 }
 0x12e   : > { %17901 = vst [vmem:[#allocation92_spill] sm:$0xff] %v13007_v12  ;;  %v13011_v19 = vpop.permute.xlu0 %11532 }
 0x12f   : > { %17902 = vst [vmem:[#allocation93_spill] sm:$0xff] %v13011_v19 }
 0x130   : > { %17904 = vst [vmem:[#allocation95_spill] sm:$0xff] %v13031_v51 }
 0x131   : > { %v13013_v30 = vpop.f32.mrf.mxu1 }
 0x132   : > { %17903 = vst [vmem:[#allocation94_spill] sm:$0xff] %v13013_v30  ;;  %3318 = vrot.lane.b32.xlu1 %v12921_v21, %s12334_s13  ;;  %11075 = vmatpush.xpose.msk.msra.mxu2 %vm869_vm1, %v13013_v30 }
 0x133   : > { %5691 = vrot.lane.b32.xlu2 %v12895_v24, %s12335_s14 }
 0x134   : > { %11045 = vmatmul.msk.f32.gmra.mxu1 %vm446_vm0, %v440_v22  ;;  %v13023_v18 = vpop.permute.xlu1 %3066  ;;  %3152 = vrot.lane.b32.xlu0 %v12829_v13, %s12334_s13 }
 0x135   : > { %v13027_v19 = vpop.permute.xlu2 %3850  ;;  %11076 = vmatmul.msk.f32.vlgmr.msra.gmra.mxu2 %vm869_vm1, %v12972_v31  ;;  %v13053_v47 = vpop.f32.mrf.mxu0 }
 0x136   : > { %v13033_v35 = vpop.permute.xlu0 %5495  ;;  %17909 = vst [vmem:[#allocation100_spill] sm:$0xff] %v13053_v47  ;;  %v13129_v45 = vpack.i.bf16 %v13053_v47, %v13031_v51 }
 0x137   : > { %17905 = vst [vmem:[#allocation96_spill] sm:$0xff] %v13033_v35 }
 0x138   : > { %17922 = vst [vmem:[#allocation113_spill] sm:$0xff] %v13129_v45 }
 0x139   : > { %v13035_v59 = vpop.f32.mrf.mxu1 }
 0x13a   : > { %17906 = vst [vmem:[#allocation97_spill] sm:$0xff] %v13035_v59  ;;  %5719 = vrot.lane.b32.xlu1 %v12921_v21, %s12335_s14  ;;  %11077 = vmatpush.xpose.msk.msra.mxu3 %vm869_vm1, %v13035_v59 }
 0x13b   : > { %5553 = vrot.lane.b32.xlu2 %v12829_v13, %s12335_s14  ;;  %v13061_v13 = vpack.i.bf16 %v12947_v61, %v12921_v21 }
 0x13c   : > { %11046 = vmatmul.msk.f32.gmra.mxu1 %vm446_vm0, %v441_v60  ;;  %v13045_v22 = vpop.permute.xlu1 %5467  ;;  %5747 = vrot.lane.b32.xlu0 %v12947_v61, %s12335_s14 }
 0x13d   : > { %17907 = vst [vmem:[#allocation98_spill] sm:$0xff] %v13045_v22  ;;  %v13049_v35 = vpop.permute.xlu2 %5523  ;;  %11078 = vmatmul.msk.f32.vlgmr.msra.gmra.mxu3 %vm869_vm1, %v13000_v34  ;;  %v13081_v48 = vpop.f32.mrf.mxu0 }
 0x13e   : > { %17908 = vst [vmem:[#allocation99_spill] sm:$0xff] %v13049_v35  ;;  %v13055_v57 = vpop.permute.xlu0 %11537 }
 0x13f   : > { %17911 = vst [vmem:[#allocation102_spill] sm:$0xff] %v13061_v13 }
 0x140   : > { %17914 = vst [vmem:[#allocation105_spill] sm:$0xff] %v13081_v48 }
 0x141   : > { %v13057_v24 = vpop.f32.mrf.mxu1 }
 0x142   : > { %17910 = vst [vmem:[#allocation101_spill] sm:$0xff] %v13057_v24  ;;  %3180 = vrot.lane.b32.xlu1 %v12857_v62, %s12334_s13  ;;  %11079 = vmatpush.xpose.msk.msrb.mxu2 %vm869_vm1, %v13057_v24 }
 0x143   : > { %11587 = vrot.lane.b32.xlu2 %v13061_v13, %s12337_s17 }
 0x144   : > { %11048 = vmatmul.msk.f32.vlgmr.msra.gmra.mxu1 %vm869_vm1, %v12599_v1  ;;  %v13071_v60 = vpop.permute.xlu1 %3822  ;;  %3374 = vrot.lane.b32.xlu0 %v12972_v31, %s12334_s13 }
 0x145   : > { %v13075_v35 = vpop.permute.xlu2 %5385  ;;  %11080 = vmatmul.msk.f32.vlgmr.msrb.gmra.mxu2 %vm869_vm1, %v13031_v51  ;;  %v13105_v23 = vpop.f32.mrf.mxu0 }
 0x146   : > { %17912 = vst [vmem:[#allocation103_spill] sm:$0xff] %v13075_v35  ;;  %v13079_v22 = vpop.permute.xlu0 %3122  ;;  %v13253_v5 = vpack.i.bf16 %v13105_v23, %v13081_v48 }
 0x147   : > { %17913 = vst [vmem:[#allocation104_spill] sm:$0xff] %v13079_v22 }
 0x148   : > { %17919 = vst [vmem:[#allocation110_spill] sm:$0xff] %v13105_v23 }
 0x149   : > { %v13083_v21 = vpop.f32.mrf.mxu1  ;;  %17944 = vst [vmem:[#allocation135_spill] sm:$0xff] %v13253_v5 }
 0x14a   : > { %17915 = vst [vmem:[#allocation106_spill] sm:$0xff] %v13083_v21  ;;  %11592 = vrot.lane.b32.xlu1 %v13061_v13, %s12336_s15  ;;  %11081 = vmatpush.xpose.msk.msrb.mxu3 %vm869_vm1, %v13083_v21 }
 0x14b   : > { %3346 = vrot.lane.b32.xlu2 %v12947_v61, %s12334_s13 }
 0x14c   : > { %11050 = vmatmul.msk.f32.vlgmr.msrb.gmra.mxu1 %vm869_vm1, %v12615_v9  ;;  %v13093_v35 = vpop.permute.xlu1 %11552  ;;  %5609 = vrot.lane.b32.xlu0 %v12875_v55, %s12335_s14 }
 0x14d   : > { %17916 = vst [vmem:[#allocation107_spill] sm:$0xff] %v13093_v35  ;;  %v13097_v20 = vpop.permute.xlu2 %11557  ;;  %11082 = vmatmul.msk.f32.vlgmr.msrb.gmra.mxu3 %vm869_vm1, %v13053_v47  ;;  %v13139_v52 = vpop.f32.mrf.mxu0 }
 0x14e   : > { %v13101_v25 = vpop.permute.xlu0 %11547  ;;  %17923 = vst [vmem:[#allocation114_spill] sm:$0xff] %v13139_v52 }
 0x14f   : > { %17917 = vst [vmem:[#allocation108_spill] sm:$0xff] %v13101_v25 }
 0x151   : > { %v13103_v33 = vpop.f32.mrf.mxu1 }
 0x152   : > { %17918 = vst [vmem:[#allocation109_spill] sm:$0xff] %v13103_v33  ;;  %5581 = vrot.lane.b32.xlu1 %v12857_v62, %s12335_s14  ;;  %11083 = vmatpush.xpose.msk.msra.mxu2 %vm869_vm1, %v13103_v33  ;;  %v13125_v62 = vpack.i.bf16 %v13000_v34, %v12972_v31 }
 0x153   : > { %3208 = vrot.lane.b32.xlu2 %v12875_v55, %s12334_s13 }
 0x154   : > { %v13113_v35 = vpop.permute.xlu1 %3150  ;;  %3236 = vrot.lane.b32.xlu0 %v12901_v53, %s12334_s13  ;;  %17921 = vst [vmem:[#allocation112_spill] sm:$0xff] %v13125_v62 }
 0x155   : > { %v13117_v61 = vpop.permute.xlu2 %3178  ;;  %11084 = vmatmul.msk.f32.vlgmr.msra.gmra.mxu2 %vm869_vm1, %v13081_v48 }
 0x156   : > { %v13121_v3 = vpop.permute.xlu0 %2984 }
 0x157   : > { %17920 = vst [vmem:[#allocation111_spill] sm:$0xff] %v13121_v3 }
 0x159   : > { %v13131_v55 = vpop.f32.mrf.mxu1 }
 0x15a   : > { %11597 = vrot.lane.b32.xlu1 %v13125_v62, %s12337_s17  ;;  %11085 = vmatpush.xpose.msk.msra.mxu3 %vm869_vm1, %v13131_v55 }
 0x15b   : > { %5775 = vrot.lane.b32.xlu2 %v12972_v31, %s12335_s14  ;;  %v13160_v31 = vpop.f32.mrf.mxu0 }
 0x15c   : > { %v13141_v25 = vpop.permute.xlu1 %5551  ;;  %11607 = vrot.lane.b32.xlu0 %v13129_v45, %s12337_s17  ;;  %17927 = vst [vmem:[#allocation118_spill] sm:$0xff] %v13160_v31 }
 0x15d   : > { %17924 = vst [vmem:[#allocation115_spill] sm:$0xff] %v13141_v25  ;;  %v3041_v50 = vpop.permute.xlu2 %3040  ;;  %11086 = vmatmul.msk.f32.vlgmr.msra.gmra.mxu3 %vm869_vm1, %v13105_v23 }
 0x15e   : > { %11147 = vmatpush.xpose.msk.msrb.mxu0 %vm869_vm1, %v3041_v50  ;;  %v13148_v54 = vpop.permute.xlu0 %5579 }
 0x15f   : > { %17925 = vst [vmem:[#allocation116_spill] sm:$0xff] %v13148_v54 }
 0x161   : > { %11148 = vmatmul.msk.f32.vlgmr.msrb.gmra.mxu0 %vm869_vm1, %v12943_v38  ;;  %v13152_v11 = vpop.f32.mrf.mxu1 }
 0x162   : > { %17926 = vst [vmem:[#allocation117_spill] sm:$0xff] %v13152_v11  ;;  %3402 = vrot.lane.b32.xlu1 %v13000_v34, %s12334_s13  ;;  %11087 = vmatpush.xpose.msk.msrb.mxu2 %vm869_vm1, %v13152_v11 }
 0x163   : > { %11602 = vrot.lane.b32.xlu2 %v13125_v62, %s12336_s15  ;;  %v13188_v1 = vpop.f32.mrf.mxu0 }
 0x164   : > { %v13162_v25 = vpop.permute.xlu1 %3012  ;;  %3458 = vrot.lane.b32.xlu0 %v13053_v47, %s12334_s13  ;;  %17932 = vst [vmem:[#allocation123_spill] sm:$0xff] %v13188_v1 }
 0x165   : > { %17928 = vst [vmem:[#allocation119_spill] sm:$0xff] %v13162_v25  ;;  %v13166_v50 = vpop.permute.xlu2 %5607  ;;  %11088 = vmatmul.msk.f32.vlgmr.msrb.gmra.mxu2 %vm869_vm1, %v13139_v52 }
 0x166   : > { %17929 = vst [vmem:[#allocation120_spill] sm:$0xff] %v13166_v50  ;;  %v13170_v38 = vpop.permute.xlu0 %3206 }
 0x167   : > { %17930 = vst [vmem:[#allocation121_spill] sm:$0xff] %v13170_v38 }
 0x169   : > { %v13172_v54 = vpop.f32.mrf.mxu1 }
 0x16a   : > { %3264 = vrot.lane.b32.xlu1 %v12927_v46, %s12334_s13  ;;  %11089 = vmatpush.xpose.msk.msrb.mxu3 %vm869_vm1, %v13172_v54 }
 0x16b   : > { %5637 = vrot.lane.b32.xlu2 %v12901_v53, %s12335_s14 }
 0x16c   : > { %v13180_v4 = vpop.permute.xlu1 %11562  ;;  %11612 = vrot.lane.b32.xlu0 %v13129_v45, %s12336_s15 }
 0x16d   : > { %v13184_v50 = vpop.permute.xlu2 %11572  ;;  %11090 = vmatmul.msk.f32.vlgmr.msrb.gmra.mxu3 %vm869_vm1, %v13160_v31 }
 0x16e   : > { %17931 = vst [vmem:[#allocation122_spill] sm:$0xff] %v13184_v50  ;;  %v13190_v41 = vpop.permute.xlu0 %5441 }
 0x16f   : > { %17933 = vst [vmem:[#allocation124_spill] sm:$0xff] %v13190_v41 }
 0x171   : > { %v13192_v63 = vpop.f32.mrf.mxu1 }
 0x172   : > { %17934 = vst [vmem:[#allocation125_spill] sm:$0xff] %v13192_v63  ;;  %5665 = vrot.lane.b32.xlu1 %v12927_v46, %s12335_s14  ;;  %11091 = vmatpush.xpose.msk.msra.mxu2 %vm869_vm1, %v13192_v63  ;;  %v13209_v46 = vpop.f32.mrf.mxu0 }
 0x173   : > { %3430 = vrot.lane.b32.xlu2 %v13031_v51, %s12334_s13  ;;  %17937 = vst [vmem:[#allocation128_spill] sm:$0xff] %v13209_v46  ;;  %v13299_v25 = vpack.i.bf16 %v13209_v46, %v13188_v1 }
 0x174   : > { %v13200_v53 = vpop.permute.xlu1 %5413  ;;  %5693 = vrot.lane.b32.xlu0 %v12949_v0, %s12335_s14 }
 0x175   : > { %17935 = vst [vmem:[#allocation126_spill] sm:$0xff] %v13200_v53  ;;  %v13204_v50 = vpop.permute.xlu2 %5469  ;;  %11092 = vmatmul.msk.f32.vlgmr.msra.gmra.mxu2 %vm869_vm1, %v13188_v1 }
 0x176   : > { %17936 = vst [vmem:[#allocation127_spill] sm:$0xff] %v13204_v50  ;;  %v3069_v41 = vpop.permute.xlu0 %3068 }
 0x177   : > { %11149 = vmatpush.xpose.msk.msra.mxu1 %vm869_vm1, %v3069_v41  ;;  %17953 = vst [vmem:[#allocation144_spill] sm:$0xff] %v13299_v25 }
 0x179   : > { %v13211_v9 = vpop.f32.mrf.mxu1 }
 0x17a   : > { %11150 = vmatmul.msk.f32.vlgmr.msra.gmra.mxu1 %vm869_vm1, %v13023_v18  ;;  %3486 = vrot.lane.b32.xlu1 %v13081_v48, %s12334_s13  ;;  %v13233_v22 = vpop.f32.mrf.mxu0 }
 0x17b   : > { %3292 = vrot.lane.b32.xlu2 %v12949_v0, %s12334_s13  ;;  %11093 = vmatpush.xpose.msk.msra.mxu3 %vm869_vm1, %v13211_v9  ;;  %17940 = vst [vmem:[#allocation131_spill] sm:$0xff] %v13233_v22 }
 0x17c   : > { %v13221_v53 = vpop.permute.xlu1 %11567  ;;  %3320 = vrot.lane.b32.xlu0 %v12969_v37, %s12334_s13 }
 0x17d   : > { %v13225_v41 = vpop.permute.xlu2 %3262 }
 0x17e   : > { %v13227_v50 = vpop.permute.xlu0 %5663  ;;  %11094 = vmatmul.msk.f32.vlgmr.msra.gmra.mxu3 %vm869_vm1, %v13209_v46 }
 0x17f   : > { %17938 = vst [vmem:[#allocation129_spill] sm:$0xff] %v13227_v50 }
 0x181   : > { %v13231_v18 = vpop.f32.mrf.mxu1 }
 0x182   : > { %17939 = vst [vmem:[#allocation130_spill] sm:$0xff] %v13231_v18  ;;  %3348 = vrot.lane.b32.xlu1 %v12991_v7, %s12334_s13  ;;  %11095 = vmatpush.xpose.msk.msrb.mxu2 %vm869_vm1, %v13231_v18 }
 0x183   : > { %5721 = vrot.lane.b32.xlu2 %v12969_v37, %s12335_s14  ;;  %v13261_v37 = vpop.f32.mrf.mxu0 }
 0x184   : > { %v13241_v0 = vpop.permute.xlu1 %3234  ;;  %3542 = vrot.lane.b32.xlu0 %v13139_v52, %s12334_s13  ;;  %17946 = vst [vmem:[#allocation137_spill] sm:$0xff] %v13261_v37  ;;  %v13382_v62 = vpack.i.bf16 %v13261_v37, %v13233_v22 }
 0x185   : > { %17941 = vst [vmem:[#allocation132_spill] sm:$0xff] %v13241_v0  ;;  %v13245_v50 = vpop.permute.xlu2 %3124  ;;  %11096 = vmatmul.msk.f32.vlgmr.msrb.gmra.mxu2 %vm869_vm1, %v13233_v22 }
 0x186   : > { %17942 = vst [vmem:[#allocation133_spill] sm:$0xff] %v13245_v50  ;;  %v13249_v38 = vpop.permute.xlu0 %11577 }
 0x187   : > { %17943 = vst [vmem:[#allocation134_spill] sm:$0xff] %v13249_v38 }
 0x188   : > { %17968 = vst [vmem:[#allocation159_spill] sm:$0xff] %v13382_v62 }
 0x189   : > { %v13255_v45 = vpop.f32.mrf.mxu1 }
 0x18a   : > { %17945 = vst [vmem:[#allocation136_spill] sm:$0xff] %v13255_v45  ;;  %11622 = vrot.lane.b32.xlu1 %v13253_v5, %s12336_s15  ;;  %11097 = vmatpush.xpose.msk.msrb.mxu3 %vm869_vm1, %v13255_v45 }
 0x18b   : > { %11617 = vrot.lane.b32.xlu2 %v13253_v5, %s12337_s17 }
 0x18c   : > { %v13265_v0 = vpop.permute.xlu1 %5635  ;;  %5777 = vrot.lane.b32.xlu0 %v13013_v30, %s12335_s14 }
 0x18d   : > { %17947 = vst [vmem:[#allocation138_spill] sm:$0xff] %v13265_v0  ;;  %v13269_v27 = vpop.permute.xlu2 %5691  ;;  %11098 = vmatmul.msk.f32.vlgmr.msrb.gmra.mxu3 %vm869_vm1, %v13261_v37 }
 0x18e   : > { %17948 = vst [vmem:[#allocation139_spill] sm:$0xff] %v13269_v27  ;;  %v13273_v50 = vpop.permute.xlu0 %3290 }
 0x191   : > { %v13275_v43 = vpop.f32.mrf.mxu1 }
 0x192   : > { %17949 = vst [vmem:[#allocation140_spill] sm:$0xff] %v13275_v43  ;;  %5749 = vrot.lane.b32.xlu1 %v12991_v7, %s12335_s14  ;;  %11099 = vmatpush.xpose.msk.msra.mxu2 %vm869_vm1, %v13275_v43  ;;  %v13295_v7 = vpack.i.bf16 %v13160_v31, %v13139_v52 }
 0x193   : > { %3514 = vrot.lane.b32.xlu2 %v13105_v23, %s12334_s13 }
 0x194   : > { %v13283_v0 = vpop.permute.xlu1 %3096  ;;  %3404 = vrot.lane.b32.xlu0 %v13035_v59, %s12334_s13  ;;  %17952 = vst [vmem:[#allocation143_spill] sm:$0xff] %v13295_v7 }
 0x195   : > { %17950 = vst [vmem:[#allocation141_spill] sm:$0xff] %v13283_v0  ;;  %v13287_v27 = vpop.permute.xlu2 %5553  ;;  %11100 = vmatmul.msk.f32.vlgmr.msra.gmra.mxu2 %vm869_vm1, %v12601_v2 }
 0x196   : > { %17951 = vst [vmem:[#allocation142_spill] sm:$0xff] %v13287_v27  ;;  %v13291_v28 = vpop.permute.xlu0 %11582 }
 0x199   : > { %v13301_v56 = vpop.f32.mrf.mxu1 }
 0x19a   : > { %17954 = vst [vmem:[#allocation145_spill] sm:$0xff] %v13301_v56  ;;  %11627 = vrot.lane.b32.xlu1 %v13295_v7, %s12337_s17  ;;  %11101 = vmatpush.xpose.msk.msra.mxu3 %vm869_vm1, %v13301_v56 }
 0x19b   : > { %3376 = vrot.lane.b32.xlu2 %v13013_v30, %s12334_s13 }
 0x19c   : > { %v13309_v27 = vpop.permute.xlu1 %5497  ;;  %11637 = vrot.lane.b32.xlu0 %v13299_v25, %s12337_s17 }
 0x19d   : > { %17955 = vst [vmem:[#allocation146_spill] sm:$0xff] %v13309_v27  ;;  %v13313_v0 = vpop.permute.xlu2 %11587  ;;  %11102 = vmatmul.msk.f32.vlgmr.msra.gmra.mxu3 %vm869_vm1, %v12617_v10 }
 0x19e   : > { %17956 = vst [vmem:[#allocation147_spill] sm:$0xff] %v13313_v0  ;;  %v13317_v14 = vpop.permute.xlu0 %5525 }
 0x19f   : > { %17957 = vst [vmem:[#allocation148_spill] sm:$0xff] %v13317_v14 }
 0x1a1   : > { %v13319_v5 = vpop.f32.mrf.mxu1 }
 0x1a2   : > { %17958 = vst [vmem:[#allocation149_spill] sm:$0xff] %v13319_v5  ;;  %3570 = vrot.lane.b32.xlu1 %v13160_v31, %s12334_s13  ;;  %11103 = vmatpush.xpose.msk.msrb.mxu2 %vm869_vm1, %v13319_v5 }
 0x1a3   : > { %11632 = vrot.lane.b32.xlu2 %v13295_v7, %s12336_s15 }
 0x1a4   : > { %v13327_v27 = vpop.permute.xlu1 %3318  ;;  %3626 = vrot.lane.b32.xlu0 %v13209_v46, %s12334_s13 }
 0x1a5   : > { %17959 = vst [vmem:[#allocation150_spill] sm:$0xff] %v13327_v27  ;;  %v13331_v30 = vpop.permute.xlu2 %3346  ;;  %11104 = vmatmul.msk.f32.vlgmr.msrb.gmra.mxu2 %vm869_vm1, %v12638_v17  ;;  %v11499_v27 = vunpack.i.l.bf16 %v12937_v40 }
 0x1a6   : > { %17960 = vst [vmem:[#allocation151_spill] sm:$0xff] %v13331_v30  ;;  %v3153_v14 = vpop.permute.xlu0 %3152 }
 0x1a7   : > { %11155 = vmatpush.xpose.msk.msra.mxu0 %vm869_vm1, %v3153_v14 }
 0x1a9   : > { %v13336_v13 = vpop.f32.mrf.mxu1 }
 0x1aa   : > { %17961 = vst [vmem:[#allocation152_spill] sm:$0xff] %v13336_v13  ;;  %11156 = vmatmul.msk.f32.vlgmr.msra.gmra.mxu0 %vm869_vm1, %v13113_v35  ;;  %3432 = vrot.lane.b32.xlu1 %v13057_v24, %s12334_s13 }
 0x1ab   : > { %3598 = vrot.lane.b32.xlu2 %v13188_v1, %s12334_s13  ;;  %11105 = vmatpush.xpose.msk.msrb.mxu3 %vm869_vm1, %v13336_v13 }
 0x1ac   : > { %v13346_v30 = vpop.permute.xlu1 %5719  ;;  %11642 = vrot.lane.b32.xlu0 %v13299_v25, %s12336_s15 }
 0x1ad   : > { %17962 = vst [vmem:[#allocation153_spill] sm:$0xff] %v13346_v30  ;;  %v13350_v14 = vpop.permute.xlu2 %3208  ;;  %v11519_v30 = vunpack.i.l.bf16 %v12939_v32 }
 0x1ae   : > { %17963 = vst [vmem:[#allocation154_spill] sm:$0xff] %v13350_v14  ;;  %11106 = vmatmul.msk.f32.vlgmr.msrb.gmra.mxu3 %vm869_vm1, %v12656_v26  ;;  %v13354_v35 = vpop.permute.xlu0 %5747 }
 0x1af   : > { %17964 = vst [vmem:[#allocation155_spill] sm:$0xff] %v13354_v35 }
 0x1b1   : > { %v13357_v3 = vpop.f32.mrf.mxu1 }
 0x1b2   : > { %17965 = vst [vmem:[#allocation156_spill] sm:$0xff] %v13357_v3  ;;  %3654 = vrot.lane.b32.xlu1 %v13233_v22, %s12334_s13  ;;  %11107 = vmatpush.xpose.msk.msra.mxu2 %vm869_vm1, %v13357_v3 }
 0x1b3   : > { %3460 = vrot.lane.b32.xlu2 %v13083_v21, %s12334_s13 }
 0x1b4   : > { %v3181_v25 = vpop.permute.xlu1 %3180  ;;  %3488 = vrot.lane.b32.xlu0 %v13103_v33, %s12334_s13 }
 0x1b5   : > { %v13368_v35 = vpop.permute.xlu2 %5775  ;;  %11108 = vmatmul.msk.f32.vlgmr.msra.gmra.mxu2 %vm869_vm1, %v12676_v36  ;;  %11157 = vmatpush.xpose.msk.msrb.mxu1 %vm869_vm1, %v3181_v25 }
 0x1b6   : > { %2139 = vmatpush.msrb.mxu2 %v11499_v27  ;;  %17966 = vst [vmem:[#allocation157_spill] sm:$0xff] %v13368_v35  ;;  %v13373_v14 = vpop.permute.xlu0 %3374  ;;  %v11500_v27 = vunpack.i.h.bf16 %v12937_v40 }
 0x1b8   : > { %2191 = vmatpush.msra.mxu2 %v11519_v30  ;;  %11158 = vmatmul.msk.f32.vlgmr.msrb.gmra.mxu1 %vm869_vm1, %v13117_v61  ;;  %v11520_v61 = vunpack.i.h.bf16 %v12939_v32 }
 0x1b9   : > { %v13378_v7 = vpop.f32.mrf.mxu1 }
 0x1ba   : > { %17967 = vst [vmem:[#allocation158_spill] sm:$0xff] %v13378_v7  ;;  %3516 = vrot.lane.b32.xlu1 %v13131_v55, %s12334_s13  ;;  %11109 = vmatpush.xpose.msk.msra.mxu3 %vm869_vm1, %v13378_v7 }
 0x1bb   : > { %11647 = vrot.lane.b32.xlu2 %v13382_v62, %s12337_s17  ;;  %s17370_s17 = sshll.u32 %s10970_s28, 2 }
 0x1bc   : > { %v13391_v30 = vpop.permute.xlu1 %11592  ;;  %3572 = vrot.lane.b32.xlu0 %v13172_v54, %s12334_s13  ;;  %p334_p4 = scmp.lt.s32.totalorder %s17370_s17, 15 }
 0x1bd   : > { %17969 = vst [vmem:[#allocation160_spill] sm:$0xff] %v13391_v30  ;;  %v13395_v40 = vpop.permute.xlu2 %11602  ;;  %11110 = vmatmul.msk.f32.vlgmr.msra.gmra.mxu3 %vm869_vm1, %v12697_v44 }
 0x1be   : > { %2165 = vmatpush.msrb.mxu3 %v11500_v27  ;;  %17970 = vst [vmem:[#allocation161_spill] sm:$0xff] %v13395_v40  ;;  %v13399_v25 = vpop.permute.xlu0 %5609  ;;  %s18421_s17 = smov (!%p334_p4, %s17370_s17), 15 }
 0x1bf   : > { %17971 = vst [vmem:[#allocation162_spill] sm:$0xff] %v13399_v25  ;;  %s10980_s28 = sshll.u32 %s18421_s17, 3 }
 0x1c0   : > { %2217 = vmatpush.msra.mxu3 %v11520_v61  ;;  %v945_v61 = vpop.f32.mrf.mxu2 }
 0x1c2   : > { %11652 = vrot.lane.b32.xlu1 %v13382_v62, %s12336_s15 }
 0x1c3   : > { %3682 = vrot.lane.b32.xlu2 %v13261_v37, %s12334_s13 }
 0x1c4   : > { %v13405_v32 = vpop.permute.xlu1 %5581 }
 0x1c5   : > { %17972 = vst [vmem:[#allocation163_spill] sm:$0xff] %v13405_v32  ;;  %v13407_v27 = vpop.permute.xlu2 %5637 }
 0x1c6   : > { %17973 = vst [vmem:[#allocation164_spill] sm:$0xff] %v13407_v27  ;;  %v13409_v30 = vpop.permute.xlu0 %3236 }
 0x1c7   : > { %17974 = vst [vmem:[#allocation165_spill] sm:$0xff] %v13409_v30 }
 0x1c8   : > { %v997_v42 = vpop.f32.mrf.mxu2 }
 0x1c9   : > { %v13449_v15 = vmul.f32 0.35355338, %v997_v42 }
 0x1cb   : > { %3544 = vrot.lane.b32.xlu2 %v13152_v11, %s12334_s13  ;;  %v1746_v44 = vsel %vm869_vm1, %v13449_v15, -inf }
 0x1cc   : > { %v13413_v35 = vpop.permute.xlu1 %11597 }
 0x1cd   : > { %17975 = vst [vmem:[#allocation166_spill] sm:$0xff] %v13413_v35  ;;  %v13415_v36 = vpop.permute.xlu2 %3430 }
 0x1ce   : > { %17976 = vst [vmem:[#allocation167_spill] sm:$0xff] %v13415_v36  ;;  %v13417_v25 = vpop.permute.xlu0 %11607 }
 0x1cf   : > { %17977 = vst [vmem:[#allocation168_spill] sm:$0xff] %v13417_v25 }
 0x1d0   : > { %v1049_v10 = vpop.f32.mrf.mxu2 }
 0x1d1   : > { %v13431_v12 = vmul.f32 0.35355338, %v1049_v10 }
 0x1d4   : > { %v3403_v62 = vpop.permute.xlu1 %3402 }
 0x1d5   : > { %v3293_v39 = vpop.permute.xlu2 %3292 }
 0x1d6   : > { %11165 = vmatpush.xpose.msk.msra.mxu1 %vm869_vm1, %v3293_v39  ;;  %v13420_v32 = vpop.permute.xlu0 %3458 }
 0x1d7   : > { %17978 = vst [vmem:[#allocation169_spill] sm:$0xff] %v13420_v32 }
 0x1d9   : > { %11166 = vmatmul.msk.f32.vlgmr.msra.gmra.mxu1 %vm869_vm1, %v13273_v50  ;;  %v1752_v50 = vsel %vm869_vm1, %v13431_v12, -inf }
 0x1dc   : > { %v3265_v27 = vpop.permute.xlu1 %3264 }
 0x1dd   : > { %v13424_v30 = vpop.permute.xlu2 %5721  ;;  %11163 = vmatpush.xpose.msk.msrb.mxu0 %vm869_vm1, %v3265_v27 }
 0x1de   : > { %17979 = vst [vmem:[#allocation170_spill] sm:$0xff] %v13424_v30  ;;  %v13427_v36 = vpop.permute.xlu0 %11612  ;;  %v13441_v30 = vmul.f32 0.35355338, %v945_v61 }
 0x1df   : > { %17980 = vst [vmem:[#allocation171_spill] sm:$0xff] %v13427_v36  ;;  %v971_v36 = vpop.f32.mrf.mxu3 }
 0x1e0   : > { %11164 = vmatmul.msk.f32.vlgmr.msrb.gmra.mxu0 %vm869_vm1, %v13225_v41  ;;  %v1740_v27 = vsel %vm869_vm1, %v13441_v30, -inf }
 0x1e4   : > { %v13433_v26 = vpop.permute.xlu1 %5665 }
 0x1e5   : > { %17981 = vst [vmem:[#allocation172_spill] sm:$0xff] %v13433_v26  ;;  %v13435_v39 = vpop.permute.xlu2 %11617  ;;  %v13447_v26 = vmul.f32 0.35355338, %v971_v36 }
 0x1e6   : > { %17982 = vst [vmem:[#allocation173_spill] sm:$0xff] %v13435_v39  ;;  %v13439_v32 = vpop.permute.xlu0 %5693  ;;  %1753 = vmax.xlane.f32.xlu0 %v1752_v50 }
 0x1e7   : > { %17983 = vst [vmem:[#allocation174_spill] sm:$0xff] %v13439_v32  ;;  %v1743_v61 = vsel %vm869_vm1, %v13447_v26, -inf  ;;  %v1023_v50 = vpop.f32.mrf.mxu3 }
 0x1e8   : > { %v13460_v36 = vmul.f32 0.35355338, %v1023_v50 }
 0x1ea   : > { %v1749_v42 = vsel %vm869_vm1, %v13460_v36, -inf }
 0x1ec   : > { %v3487_v29 = vpop.permute.xlu1 %3486  ;;  %1741 = vmax.xlane.f32.xlu1 %v1740_v27 }
 0x1ed   : > { %v3515_v10 = vpop.permute.xlu2 %3514 }
 0x1ee   : > { %v13445_v41 = vpop.permute.xlu0 %3320 }
 0x1ef   : > { %17984 = vst [vmem:[#allocation175_spill] sm:$0xff] %v13445_v41 }
 0x1f4   : > { %1747 = vmax.xlane.f32.xlu2 %v1746_v44  ;;  %v13455_v32 = vpop.permute.xlu1 %3348  ;;  %1744 = vmax.xlane.f32.xlu1 %v1743_v61 }
 0x1f5   : > { %17985 = vst [vmem:[#allocation176_spill] sm:$0xff] %v13455_v32  ;;  %v3377_v58 = vpop.permute.xlu2 %3376 }
 0x1f6   : > { %11171 = vmatpush.xpose.msk.msra.mxu0 %vm869_vm1, %v3377_v58  ;;  %v13458_v27 = vpop.permute.xlu0 %3542 }
 0x1f7   : > { %17986 = vst [vmem:[#allocation177_spill] sm:$0xff] %v13458_v27  ;;  %v1075_v27 = vpop.f32.mrf.mxu3 }
 0x1f9   : > { %11172 = vmatmul.msk.f32.vlgmr.msra.gmra.mxu0 %vm869_vm1, %v13373_v14 }
 0x1fa   : > { %3656 = vrot.lane.b32.xlu0 %v13231_v18, %s12334_s13  ;;  %v3063_v18 = vpop.f32.mrf.mxu0 }
 0x1fc   : > { %1750 = vmax.xlane.f32.xlu2 %v1749_v42  ;;  %v13468_v44 = vpop.permute.xlu1 %11622 }
 0x1fd   : > { %17987 = vst [vmem:[#allocation178_spill] sm:$0xff] %v13468_v44  ;;  %v13499_v17 = vpop.permute.xlu2 %11632 }
 0x1fe   : > { %v13470_v61 = vpop.permute.xlu0 %5777  ;;  %17996 = vst [vmem:[#allocation187_spill] sm:$0xff] %v13499_v17 }
 0x1ff   : > { %17988 = vst [vmem:[#allocation179_spill] sm:$0xff] %v13470_v61 }
 0x204   : > { %v13472_v32 = vpop.permute.xlu1 %5749 }
 0x205   : > { %17989 = vst [vmem:[#allocation180_spill] sm:$0xff] %v13472_v32  ;;  %v1127_v32 = vpop.f32.mrf.mxu3 }
 0x206   : > { %v3405_v58 = vpop.permute.xlu0 %3404 }
 0x207   : > { %11173 = vmatpush.xpose.msk.msrb.mxu1 %vm869_vm1, %v3405_v58 }
 0x20a   : > { %11174 = vmatmul.msk.f32.vlgmr.msrb.gmra.mxu1 %vm869_vm1, %v3403_v62  ;;  %v13490_v62 = vmul.f32 0.35355338, %v1127_v32  ;;  %v13502_v32 = vmul.f32 0.35355338, %v1075_v27 }
 0x20c   : > { %v13476_v50 = vpop.permute.xlu1 %11627  ;;  %v1761_v22 = vsel %vm869_vm1, %v13490_v62, -inf }
 0x20d   : > { %17990 = vst [vmem:[#allocation181_spill] sm:$0xff] %v13476_v50  ;;  %3600 = vrot.lane.b32.xlu1 %v13192_v63, %s12334_s13 }
 0x20e   : > { %v13480_v14 = vpop.permute.xlu0 %11637 }
 0x20f   : > { %17991 = vst [vmem:[#allocation182_spill] sm:$0xff] %v13480_v14 }
 0x214   : > { %3628 = vrot.lane.b32.xlu2 %v13211_v9, %s12334_s13  ;;  %v13484_v42 = vpop.permute.xlu1 %3570 }
 0x215   : > { %17992 = vst [vmem:[#allocation183_spill] sm:$0xff] %v13484_v42 }
 0x216   : > { %v3627_v61 = vpop.permute.xlu0 %3626 }
 0x21c   : > { %v13486_v41 = vpop.permute.xlu1 %3432 }
 0x21d   : > { %17993 = vst [vmem:[#allocation184_spill] sm:$0xff] %v13486_v41  ;;  %v1101_v41 = vpop.f32.mrf.mxu2 }
 0x21e   : > { %v13488_v58 = vpop.permute.xlu0 %11642 }
 0x21f   : > { %17994 = vst [vmem:[#allocation185_spill] sm:$0xff] %v13488_v58 }
 0x224   : > { %1762 = vmax.xlane.f32.xlu0 %v1761_v22  ;;  %v13494_v2 = vpop.permute.xlu1 %3654  ;;  %v1755_v22 = vsel %vm869_vm1, %v13502_v32, -inf }
 0x225   : > { %17995 = vst [vmem:[#allocation186_spill] sm:$0xff] %v13494_v2  ;;  %v13506_v2 = vmul.f32 0.35355338, %v1101_v41  ;;  %v1153_v27 = vpop.f32.mrf.mxu2 }
 0x226   : > { %v3489_v44 = vpop.permute.xlu0 %3488 }
 0x227   : > { %11179 = vmatpush.xpose.msk.msrb.mxu0 %vm869_vm1, %v3489_v44  ;;  %v1758_v44 = vsel %vm869_vm1, %v13506_v2, -inf }
 0x22a   : > { %11180 = vmatmul.msk.f32.vlgmr.msrb.gmra.mxu0 %vm869_vm1, %v3487_v29  ;;  %v3599_v29 = vpop.permute.xlu2 %3598 }
 0x22c   : > { %v3517_v42 = vpop.permute.xlu1 %3516 }
 0x22d   : > { %11181 = vmatpush.xpose.msk.msra.mxu1 %vm869_vm1, %v3517_v42 }
 0x230   : > { %11182 = vmatmul.msk.f32.vlgmr.msra.gmra.mxu1 %vm869_vm1, %v3515_v10 }
 0x232   : > { %v13512_v42 = vpop.permute.xlu2 %3460 }
 0x233   : > { %17997 = vst [vmem:[#allocation188_spill] sm:$0xff] %v13512_v42 }
 0x234   : > { %v13528_v42 = vpop.permute.xlu1 %11652 }
 0x235   : > { %18001 = vst [vmem:[#allocation192_spill] sm:$0xff] %v13528_v42 }
 0x237   : > { %1756 = vmax.xlane.f32.xlu1 %v1755_v22  ;;  %v1205_v22 = vpop.f32.mrf.mxu2 }
 0x238   : > { %3740 = vrot.lane.b32.xlu0 %v13301_v56, %s12334_s13  ;;  %v13522_v17 = vmul.f32 0.35355338, %v1205_v22 }
 0x23a   : > { %v13514_v10 = vpop.permute.xlu2 %11647 }
 0x23b   : > { %17998 = vst [vmem:[#allocation189_spill] sm:$0xff] %v13514_v10 }
 0x23d   : > { %1759 = vmax.xlane.f32.xlu2 %v1758_v44  ;;  %v1770_v44 = vsel %vm869_vm1, %v13522_v17, -inf }
 0x242   : > { %v13520_v41 = vpop.permute.xlu2 %3682 }
 0x243   : > { %17999 = vst [vmem:[#allocation190_spill] sm:$0xff] %v13520_v41  ;;  %v1179_v41 = vpop.f32.mrf.mxu3 }
 0x24a   : > { %v13524_v58 = vpop.permute.xlu2 %3544 }
 0x24b   : > { %18000 = vst [vmem:[#allocation191_spill] sm:$0xff] %v13524_v58 }
 0x250   : > { %3684 = vrot.lane.b32.xlu1 %v13255_v45, %s12334_s13 }
 0x255   : > { %3712 = vrot.lane.b32.xlu2 %v13275_v43, %s12334_s13  ;;  %v13536_v43 = vmul.f32 0.35355338, %v1153_v27 }
 0x257   : > { %v1764_v42 = vsel %vm869_vm1, %v13536_v43, -inf }
 0x25f   : > { %v13532_v45 = vpop.xlane.xlu1 %1741 }
 0x262   : > { %1771 = vmax.xlane.f32.xlu0 %v1770_v44  ;;  %v13543_v44 = vmul.f32 0.35355338, %v1179_v41 }
 0x264   : > { %v1767_v27 = vsel %vm869_vm1, %v13543_v44, -inf }
 0x267   : > { %v13530_v56 = vpop.xlane.xlu2 %1747  ;;  %v13540_v22 = vpop.xlane.xlu1 %1744 }
 0x26f   : > { %v13534_v8 = vpop.xlane.xlu2 %1750 }
 0x276   : > { %3824 = vrot.lane.b32.xlu0 %v13357_v3, %s12334_s13  ;;  %v13552_v3 = vpop.permute.xlu0 %3572 }
 0x277   : > { %v3629_v58 = vpop.permute.xlu2 %3628  ;;  %18002 = vst [vmem:[#allocation193_spill] sm:$0xff] %v13552_v3 }
 0x278   : > { %11189 = vmatpush.xpose.msk.msrb.mxu1 %vm869_vm1, %v3629_v58  ;;  %v1231_v58 = vpop.f32.mrf.mxu3 }
 0x27a   : > { %1765 = vmax.xlane.f32.xlu1 %v1764_v42 }
 0x27b   : > { %11190 = vmatmul.msk.f32.vlgmr.msrb.gmra.mxu1 %vm869_vm1, %v3627_v61 }
 0x27e   : > { %1768 = vmax.xlane.f32.xlu2 %v1767_v27  ;;  %v13554_v41 = vpop.xlane.xlu0 %1753 }
 0x27f   : > { %v3601_v40 = vpop.permute.xlu1 %3600 }
 0x280   : > { %11187 = vmatpush.xpose.msk.msra.mxu0 %vm869_vm1, %v3601_v40  ;;  %v1283_v61 = vpop.f32.mrf.mxu3 }
 0x281   : > { %v13562_v27 = vmul.f32 0.35355338, %v1283_v61 }
 0x283   : > { %11188 = vmatmul.msk.f32.vlgmr.msra.gmra.mxu0 %vm869_vm1, %v3599_v29  ;;  %v1779_v40 = vsel %vm869_vm1, %v13562_v27, -inf  ;;  %v893_v29 = vpop.f32.mrf.mxu1 }
 0x284   : > { %v13568_v10 = vmul.f32 0.35355338, %v893_v29 }
 0x286   : > { %v13560_v42 = vpop.permute.xlu0 %3656 }
 0x287   : > { %18003 = vst [vmem:[#allocation194_spill] sm:$0xff] %v13560_v42  ;;  %v1257_v42 = vpop.f32.mrf.mxu2 }
 0x288   : > { %v13580_v29 = vmul.f32 0.35355338, %v1257_v42 }
 0x293   : > { %3768 = vrot.lane.b32.xlu1 %v13319_v5, %s12334_s13  ;;  %v1734_v5 = vsel %vm869_vm1, %v13568_v10, -inf }
 0x296   : > { %3796 = vrot.lane.b32.xlu2 %v13336_v13, %s12334_s13  ;;  %v13577_v13 = vmul.f32 0.35355338, %v1231_v58 }
 0x297   : > { %v13566_v3 = vpop.xlane.xlu0 %1762 }
 0x2a0   : > { %1780 = vmax.xlane.f32.xlu0 %v1779_v40 }
 0x2a8   : > { %1735 = vmax.xlane.f32.xlu0 %v1734_v5  ;;  %v1776_v5 = vsel %vm869_vm1, %v13580_v29, -inf }
 0x2aa   : > { %v3741_v63 = vpop.permute.xlu0 %3740 }
 0x2ab   : > { %11197 = vmatpush.xpose.msk.msra.mxu1 %vm869_vm1, %v3741_v63  ;;  %v1773_v63 = vsel %vm869_vm1, %v13577_v13, -inf }
 0x2ae   : > { %11198 = vmatmul.msk.f32.vlgmr.msra.gmra.mxu1 %vm869_vm1, %v12981_v6  ;;  %v919_v6 = vpop.f32.mrf.mxu1 }
 0x2b0   : > { %v13575_v61 = vpop.xlane.xlu2 %1759 }
 0x2b8   : > { %v3713_v40 = vpop.permute.xlu2 %3712 }
 0x2b9   : > { %11195 = vmatpush.xpose.msk.msrb.mxu0 %vm869_vm1, %v3713_v40  ;;  %v3091_v40 = vpop.f32.mrf.mxu1 }
 0x2ba   : > { %v13601_v14 = vmul.f32 0.35355338, %v3091_v40 }
 0x2bc   : > { %11196 = vmatmul.msk.f32.vlgmr.msrb.gmra.mxu0 %vm869_vm1, %v12893_v49  ;;  %5831 = vrot.lane.b32.xlu0 %v13031_v51, %s12335_s14  ;;  %v13596_v49 = vmul.f32 0.35355338, %v919_v6  ;;  %v1309_v51 = vpop.f32.mrf.mxu2  ;;  %v3919_v6 = vsel %vm869_vm1, %v13601_v14, -inf }
 0x2bd   : > { %1774 = vmax.xlane.f32.xlu1 %v1773_v63  ;;  %v11529_v63 = vunpack.i.l.bf16 %v12961_v16 }
 0x2be   : > { %v1737_v42 = vsel %vm869_vm1, %v13596_v49, -inf }
 0x2bf   : > { %1777 = vmax.xlane.f32.xlu2 %v1776_v5 }
 0x2d5   : > { %v13594_v58 = vpop.xlane.xlu0 %1771 }
 0x2d6   : > { %3852 = vrot.lane.b32.xlu1 %v13378_v7, %s12334_s13 }
 0x2d7   : > { %5805 = vrot.lane.b32.xlu2 %v13035_v59, %s12335_s14  ;;  %v11564_v59 = vunpack.i.l.bf16 %v13180_v4 }
 0x2e6   : > { %1738 = vmax.xlane.f32.xlu0 %v1737_v42  ;;  %v1361_v42 = vpop.f32.mrf.mxu2 }
 0x2e7   : > { %v13609_v7 = vmul.f32 0.35355338, %v1361_v42 }
 0x2e8   : > { %v3825_v5 = vpop.permute.xlu0 %3824 }
 0x2e9   : > { %11203 = vmatpush.xpose.msk.msra.mxu0 %vm869_vm1, %v3825_v5  ;;  %v1788_v40 = vsel %vm869_vm1, %v13609_v7, -inf  ;;  %v1335_v5 = vpop.f32.mrf.mxu3 }
 0x2ea   : > { %v13615_v50 = vmul.f32 0.35355338, %v1335_v5  ;;  %v3175_v5 = vpop.f32.mrf.mxu0 }
 0x2ec   : > { %11204 = vmatmul.msk.f32.vlgmr.msra.gmra.mxu0 %vm869_vm1, %v13071_v60 }
 0x2ed   : > { %4493 = vmatpush.msrb.mxu0 %v11529_v63  ;;  %v13613_v63 = vmul.f32 0.35355338, %v3063_v18  ;;  %v1757_v18 = vpop.xlane.xlu1 %1756 }
 0x2ee   : > { %3920 = vmax.xlane.f32.xlu0 %v3919_v6  ;;  %v13621_v6 = vmul.f32 0.35355338, %v1309_v51  ;;  %v1834_v51 = vsub.f32 %v13449_v15, %v13530_v56  ;;  %v1832_v15 = vsub.f32 %v13441_v30, %v13532_v45  ;;  %v1413_v56 = vpop.f32.mrf.mxu2 }
 0x2ef   : > { %4593 = vmatpush.msra.mxu0 %v11564_v59  ;;  %v1785_v59 = vsel %vm869_vm1, %v13615_v50, -inf  ;;  %v3916_v60 = vsel %vm869_vm1, %v13613_v63, -inf  ;;  %v13660_v30 = vmul.f32 0.35355338, %v1413_v56 }
 0x2f0   : > { %v1782_v42 = vsel %vm869_vm1, %v13621_v6, -inf }
 0x2f1   : > { %v1387_v37 = vpop.f32.mrf.mxu3 }
 0x2f6   : > { %1789 = vmax.xlane.f32.xlu0 %v1788_v40  ;;  %v13631_v40 = vpop.permute.xlu1 %3684 }
 0x2f7   : > { %18004 = vst [vmem:[#allocation195_spill] sm:$0xff] %v13631_v40 }
 0x300   : > { %1786 = vmax.xlane.f32.xlu2 %v1785_v59  ;;  %3917 = vmax.xlane.f32.xlu1 %v3916_v60  ;;  %v1870_v59 = vmul.f32 1.442695, %v1834_v51  ;;  %v13635_v60 = vmul.f32 0.35355338, %v3175_v5  ;;  %v1837_v51 = vsub.f32 %v13502_v32, %v1757_v18  ;;  %v1866_v5 = vmul.f32 1.442695, %v1832_v15  ;;  %v13662_v32 = vpop.f32.mrf.mxu2 }
 0x301   : > { %v1836_v15 = vsub.f32 %v13431_v12, %v13554_v41  ;;  %v11565_v12 = vunpack.i.h.bf16 %v13180_v4 }
 0x302   : > { %11812 = vpow2.f32 %v1870_v59  ;;  %v1439_v59 = vpop.f32.mrf.mxu3 }
 0x303   : > { %v1874_v41 = vmul.f32 1.442695, %v1836_v15 }
 0x308   : > { %1783 = vmax.xlane.f32.xlu1 %v1782_v42  ;;  %v1833_v42 = vsub.f32 %v13447_v26, %v13540_v22 }
 0x30a   : > { %5861 = vrot.lane.b32.xlu0 %v13083_v21, %s12335_s14  ;;  %v1766_v21 = vpop.xlane.xlu1 %1765  ;;  %v1868_v39 = vmul.f32 1.442695, %v1833_v42 }
 0x30b   : > { %v1840_v56 = vsub.f32 %v13536_v43, %v1766_v21  ;;  %v1517_v43 = vpop.f32.mrf.mxu2 }
 0x30c   : > { %11814 = vpow2.f32 %v1868_v39  ;;  %v13652_v39 = vmul.f32 0.35355338, %v1439_v59  ;;  %v1794_v59 = vsel %vm869_vm1, %v13660_v30, -inf }
 0x30d   : > { %11816 = vpow2.f32 %v1866_v5  ;;  %v1491_v5 = vpop.f32.mrf.mxu3  ;;  %v1882_v21 = vmul.f32 1.442695, %v1840_v56 }
 0x30e   : > { %v1797_v45 = vsel %vm869_vm1, %v13652_v39, -inf }
 0x312   : > { %v13643_v40 = vpop.permute.xlu1 %3768 }
 0x313   : > { %18005 = vst [vmem:[#allocation196_spill] sm:$0xff] %v13643_v40 }
 0x315   : > { %v13690_v15 = vpop.f32.mrf.mxu3 }
 0x318   : > { %5859 = vrot.lane.b32.xlu2 %v13053_v47, %s12335_s14  ;;  %v3928_v47 = vsel %vm869_vm1, %v13635_v60, -inf }
 0x321   : > { %5803 = vrot.lane.b32.xlu1 %v13000_v34, %s12335_s14  ;;  %v13641_v34 = vpop.eup %11812 }
 0x322   : > { %v1938_v26 = vsel %vm869_vm1, %v13641_v34, 0.0  ;;  %v13650_v22 = vpop.eup %11814 }
 0x323   : > { %v1935_v40 = vsel %vm869_vm1, %v13650_v22, 0.0  ;;  %v13664_v18 = vpop.eup %11816 }
 0x330   : > { %v13654_v42 = vpop.xlane.xlu1 %1774 }
 0x334   : > { %3929 = vmax.xlane.f32.xlu0 %v3928_v47  ;;  %v1876_v47 = vmul.f32 1.442695, %v1837_v51 }
 0x336   : > { %11818 = vpow2.f32 %v1876_v47  ;;  %v3203_v47 = vpop.f32.mrf.mxu1 }
 0x337   : > { %v13680_v25 = vmul.f32 0.35355338, %v3203_v47  ;;  %11820 = vpow2.f32 %v1874_v41  ;;  %v1595_v41 = vpop.f32.mrf.mxu3 }
 0x338   : > { %11822 = vpow2.f32 %v1882_v21 }
 0x339   : > { %v3931_v4 = vsel %vm869_vm1, %v13680_v25, -inf }
 0x33c   : > { %1939 = vadd.xlane.f32.xlu0 %v1938_v26  ;;  %v13668_v51 = vpop.eup %11818  ;;  %v11530_v26 = vunpack.i.h.bf16 %v12961_v16 }
 0x33d   : > { %v1947_v16 = vsel %vm869_vm1, %v13668_v51, 0.0 }
 0x341   : > { %1936 = vadd.xlane.f32.xlu2 %v1935_v40 }
 0x344   : > { %1798 = vmax.xlane.f32.xlu0 %v1797_v45  ;;  %v1932_v45 = vsel %vm869_vm1, %v13664_v18, 0.0 }
 0x348   : > { %v3853_v40 = vpop.permute.xlu1 %3852 }
 0x349   : > { %1795 = vmax.xlane.f32.xlu2 %v1794_v59  ;;  %11205 = vmatpush.xpose.msk.msrb.mxu1 %vm869_vm1, %v3853_v40  ;;  %v13684_v40 = vmul.f32 0.35355338, %v1387_v37  ;;  %v13696_v37 = vpop.eup %11820 }
 0x34a   : > { %v13698_v47 = vpop.eup %11822  ;;  %v1944_v56 = vsel %vm869_vm1, %v13696_v37, 0.0 }
 0x34b   : > { %1933 = vadd.xlane.f32.xlu1 %v1932_v45  ;;  %v1791_v59 = vsel %vm869_vm1, %v13684_v40, -inf  ;;  %v1956_v45 = vsel %vm869_vm1, %v13698_v47, 0.0 }
 0x34c   : > { %11206 = vmatmul.msk.f32.vlgmr.msrb.gmra.mxu1 %vm869_vm1, %v13027_v19  ;;  %1948 = vadd.xlane.f32.xlu0 %v1947_v16  ;;  %v13706_v16 = vmul.f32 0.35355338, %v1595_v41  ;;  %v1569_v41 = vpop.f32.mrf.mxu2 }
 0x34d   : > { %4518 = vmatpush.msra.mxu1 %v11530_v26  ;;  %v13686_v26 = vmul.f32 0.35355338, %v1517_v43  ;;  %v1839_v43 = vsub.f32 %v13490_v62, %v13566_v3 }
 0x34e   : > { %18008 = vst [vmem:[#allocation199_spill] sm:$0xff] %v13706_v16 }
 0x34f   : > { %4618 = vmatpush.msrb.mxu1 %v11565_v12  ;;  %18006 = vst [vmem:[#allocation197_spill] sm:$0xff] %v13686_v26  ;;  %v1806_v19 = vsel %vm869_vm1, %v13686_v26, -inf  ;;  %v13704_v12 = vmul.f32 0.35355338, %v1491_v5 }
 0x351   : > { %3932 = vmax.xlane.f32.xlu2 %v3931_v4  ;;  %18007 = vst [vmem:[#allocation198_spill] sm:$0xff] %v13704_v12  ;;  %v1803_v21 = vsel %vm869_vm1, %v13704_v12, -inf  ;;  %v3287_v4 = vpop.f32.mrf.mxu0 }
 0x353   : > { %1792 = vmax.xlane.f32.xlu1 %v1791_v59  ;;  %v1880_v59 = vmul.f32 1.442695, %v1839_v43 }
 0x354   : > { %1807 = vmax.xlane.f32.xlu0 %v1806_v19  ;;  %v1815_v19 = vsel %vm869_vm1, %v13706_v16, -inf }
 0x355   : > { %11824 = vpow2.f32 %v1880_v59 }
 0x359   : > { %1945 = vadd.xlane.f32.xlu2 %v1944_v56  ;;  %v13714_v56 = vmul.f32 0.35355338, %v3287_v4 }
 0x35b   : > { %v3940_v5 = vsel %vm869_vm1, %v13714_v56, -inf  ;;  %v13722_v3 = vpop.eup %11824 }
 0x35c   : > { %1957 = vadd.xlane.f32.xlu0 %v1956_v45  ;;  %v13718_v45 = vpop.xlane.xlu0 %1780  ;;  %v1953_v62 = vsel %vm869_vm1, %v13722_v3, 0.0 }
 0x361   : > { %1804 = vmax.xlane.f32.xlu2 %v1803_v21  ;;  %v13728_v21 = vmul.f32 0.35355338, %v1569_v41 }
 0x363   : > { %18009 = vst [vmem:[#allocation200_spill] sm:$0xff] %v13728_v21  ;;  %v1812_v4 = vsel %vm869_vm1, %v13728_v21, -inf }
 0x364   : > { %1816 = vmax.xlane.f32.xlu0 %v1815_v19  ;;  %v13726_v43 = vpop.xlane.xlu0 %1735  ;;  %v1769_v19 = vpop.xlane.xlu2 %1768 }
 0x369   : > { %3941 = vmax.xlane.f32.xlu2 %v3940_v5 }
 0x36c   : > { %5833 = vrot.lane.b32.xlu1 %v13057_v24, %s12335_s14  ;;  %v13734_v59 = vpop.permute.xlu0 %5831  ;;  %v1835_v24 = vsub.f32 %v13460_v36, %v13534_v8  ;;  %v13740_v16 = vpop.permute.xlu2 %3796 }
 0x36d   : > { %18010 = vst [vmem:[#allocation201_spill] sm:$0xff] %v13734_v59  ;;  %v3315_v59 = vpop.f32.mrf.mxu1 }
 0x36e   : > { %18011 = vst [vmem:[#allocation202_spill] sm:$0xff] %v13740_v16  ;;  %v13759_v16 = vmul.f32 0.35355338, %v13662_v32 }
 0x371   : > { %1954 = vadd.xlane.f32.xlu2 %v1953_v62  ;;  %v1872_v62 = vmul.f32 1.442695, %v1835_v24 }
 0x373   : > { %11826 = vpow2.f32 %v1872_v62  ;;  %v1843_v62 = vsub.f32 %v13577_v13, %v13654_v42  ;;  %v13773_v42 = vpop.f32.mrf.mxu2 }
 0x374   : > { %v13736_v5 = vpop.xlane.xlu0 %1738  ;;  %v13744_v12 = vpop.xlane.xlu2 %1777 }
 0x375   : > { %v1888_v35 = vmul.f32 1.442695, %v1843_v62 }
 0x378   : > { %5915 = vrot.lane.b32.xlu0 %v13105_v23, %s12335_s14  ;;  %v1838_v23 = vsub.f32 %v13506_v2, %v13575_v61  ;;  %v1800_v2 = vsel %vm869_vm1, %v13759_v16, -inf }
 0x379   : > { %1813 = vmax.xlane.f32.xlu2 %v1812_v4  ;;  %v13748_v4 = vpop.eup %11826 }
 0x37a   : > { %v1941_v8 = vsel %vm869_vm1, %v13748_v4, 0.0  ;;  %v1878_v36 = vmul.f32 1.442695, %v1838_v23 }
 0x37c   : > { %v13742_v41 = vpop.xlane.xlu0 %3920  ;;  %v13761_v21 = vpop.permute.xlu2 %5805  ;;  %11828 = vpow2.f32 %v1878_v36 }
 0x37d   : > { %18012 = vst [vmem:[#allocation203_spill] sm:$0xff] %v13761_v21  ;;  %11830 = vpow2.f32 %v1888_v35  ;;  %v1842_v35 = vsub.f32 %v13522_v17, %v13594_v58  ;;  %v1673_v21 = vpop.f32.mrf.mxu2 }
 0x37e   : > { %v13794_v31 = vmul.f32 0.35355338, %v1673_v21 }
 0x380   : > { %18017 = vst [vmem:[#allocation208_spill] sm:$0xff] %v13794_v31 }
 0x382   : > { %v13771_v13 = vpop.eup %11828 }
 0x383   : > { %v13781_v36 = vpop.eup %11830 }
 0x384   : > { %v13754_v24 = vpop.xlane.xlu0 %1789  ;;  %v13775_v32 = vpop.xlane.xlu2 %1786 }
 0x38c   : > { %v13767_v61 = vpop.permute.xlu0 %5861  ;;  %v13792_v26 = vpop.permute.xlu2 %5859 }
 0x38d   : > { %18014 = vst [vmem:[#allocation205_spill] sm:$0xff] %v13767_v61  ;;  %v1965_v61 = vsel %vm869_vm1, %v13781_v36, 0.0 }
 0x38e   : > { %18016 = vst [vmem:[#allocation207_spill] sm:$0xff] %v13792_v26 }
 0x391   : > { %5889 = vrot.lane.b32.xlu2 %v13103_v33, %s12335_s14  ;;  %v3427_v33 = vpop.f32.mrf.mxu1 }
 0x392   : > { %v13763_v0 = vmul.f32 0.35355338, %v3427_v33  ;;  %v1950_v33 = vsel %vm869_vm1, %v13771_v13, 0.0 }
 0x394   : > { %18013 = vst [vmem:[#allocation204_spill] sm:$0xff] %v13763_v0  ;;  %v3955_v23 = vsel %vm869_vm1, %v13763_v0, -inf  ;;  %v1841_v0 = vsub.f32 %v13543_v44, %v1769_v19  ;;  %v1824_v44 = vsel %vm869_vm1, %v13794_v31, -inf }
 0x396   : > { %1942 = vadd.xlane.f32.xlu1 %v1941_v8  ;;  %v13777_v8 = vpop.xlane.xlu1 %3917 }
 0x39e   : > { %1801 = vmax.xlane.f32.xlu1 %v1800_v2  ;;  %v13787_v2 = vmul.f32 0.35355338, %v3315_v59  ;;  %v13798_v17 = vpop.xlane.xlu1 %1783  ;;  %v1884_v59 = vmul.f32 1.442695, %v1841_v0 }
 0x3a0   : > { %18015 = vst [vmem:[#allocation206_spill] sm:$0xff] %v13787_v2 }
 0x3a2   : > { %3956 = vmax.xlane.f32.xlu0 %v3955_v23  ;;  %v1886_v23 = vmul.f32 1.442695, %v1842_v35 }
 0x3a4   : > { %11832 = vpow2.f32 %v1886_v23 }
 0x3a6   : > { %1951 = vadd.xlane.f32.xlu1 %v1950_v33  ;;  %v3943_v33 = vsel %vm869_vm1, %v13787_v2, -inf  ;;  %v13815_v0 = vpop.permute.xlu1 %5803 }
 0x3a7   : > { %v13785_v62 = vpop.xlane.xlu0 %3929  ;;  %18018 = vst [vmem:[#allocation209_spill] sm:$0xff] %v13815_v0  ;;  %v3399_v0 = vpop.f32.mrf.mxu0 }
 0x3aa   : > { %1966 = vadd.xlane.f32.xlu0 %v1965_v61  ;;  %v13801_v61 = vmul.f32 0.35355338, %v13690_v15  ;;  %v13805_v19 = vpop.eup %11832 }
 0x3ac   : > { %v1809_v35 = vsel %vm869_vm1, %v13801_v61, -inf }
 0x3ae   : > { %3944 = vmax.xlane.f32.xlu1 %v3943_v33 }
 0x3af   : > { %v1940_v58 = vpop.xlane.xlu0 %1939 }
 0x3b0   : > { %11834 = vrcp.f32 %v1940_v58  ;;  %v1962_v58 = vsel %vm869_vm1, %v13805_v19, 0.0 }
 0x3b1   : > { %11836 = vpow2.f32 %v1884_v59 }
 0x3b2   : > { %1825 = vmax.xlane.f32.xlu0 %v1824_v44  ;;  %v1647_v44 = vpop.f32.mrf.mxu3 }
 0x3b4   : > { %v1937_v21 = vpop.xlane.xlu2 %1936 }
 0x3b5   : > { %11838 = vrcp.f32 %v1937_v21 }
 0x3b6   : > { %v11835_v33 = vpop.eup %11834  ;;  %1810 = vmax.xlane.f32.xlu1 %v1809_v35 }
 0x3b7   : > { %v13818_v15 = vmul.f32 %v11835_v33, %v13641_v34  ;;  %v13820_v23 = vpop.xlane.xlu0 %1798  ;;  %v13827_v59 = vpop.eup %11836  ;;  %v13834_v34 = vmul.f32 0.35355338, %v1647_v44 }
 0x3b8   : > { %v1959_v33 = vsel %vm869_vm1, %v13827_v59, 0.0 }
 0x3b9   : > { %18019 = vst [vmem:[#allocation210_spill] sm:$0xff] %v13818_v15  ;;  %v1821_v44 = vsel %vm869_vm1, %v13834_v34, -inf }
 0x3ba   : > { %2090 = vst.msk [vmem:[%s13813_s20 + $0x20] sm:$0xff] %vm869_vm1, %v13818_v15  ;;  %1963 = vadd.xlane.f32.xlu2 %v1962_v58 }
 0x3bb   : > { %v11839_v21 = vpop.eup %11838  ;;  %18020 = vst [vmem:[#allocation211_spill] sm:$0xff] %v13834_v34 }
 0x3bc   : > { %v13830_v26 = vmul.f32 %v11839_v21, %v13650_v22  ;;  %v13832_v35 = vpop.xlane.xlu2 %1795  ;;  %v13841_v22 = vmul.f32 0.35355338, %v3399_v0 }
 0x3be   : > { %2089 = vst.msk [vmem:[%s13813_s20 + $0x18] sm:$0xff] %vm869_vm1, %v13830_v26  ;;  %v1934_v31 = vpop.xlane.xlu1 %1933  ;;  %1960 = vadd.xlane.f32.xlu1 %v1959_v33  ;;  %v3952_v15 = vsel %vm869_vm1, %v13841_v22, -inf }
 0x3bf   : > { %11840 = vrcp.f32 %v1934_v31  ;;  %v1949_v58 = vpop.xlane.xlu0 %1948 }
 0x3c0   : > { %11842 = vrcp.f32 %v1949_v58  ;;  %v13863_v58 = vmul.f32 0.35355338, %v13773_v42 }
 0x3c2   : > { %1822 = vmax.xlane.f32.xlu2 %v1821_v44 }
 0x3c4   : > { %v13845_v21 = vpop.xlane.xlu2 %3932 }
 0x3c5   : > { %v11841_v2 = vpop.eup %11840 }
 0x3c6   : > { %v11843_v38 = vpop.eup %11842  ;;  %v13850_v33 = vmul.f32 %v11841_v2, %v13664_v18  ;;  %3953 = vmax.xlane.f32.xlu1 %v3952_v15  ;;  %5945 = vrot.lane.b32.xlu0 %v13152_v11, %s12335_s14  ;;  %v1818_v2 = vsel %vm869_vm1, %v13863_v58, -inf }
 0x3c7   : > { %v13855_v31 = vmul.f32 %v11843_v38, %v13668_v51  ;;  %v13857_v0 = vpop.xlane.xlu0 %1807 }
 0x3c8   : > { %2088 = vst.msk [vmem:[%s13813_s20 + $0x10] sm:$0xff] %vm869_vm1, %v13850_v33 }
 0x3c9   : > { %2093 = vst.msk [vmem:[%s13813_s20 + $0x38] sm:$0xff] %vm869_vm1, %v13855_v31 }
 0x3cc   : > { %v1946_v18 = vpop.xlane.xlu2 %1945 }
 0x3cd   : > { %11844 = vrcp.f32 %v1946_v18 }
 0x3ce   : > { %1819 = vmax.xlane.f32.xlu1 %v1818_v2  ;;  %v1846_v2 = vsub.f32 %v13621_v6, %v13798_v17  ;;  %v1845_v17 = vsub.f32 %v13562_v27, %v13718_v45  ;;  %v1844_v45 = vsub.f32 %v13580_v29, %v13744_v12 }
 0x3cf   : > { %v1958_v38 = vpop.xlane.xlu0 %1957 }
 0x3d0   : > { %11846 = vrcp.f32 %v1958_v38  ;;  %v3511_v38 = vpop.f32.mrf.mxu0 }
 0x3d3   : > { %v11845_v51 = vpop.eup %11844 }
 0x3d4   : > { %v13871_v15 = vmul.f32 %v11845_v51, %v13696_v37  ;;  %v13873_v44 = vpop.xlane.xlu2 %1804  ;;  %v1894_v51 = vmul.f32 1.442695, %v1846_v2  ;;  %v1793_v2 = vpop.xlane.xlu1 %1792 }
 0x3d6   : > { %v11847_v11 = vpop.eup %11846  ;;  %2092 = vst.msk [vmem:[%s13813_s20 + $0x30] sm:$0xff] %vm869_vm1, %v13871_v15 }
 0x3d7   : > { %v13879_v42 = vmul.f32 %v11847_v11, %v13698_v47  ;;  %v13892_v47 = vmul.f32 0.35355338, %v3511_v38 }
 0x3d9   : > { %2096 = vst.msk [vmem:[%s13813_s20 + $0x50] sm:$0xff] %vm869_vm1, %v13879_v42  ;;  %v3964_v6 = vsel %vm869_vm1, %v13892_v47, -inf }
 0x3da   : > { %5943 = vrot.lane.b32.xlu2 %v13139_v52, %s12335_s14  ;;  %18021 = vst [vmem:[#allocation212_spill] sm:$0xff] %v13892_v47  ;;  %v1831_v52 = vsub.f32 %v13596_v49, %v13736_v5  ;;  %v1830_v5 = vsub.f32 %v13568_v10, %v13726_v43  ;;  %v1890_v43 = vmul.f32 1.442695, %v1844_v45 }
 0x3dc   : > { %v13886_v18 = vpop.xlane.xlu2 %3941  ;;  %v1862_v27 = vmul.f32 1.442695, %v1830_v5 }
 0x3e4   : > { %v1955_v37 = vpop.xlane.xlu2 %1954 }
 0x3e5   : > { %11848 = vrcp.f32 %v1955_v37  ;;  %v1864_v37 = vmul.f32 1.442695, %v1831_v52 }
 0x3e6   : > { %11850 = vpow2.f32 %v1894_v51 }
 0x3e7   : > { %5887 = vrot.lane.b32.xlu1 %v13081_v48, %s12335_s14  ;;  %11852 = vpow2.f32 %v1864_v37  ;;  %v13923_v37 = vpop.permute.xlu1 %5833 }
 0x3e8   : > { %18022 = vst [vmem:[#allocation213_spill] sm:$0xff] %v13923_v37 }
 0x3eb   : > { %v11849_v11 = vpop.eup %11848 }
 0x3ec   : > { %v13895_v34 = vmul.f32 %v11849_v11, %v13722_v3  ;;  %v13906_v38 = vpop.eup %11850  ;;  %v1892_v3 = vmul.f32 1.442695, %v1845_v17  ;;  %v1849_v11 = vsub.f32 %v13684_v40, %v1793_v2  ;;  %v4008_v17 = vsub.f32 %v13613_v63, %v13777_v8 }
 0x3ed   : > { %v1974_v49 = vsel %vm869_vm1, %v13906_v38, 0.0 }
 0x3ee   : > { %2095 = vst.msk [vmem:[%s13813_s20 + $0x48] sm:$0xff] %vm869_vm1, %v13895_v34  ;;  %11854 = vpow2.f32 %v1892_v3  ;;  %v1900_v51 = vmul.f32 1.442695, %v1849_v11  ;;  %v4042_v3 = vmul.f32 1.442695, %v4008_v17  ;;  %v13929_v11 = vpop.xlane.xlu0 %1816  ;;  %v1848_v17 = vsub.f32 %v13609_v7, %v13754_v24 }
 0x3f0   : > { %3965 = vmax.xlane.f32.xlu0 %v3964_v6  ;;  %v13913_v6 = vpop.eup %11852  ;;  %11856 = vpow2.f32 %v1900_v51 }
 0x3f1   : > { %v1929_v40 = vsel %vm869_vm1, %v13913_v6, 0.0  ;;  %11858 = vpow2.f32 %v1862_v27 }
 0x3f2   : > { %11860 = vpow2.f32 %v1890_v43 }
 0x3f3   : > { %11862 = vpow2.f32 %v4042_v3 }
 0x3f4   : > { %v13915_v52 = vpop.eup %11854 }
 0x3f5   : > { %v1971_v10 = vsel %vm869_vm1, %v13915_v52, 0.0 }
 0x3f6   : > { %v13927_v2 = vpop.eup %11856  ;;  %v13939_v5 = vpop.permute.xlu0 %5915 }
 0x3f7   : > { %v13931_v29 = vpop.eup %11858  ;;  %v1983_v12 = vsel %vm869_vm1, %v13927_v2, 0.0  ;;  %18023 = vst [vmem:[#allocation214_spill] sm:$0xff] %v13939_v5 }
 0x3f8   : > { %1975 = vadd.xlane.f32.xlu0 %v1974_v49  ;;  %v1926_v8 = vsel %vm869_vm1, %v13931_v29, 0.0  ;;  %v13937_v49 = vpop.eup %11860 }
 0x3f9   : > { %v13941_v51 = vpop.eup %11862  ;;  %v1968_v45 = vsel %vm869_vm1, %v13937_v49, 0.0 }
 0x3fa   : > { %v4108_v3 = vsel %vm869_vm1, %v13941_v51, 0.0 }
 0x400   : > { %1930 = vadd.xlane.f32.xlu0 %v1929_v40  ;;  %v1699_v40 = vpop.f32.mrf.mxu3 }
 0x403   : > { %1972 = vadd.xlane.f32.xlu2 %v1971_v10 }
 0x408   : > { %1984 = vadd.xlane.f32.xlu0 %v1983_v12  ;;  %v3539_v12 = vpop.f32.mrf.mxu1 }
 0x409   : > { %v1943_v63 = vpop.xlane.xlu1 %1942  ;;  %v13959_v48 = vmul.f32 0.35355338, %v3539_v12 }
 0x40a   : > { %11864 = vrcp.f32 %v1943_v63  ;;  %v13955_v63 = vmul.f32 0.35355338, %v1699_v40 }
 0x40b   : > { %1927 = vadd.xlane.f32.xlu2 %v1926_v8  ;;  %v1898_v8 = vmul.f32 1.442695, %v1848_v17  ;;  %v3967_v24 = vsel %vm869_vm1, %v13959_v48, -inf }
 0x40c   : > { %v1827_v7 = vsel %vm869_vm1, %v13955_v63, -inf }
 0x40d   : > { %11866 = vpow2.f32 %v1898_v8 }
 0x410   : > { %v11865_v27 = vpop.eup %11864 }
 0x411   : > { %v13948_v10 = vmul.f32 %v11865_v27, %v13748_v4  ;;  %v1802_v43 = vpop.xlane.xlu1 %1801  ;;  %1969 = vadd.xlane.f32.xlu1 %v1968_v45  ;;  %v13965_v27 = vpop.xlane.xlu2 %1813 }
 0x413   : > { %2091 = vst.msk [vmem:[%s13813_s20 + $0x28] sm:$0xff] %vm869_vm1, %v13948_v10  ;;  %4109 = vadd.xlane.f32.xlu2 %v4108_v3  ;;  %v13969_v40 = vpop.eup %11866 }
 0x414   : > { %v1980_v8 = vsel %vm869_vm1, %v13969_v40, 0.0 }
 0x415   : > { %v13957_v37 = vpop.xlane.xlu0 %3956 }
 0x419   : > { %v1952_v4 = vpop.xlane.xlu1 %1951  ;;  %1828 = vmax.xlane.f32.xlu1 %v1827_v7  ;;  %v3623_v7 = vpop.f32.mrf.mxu0 }
 0x41a   : > { %11868 = vrcp.f32 %v1952_v4 }
 0x41b   : > { %3968 = vmax.xlane.f32.xlu2 %v3967_v24  ;;  %v13981_v24 = vpop.permute.xlu2 %5889 }
 0x41c   : > { %5999 = vrot.lane.b32.xlu0 %v13188_v1, %s12335_s14  ;;  %18024 = vst [vmem:[#allocation215_spill] sm:$0xff] %v13981_v24  ;;  %v13986_v1 = vmul.f32 0.35355338, %v3623_v7 }
 0x41d   : > { %v1967_v45 = vpop.xlane.xlu0 %1966 }
 0x41e   : > { %11870 = vrcp.f32 %v1967_v45 }
 0x420   : > { %v11869_v17 = vpop.eup %11868 }
 0x421   : > { %v13971_v3 = vpop.xlane.xlu1 %3944  ;;  %v13974_v12 = vmul.f32 %v11869_v17, %v13771_v13  ;;  %v3976_v17 = vsel %vm869_vm1, %v13986_v1, -inf }
 0x423   : > { %1981 = vadd.xlane.f32.xlu2 %v1980_v8  ;;  %2094 = vst.msk [vmem:[%s13813_s20 + $0x40] sm:$0xff] %vm869_vm1, %v13974_v12 }
 0x424   : > { %v11871_v4 = vpop.eup %11870 }
 0x425   : > { %v13984_v45 = vmul.f32 %v11871_v4, %v13781_v36  ;;  %v4013_v36 = vsub.f32 %v13680_v25, %v13845_v21 }
 0x427   : > { %2099 = vst.msk [vmem:[%s13813_s20 + $0x68] sm:$0xff] %vm869_vm1, %v13984_v45  ;;  %v4052_v47 = vmul.f32 1.442695, %v4013_v36 }
 0x429   : > { %v13991_v13 = vpop.xlane.xlu1 %1810 }
 0x42b   : > { %3977 = vmax.xlane.f32.xlu2 %v3976_v17 }
 0x42d   : > { %v1964_v8 = vpop.xlane.xlu2 %1963 }
 0x42e   : > { %11872 = vrcp.f32 %v1964_v8 }
 0x431   : > { %v1961_v5 = vpop.xlane.xlu1 %1960 }
 0x432   : > { %11874 = vrcp.f32 %v1961_v5  ;;  %5917 = vrot.lane.b32.xlu1 %v13131_v55, %s12335_s14  ;;  %v1852_v5 = vsub.f32 %v13759_v16, %v1802_v43  ;;  %v4009_v43 = vsub.f32 %v13601_v14, %v13742_v41 }
 0x433   : > { %11876 = vpow2.f32 %v4052_v47 }
 0x434   : > { %v11873_v7 = vpop.eup %11872  ;;  %v1906_v8 = vmul.f32 1.442695, %v1852_v5  ;;  %v4044_v36 = vmul.f32 1.442695, %v4009_v43  ;;  %v4012_v5 = vsub.f32 %v13635_v60, %v13785_v62 }
 0x435   : > { %v14000_v4 = vmul.f32 %v11873_v7, %v13805_v19  ;;  %v14048_v62 = vpop.xlane.xlu2 %1822 }
 0x436   : > { %11878 = vpow2.f32 %v1906_v8  ;;  %v4050_v14 = vmul.f32 1.442695, %v4012_v5 }
 0x437   : > { %2098 = vst.msk [vmem:[%s13813_s20 + $0x60] sm:$0xff] %vm869_vm1, %v14000_v4 }
 0x438   : > { %v11875_v24 = vpop.eup %11874 }
 0x439   : > { %v14006_v17 = vmul.f32 %v11875_v24, %v13827_v59  ;;  %v14012_v25 = vpop.eup %11876  ;;  %v1847_v59 = vsub.f32 %v13615_v50, %v13775_v32  ;;  %v14026_v24 = vpop.xlane.xlu0 %1825  ;;  %v1851_v50 = vsub.f32 %v13652_v39, %v13820_v23 }
 0x43a   : > { %v4123_v19 = vsel %vm869_vm1, %v14012_v25, 0.0  ;;  %v14054_v43 = vpop.xlane.xlu1 %3953 }
 0x43b   : > { %2097 = vst.msk [vmem:[%s13813_s20 + $0x58] sm:$0xff] %vm869_vm1, %v14006_v17  ;;  %v1896_v16 = vmul.f32 1.442695, %v1847_v59  ;;  %v1904_v41 = vmul.f32 1.442695, %v1851_v50  ;;  %v1850_v59 = vsub.f32 %v13660_v30, %v13832_v35 }
 0x43c   : > { %v14018_v21 = vpop.eup %11878 }
 0x43d   : > { %v1992_v47 = vsel %vm869_vm1, %v14018_v21, 0.0  ;;  %11880 = vpow2.f32 %v1896_v16  ;;  %v1902_v23 = vmul.f32 1.442695, %v1850_v59  ;;  %v14060_v5 = vpop.permute.xlu2 %5943 }
 0x43e   : > { %11882 = vpow2.f32 %v4044_v36  ;;  %18026 = vst [vmem:[#allocation217_spill] sm:$0xff] %v14060_v5 }
 0x43f   : > { %11884 = vpow2.f32 %v4050_v14 }
 0x440   : > { %11886 = vpow2.f32 %v1904_v41 }
 0x441   : > { %v14034_v32 = vpop.permute.xlu0 %5945  ;;  %11888 = vpow2.f32 %v1902_v23 }
 0x442   : > { %18025 = vst [vmem:[#allocation216_spill] sm:$0xff] %v14034_v32  ;;  %v14069_v23 = vpop.xlane.xlu1 %1819 }
 0x443   : > { %5973 = vrot.lane.b32.xlu2 %v13172_v54, %s12335_s14  ;;  %v14028_v7 = vpop.eup %11880 }
 0x444   : > { %v1977_v8 = vsel %vm869_vm1, %v14028_v7, 0.0 }
 0x446   : > { %4124 = vadd.xlane.f32.xlu0 %v4123_v19  ;;  %v14038_v19 = vpop.eup %11882 }
 0x447   : > { %v4111_v39 = vsel %vm869_vm1, %v14038_v19, 0.0 }
 0x44e   : > { %1993 = vadd.xlane.f32.xlu0 %v1992_v47  ;;  %v14050_v47 = vpop.eup %11884 }
 0x44f   : > { %v14052_v16 = vpop.eup %11886  ;;  %v4120_v36 = vsel %vm869_vm1, %v14050_v47, 0.0 }
 0x450   : > { %v1989_v35 = vsel %vm869_vm1, %v14052_v16, 0.0  ;;  %v14062_v50 = vpop.eup %11888 }
 0x451   : > { %v1986_v59 = vsel %vm869_vm1, %v14062_v50, 0.0 }
 0x459   : > { %v14082_v32 = vpop.permute.xlu1 %5887 }
 0x45c   : > { %1978 = vadd.xlane.f32.xlu1 %v1977_v8 }
 0x462   : > { %6029 = vrot.lane.b32.xlu0 %v13211_v9, %s12335_s14 }
 0x463   : > { %v14044_v60 = vpop.xlane.xlu0 %3965 }
 0x464   : > { %4112 = vadd.xlane.f32.xlu1 %v4111_v39  ;;  %v3651_v39 = vpop.f32.mrf.mxu1 }
 0x46b   : > { %v1976_v30 = vpop.xlane.xlu0 %1975 }
 0x46c   : > { %11890 = vrcp.f32 %v1976_v30  ;;  %1990 = vadd.xlane.f32.xlu2 %v1989_v35  ;;  %4121 = vadd.xlane.f32.xlu1 %v4120_v36  ;;  %v14074_v35 = vmul.f32 0.35355338, %v3651_v39 }
 0x472   : > { %v11891_v8 = vpop.eup %11890 }
 0x473   : > { %v14065_v14 = vmul.f32 %v11891_v8, %v13906_v38  ;;  %v1931_v41 = vpop.xlane.xlu0 %1930  ;;  %v4016_v38 = vsub.f32 %v13714_v56, %v13886_v18 }
 0x474   : > { %11892 = vrcp.f32 %v1931_v41  ;;  %1987 = vadd.xlane.f32.xlu1 %v1986_v59  ;;  %v3979_v41 = vsel %vm869_vm1, %v14074_v35, -inf  ;;  %v11540_v59 = vunpack.i.h.bf16 %v13055_v57 }
 0x475   : > { %2102 = vst.msk [vmem:[%s13813_s20 + $0x80] sm:$0xff] %vm869_vm1, %v14065_v14  ;;  %v4058_v56 = vmul.f32 1.442695, %v4016_v38 }
 0x476   : > { %v1973_v30 = vpop.xlane.xlu2 %1972 }
 0x477   : > { %11894 = vrcp.f32 %v1973_v30 }
 0x47a   : > { %v11893_v36 = vpop.eup %11892 }
 0x47b   : > { %v2055_v8 = vmul.f32 %v11893_v36, %v13913_v6  ;;  %v1985_v5 = vpop.xlane.xlu0 %1984  ;;  %v11560_v36 = vunpack.i.h.bf16 %v13097_v20 }
 0x47c   : > { %11896 = vrcp.f32 %v1985_v5  ;;  %3980 = vmax.xlane.f32.xlu1 %v3979_v41 }
 0x47d   : > { %v11895_v39 = vpop.eup %11894  ;;  %2087 = vst.msk [vmem:[%s13813_s20 + $0x8] sm:$0xff] %vm869_vm1, %v2055_v8  ;;  %11112 = vmatmul.msk.f32.vlgmr.msrb.gmra.mxu3 %vm869_vm1, %v2055_v8 }
 0x47e   : > { %v14088_v18 = vmul.f32 %v11895_v39, %v13915_v52  ;;  %2269 = vmatpush.msrb.mxu3 %v11540_v59  ;;  %v1928_v6 = vpop.xlane.xlu2 %1927  ;;  %v1855_v39 = vsub.f32 %v13801_v61, %v13991_v13 }
 0x47f   : > { %11898 = vrcp.f32 %v1928_v6  ;;  %v3763_v6 = vpop.f32.mrf.mxu1 }
 0x480   : > { %2101 = vst.msk [vmem:[%s13813_s20 + $0x78] sm:$0xff] %vm869_vm1, %v14088_v18  ;;  %11900 = vpow2.f32 %v4058_v56 }
 0x482   : > { %v11897_v30 = vpop.eup %11896 }
 0x483   : > { %v14094_v5 = vmul.f32 %v11897_v30, %v13927_v2  ;;  %v11539_v2 = vunpack.i.l.bf16 %v13055_v57 }
 0x484   : > { %6027 = vrot.lane.b32.xlu2 %v13209_v46, %s12335_s14  ;;  %v1970_v38 = vpop.xlane.xlu1 %1969 }
 0x485   : > { %v11899_v52 = vpop.eup %11898  ;;  %2105 = vst.msk [vmem:[%s13813_s20 + $0x98] sm:$0xff] %vm869_vm1, %v14094_v5  ;;  %11902 = vrcp.f32 %v1970_v38  ;;  %11114 = vmatmul.msk.f32.vlgmr.msra.gmra.mxu3 %vm869_vm1, %v13830_v26  ;;  %v11559_v38 = vunpack.i.l.bf16 %v13097_v20  ;;  %v18028_v20 = vld [vmem:[#allocation118_spill] sm:$0xff] }
 0x486   : > { %v2054_v8 = vmul.f32 %v11899_v52, %v13931_v29  ;;  %2321 = vmatpush.msra.mxu3 %v11560_v36  ;;  %v4110_v41 = vpop.xlane.xlu2 %4109  ;;  %v14106_v59 = vpop.eup %11900  ;;  %v11570_v29 = vunpack.i.h.bf16 %v13221_v53  ;;  %v1912_v36 = vmul.f32 1.442695, %v1855_v39  ;;  %v14131_v52 = vmul.f32 0.35355338, %v3763_v6  ;;  %v18029_v39 = vld [vmem:[#allocation210_spill] sm:$0xff] }
 0x487   : > { %11904 = vrcp.f32 %v4110_v41  ;;  %v4132_v26 = vsel %vm869_vm1, %v14106_v59, 0.0  ;;  %v11569_v41 = vunpack.i.l.bf16 %v13221_v53 }
 0x488   : > { %2086 = vst.msk [vmem:[%s13813_s20] sm:$0xff] %vm869_vm1, %v2054_v8  ;;  %11111 = vmatmul.msk.f32.vlgmr.msrb.gmra.mxu2 %vm869_vm1, %v2054_v8  ;;  %11906 = vpow2.f32 %v1912_v36 }
 0x489   : > { %2243 = vmatpush.msrb.mxu2 %v11539_v2 }
 0x48b   : > { %v11903_v56 = vpop.eup %11902 }
 0x48c   : > { %v14117_v57 = vmul.f32 %v11903_v56, %v13937_v49  ;;  %4133 = vadd.xlane.f32.xlu0 %v4132_v26  ;;  %v11584_v49 = vunpack.i.l.bf16 %v13291_v28  ;;  %v18030_v56 = vld [vmem:[#allocation197_spill] sm:$0xff] }
 0x48d   : > { %v11905_v30 = vpop.eup %11904  ;;  %11116 = vmatmul.msk.f32.vlgmr.msrb.gmra.mxu3 %vm869_vm1, %v13948_v10  ;;  %v18027_v10 = vld [vmem:[#allocation134_spill] sm:$0xff]  ;;  %v1854_v26 = vsub.f32 %v18030_v56, %v13857_v0 }
 0x48e   : > { %2100 = vst.msk [vmem:[%s13813_s20 + $0x70] sm:$0xff] %vm869_vm1, %v14117_v57  ;;  %v14125_v61 = vmul.f32 %v11905_v30, %v13941_v51  ;;  %2373 = vmatpush.msrb.mxu3 %v11570_v29  ;;  %v14127_v13 = vpop.xlane.xlu2 %3968  ;;  %v3991_v51 = vsel %vm869_vm1, %v14131_v52, -inf  ;;  %v11580_v8 = vunpack.i.h.bf16 %v18027_v10  ;;  %v14145_v2 = vpop.eup %11906  ;;  %v18031_v29 = vld [vmem:[#allocation147_spill] sm:$0xff]  ;;  %v11579_v36 = vunpack.i.l.bf16 %v18027_v10  ;;  %v18032_v0 = vld [vmem:[#allocation206_spill] sm:$0xff] }
 0x48f   : > { %v11590_v6 = vunpack.i.h.bf16 %v18031_v29 }
 0x490   : > { %11113 = vmatmul.msk.f32.vlgmr.msra.gmra.mxu2 %vm869_vm1, %v13850_v33  ;;  %11209 = vmatmul.msk.f32.vlgmr.msrb.gmra.mxu0 %vm869_vm1, %v14125_v61 }
 0x491   : > { %2295 = vmatpush.msra.mxu2 %v11559_v38  ;;  %4693 = vmatpush.msrb.mxu0 %v11584_v49  ;;  %v1910_v38 = vmul.f32 1.442695, %v1854_v26  ;;  %v4017_v49 = vsub.f32 %v18032_v0, %v13971_v3  ;;  %v3735_v0 = vpop.f32.mrf.mxu0 }
 0x493   : > { %v4060_v10 = vmul.f32 1.442695, %v4017_v49  ;;  %v14204_v49 = vpop.xlane.xlu1 %1828 }
 0x494   : > { %3992 = vmax.xlane.f32.xlu0 %v3991_v51  ;;  %v18033_v51 = vld [vmem:[#allocation166_spill] sm:$0xff] }
 0x495   : > { %11118 = vmatmul.msk.f32.vlgmr.msra.gmra.mxu3 %vm869_vm1, %v13855_v31  ;;  %5971 = vrot.lane.b32.xlu1 %v18028_v20, %s12335_s14  ;;  %v2001_v31 = vsel %vm869_vm1, %v14145_v2, 0.0 }
 0x496   : > { %2425 = vmatpush.msra.mxu3 %v11580_v8  ;;  %v1982_v33 = vpop.xlane.xlu2 %1981 }
 0x497   : > { %11908 = vrcp.f32 %v1982_v33 }
 0x498   : > { %11115 = vmatmul.msk.f32.vlgmr.msrb.gmra.mxu2 %vm869_vm1, %v18029_v39  ;;  %11910 = vpow2.f32 %v1910_v38 }
 0x499   : > { %2347 = vmatpush.msrb.mxu2 %v11569_v41  ;;  %11912 = vpow2.f32 %v4060_v10  ;;  %v18035_v41 = vld [vmem:[#allocation198_spill] sm:$0xff] }
 0x49a   : > { %v1853_v39 = vsub.f32 %v18035_v41, %v13873_v44  ;;  %v18037_v44 = vld [vmem:[#allocation173_spill] sm:$0xff]  ;;  %v18040_v41 = vld [vmem:[#allocation182_spill] sm:$0xff] }
 0x49b   : > { %v11619_v38 = vunpack.i.l.bf16 %v18037_v44 }
 0x49c   : > { %2002 = vadd.xlane.f32.xlu0 %v2001_v31  ;;  %v1908_v26 = vmul.f32 1.442695, %v1853_v39  ;;  %v14189_v31 = vpop.permute.xlu0 %5999  ;;  %v11639_v39 = vunpack.i.l.bf16 %v18040_v41 }
 0x49d   : > { %v11909_v30 = vpop.eup %11908  ;;  %11120 = vmatmul.msk.f32.vlgmr.msrb.gmra.mxu3 %vm869_vm1, %v13895_v34  ;;  %v11600_v34 = vunpack.i.h.bf16 %v18033_v51 }
 0x49e   : > { %v14157_v53 = vmul.f32 %v11909_v30, %v13969_v40  ;;  %2477 = vmatpush.msrb.mxu3 %v11590_v6  ;;  %v11589_v40 = vunpack.i.l.bf16 %v18031_v29  ;;  %v14173_v8 = vpop.eup %11910  ;;  %v11620_v29 = vunpack.i.h.bf16 %v18037_v44  ;;  %11914 = vpow2.f32 %v1908_v26 }
 0x49f   : > { %v1998_v3 = vsel %vm869_vm1, %v14173_v8, 0.0  ;;  %v14187_v56 = vpop.eup %11912 }
 0x4a0   : > { %2104 = vst.msk [vmem:[%s13813_s20 + $0x90] sm:$0xff] %vm869_vm1, %v14157_v53  ;;  %11117 = vmatmul.msk.f32.vlgmr.msra.gmra.mxu2 %vm869_vm1, %v13871_v15  ;;  %v18034_v15 = vld [vmem:[#allocation168_spill] sm:$0xff] }
 0x4a1   : > { %2399 = vmatpush.msra.mxu2 %v11579_v36  ;;  %v11610_v33 = vunpack.i.h.bf16 %v18034_v15 }
 0x4a4   : > { %v14199_v30 = vpop.eup %11914  ;;  %v14213_v10 = vpop.permute.xlu1 %5917 }
 0x4a5   : > { %11122 = vmatmul.msk.f32.vlgmr.msra.gmra.mxu3 %vm869_vm1, %v14006_v17  ;;  %v11599_v17 = vunpack.i.l.bf16 %v18033_v51  ;;  %v1995_v36 = vsel %vm869_vm1, %v14199_v30, 0.0 }
 0x4a6   : > { %2529 = vmatpush.msra.mxu3 %v11600_v34  ;;  %v18038_v34 = vld [vmem:[#allocation181_spill] sm:$0xff] }
 0x4a8   : > { %11119 = vmatmul.msk.f32.vlgmr.msrb.gmra.mxu2 %vm869_vm1, %v13974_v12  ;;  %v18036_v12 = vld [vmem:[#allocation137_spill] sm:$0xff] }
 0x4a9   : > { %2451 = vmatpush.msrb.mxu2 %v11589_v40  ;;  %v11629_v40 = vunpack.i.l.bf16 %v18038_v34 }
 0x4ad   : > { %1999 = vadd.xlane.f32.xlu2 %v1998_v3  ;;  %11124 = vmatmul.msk.f32.vlgmr.msrb.gmra.mxu3 %vm869_vm1, %v13984_v45  ;;  %v4135_v45 = vsel %vm869_vm1, %v14187_v56, 0.0  ;;  %v18039_v3 = vld [vmem:[#allocation130_spill] sm:$0xff] }
 0x4ae   : > { %2581 = vmatpush.msrb.mxu3 %v11610_v33 }
 0x4b0   : > { %11121 = vmatmul.msk.f32.vlgmr.msra.gmra.mxu2 %vm869_vm1, %v13879_v42  ;;  %6083 = vrot.lane.b32.xlu0 %v18036_v12, %s12335_s14  ;;  %v11609_v42 = vunpack.i.l.bf16 %v18034_v15 }
 0x4b1   : > { %2503 = vmatpush.msra.mxu2 %v11599_v17 }
 0x4b5   : > { %4136 = vadd.xlane.f32.xlu2 %v4135_v45  ;;  %11126 = vmatmul.msk.f32.vlgmr.msra.gmra.mxu3 %vm869_vm1, %v14088_v18 }
 0x4b6   : > { %2633 = vmatpush.msra.mxu3 %v11620_v29 }
 0x4b8   : > { %11123 = vmatmul.msk.f32.vlgmr.msrb.gmra.mxu2 %vm869_vm1, %v14000_v4  ;;  %v14208_v4 = vmul.f32 0.35355338, %v3735_v0 }
 0x4b9   : > { %2555 = vmatpush.msrb.mxu2 %v11609_v42  ;;  %v4125_v6 = vpop.xlane.xlu0 %4124 }
 0x4ba   : > { %v3988_v51 = vsel %vm869_vm1, %v14208_v4, -inf }
 0x4bf   : > { %1996 = vadd.xlane.f32.xlu1 %v1995_v36 }
 0x4c0   : > { %11125 = vmatmul.msk.f32.vlgmr.msra.gmra.mxu2 %vm869_vm1, %v14117_v57  ;;  %v14223_v57 = vpop.xlane.xlu2 %3977 }
 0x4c1   : > { %2607 = vmatpush.msra.mxu2 %v11619_v38  ;;  %v1994_v18 = vpop.xlane.xlu0 %1993  ;;  %v11630_v38 = vunpack.i.h.bf16 %v18038_v34  ;;  %v11640_v34 = vunpack.i.h.bf16 %v18040_v41 }
 0x4c2   : > { %11916 = vrcp.f32 %v1994_v18 }
 0x4c7   : > { %3989 = vmax.xlane.f32.xlu1 %v3988_v51  ;;  %v11585_v51 = vunpack.i.h.bf16 %v13291_v28 }
 0x4c8   : > { %v11917_v15 = vpop.eup %11916  ;;  %11127 = vmatmul.msk.f32.vlgmr.msrb.gmra.mxu2 %vm869_vm1, %v14065_v14  ;;  %v3847_v14 = vpop.f32.mrf.mxu0 }
 0x4c9   : > { %v14218_v33 = vmul.f32 %v11917_v15, %v14018_v21  ;;  %2659 = vmatpush.msrb.mxu2 %v11629_v40  ;;  %v1858_v21 = vsub.f32 %v13863_v58, %v14069_v23  ;;  %v14232_v26 = vmul.f32 0.35355338, %v3847_v14  ;;  %v14234_v45 = vpop.permute.xlu2 %5973  ;;  %v18041_v40 = vld [vmem:[#allocation125_spill] sm:$0xff] }
 0x4ca   : > { %v18043_v14 = vld [vmem:[#allocation189_spill] sm:$0xff] }
 0x4cb   : > { %2108 = vst.msk [vmem:[%s13813_s20 + $0xb0] sm:$0xff] %vm869_vm1, %v14218_v33  ;;  %v1918_v44 = vmul.f32 1.442695, %v1858_v21  ;;  %v4000_v58 = vsel %vm869_vm1, %v14232_v26, -inf }
 0x4cd   : > { %6057 = vrot.lane.b32.xlu2 %v18039_v3, %s12335_s14 }
 0x4cf   : > { %v1979_v17 = vpop.xlane.xlu1 %1978 }
 0x4d0   : > { %11129 = vmatmul.msk.f32.vlgmr.msra.gmra.mxu2 %vm869_vm1, %v14157_v53  ;;  %11918 = vrcp.f32 %v1979_v17 }
 0x4d1   : > { %2711 = vmatpush.msra.mxu2 %v11639_v39 }
 0x4d6   : > { %v11919_v29 = vpop.eup %11918 }
 0x4d7   : > { %v2071_v42 = vmul.f32 %v11919_v29, %v14028_v7  ;;  %v4113_v36 = vpop.xlane.xlu1 %4112 }
 0x4d8   : > { %11920 = vrcp.f32 %v4113_v36  ;;  %v18044_v36 = vld [vmem:[#allocation161_spill] sm:$0xff] }
 0x4d9   : > { %11922 = vpow2.f32 %v1918_v44  ;;  %2103 = vst.msk [vmem:[%s13813_s20 + $0x88] sm:$0xff] %vm869_vm1, %v2071_v42  ;;  %11128 = vmatmul.msk.f32.vlgmr.msrb.gmra.mxu3 %vm869_vm1, %v2071_v42  ;;  %v11650_v44 = vunpack.i.h.bf16 %v18043_v14 }
 0x4da   : > { %2685 = vmatpush.msrb.mxu3 %v11630_v38  ;;  %4001 = vmax.xlane.f32.xlu0 %v4000_v58  ;;  %11924 = vrcp.f32 %v4125_v6  ;;  %v18042_v6 = vld [vmem:[#allocation199_spill] sm:$0xff]  ;;  %v11605_v38 = vunpack.i.h.bf16 %v18044_v36  ;;  %v11649_v58 = vunpack.i.l.bf16 %v18043_v14 }
 0x4db   : > { %v1857_v15 = vsub.f32 %v18042_v6, %v13929_v11  ;;  %v11604_v11 = vunpack.i.l.bf16 %v18044_v36 }
 0x4dd   : > { %v1916_v29 = vmul.f32 1.442695, %v1857_v15 }
 0x4de   : > { %v11921_v23 = vpop.eup %11920 }
 0x4df   : > { %v14243_v53 = vpop.eup %11922  ;;  %v14246_v7 = vmul.f32 %v11921_v23, %v14038_v19  ;;  %v1991_v0 = vpop.xlane.xlu2 %1990 }
 0x4e0   : > { %v4122_v18 = vpop.xlane.xlu1 %4121  ;;  %11926 = vrcp.f32 %v1991_v0  ;;  %6001 = vrot.lane.b32.xlu1 %v18041_v40, %s12335_s14  ;;  %v2010_v19 = vsel %vm869_vm1, %v14243_v53, 0.0  ;;  %v11925_v28 = vpop.eup %11924  ;;  %v18124_v40 = vld [vmem:[#allocation195_spill] sm:$0xff] }
 0x4e1   : > { %11928 = vrcp.f32 %v4122_v18  ;;  %11130 = vmatmul.msk.f32.vlgmr.msra.gmra.mxu3 %vm869_vm1, %v14094_v5  ;;  %11210 = vmatmul.msk.f32.vlgmr.msra.gmra.mxu1 %vm869_vm1, %v14246_v7  ;;  %v14261_v17 = vmul.f32 %v11925_v28, %v14012_v25  ;;  %v4020_v25 = vsub.f32 %v13841_v22, %v14054_v43  ;;  %v18045_v22 = vld [vmem:[#allocation200_spill] sm:$0xff] }
 0x4e2   : > { %2737 = vmatpush.msra.mxu3 %v11640_v34  ;;  %4718 = vmatpush.msra.mxu1 %v11585_v51  ;;  %v1856_v43 = vsub.f32 %v18045_v22, %v13965_v27  ;;  %v14290_v51 = vpop.permute.xlu0 %6029  ;;  %v18047_v34 = vld [vmem:[#allocation83_spill] sm:$0xff]  ;;  %v18048_v27 = vld [vmem:[#allocation33_spill] sm:$0xff]  ;;  %v1861_v22 = vsub.f32 %v13955_v63, %v14204_v49 }
 0x4e3   : > { %2011 = vadd.xlane.f32.xlu0 %v2010_v19  ;;  %v4066_v23 = vmul.f32 1.442695, %v4020_v25  ;;  %v11504_v19 = vunpack.i.l.bf16 %v18047_v34 }
 0x4e4   : > { %v1914_v6 = vmul.f32 1.442695, %v1856_v43 }
 0x4e6   : > { %v11927_v41 = vpop.eup %11926 }
 0x4e7   : > { %v11929_v39 = vpop.eup %11928  ;;  %v2075_v5 = vmul.f32 %v11927_v41, %v14052_v16  ;;  %v3875_v41 = vpop.f32.mrf.mxu1 }
 0x4e8   : > { %v1988_v21 = vpop.xlane.xlu1 %1987  ;;  %v14266_v42 = vmul.f32 %v11929_v39, %v14050_v47 }
 0x4e9   : > { %11930 = vrcp.f32 %v1988_v21  ;;  %2107 = vst.msk [vmem:[%s13813_s20 + $0xa8] sm:$0xff] %vm869_vm1, %v2075_v5  ;;  %11132 = vmatmul.msk.f32.vlgmr.msrb.gmra.mxu3 %vm869_vm1, %v2075_v5  ;;  %11214 = vmatmul.msk.f32.vlgmr.msrb.gmra.mxu1 %vm869_vm1, %v14261_v17  ;;  %v14303_v21 = vmul.f32 0.35355338, %v3875_v41 }
 0x4ea   : > { %2789 = vmatpush.msrb.mxu3 %v11650_v44  ;;  %11213 = vmatmul.msk.f32.vlgmr.msra.gmra.mxu0 %vm869_vm1, %v14266_v42  ;;  %11932 = vpow2.f32 %v1916_v29 }
 0x4eb   : > { %4793 = vmatpush.msra.mxu0 %v11604_v11  ;;  %4818 = vmatpush.msrb.mxu1 %v11605_v38  ;;  %11934 = vpow2.f32 %v4066_v23  ;;  %v4003_v14 = vsel %vm869_vm1, %v14303_v21, -inf  ;;  %v18049_v38 = vld [vmem:[#allocation178_spill] sm:$0xff] }
 0x4ec   : > { %11936 = vpow2.f32 %v1914_v6  ;;  %v11624_v11 = vunpack.i.l.bf16 %v18049_v38 }
 0x4ef   : > { %v11931_v47 = vpop.eup %11930 }
 0x4f0   : > { %v2074_v16 = vmul.f32 %v11931_v47, %v14062_v50  ;;  %v14284_v0 = vpop.eup %11932  ;;  %v18046_v50 = vld [vmem:[#allocation140_spill] sm:$0xff] }
 0x4f1   : > { %v2007_v18 = vsel %vm869_vm1, %v14284_v0, 0.0  ;;  %v14297_v28 = vpop.eup %11934 }
 0x4f2   : > { %2106 = vst.msk [vmem:[%s13813_s20 + $0xa0] sm:$0xff] %vm869_vm1, %v2074_v16  ;;  %11131 = vmatmul.msk.f32.vlgmr.msrb.gmra.mxu2 %vm869_vm1, %v2074_v16  ;;  %v4144_v15 = vsel %vm869_vm1, %v14297_v28, 0.0 }
 0x4f3   : > { %2763 = vmatpush.msrb.mxu2 %v11649_v58 }
 0x4f6   : > { %2008 = vadd.xlane.f32.xlu2 %v2007_v18 }
 0x4f7   : > { %6113 = vrot.lane.b32.xlu0 %v18046_v50, %s12335_s14 }
 0x4fa   : > { %11133 = vmatmul.msk.f32.vlgmr.msra.gmra.mxu2 %vm869_vm1, %v14218_v33  ;;  %v14306_v33 = vpop.eup %11936 }
 0x4fb   : > { %2815 = vmatpush.msra.mxu2 %v11504_v19  ;;  %v2004_v47 = vsel %vm869_vm1, %v14306_v33, 0.0  ;;  %v14329_v19 = vpop.permute.xlu2 %6027 }
 0x4fe   : > { %4145 = vadd.xlane.f32.xlu2 %v4144_v15  ;;  %v1924_v15 = vmul.f32 1.442695, %v1861_v22 }
 0x4ff   : > { %6167 = vrot.lane.b32.xlu0 %v18048_v27, %s12335_s14  ;;  %v4134_v39 = vpop.xlane.xlu0 %4133 }
 0x500   : > { %11938 = vrcp.f32 %v4134_v39  ;;  %v2167_v5 = vpop.f32.mrf.mxu3  ;;  %v18050_v39 = vld [vmem:[#allocation27_spill] sm:$0xff] }
 0x501   : > { %2951 = vst.msk [vmem:[#allocation2 + $0x8] sm:$0xff] %vm869_vm1, %v2167_v5 }
 0x506   : > { %v11939_v44 = vpop.eup %11938  ;;  %4004 = vmax.xlane.f32.xlu2 %v4003_v14  ;;  %v18051_v14 = vld [vmem:[#allocation131_spill] sm:$0xff] }
 0x507   : > { %v14311_v29 = vmul.f32 %v11939_v44, %v14106_v59  ;;  %v14313_v36 = vpop.xlane.xlu0 %3992 }
 0x508   : > { %v2219_v25 = vpop.f32.mrf.mxu3 }
 0x509   : > { %2953 = vst.msk [vmem:[#allocation2 + $0x18] sm:$0xff] %vm869_vm1, %v2219_v25  ;;  %11217 = vmatmul.msk.f32.vlgmr.msrb.gmra.mxu0 %vm869_vm1, %v14311_v29 }
 0x50a   : > { %4893 = vmatpush.msrb.mxu0 %v11624_v11  ;;  %2005 = vadd.xlane.f32.xlu1 %v2004_v47  ;;  %v18052_v11 = vld [vmem:[#allocation145_spill] sm:$0xff] }
 0x50b   : > { %v2141_v16 = vpop.f32.mrf.mxu2 }
 0x50c   : > { %2950 = vst.msk [vmem:[#allocation2] sm:$0xff] %vm869_vm1, %v2141_v16 }
 0x50f   : > { %v2003_v59 = vpop.xlane.xlu0 %2002 }
 0x510   : > { %11940 = vrcp.f32 %v2003_v59  ;;  %v2271_v58 = vpop.f32.mrf.mxu3 }
 0x511   : > { %2955 = vst.msk [vmem:[#allocation2 + $0x28] sm:$0xff] %vm869_vm1, %v2271_v58  ;;  %11942 = vpow2.f32 %v1924_v15 }
 0x513   : > { %v2193_v23 = vpop.f32.mrf.mxu2 }
 0x514   : > { %2952 = vst.msk [vmem:[#allocation2 + $0x10] sm:$0xff] %vm869_vm1, %v2193_v23  ;;  %v18053_v23 = vld [vmem:[#allocation84_spill] sm:$0xff] }
 0x516   : > { %v11941_v18 = vpop.eup %11940 }
 0x517   : > { %v14327_v43 = vmul.f32 %v11941_v18, %v14145_v2  ;;  %v14339_v2 = vpop.xlane.xlu1 %3980  ;;  %v14344_v44 = vpop.eup %11942  ;;  %v11524_v18 = vunpack.i.l.bf16 %v18053_v23 }
 0x518   : > { %v2323_v6 = vpop.f32.mrf.mxu3  ;;  %v2019_v58 = vsel %vm869_vm1, %v14344_v44, 0.0 }
 0x519   : > { %2111 = vst.msk [vmem:[%s13813_s20 + $0xc8] sm:$0xff] %vm869_vm1, %v14327_v43 }
 0x51a   : > { %2957 = vst.msk [vmem:[#allocation2 + $0x38] sm:$0xff] %vm869_vm1, %v2323_v6 }
 0x51b   : > { %v2245_v41 = vpop.f32.mrf.mxu2 }
 0x51c   : > { %2954 = vst.msk [vmem:[#allocation2 + $0x20] sm:$0xff] %vm869_vm1, %v2245_v41 }
 0x51e   : > { %6111 = vrot.lane.b32.xlu2 %v18050_v39, %s12335_s14  ;;  %v18123_v39 = vld [vmem:[#allocation91_spill] sm:$0xff] }
 0x51f   : > { %v14353_v22 = vpop.permute.xlu1 %5971 }
 0x520   : > { %v2000_v63 = vpop.xlane.xlu2 %1999  ;;  %v2375_v49 = vpop.f32.mrf.mxu3  ;;  %18054 = vst [vmem:[#allocation134_spill] sm:$0xff] %v14353_v22 }
 0x521   : > { %11944 = vrcp.f32 %v2000_v63  ;;  %2959 = vst.msk [vmem:[#allocation2 + $0x48] sm:$0xff] %vm869_vm1, %v2375_v49  ;;  %v11625_v63 = vunpack.i.h.bf16 %v18049_v38  ;;  %v18055_v38 = vld [vmem:[#allocation204_spill] sm:$0xff] }
 0x523   : > { %v2297_v5 = vpop.f32.mrf.mxu2  ;;  %6055 = vrot.lane.b32.xlu1 %v18051_v14, %s12335_s14 }
 0x524   : > { %2956 = vst.msk [vmem:[#allocation2 + $0x30] sm:$0xff] %vm869_vm1, %v2297_v5 }
 0x526   : > { %6141 = vrot.lane.b32.xlu2 %v18052_v11, %s12335_s14 }
 0x527   : > { %v11945_v25 = vpop.eup %11944 }
 0x528   : > { %v2078_v47 = vmul.f32 %v11945_v25, %v14173_v8  ;;  %v4137_v16 = vpop.xlane.xlu2 %4136  ;;  %v2427_v59 = vpop.f32.mrf.mxu3 }
 0x529   : > { %11946 = vrcp.f32 %v4137_v16  ;;  %2961 = vst.msk [vmem:[#allocation2 + $0x58] sm:$0xff] %vm869_vm1, %v2427_v59  ;;  %2020 = vadd.xlane.f32.xlu0 %v2019_v58  ;;  %v11505_v16 = vunpack.i.h.bf16 %v18047_v34  ;;  %v4021_v59 = vsub.f32 %v18055_v38, %v13957_v37  ;;  %v18057_v37 = vld [vmem:[#allocation211_spill] sm:$0xff] }
 0x52a   : > { %2110 = vst.msk [vmem:[%s13813_s20 + $0xc0] sm:$0xff] %vm869_vm1, %v2078_v47  ;;  %11135 = vmatmul.msk.f32.vlgmr.msrb.gmra.mxu2 %vm869_vm1, %v2078_v47 }
 0x52b   : > { %2867 = vmatpush.msrb.mxu2 %v11524_v18  ;;  %v2349_v6 = vpop.f32.mrf.mxu2  ;;  %v18056_v18 = vld [vmem:[#allocation208_spill] sm:$0xff] }
 0x52c   : > { %2958 = vst.msk [vmem:[#allocation2 + $0x40] sm:$0xff] %vm869_vm1, %v2349_v6  ;;  %v1860_v6 = vsub.f32 %v18056_v18, %v14026_v24  ;;  %v14386_v24 = vpop.permute.xlu0 %6083 }
 0x52d   : > { %18058 = vst [vmem:[#allocation210_spill] sm:$0xff] %v14386_v24  ;;  %v18130_v24 = vld [vmem:[#allocation202_spill] sm:$0xff] }
 0x52e   : > { %v1922_v34 = vmul.f32 1.442695, %v1860_v6 }
 0x52f   : > { %v11947_v8 = vpop.eup %11946 }
 0x530   : > { %v14360_v15 = vmul.f32 %v11947_v8, %v14187_v56  ;;  %v2479_v41 = vpop.f32.mrf.mxu3  ;;  %v11525_v8 = vunpack.i.h.bf16 %v18053_v23 }
 0x531   : > { %2963 = vst.msk [vmem:[#allocation2 + $0x68] sm:$0xff] %vm869_vm1, %v2479_v41  ;;  %v1859_v41 = vsub.f32 %v18057_v37, %v14048_v62  ;;  %v14416_v37 = vpop.permute.xlu2 %6057 }
 0x532   : > { %11218 = vmatmul.msk.f32.vlgmr.msra.gmra.mxu1 %vm869_vm1, %v14360_v15  ;;  %v1997_v49 = vpop.xlane.xlu1 %1996 }
 0x533   : > { %4918 = vmatpush.msra.mxu1 %v11625_v63  ;;  %v2401_v5 = vpop.f32.mrf.mxu2  ;;  %11948 = vrcp.f32 %v1997_v49  ;;  %v1920_v49 = vmul.f32 1.442695, %v1859_v41 }
 0x534   : > { %2960 = vst.msk [vmem:[#allocation2 + $0x50] sm:$0xff] %vm869_vm1, %v2401_v5 }
 0x538   : > { %v2531_v25 = vpop.f32.mrf.mxu3 }
 0x539   : > { %v11949_v47 = vpop.eup %11948  ;;  %2965 = vst.msk [vmem:[#allocation2 + $0x78] sm:$0xff] %vm869_vm1, %v2531_v25 }
 0x53a   : > { %v2077_v56 = vmul.f32 %v11949_v47, %v14199_v30  ;;  %v4068_v30 = vmul.f32 1.442695, %v4021_v59 }
 0x53b   : > { %v2453_v58 = vpop.f32.mrf.mxu2 }
 0x53c   : > { %2109 = vst.msk [vmem:[%s13813_s20 + $0xb8] sm:$0xff] %vm869_vm1, %v2077_v56  ;;  %11134 = vmatmul.msk.f32.vlgmr.msra.gmra.mxu3 %vm869_vm1, %v2077_v56  ;;  %11950 = vpow2.f32 %v4068_v30 }
 0x53d   : > { %2962 = vst.msk [vmem:[#allocation2 + $0x60] sm:$0xff] %vm869_vm1, %v2453_v58  ;;  %4298 = vrot.lane.b32.xlu0 %v14125_v61, %s12338_s16  ;;  %2841 = vmatpush.msra.mxu3 %v11505_v16  ;;  %11952 = vpow2.f32 %v1922_v34  ;;  %v18059_v61 = vld [vmem:[#allocation152_spill] sm:$0xff]  ;;  %v18062_v34 = vld [vmem:[#allocation62_spill] sm:$0xff] }
 0x53e   : > { %11954 = vpow2.f32 %v1920_v49  ;;  %v18061_v58 = vld [vmem:[#allocation32_spill] sm:$0xff] }
 0x542   : > { %v14390_v5 = vpop.eup %11950 }
 0x543   : > { %v2505_v63 = vpop.f32.mrf.mxu2  ;;  %v14392_v23 = vpop.eup %11952  ;;  %v4147_v25 = vsel %vm869_vm1, %v14390_v5, 0.0 }
 0x544   : > { %2964 = vst.msk [vmem:[#allocation2 + $0x70] sm:$0xff] %vm869_vm1, %v2505_v63  ;;  %11136 = vmatmul.msk.f32.vlgmr.msrb.gmra.mxu3 %vm869_vm1, %v14327_v43  ;;  %v18060_v43 = vld [vmem:[#allocation43_spill] sm:$0xff]  ;;  %v2016_v56 = vsel %vm869_vm1, %v14392_v23, 0.0  ;;  %v14403_v16 = vpop.eup %11954  ;;  %v18063_v63 = vld [vmem:[#allocation36_spill] sm:$0xff] }
 0x545   : > { %6197 = vrot.lane.b32.xlu0 %v18059_v61, %s12335_s14  ;;  %2893 = vmatpush.msrb.mxu3 %v11525_v8  ;;  %v2013_v59 = vsel %vm869_vm1, %v14403_v16, 0.0 }
 0x54b   : > { %v2557_v62 = vpop.f32.mrf.mxu2 }
 0x54c   : > { %2966 = vst.msk [vmem:[#allocation2 + $0x80] sm:$0xff] %vm869_vm1, %v2557_v62 }
 0x54d   : > { %6251 = vrot.lane.b32.xlu0 %v18060_v43, %s12335_s14  ;;  %v14399_v47 = vpop.xlane.xlu0 %4001  ;;  %4148 = vadd.xlane.f32.xlu1 %v4147_v25  ;;  %v14421_v25 = vpop.xlane.xlu1 %3989  ;;  %v18246_v43 = vld [vmem:[#allocation160_spill] sm:$0xff] }
 0x54f   : > { %2017 = vadd.xlane.f32.xlu2 %v2016_v56  ;;  %v18065_v56 = vld [vmem:[#allocation156_spill] sm:$0xff] }
 0x553   : > { %v2609_v38 = vpop.f32.mrf.mxu2 }
 0x554   : > { %2968 = vst.msk [vmem:[#allocation2 + $0x90] sm:$0xff] %vm869_vm1, %v2609_v38 }
 0x555   : > { %11657 = vrot.lane.b32.xlu0 %v18061_v58, %s12339_s21  ;;  %2014 = vadd.xlane.f32.xlu1 %v2013_v59 }
 0x556   : > { %v2012_v18 = vpop.xlane.xlu0 %2011 }
 0x557   : > { %11956 = vrcp.f32 %v2012_v18  ;;  %v18066_v18 = vld [vmem:[#allocation92_spill] sm:$0xff] }
 0x55c   : > { %v2583_v6 = vpop.f32.mrf.mxu3 }
 0x55d   : > { %v11957_v30 = vpop.eup %11956  ;;  %11672 = vrot.lane.b32.xlu0 %v18062_v34, %s12339_s21  ;;  %2967 = vst.msk [vmem:[#allocation2 + $0x88] sm:$0xff] %vm869_vm1, %v2583_v6  ;;  %v11545_v6 = vunpack.i.h.bf16 %v18066_v18  ;;  %v4025_v34 = vsub.f32 %v13959_v48, %v14127_v13 }
 0x55e   : > { %v2082_v8 = vmul.f32 %v11957_v30, %v14243_v53  ;;  %v18064_v53 = vld [vmem:[#allocation136_spill] sm:$0xff] }
 0x560   : > { %2114 = vst.msk [vmem:[%s13813_s20 + $0xe0] sm:$0xff] %vm869_vm1, %v2082_v8 }
 0x564   : > { %v2635_v41 = vpop.f32.mrf.mxu3 }
 0x565   : > { %2969 = vst.msk [vmem:[#allocation2 + $0x98] sm:$0xff] %vm869_vm1, %v2635_v41  ;;  %v14435_v41 = vpop.permute.xlu1 %6001 }
 0x567   : > { %6195 = vrot.lane.b32.xlu2 %v18063_v63, %s12335_s14  ;;  %v11544_v63 = vunpack.i.l.bf16 %v18066_v18  ;;  %v18074_v18 = vld [vmem:[#allocation111_spill] sm:$0xff] }
 0x569   : > { %v2009_v49 = vpop.xlane.xlu2 %2008 }
 0x56a   : > { %11958 = vrcp.f32 %v2009_v49  ;;  %v18067_v49 = vld [vmem:[#allocation30_spill] sm:$0xff] }
 0x56c   : > { %v2687_v62 = vpop.f32.mrf.mxu3 }
 0x56d   : > { %2971 = vst.msk [vmem:[#allocation2 + $0xa8] sm:$0xff] %vm869_vm1, %v2687_v62 }
 0x56e   : > { %6085 = vrot.lane.b32.xlu1 %v18064_v53, %s12335_s14 }
 0x56f   : > { %6225 = vrot.lane.b32.xlu2 %v18065_v56, %s12335_s14 }
 0x570   : > { %v11959_v38 = vpop.eup %11958 }
 0x571   : > { %v2081_v59 = vmul.f32 %v11959_v38, %v14284_v0  ;;  %v4146_v58 = vpop.xlane.xlu2 %4145  ;;  %v18068_v0 = vld [vmem:[#allocation42_spill] sm:$0xff]  ;;  %v4076_v38 = vmul.f32 1.442695, %v4025_v34 }
 0x572   : > { %11960 = vrcp.f32 %v4146_v58 }
 0x573   : > { %2113 = vst.msk [vmem:[%s13813_s20 + $0xd8] sm:$0xff] %vm869_vm1, %v2081_v59  ;;  %11138 = vmatmul.msk.f32.vlgmr.msra.gmra.mxu3 %vm869_vm1, %v2081_v59  ;;  %v18069_v59 = vld [vmem:[#allocation185_spill] sm:$0xff]  ;;  %11962 = vpow2.f32 %v4076_v38  ;;  %v14462_v38 = vpop.permute.xlu0 %6113 }
 0x574   : > { %2945 = vmatpush.msra.mxu3 %v11545_v6  ;;  %v11644_v6 = vunpack.i.l.bf16 %v18069_v59 }
 0x575   : > { %v2661_v30 = vpop.f32.mrf.mxu2 }
 0x576   : > { %2970 = vst.msk [vmem:[#allocation2 + $0xa0] sm:$0xff] %vm869_vm1, %v2661_v30  ;;  %6139 = vrot.lane.b32.xlu1 %v18067_v49, %s12335_s14  ;;  %v18070_v30 = vld [vmem:[#allocation73_spill] sm:$0xff] }
 0x577   : > { %11662 = vrot.lane.b32.xlu2 %v18068_v0, %s12339_s21 }
 0x578   : > { %v11961_v62 = vpop.eup %11960 }
 0x579   : > { %v14443_v58 = vmul.f32 %v11961_v62, %v14297_v28  ;;  %v14451_v34 = vpop.eup %11962 }
 0x57a   : > { %v4159_v62 = vsel %vm869_vm1, %v14451_v34, 0.0 }
 0x57b   : > { %11221 = vmatmul.msk.f32.vlgmr.msra.gmra.mxu0 %vm869_vm1, %v14443_v58 }
 0x57c   : > { %4993 = vmatpush.msra.mxu0 %v11644_v6  ;;  %v18071_v6 = vld [vmem:[#allocation112_spill] sm:$0xff] }
 0x57d   : > { %v2713_v48 = vpop.f32.mrf.mxu2  ;;  %v2006_v13 = vpop.xlane.xlu1 %2005 }
 0x57e   : > { %2972 = vst.msk [vmem:[#allocation2 + $0xb0] sm:$0xff] %vm869_vm1, %v2713_v48  ;;  %11964 = vrcp.f32 %v2006_v13  ;;  %v18072_v48 = vld [vmem:[#allocation212_spill] sm:$0xff] }
 0x57f   : > { %11677 = vrot.lane.b32.xlu2 %v18070_v30, %s12339_s21  ;;  %v4024_v13 = vsub.f32 %v18072_v48, %v14044_v60  ;;  %v14488_v48 = vpop.xlane.xlu2 %4004 }
 0x581   : > { %v4074_v30 = vmul.f32 1.442695, %v4024_v13  ;;  %v18078_v13 = vld [vmem:[#allocation31_spill] sm:$0xff] }
 0x583   : > { %11966 = vpow2.f32 %v4074_v30 }
 0x584   : > { %v11965_v28 = vpop.eup %11964 }
 0x585   : > { %v2080_v0 = vmul.f32 %v11965_v28, %v14306_v33  ;;  %v18073_v33 = vld [vmem:[#allocation143_spill] sm:$0xff]  ;;  %v14471_v28 = vpop.permute.xlu0 %6167 }
 0x586   : > { %18075 = vst [vmem:[#allocation197_spill] sm:$0xff] %v14471_v28 }
 0x587   : > { %11692 = vrot.lane.b32.xlu2 %v18071_v6, %s12339_s21  ;;  %4160 = vadd.xlane.f32.xlu0 %v4159_v62  ;;  %2112 = vst.msk [vmem:[%s13813_s20 + $0xd0] sm:$0xff] %vm869_vm1, %v2080_v0  ;;  %v18077_v6 = vld [vmem:[#allocation135_spill] sm:$0xff] }
 0x588   : > { %11137 = vmatmul.msk.f32.vlgmr.msra.gmra.mxu2 %vm869_vm1, %v2080_v0 }
 0x589   : > { %2919 = vmatpush.msra.mxu2 %v11544_v63  ;;  %v18076_v63 = vld [vmem:[#allocation102_spill] sm:$0xff]  ;;  %v14477_v60 = vpop.eup %11966 }
 0x58f   : > { %11707 = vrot.lane.b32.xlu2 %v18073_v33, %s12339_s21 }
 0x590   : > { %11139 = vmatmul.msk.f32.vlgmr.msrb.gmra.mxu2 %vm869_vm1, %v2082_v8  ;;  %v4156_v8 = vsel %vm869_vm1, %v14477_v60, 0.0 }
 0x591   : > { %11143 = vmatpush.xpose.msk.msrb.mxu2 %vm869_vm1, %v18074_v18  ;;  %v14496_v18 = vpop.permute.xlu2 %6111 }
 0x595   : > { %v14500_v30 = vpop.permute.xlu1 %6055 }
 0x596   : > { %18079 = vst [vmem:[#allocation147_spill] sm:$0xff] %v14500_v30 }
 0x597   : > { %4300 = vrot.lane.b32.xlu2 %v14246_v7, %s12338_s16 }
 0x59b   : > { %11687 = vrot.lane.b32.xlu0 %v18076_v63, %s12339_s21  ;;  %v4028_v63 = vsub.f32 %v13986_v1, %v14223_v57  ;;  %v4032_v1 = vsub.f32 %v14208_v4, %v14421_v25 }
 0x59c   : > { %v2021_v0 = vpop.xlane.xlu0 %2020 }
 0x59d   : > { %11968 = vrcp.f32 %v2021_v0  ;;  %v14506_v0 = vpop.permute.xlu2 %6141 }
 0x59f   : > { %4306 = vrot.lane.b32.xlu2 %v14266_v42, %s12338_s16 }
 0x5a0   : > { %4157 = vadd.xlane.f32.xlu1 %v4156_v8  ;;  %v4082_v8 = vmul.f32 1.442695, %v4028_v63 }
 0x5a3   : > { %v11969_v62 = vpop.eup %11968  ;;  %11702 = vrot.lane.b32.xlu0 %v18077_v6, %s12339_s21 }
 0x5a4   : > { %v14486_v7 = vmul.f32 %v11969_v62, %v14344_v44  ;;  %v18080_v44 = vld [vmem:[#allocation149_spill] sm:$0xff]  ;;  %v4029_v62 = vsub.f32 %v14074_v35, %v14339_v2 }
 0x5a6   : > { %2117 = vst.msk [vmem:[%s13813_s20 + $0xf8] sm:$0xff] %vm869_vm1, %v14486_v7 }
 0x5a7   : > { %11722 = vrot.lane.b32.xlu2 %v18078_v13, %s12339_s21  ;;  %v4084_v13 = vmul.f32 1.442695, %v4029_v62  ;;  %v18084_v62 = vld [vmem:[#allocation141_spill] sm:$0xff] }
 0x5ad   : > { %v2765_v42 = vpop.f32.mrf.mxu2 }
 0x5ae   : > { %2974 = vst.msk [vmem:[#allocation2 + $0xc0] sm:$0xff] %vm869_vm1, %v2765_v42 }
 0x5af   : > { %v4299_v33 = vpop.permute.xlu0 %4298 }
 0x5b0   : > { %4393 = vst.msk [vmem:[%s13813_s20 + $0x10] sm:$0xff] %vm4390_vm2, %v4299_v33  ;;  %v18081_v33 = vld [vmem:[#allocation39_spill] sm:$0xff] }
 0x5b9   : > { %6169 = vrot.lane.b32.xlu1 %v18080_v44, %s12335_s14 }
 0x5bf   : > { %v2739_v6 = vpop.f32.mrf.mxu3 }
 0x5c0   : > { %2973 = vst.msk [vmem:[#allocation2 + $0xb8] sm:$0xff] %vm869_vm1, %v2739_v6  ;;  %v4149_v42 = vpop.xlane.xlu1 %4148 }
 0x5c1   : > { %11970 = vrcp.f32 %v4149_v42  ;;  %6223 = vrot.lane.b32.xlu1 %v18081_v33, %s12335_s14  ;;  %v18125_v33 = vld [vmem:[#allocation186_spill] sm:$0xff] }
 0x5c2   : > { %11972 = vpow2.f32 %v4082_v8  ;;  %v2018_v11 = vpop.xlane.xlu2 %2017  ;;  %v11645_v8 = vunpack.i.h.bf16 %v18069_v59 }
 0x5c3   : > { %11974 = vrcp.f32 %v2018_v11  ;;  %v18082_v11 = vld [vmem:[#allocation158_spill] sm:$0xff] }
 0x5c4   : > { %11976 = vpow2.f32 %v4084_v13  ;;  %v4090_v13 = vmul.f32 1.442695, %v4032_v1 }
 0x5c7   : > { %v11971_v57 = vpop.eup %11970  ;;  %v2791_v63 = vpop.f32.mrf.mxu3 }
 0x5c8   : > { %v14515_v35 = vpop.eup %11972  ;;  %v14518_v2 = vmul.f32 %v11971_v57, %v14390_v5  ;;  %2975 = vst.msk [vmem:[#allocation2 + $0xc8] sm:$0xff] %vm869_vm1, %v2791_v63  ;;  %v2015_v6 = vpop.xlane.xlu1 %2014  ;;  %v18085_v63 = vld [vmem:[#allocation48_spill] sm:$0xff] }
 0x5c9   : > { %v11975_v42 = vpop.eup %11974  ;;  %11978 = vrcp.f32 %v2015_v6  ;;  %6253 = vrot.lane.b32.xlu1 %v18082_v11, %s12335_s14  ;;  %v4168_v59 = vsel %vm869_vm1, %v14515_v35, 0.0 }
 0x5ca   : > { %v2084_v4 = vmul.f32 %v11975_v42, %v14392_v23  ;;  %v14525_v25 = vpop.permute.xlu2 %6195  ;;  %11222 = vmatmul.msk.f32.vlgmr.msrb.gmra.mxu1 %vm869_vm1, %v14518_v2  ;;  %v14529_v5 = vpop.eup %11976  ;;  %11980 = vpow2.f32 %v4090_v13  ;;  %v18086_v42 = vld [vmem:[#allocation119_spill] sm:$0xff] }
 0x5cb   : > { %18083 = vst [vmem:[#allocation206_spill] sm:$0xff] %v14525_v25  ;;  %5018 = vmatpush.msrb.mxu1 %v11645_v8  ;;  %v4171_v1 = vsel %vm869_vm1, %v14529_v5, 0.0  ;;  %v14552_v13 = vpop.permute.xlu0 %6197 }
 0x5cc   : > { %2116 = vst.msk [vmem:[%s13813_s20 + $0xf0] sm:$0xff] %vm869_vm1, %v2084_v4  ;;  %11141 = vmatmul.msk.f32.vlgmr.msra.gmra.mxu2 %vm869_vm1, %v2084_v4  ;;  %v18088_v4 = vld [vmem:[#allocation70_spill] sm:$0xff] }
 0x5cd   : > { %11151 = vmatpush.xpose.msk.msra.mxu2 %vm869_vm1, %v18084_v62  ;;  %4169 = vadd.xlane.f32.xlu0 %v4168_v59  ;;  %18087 = vst [vmem:[#allocation166_spill] sm:$0xff] %v14552_v13  ;;  %v18090_v62 = vld [vmem:[#allocation79_spill] sm:$0xff] }
 0x5cf   : > { %v11979_v23 = vpop.eup %11978 }
 0x5d0   : > { %v2083_v57 = vmul.f32 %v11979_v23, %v14403_v16  ;;  %4172 = vadd.xlane.f32.xlu2 %v4171_v1  ;;  %v14550_v8 = vpop.eup %11980  ;;  %v18089_v16 = vld [vmem:[#allocation154_spill] sm:$0xff]  ;;  %v18091_v1 = vld [vmem:[#allocation133_spill] sm:$0xff] }
 0x5d1   : > { %11667 = vrot.lane.b32.xlu1 %v18085_v63, %s12339_s21  ;;  %v4180_v59 = vsel %vm869_vm1, %v14550_v8, 0.0  ;;  %v18093_v63 = vld [vmem:[#allocation175_spill] sm:$0xff] }
 0x5d2   : > { %2115 = vst.msk [vmem:[%s13813_s20 + $0xe8] sm:$0xff] %vm869_vm1, %v2083_v57  ;;  %v14545_v6 = vpop.permute.xlu2 %6225  ;;  %11140 = vmatmul.msk.f32.vlgmr.msrb.gmra.mxu3 %vm869_vm1, %v2083_v57  ;;  %v18092_v57 = vld [vmem:[#allocation87_spill] sm:$0xff] }
 0x5d3   : > { %11145 = vmatpush.xpose.msk.msrb.mxu3 %vm869_vm1, %v18086_v42  ;;  %v14572_v42 = vpop.permute.xlu0 %6251 }
 0x5d4   : > { %11144 = vmatmul.msk.f32.vlgmr.msrb.gmra.mxu2 %vm869_vm1, %v18088_v4  ;;  %v18094_v4 = vld [vmem:[#allocation113_spill] sm:$0xff] }
 0x5d5   : > { %11159 = vmatpush.xpose.msk.msrb.mxu2 %vm869_vm1, %v18089_v16 }
 0x5d8   : > { %4181 = vadd.xlane.f32.xlu2 %v4180_v59  ;;  %v18097_v59 = vld [vmem:[#allocation165_spill] sm:$0xff] }
 0x5d9   : > { %11682 = vrot.lane.b32.xlu1 %v18090_v62, %s12339_s21  ;;  %v18098_v62 = vld [vmem:[#allocation121_spill] sm:$0xff] }
 0x5da   : > { %v14562_v23 = vpop.permute.xlu2 %11662  ;;  %11142 = vmatmul.msk.f32.vlgmr.msra.gmra.mxu3 %vm869_vm1, %v14486_v7  ;;  %v18096_v7 = vld [vmem:[#allocation64_spill] sm:$0xff] }
 0x5db   : > { %11153 = vmatpush.xpose.msk.msra.mxu3 %vm869_vm1, %v18091_v1  ;;  %v18099_v1 = vld [vmem:[#allocation184_spill] sm:$0xff] }
 0x5dc   : > { %11152 = vmatmul.msk.f32.vlgmr.msra.gmra.mxu2 %vm869_vm1, %v18092_v57  ;;  %v14588_v57 = vpop.permute.xlu0 %11657 }
 0x5dd   : > { %11167 = vmatpush.xpose.msk.msra.mxu2 %vm869_vm1, %v18093_v63  ;;  %18100 = vst [vmem:[#allocation198_spill] sm:$0xff] %v14588_v57  ;;  %v18102_v63 = vld [vmem:[#allocation144_spill] sm:$0xff] }
 0x5e1   : > { %4308 = vrot.lane.b32.xlu0 %v14261_v17, %s12338_s16  ;;  %11697 = vrot.lane.b32.xlu1 %v18094_v4, %s12339_s21  ;;  %v18101_v17 = vld [vmem:[#allocation159_spill] sm:$0xff] }
 0x5e2   : > { %v14578_v16 = vpop.permute.xlu2 %11677  ;;  %11146 = vmatmul.msk.f32.vlgmr.msrb.gmra.mxu3 %vm869_vm1, %v18096_v7  ;;  %v18103_v7 = vld [vmem:[#allocation104_spill] sm:$0xff] }
 0x5e3   : > { %18095 = vst [vmem:[#allocation168_spill] sm:$0xff] %v14578_v16  ;;  %11161 = vmatpush.xpose.msk.msrb.mxu3 %vm869_vm1, %v18097_v59  ;;  %v18104_v59 = vld [vmem:[#allocation176_spill] sm:$0xff]  ;;  %v18112_v16 = vld [vmem:[#allocation194_spill] sm:$0xff] }
 0x5e4   : > { %11160 = vmatmul.msk.f32.vlgmr.msrb.gmra.mxu2 %vm869_vm1, %v18098_v62  ;;  %v18105_v62 = vld [vmem:[#allocation150_spill] sm:$0xff] }
 0x5e5   : > { %11175 = vmatpush.xpose.msk.msrb.mxu2 %vm869_vm1, %v18099_v1  ;;  %v18106_v1 = vld [vmem:[#allocation191_spill] sm:$0xff] }
 0x5e9   : > { %11717 = vrot.lane.b32.xlu0 %v18101_v17, %s12339_s21  ;;  %11712 = vrot.lane.b32.xlu1 %v18102_v63, %s12339_s21  ;;  %v18107_v17 = vld [vmem:[#allocation29_spill] sm:$0xff]  ;;  %v14610_v63 = vpop.permute.xlu0 %11672 }
 0x5ea   : > { %v14594_v4 = vpop.permute.xlu2 %11692  ;;  %11154 = vmatmul.msk.f32.vlgmr.msra.gmra.mxu3 %vm869_vm1, %v18103_v7 }
 0x5eb   : > { %11169 = vmatpush.xpose.msk.msra.mxu3 %vm869_vm1, %v18104_v59  ;;  %v18109_v59 = vld [vmem:[#allocation132_spill] sm:$0xff] }
 0x5ec   : > { %11168 = vmatmul.msk.f32.vlgmr.msra.gmra.mxu2 %vm869_vm1, %v18105_v62  ;;  %v18110_v62 = vld [vmem:[#allocation188_spill] sm:$0xff] }
 0x5ed   : > { %11183 = vmatpush.xpose.msk.msra.mxu2 %vm869_vm1, %v18106_v1  ;;  %v18111_v1 = vld [vmem:[#allocation167_spill] sm:$0xff] }
 0x5f0   : > { %7812 = vrot.lane.b32.xlu2 %v18107_v17, %s12340_s22  ;;  %v18114_v17 = vld [vmem:[#allocation151_spill] sm:$0xff] }
 0x5f1   : > { %4314 = vrot.lane.b32.xlu0 %v14311_v29, %s12338_s16  ;;  %4316 = vrot.lane.b32.xlu1 %v14360_v15, %s12338_s16  ;;  %v18113_v15 = vld [vmem:[#allocation51_spill] sm:$0xff] }
 0x5f2   : > { %v14612_v7 = vpop.permute.xlu2 %11707  ;;  %11162 = vmatmul.msk.f32.vlgmr.msrb.gmra.mxu3 %vm869_vm1, %v18109_v59 }
 0x5f3   : > { %18108 = vst [vmem:[#allocation137_spill] sm:$0xff] %v14612_v7  ;;  %11177 = vmatpush.xpose.msk.msrb.mxu3 %vm869_vm1, %v18110_v62  ;;  %v18115_v62 = vld [vmem:[#allocation193_spill] sm:$0xff] }
 0x5f4   : > { %11176 = vmatmul.msk.f32.vlgmr.msrb.gmra.mxu2 %vm869_vm1, %v18111_v1  ;;  %v18117_v1 = vld [vmem:[#allocation196_spill] sm:$0xff] }
 0x5f5   : > { %11191 = vmatpush.xpose.msk.msrb.mxu2 %vm869_vm1, %v18112_v16  ;;  %v18116_v16 = vld [vmem:[#allocation177_spill] sm:$0xff] }
 0x5f6   : > { %v2843_v29 = vpop.f32.mrf.mxu3 }
 0x5f7   : > { %2977 = vst.msk [vmem:[#allocation2 + $0xd8] sm:$0xff] %vm869_vm1, %v2843_v29 }
 0x5f8   : > { %4324 = vrot.lane.b32.xlu2 %v14518_v2, %s12338_s16  ;;  %v18118_v2 = vld [vmem:[#allocation41_spill] sm:$0xff] }
 0x5f9   : > { %11732 = vrot.lane.b32.xlu0 %v18113_v15, %s12339_s21  ;;  %v14639_v15 = vpop.permute.xlu1 %6085 }
 0x5fa   : > { %v4161_v7 = vpop.xlane.xlu0 %4160  ;;  %v4301_v59 = vpop.permute.xlu2 %4300  ;;  %11170 = vmatmul.msk.f32.vlgmr.msra.gmra.mxu3 %vm869_vm1, %v18114_v17  ;;  %18119 = vst [vmem:[#allocation173_spill] sm:$0xff] %v14639_v15  ;;  %v18120_v17 = vld [vmem:[#allocation26_spill] sm:$0xff] }
 0x5fb   : > { %11982 = vrcp.f32 %v4161_v7  ;;  %4394 = vst.msk [vmem:[%s13813_s20 + $0x18] sm:$0xff] %vm4390_vm2, %v4301_v59  ;;  %11185 = vmatpush.xpose.msk.msra.mxu3 %vm869_vm1, %v18115_v62  ;;  %v18121_v62 = vld [vmem:[#allocation169_spill] sm:$0xff] }
 0x5fc   : > { %11184 = vmatmul.msk.f32.vlgmr.msra.gmra.mxu2 %vm869_vm1, %v18116_v16  ;;  %v18122_v16 = vld [vmem:[#allocation68_spill] sm:$0xff] }
 0x5fd   : > { %11199 = vmatpush.xpose.msk.msra.mxu2 %vm869_vm1, %v18117_v1  ;;  %v11515_v11 = vunpack.i.h.bf16 %v18122_v16  ;;  %v11509_v1 = vunpack.i.l.bf16 %v18123_v39 }
 0x600   : > { %7868 = vrot.lane.b32.xlu2 %v18118_v2, %s12340_s22 }
 0x601   : > { %v11983_v29 = vpop.eup %11982  ;;  %7784 = vrot.lane.b32.xlu0 %v18120_v17, %s12340_s22 }
 0x602   : > { %v14644_v7 = vmul.f32 %v11983_v29, %v14451_v34  ;;  %v4307_v59 = vpop.permute.xlu2 %4306  ;;  %11178 = vmatmul.msk.f32.vlgmr.msrb.gmra.mxu3 %vm869_vm1, %v18121_v62  ;;  %v18126_v34 = vld [vmem:[#allocation47_spill] sm:$0xff]  ;;  %v4033_v29 = vsub.f32 %v14131_v52, %v14313_v36  ;;  %v18127_v62 = vld [vmem:[#allocation58_spill] sm:$0xff]  ;;  %v18132_v36 = vld [vmem:[#allocation57_spill] sm:$0xff] }
 0x603   : > { %4397 = vst.msk [vmem:[%s13813_s20 + $0x30] sm:$0xff] %vm4390_vm2, %v4307_v59  ;;  %11193 = vmatpush.xpose.msk.msrb.mxu3 %vm869_vm1, %v18124_v40  ;;  %v18128_v59 = vld [vmem:[#allocation183_spill] sm:$0xff]  ;;  %v18129_v40 = vld [vmem:[#allocation108_spill] sm:$0xff] }
 0x604   : > { %11192 = vmatmul.msk.f32.vlgmr.msrb.gmra.mxu2 %vm869_vm1, %v18125_v33  ;;  %11226 = vmatmul.msk.f32.vlgmr.msra.gmra.mxu1 %vm869_vm1, %v14644_v7  ;;  %v11549_v61 = vunpack.i.l.bf16 %v18129_v40  ;;  %v14667_v33 = vpop.permute.xlu1 %6139  ;;  %v4092_v52 = vmul.f32 1.442695, %v4033_v29 }
 0x605   : > { %4443 = vmatpush.msrb.mxu2 %v11509_v1  ;;  %5118 = vmatpush.msra.mxu1 %v11515_v11  ;;  %v18131_v11 = vld [vmem:[#allocation71_spill] sm:$0xff]  ;;  %v11510_v1 = vunpack.i.h.bf16 %v18123_v39 }
 0x606   : > { %11984 = vpow2.f32 %v4092_v52 }
 0x608   : > { %7924 = vrot.lane.b32.xlu2 %v18126_v34, %s12340_s22 }
 0x609   : > { %7898 = vrot.lane.b32.xlu0 %v18127_v62, %s12340_s22  ;;  %v18133_v62 = vld [vmem:[#allocation190_spill] sm:$0xff] }
 0x60a   : > { %11186 = vmatmul.msk.f32.vlgmr.msra.gmra.mxu3 %vm869_vm1, %v18128_v59 }
 0x60b   : > { %v2817_v25 = vpop.f32.mrf.mxu2  ;;  %11201 = vmatpush.xpose.msk.msra.mxu3 %vm869_vm1, %v18130_v24 }
 0x60c   : > { %2976 = vst.msk [vmem:[#allocation2 + $0xd0] sm:$0xff] %vm869_vm1, %v2817_v25  ;;  %11200 = vmatmul.msk.f32.vlgmr.msra.gmra.mxu2 %vm869_vm1, %v18131_v11  ;;  %v14680_v24 = vpop.eup %11984  ;;  %v18134_v25 = vld [vmem:[#allocation52_spill] sm:$0xff] }
 0x60d   : > { %4543 = vmatpush.msra.mxu2 %v11549_v61  ;;  %v11550_v61 = vunpack.i.h.bf16 %v18129_v40  ;;  %v18135_v11 = vld [vmem:[#allocation88_spill] sm:$0xff]  ;;  %v4183_v39 = vsel %vm869_vm1, %v14680_v24, 0.0  ;;  %v4037_v40 = vsub.f32 %v14303_v21, %v14488_v48  ;;  %v18138_v48 = vld [vmem:[#allocation38_spill] sm:$0xff] }
 0x610   : > { %7980 = vrot.lane.b32.xlu2 %v18132_v36, %s12340_s22  ;;  %v18145_v36 = vld [vmem:[#allocation107_spill] sm:$0xff] }
 0x612   : > { %11194 = vmatmul.msk.f32.vlgmr.msrb.gmra.mxu3 %vm869_vm1, %v18133_v62  ;;  %v4100_v62 = vmul.f32 1.442695, %v4037_v40  ;;  %v18141_v40 = vld [vmem:[#allocation89_spill] sm:$0xff] }
 0x613   : > { %v2869_v59 = vpop.f32.mrf.mxu2  ;;  %4468 = vmatpush.msrb.mxu3 %v11510_v1  ;;  %v4158_v34 = vpop.xlane.xlu1 %4157  ;;  %v18136_v1 = vld [vmem:[#allocation82_spill] sm:$0xff] }
 0x614   : > { %2978 = vst.msk [vmem:[#allocation2 + $0xe0] sm:$0xff] %vm869_vm1, %v2869_v59  ;;  %11986 = vrcp.f32 %v4158_v34  ;;  %v11514_v34 = vunpack.i.l.bf16 %v18122_v16  ;;  %v14703_v16 = vpop.f32.mrf.mxu0 }
 0x615   : > { %11988 = vpow2.f32 %v4100_v62 }
 0x618   : > { %7842 = vrot.lane.b32.xlu2 %v18134_v25, %s12340_s22 }
 0x61a   : > { %v11987_v29 = vpop.eup %11986  ;;  %11202 = vmatmul.msk.f32.vlgmr.msra.gmra.mxu3 %vm869_vm1, %v18135_v11 }
 0x61b   : > { %v4248_v52 = vmul.f32 %v11987_v29, %v14477_v60  ;;  %4568 = vmatpush.msra.mxu3 %v11550_v61  ;;  %4184 = vadd.xlane.f32.xlu1 %v4183_v39  ;;  %v14699_v60 = vpop.permute.xlu0 %11687  ;;  %v14701_v25 = vpop.eup %11988 }
 0x61c   : > { %18137 = vst [vmem:[#allocation181_spill] sm:$0xff] %v14699_v60  ;;  %v4520_v61 = vpop.f32.mrf.mxu1  ;;  %v4195_v29 = vsel %vm869_vm1, %v14701_v25, 0.0  ;;  %v4595_v11 = vpop.f32.mrf.mxu0  ;;  %v18144_v60 = vld [vmem:[#allocation81_spill] sm:$0xff] }
 0x61d   : > { %11225 = vmatmul.msk.f32.vlgmr.msrb.gmra.mxu0 %vm869_vm1, %v4248_v52 }
 0x61e   : > { %5093 = vmatpush.msrb.mxu0 %v11514_v34 }
 0x620   : > { %8094 = vrot.lane.b32.xlu2 %v18136_v1, %s12340_s22 }
 0x623   : > { %v14712_v39 = vpop.permute.xlu0 %11702 }
 0x624   : > { %18139 = vst [vmem:[#allocation130_spill] sm:$0xff] %v14712_v39 }
 0x628   : > { %4330 = vrot.lane.b32.xlu2 %v4248_v52, %s12338_s16  ;;  %v14715_v52 = vpop.permute.xlu2 %11722 }
 0x629   : > { %18140 = vst [vmem:[#allocation182_spill] sm:$0xff] %v14715_v52 }
 0x62b   : > { %v14697_v59 = vpop.permute.xlu1 %6169 }
 0x630   : > { %5261 = vrot.lane.b32.xlu2 %v4520_v61, %s12338_s16 }
 0x633   : > { %4196 = vadd.xlane.f32.xlu0 %v4195_v29  ;;  %v14708_v21 = vpop.permute.xlu1 %6223 }
 0x634   : > { %11727 = vrot.lane.b32.xlu1 %v18138_v48, %s12339_s21  ;;  %v18143_v48 = vld [vmem:[#allocation55_spill] sm:$0xff] }
 0x638   : > { %5267 = vrot.lane.b32.xlu2 %v4595_v11, %s12338_s16 }
 0x63b   : > { %v14717_v34 = vpop.permute.xlu1 %6253 }
 0x63c   : > { %4322 = vrot.lane.b32.xlu1 %v14443_v58, %s12338_s16  ;;  %v11554_v58 = vunpack.i.l.bf16 %v18145_v36 }
 0x640   : > { %v4170_v1 = vpop.xlane.xlu0 %4169  ;;  %8150 = vrot.lane.b32.xlu2 %v18141_v40, %s12340_s22 }
 0x641   : > { %11990 = vrcp.f32 %v4170_v1 }
 0x643   : > { %v4173_v62 = vpop.xlane.xlu2 %4172  ;;  %v14723_v61 = vpop.permute.xlu1 %11667 }
 0x644   : > { %18142 = vst [vmem:[#allocation199_spill] sm:$0xff] %v14723_v61  ;;  %11992 = vrcp.f32 %v4173_v62 }
 0x647   : > { %v11991_v29 = vpop.eup %11990  ;;  %7870 = vrot.lane.b32.xlu0 %v18143_v48, %s12340_s22  ;;  %v11555_v48 = vunpack.i.h.bf16 %v18145_v36 }
 0x648   : > { %v4252_v11 = vmul.f32 %v11991_v29, %v14515_v35  ;;  %8148 = vrot.lane.b32.xlu2 %v18144_v60, %s12340_s22  ;;  %v18146_v35 = vld [vmem:[#allocation69_spill] sm:$0xff]  ;;  %v18150_v60 = vld [vmem:[#allocation124_spill] sm:$0xff] }
 0x64a   : > { %v11993_v52 = vpop.eup %11992  ;;  %11229 = vmatmul.msk.f32.vlgmr.msra.gmra.mxu0 %vm869_vm1, %v4252_v11 }
 0x64b   : > { %v14733_v1 = vmul.f32 %v11993_v52, %v14529_v5  ;;  %5193 = vmatpush.msra.mxu0 %v11554_v58  ;;  %v4182_v40 = vpop.xlane.xlu2 %4181  ;;  %v14735_v62 = vpop.permute.xlu1 %11682  ;;  %v18147_v5 = vld [vmem:[#allocation54_spill] sm:$0xff] }
 0x64c   : > { %11994 = vrcp.f32 %v4182_v40 }
 0x64d   : > { %11230 = vmatmul.msk.f32.vlgmr.msrb.gmra.mxu1 %vm869_vm1, %v14733_v1 }
 0x64e   : > { %5218 = vmatpush.msrb.mxu1 %v11555_v48  ;;  %v4036_v48 = vsub.f32 %v14232_v26, %v14399_v47 }
 0x64f   : > { %8010 = vrot.lane.b32.xlu0 %v18146_v35, %s12340_s22  ;;  %v2921_v29 = vpop.f32.mrf.mxu2 }
 0x650   : > { %2980 = vst.msk [vmem:[#allocation2 + $0xf0] sm:$0xff] %vm869_vm1, %v2921_v29  ;;  %7952 = vrot.lane.b32.xlu2 %v18147_v5, %s12340_s22 }
 0x652   : > { %v11995_v52 = vpop.eup %11994 }
 0x653   : > { %v14746_v58 = vmul.f32 %v11995_v52, %v14550_v8  ;;  %v4309_v36 = vpop.permute.xlu0 %4308  ;;  %v14748_v40 = vpop.permute.xlu2 %7812  ;;  %v18151_v8 = vld [vmem:[#allocation66_spill] sm:$0xff]  ;;  %v4098_v52 = vmul.f32 1.442695, %v4036_v48 }
 0x654   : > { %18148 = vst [vmem:[#allocation189_spill] sm:$0xff] %v14748_v40  ;;  %v14754_v35 = vpop.permute.xlu1 %11697 }
 0x655   : > { %4398 = vst.msk [vmem:[%s13813_s20 + $0x38] sm:$0xff] %vm4390_vm2, %v4309_v36  ;;  %11233 = vmatmul.msk.f32.vlgmr.msrb.gmra.mxu0 %vm869_vm1, %v14746_v58  ;;  %v2895_v29 = vpop.f32.mrf.mxu3  ;;  %11996 = vpow2.f32 %v4098_v52 }
 0x656   : > { %18149 = vst [vmem:[#allocation161_spill] sm:$0xff] %v14754_v35  ;;  %11243 = vmatpush.xpose.msk.msrb.mxu0 %vm869_vm1, %v18150_v60  ;;  %v18154_v60 = vld [vmem:[#allocation85_spill] sm:$0xff] }
 0x657   : > { %2979 = vst.msk [vmem:[#allocation2 + $0xe8] sm:$0xff] %vm869_vm1, %v2895_v29  ;;  %7982 = vrot.lane.b32.xlu0 %v18151_v8, %s12340_s22 }
 0x65b   : > { %v14763_v26 = vpop.permute.xlu0 %11717  ;;  %v4325_v47 = vpop.permute.xlu2 %4324 }
 0x65c   : > { %18152 = vst [vmem:[#allocation200_spill] sm:$0xff] %v14763_v26  ;;  %v14767_v36 = vpop.permute.xlu1 %11712  ;;  %v14772_v29 = vpop.eup %11996  ;;  %v18162_v26 = vld [vmem:[#allocation72_spill] sm:$0xff] }
 0x65d   : > { %4406 = vst.msk [vmem:[%s13813_s20 + $0x78] sm:$0xff] %vm4390_vm2, %v4325_v47  ;;  %v2947_v40 = vpop.f32.mrf.mxu3  ;;  %v4192_v8 = vsel %vm869_vm1, %v14772_v29, 0.0 }
 0x65e   : > { %18153 = vst [vmem:[#allocation140_spill] sm:$0xff] %v14767_v36 }
 0x65f   : > { %2981 = vst.msk [vmem:[#allocation2 + $0xf8] sm:$0xff] %vm869_vm1, %v2947_v40  ;;  %8122 = vrot.lane.b32.xlu0 %v18154_v60, %s12340_s22  ;;  %v18156_v40 = vld [vmem:[#allocation78_spill] sm:$0xff]  ;;  %v4620_v60 = vpop.f32.mrf.mxu1 }
 0x663   : > { %v4315_v35 = vpop.permute.xlu0 %4314  ;;  %v14774_v5 = vpop.permute.xlu2 %7868 }
 0x664   : > { %18155 = vst [vmem:[#allocation83_spill] sm:$0xff] %v14774_v5  ;;  %v4317_v48 = vpop.permute.xlu1 %4316 }
 0x665   : > { %4401 = vst.msk [vmem:[%s13813_s20 + $0x50] sm:$0xff] %vm4390_vm2, %v4315_v35 }
 0x666   : > { %4402 = vst.msk [vmem:[%s13813_s20 + $0x58] sm:$0xff] %vm4390_vm2, %v4317_v48  ;;  %4193 = vadd.xlane.f32.xlu1 %v4192_v8  ;;  %v18160_v48 = vld [vmem:[#allocation45_spill] sm:$0xff] }
 0x667   : > { %8120 = vrot.lane.b32.xlu0 %v18156_v40, %s12340_s22 }
 0x66b   : > { %v14784_v52 = vpop.permute.xlu2 %7924 }
 0x66c   : > { %18157 = vst [vmem:[#allocation33_spill] sm:$0xff] %v14784_v52  ;;  %v18163_v52 = vld [vmem:[#allocation49_spill] sm:$0xff] }
 0x66f   : > { %4332 = vrot.lane.b32.xlu0 %v14644_v7, %s12338_s16  ;;  %v14802_v7 = vpop.permute.xlu0 %11732 }
 0x670   : > { %18164 = vst [vmem:[#allocation208_spill] sm:$0xff] %v14802_v7 }
 0x673   : > { %v14788_v47 = vpop.permute.xlu2 %7980 }
 0x674   : > { %18158 = vst [vmem:[#allocation178_spill] sm:$0xff] %v14788_v47 }
 0x677   : > { %4338 = vrot.lane.b32.xlu0 %v4252_v11, %s12338_s16  ;;  %v4695_v11 = vpop.f32.mrf.mxu0 }
 0x67b   : > { %v14791_v35 = vpop.permute.xlu2 %7842 }
 0x67c   : > { %18159 = vst [vmem:[#allocation84_spill] sm:$0xff] %v14791_v35 }
 0x67f   : > { %5269 = vrot.lane.b32.xlu0 %v4620_v60, %s12338_s16  ;;  %7786 = vrot.lane.b32.xlu1 %v18160_v48, %s12340_s22  ;;  %v14809_v48 = vpop.permute.xlu0 %7784 }
 0x680   : > { %18165 = vst [vmem:[#allocation211_spill] sm:$0xff] %v14809_v48  ;;  %v18176_v48 = vld [vmem:[#allocation114_spill] sm:$0xff] }
 0x683   : > { %v14796_v8 = vpop.permute.xlu2 %8094 }
 0x684   : > { %18161 = vst [vmem:[#allocation204_spill] sm:$0xff] %v14796_v8  ;;  %v18166_v8 = vld [vmem:[#allocation61_spill] sm:$0xff] }
 0x687   : > { %8092 = vrot.lane.b32.xlu0 %v18162_v26, %s12340_s22  ;;  %7814 = vrot.lane.b32.xlu1 %v18163_v52, %s12340_s22 }
 0x68b   : > { %v4331_v40 = vpop.permute.xlu2 %4330 }
 0x68c   : > { %4409 = vst.msk [vmem:[%s13813_s20 + $0x90] sm:$0xff] %vm4390_vm2, %v4331_v40  ;;  %v18167_v40 = vld [vmem:[#allocation44_spill] sm:$0xff] }
 0x68e   : > { %v4185_v47 = vpop.xlane.xlu1 %4184 }
 0x68f   : > { %5275 = vrot.lane.b32.xlu0 %v4695_v11, %s12338_s16  ;;  %11998 = vrcp.f32 %v4185_v47  ;;  %5259 = vrot.lane.b32.xlu1 %v14703_v16, %s12338_s16  ;;  %v18168_v47 = vld [vmem:[#allocation127_spill] sm:$0xff]  ;;  %v14822_v11 = vpop.permute.xlu0 %7898 }
 0x690   : > { %18169 = vst [vmem:[#allocation32_spill] sm:$0xff] %v14822_v11 }
 0x693   : > { %v5262_v60 = vpop.permute.xlu2 %5261 }
 0x694   : > { %5354 = vst.msk [vmem:[#allocation2 + $0x18] sm:$0xff] %vm4390_vm2, %v5262_v60 }
 0x695   : > { %v11999_v26 = vpop.eup %11998 }
 0x696   : > { %v4257_v52 = vmul.f32 %v11999_v26, %v14680_v24  ;;  %v18170_v24 = vld [vmem:[#allocation97_spill] sm:$0xff]  ;;  %v18171_v26 = vld [vmem:[#allocation60_spill] sm:$0xff] }
 0x697   : > { %7954 = vrot.lane.b32.xlu0 %v18166_v8, %s12340_s22  ;;  %7896 = vrot.lane.b32.xlu1 %v18167_v40, %s12340_s22  ;;  %v18172_v8 = vld [vmem:[#allocation117_spill] sm:$0xff]  ;;  %v18177_v40 = vld [vmem:[#allocation100_spill] sm:$0xff] }
 0x698   : > { %4348 = vrot.lane.b32.xlu2 %v4257_v52, %s12338_s16  ;;  %11234 = vmatmul.msk.f32.vlgmr.msra.gmra.mxu1 %vm869_vm1, %v4257_v52 }
 0x699   : > { %11245 = vmatpush.xpose.msk.msra.mxu1 %vm869_vm1, %v18168_v47  ;;  %v18174_v47 = vld [vmem:[#allocation106_spill] sm:$0xff] }
 0x69b   : > { %v5268_v16 = vpop.permute.xlu2 %5267 }
 0x69c   : > { %5357 = vst.msk [vmem:[#allocation2 + $0x30] sm:$0xff] %vm4390_vm2, %v5268_v16  ;;  %v18175_v16 = vld [vmem:[#allocation59_spill] sm:$0xff] }
 0x69f   : > { %8206 = vrot.lane.b32.xlu0 %v18170_v24, %s12340_s22  ;;  %7926 = vrot.lane.b32.xlu1 %v18171_v26, %s12340_s22 }
 0x6a0   : > { %8346 = vrot.lane.b32.xlu2 %v18172_v8, %s12340_s22  ;;  %v18178_v8 = vld [vmem:[#allocation74_spill] sm:$0xff] }
 0x6a6   : > { %v4197_v60 = vpop.xlane.xlu0 %4196  ;;  %v14830_v52 = vpop.permute.xlu1 %11727 }
 0x6a7   : > { %18173 = vst [vmem:[#allocation62_spill] sm:$0xff] %v14830_v52  ;;  %12000 = vrcp.f32 %v4197_v60  ;;  %8262 = vrot.lane.b32.xlu0 %v18174_v47, %s12340_s22  ;;  %8008 = vrot.lane.b32.xlu1 %v18175_v16, %s12340_s22  ;;  %v18179_v60 = vld [vmem:[#allocation110_spill] sm:$0xff]  ;;  %v18180_v47 = vld [vmem:[#allocation163_spill] sm:$0xff] }
 0x6a8   : > { %8344 = vrot.lane.b32.xlu2 %v18176_v48, %s12340_s22  ;;  %v18181_v48 = vld [vmem:[#allocation67_spill] sm:$0xff] }
 0x6ad   : > { %v12001_v24 = vpop.eup %12000 }
 0x6ae   : > { %v4261_v11 = vmul.f32 %v12001_v24, %v14701_v25  ;;  %v4323_v26 = vpop.permute.xlu1 %4322  ;;  %v18182_v25 = vld [vmem:[#allocation63_spill] sm:$0xff]  ;;  %v18183_v24 = vld [vmem:[#allocation98_spill] sm:$0xff] }
 0x6af   : > { %8260 = vrot.lane.b32.xlu0 %v18177_v40, %s12340_s22  ;;  %4405 = vst.msk [vmem:[%s13813_s20 + $0x70] sm:$0xff] %vm4390_vm2, %v4323_v26  ;;  %8038 = vrot.lane.b32.xlu1 %v18178_v8, %s12340_s22  ;;  %v18184_v26 = vld [vmem:[#allocation174_spill] sm:$0xff]  ;;  %v18187_v40 = vld [vmem:[#allocation203_spill] sm:$0xff] }
 0x6b0   : > { %11238 = vmatmul.msk.f32.vlgmr.msrb.gmra.mxu1 %vm869_vm1, %v4261_v11  ;;  %8316 = vrot.lane.b32.xlu2 %v18179_v60, %s12340_s22 }
 0x6b1   : > { %11253 = vmatpush.xpose.msk.msrb.mxu1 %vm869_vm1, %v18180_v47  ;;  %v18186_v47 = vld [vmem:[#allocation116_spill] sm:$0xff] }
 0x6b7   : > { %8064 = vrot.lane.b32.xlu0 %v18181_v48, %s12340_s22  ;;  %8036 = vrot.lane.b32.xlu1 %v18182_v25, %s12340_s22  ;;  %v18190_v48 = vld [vmem:[#allocation139_spill] sm:$0xff] }
 0x6b8   : > { %11246 = vmatmul.msk.f32.vlgmr.msra.gmra.mxu1 %vm869_vm1, %v18183_v24  ;;  %v18189_v24 = vld [vmem:[#allocation35_spill] sm:$0xff] }
 0x6b9   : > { %11261 = vmatpush.xpose.msk.msra.mxu1 %vm869_vm1, %v18184_v26  ;;  %v14858_v8 = vpop.permute.xlu0 %7870  ;;  %v4720_v26 = vpop.f32.mrf.mxu1 }
 0x6ba   : > { %18185 = vst [vmem:[#allocation136_spill] sm:$0xff] %v14858_v8 }
 0x6bf   : > { %4356 = vrot.lane.b32.xlu0 %v4261_v11, %s12338_s16  ;;  %4340 = vrot.lane.b32.xlu1 %v14733_v1, %s12338_s16  ;;  %v18192_v1 = vld [vmem:[#allocation209_spill] sm:$0xff] }
 0x6c0   : > { %11254 = vmatmul.msk.f32.vlgmr.msrb.gmra.mxu1 %vm869_vm1, %v18186_v47  ;;  %v14885_v47 = vpop.permute.xlu2 %8150 }
 0x6c1   : > { %11269 = vmatpush.xpose.msk.msrb.mxu1 %vm869_vm1, %v18187_v40  ;;  %v14867_v60 = vpop.permute.xlu0 %8010  ;;  %18194 = vst [vmem:[#allocation42_spill] sm:$0xff] %v14885_v47  ;;  %v18213_v47 = vld [vmem:[#allocation157_spill] sm:$0xff] }
 0x6c2   : > { %18188 = vst [vmem:[#allocation156_spill] sm:$0xff] %v14867_v60 }
 0x6c7   : > { %7840 = vrot.lane.b32.xlu1 %v18189_v24, %s12340_s22 }
 0x6c8   : > { %11262 = vmatmul.msk.f32.vlgmr.msra.gmra.mxu1 %vm869_vm1, %v18190_v48 }
 0x6c9   : > { %11277 = vmatpush.xpose.msk.msra.mxu1 %vm869_vm1, %v14213_v10  ;;  %v14875_v11 = vpop.permute.xlu0 %7982  ;;  %v18195_v10 = vld [vmem:[#allocation214_spill] sm:$0xff] }
 0x6ca   : > { %18191 = vst [vmem:[#allocation92_spill] sm:$0xff] %v14875_v11 }
 0x6cf   : > { %4346 = vrot.lane.b32.xlu1 %v14746_v58, %s12338_s16 }
 0x6d0   : > { %11270 = vmatmul.msk.f32.vlgmr.msrb.gmra.mxu1 %vm869_vm1, %v18192_v1 }
 0x6d1   : > { %11285 = vmatpush.xpose.msk.msrb.mxu1 %vm869_vm1, %v14290_v51  ;;  %v14883_v40 = vpop.permute.xlu0 %8122  ;;  %v18197_v51 = vld [vmem:[#allocation101_spill] sm:$0xff] }
 0x6d2   : > { %18193 = vst [vmem:[#allocation30_spill] sm:$0xff] %v14883_v40  ;;  %v14896_v40 = vpop.permute.xlu2 %8148 }
 0x6d3   : > { %18198 = vst [vmem:[#allocation73_spill] sm:$0xff] %v14896_v40  ;;  %v18200_v40 = vld [vmem:[#allocation95_spill] sm:$0xff] }
 0x6d7   : > { %5277 = vrot.lane.b32.xlu1 %v4720_v26, %s12338_s16  ;;  %v3007_v26 = vpop.f32.mrf.mxu2 }
 0x6d8   : > { %11278 = vmatmul.msk.f32.vlgmr.msra.gmra.mxu1 %vm869_vm1, %v18195_v10 }
 0x6d9   : > { %11293 = vmatpush.xpose.msk.msra.mxu1 %vm869_vm1, %v14506_v0  ;;  %v14892_v58 = vpop.permute.xlu0 %8120  ;;  %v4194_v48 = vpop.xlane.xlu1 %4193 }
 0x6da   : > { %18196 = vst [vmem:[#allocation185_spill] sm:$0xff] %v14892_v58  ;;  %12002 = vrcp.f32 %v4194_v48  ;;  %v14907_v48 = vmul.f32 0.35355338, %v3007_v26  ;;  %v4820_v26 = vpop.f32.mrf.mxu1  ;;  %v18210_v58 = vld [vmem:[#allocation129_spill] sm:$0xff] }
 0x6df   : > { %8234 = vrot.lane.b32.xlu1 %v18197_v51, %s12340_s22  ;;  %v18199_v51 = vld [vmem:[#allocation142_spill] sm:$0xff] }
 0x6e0   : > { %v12003_v1 = vpop.eup %12002  ;;  %11286 = vmatmul.msk.f32.vlgmr.msrb.gmra.mxu1 %vm869_vm1, %v14329_v19  ;;  %v11665_v19 = vunpack.i.h.bf16 %v14562_v23 }
 0x6e1   : > { %11301 = vmatpush.xpose.msk.msrb.mxu1 %vm869_vm1, %v14717_v34  ;;  %v4333_v10 = vpop.permute.xlu0 %4332  ;;  %v4260_v0 = vmul.f32 %v12003_v1, %v14772_v29  ;;  %v3910_v34 = vsel %vm869_vm1, %v14907_v48, -inf  ;;  %v4795_v29 = vpop.f32.mrf.mxu0 }
 0x6e2   : > { %4410 = vst.msk [vmem:[%s13813_s20 + $0x98] sm:$0xff] %vm4390_vm2, %v4333_v10  ;;  %v14918_v10 = vpop.permute.xlu2 %7952 }
 0x6e3   : > { %4354 = vrot.lane.b32.xlu2 %v4260_v0, %s12338_s16  ;;  %11237 = vmatmul.msk.f32.vlgmr.msra.gmra.mxu0 %vm869_vm1, %v4260_v0  ;;  %18201 = vst [vmem:[#allocation112_spill] sm:$0xff] %v14918_v10  ;;  %v18202_v0 = vld [vmem:[#allocation76_spill] sm:$0xff] }
 0x6e4   : > { %11251 = vmatpush.xpose.msk.msra.mxu0 %vm869_vm1, %v18199_v51  ;;  %v18203_v51 = vld [vmem:[#allocation172_spill] sm:$0xff] }
 0x6e7   : > { %8232 = vrot.lane.b32.xlu1 %v18200_v40, %s12340_s22 }
 0x6e8   : > { %11294 = vmatmul.msk.f32.vlgmr.msra.gmra.mxu1 %vm869_vm1, %v14667_v33  ;;  %v11675_v33 = vunpack.i.h.bf16 %v14610_v63 }
 0x6e9   : > { %6919 = vmatpush.msra.mxu1 %v11665_v19  ;;  %v4339_v1 = vpop.permute.xlu0 %4338  ;;  %3911 = vmax.xlane.f32.xlu0 %v3910_v34 }
 0x6ea   : > { %4413 = vst.msk [vmem:[%s13813_s20 + $0xb0] sm:$0xff] %vm4390_vm2, %v4339_v1  ;;  %v4895_v1 = vpop.f32.mrf.mxu0 }
 0x6eb   : > { %5285 = vrot.lane.b32.xlu2 %v4820_v26, %s12338_s16  ;;  %11244 = vmatmul.msk.f32.vlgmr.msrb.gmra.mxu0 %vm869_vm1, %v18202_v0  ;;  %v18205_v0 = vld [vmem:[#allocation115_spill] sm:$0xff] }
 0x6ec   : > { %11259 = vmatpush.xpose.msk.msrb.mxu0 %vm869_vm1, %v18203_v51  ;;  %v18206_v51 = vld [vmem:[#allocation179_spill] sm:$0xff] }
 0x6ef   : > { %5283 = vrot.lane.b32.xlu1 %v4795_v29, %s12338_s16 }
 0x6f0   : > { %11302 = vmatmul.msk.f32.vlgmr.msrb.gmra.mxu1 %vm869_vm1, %v14572_v42  ;;  %v18207_v42 = vld [vmem:[#allocation90_spill] sm:$0xff] }
 0x6f1   : > { %7019 = vmatpush.msrb.mxu1 %v11675_v33  ;;  %v5270_v19 = vpop.permute.xlu0 %5269  ;;  %v14931_v34 = vpop.permute.xlu1 %7786 }
 0x6f2   : > { %18204 = vst [vmem:[#allocation212_spill] sm:$0xff] %v14931_v34  ;;  %v4349_v26 = vpop.permute.xlu2 %4348 }
 0x6f3   : > { %5358 = vst.msk [vmem:[#allocation2 + $0x38] sm:$0xff] %vm4390_vm2, %v5270_v19  ;;  %5291 = vrot.lane.b32.xlu2 %v4895_v1, %s12338_s16  ;;  %11252 = vmatmul.msk.f32.vlgmr.msra.gmra.mxu0 %vm869_vm1, %v18205_v0  ;;  %v4920_v19 = vpop.f32.mrf.mxu1  ;;  %v18212_v1 = vld [vmem:[#allocation80_spill] sm:$0xff] }
 0x6f4   : > { %4418 = vst.msk [vmem:[%s13813_s20 + $0xd8] sm:$0xff] %vm4390_vm2, %v4349_v26  ;;  %11267 = vmatpush.xpose.msk.msra.mxu0 %vm869_vm1, %v18206_v51  ;;  %v18211_v26 = vld [vmem:[#allocation215_spill] sm:$0xff] }
 0x6f7   : > { %8204 = vrot.lane.b32.xlu1 %v18207_v42, %s12340_s22 }
 0x6f9   : > { %v14943_v29 = vpop.permute.xlu0 %8092  ;;  %v14945_v33 = vpop.permute.xlu1 %7814 }
 0x6fa   : > { %18208 = vst [vmem:[#allocation143_spill] sm:$0xff] %v14943_v29 }
 0x6fb   : > { %18209 = vst [vmem:[#allocation111_spill] sm:$0xff] %v14945_v33  ;;  %11260 = vmatmul.msk.f32.vlgmr.msrb.gmra.mxu0 %vm869_vm1, %v18210_v58  ;;  %v3035_v58 = vpop.f32.mrf.mxu3 }
 0x6fc   : > { %11275 = vmatpush.xpose.msk.msrb.mxu0 %vm869_vm1, %v18211_v26 }
 0x6fd   : > { %5293 = vrot.lane.b32.xlu0 %v4920_v19, %s12338_s16 }
 0x6ff   : > { %8066 = vrot.lane.b32.xlu1 %v18212_v1, %s12340_s22  ;;  %v3119_v1 = vpop.f32.mrf.mxu2 }
 0x701   : > { %v5276_v0 = vpop.permute.xlu0 %5275  ;;  %v5260_v51 = vpop.permute.xlu1 %5259 }
 0x702   : > { %5361 = vst.msk [vmem:[#allocation2 + $0x50] sm:$0xff] %vm4390_vm2, %v5276_v0 }
 0x703   : > { %5353 = vst.msk [vmem:[#allocation2 + $0x10] sm:$0xff] %vm4390_vm2, %v5260_v51  ;;  %11268 = vmatmul.msk.f32.vlgmr.msra.gmra.mxu0 %vm869_vm1, %v18213_v47  ;;  %v3147_v47 = vpop.f32.mrf.mxu3 }
 0x704   : > { %11283 = vmatpush.xpose.msk.msra.mxu0 %vm869_vm1, %v14435_v41 }
 0x707   : > { %8318 = vrot.lane.b32.xlu1 %v13131_v55, %s12340_s22  ;;  %v14980_v55 = vmul.f32 0.35355338, %v3035_v58 }
 0x709   : > { %v14962_v19 = vpop.permute.xlu0 %7954  ;;  %v14964_v26 = vpop.permute.xlu1 %7896  ;;  %v3913_v60 = vsel %vm869_vm1, %v14980_v55, -inf }
 0x70a   : > { %18214 = vst [vmem:[#allocation102_spill] sm:$0xff] %v14962_v19 }
 0x70b   : > { %18215 = vst [vmem:[#allocation135_spill] sm:$0xff] %v14964_v26  ;;  %11276 = vmatmul.msk.f32.vlgmr.msrb.gmra.mxu0 %vm869_vm1, %v14082_v32  ;;  %v3231_v32 = vpop.f32.mrf.mxu2  ;;  %v3259_v26 = vpop.f32.mrf.mxu3 }
 0x70c   : > { %11291 = vmatpush.xpose.msk.msrb.mxu0 %vm869_vm1, %v14462_v38  ;;  %v15000_v40 = vmul.f32 0.35355338, %v3259_v26 }
 0x70f   : > { %8374 = vrot.lane.b32.xlu1 %v13172_v54, %s12340_s22  ;;  %v11664_v54 = vunpack.i.l.bf16 %v14562_v23 }
 0x711   : > { %v14972_v41 = vpop.permute.xlu0 %8206  ;;  %v14974_v0 = vpop.permute.xlu1 %7926 }
 0x712   : > { %18216 = vst [vmem:[#allocation149_spill] sm:$0xff] %v14972_v41 }
 0x713   : > { %18217 = vst [vmem:[#allocation141_spill] sm:$0xff] %v14974_v0  ;;  %11284 = vmatmul.msk.f32.vlgmr.msra.gmra.mxu0 %vm869_vm1, %v14189_v31  ;;  %v14991_v31 = vmul.f32 0.35355338, %v3119_v1  ;;  %v3343_v23 = vpop.f32.mrf.mxu2  ;;  %v3937_v1 = vsel %vm869_vm1, %v15000_v40, -inf  ;;  %v4995_v0 = vpop.f32.mrf.mxu0 }
 0x714   : > { %11299 = vmatpush.xpose.msk.msra.mxu0 %vm869_vm1, %v14545_v6  ;;  %v14993_v6 = vpop.permute.xlu2 %8346 }
 0x715   : > { %18220 = vst [vmem:[#allocation70_spill] sm:$0xff] %v14993_v6 }
 0x719   : > { %v14982_v51 = vpop.permute.xlu0 %8262  ;;  %v14984_v38 = vpop.permute.xlu1 %8008 }
 0x71a   : > { %18218 = vst [vmem:[#allocation48_spill] sm:$0xff] %v14982_v51 }
 0x71b   : > { %18219 = vst [vmem:[#allocation119_spill] sm:$0xff] %v14984_v38  ;;  %11292 = vmatmul.msk.f32.vlgmr.msrb.gmra.mxu0 %vm869_vm1, %v14496_v18  ;;  %v11674_v38 = vunpack.i.l.bf16 %v14610_v63  ;;  %v3922_v18 = vsel %vm869_vm1, %v14991_v31, -inf }
 0x71c   : > { %6894 = vmatpush.msrb.mxu0 %v11664_v54  ;;  %3914 = vmax.xlane.f32.xlu2 %v3913_v60  ;;  %v3371_v60 = vpop.f32.mrf.mxu3 }
 0x71d   : > { %v15008_v54 = vmul.f32 0.35355338, %v3371_v60 }
 0x721   : > { %v14995_v58 = vpop.permute.xlu0 %8260  ;;  %v14997_v51 = vpop.permute.xlu1 %8038 }
 0x722   : > { %18221 = vst [vmem:[#allocation154_spill] sm:$0xff] %v14995_v58  ;;  %v15014_v58 = vmul.f32 0.35355338, %v3343_v23 }
 0x723   : > { %18222 = vst [vmem:[#allocation79_spill] sm:$0xff] %v14997_v51  ;;  %11300 = vmatmul.msk.f32.vlgmr.msra.gmra.mxu0 %vm869_vm1, %v14708_v21  ;;  %v15016_v21 = vpop.permute.xlu2 %8344 }
 0x724   : > { %6994 = vmatpush.msra.mxu0 %v11674_v38  ;;  %3923 = vmax.xlane.f32.xlu2 %v3922_v18  ;;  %18225 = vst [vmem:[#allocation175_spill] sm:$0xff] %v15016_v21  ;;  %v3949_v38 = vsel %vm869_vm1, %v15008_v54, -inf  ;;  %v3455_v18 = vpop.f32.mrf.mxu2  ;;  %v3946_v6 = vsel %vm869_vm1, %v15014_v58, -inf  ;;  %v15030_v21 = vmul.f32 0.35355338, %v3147_v47 }
 0x725   : > { %v15022_v60 = vmul.f32 0.35355338, %v3455_v18 }
 0x726   : > { %v3925_v18 = vsel %vm869_vm1, %v15030_v21, -inf }
 0x727   : > { %3938 = vmax.xlane.f32.xlu0 %v3937_v1  ;;  %v3958_v23 = vsel %vm869_vm1, %v15022_v60, -inf }
 0x729   : > { %v15010_v63 = vpop.permute.xlu0 %8064  ;;  %v15012_v26 = vpop.permute.xlu1 %8036 }
 0x72a   : > { %18223 = vst [vmem:[#allocation133_spill] sm:$0xff] %v15010_v63 }
 0x72b   : > { %18224 = vst [vmem:[#allocation87_spill] sm:$0xff] %v15012_v26  ;;  %v15038_v26 = vmul.f32 0.35355338, %v3231_v32  ;;  %v18228_v32 = vld [vmem:[#allocation94_spill] sm:$0xff] }
 0x72c   : > { %3950 = vmax.xlane.f32.xlu2 %v3949_v38  ;;  %v15032_v38 = vpop.permute.xlu2 %8316 }
 0x72d   : > { %18226 = vst [vmem:[#allocation113_spill] sm:$0xff] %v15032_v38 }
 0x72f   : > { %3947 = vmax.xlane.f32.xlu0 %v3946_v6 }
 0x731   : > { %v4357_v1 = vpop.permute.xlu0 %4356  ;;  %v4341_v51 = vpop.permute.xlu1 %4340 }
 0x732   : > { %4422 = vst.msk [vmem:[%s13813_s20 + $0xf8] sm:$0xff] %vm4390_vm2, %v4357_v1 }
 0x733   : > { %4414 = vst.msk [vmem:[%s13813_s20 + $0xb8] sm:$0xff] %vm4390_vm2, %v4341_v51  ;;  %v3934_v51 = vsel %vm869_vm1, %v15038_v26, -inf }
 0x734   : > { %3959 = vmax.xlane.f32.xlu2 %v3958_v23 }
 0x739   : > { %3926 = vmax.xlane.f32.xlu1 %v3925_v18  ;;  %v15036_v6 = vpop.permute.xlu1 %7840 }
 0x73a   : > { %18227 = vst [vmem:[#allocation64_spill] sm:$0xff] %v15036_v6 }
 0x73d   : > { %v4355_v1 = vpop.permute.xlu2 %4354 }
 0x73e   : > { %4421 = vst.msk [vmem:[%s13813_s20 + $0xf0] sm:$0xff] %vm4390_vm2, %v4355_v1 }
 0x741   : > { %3935 = vmax.xlane.f32.xlu1 %v3934_v51  ;;  %v4347_v47 = vpop.permute.xlu1 %4346  ;;  %v5020_v51 = vpop.f32.mrf.mxu1 }
 0x742   : > { %4417 = vst.msk [vmem:[%s13813_s20 + $0xd0] sm:$0xff] %vm4390_vm2, %v4347_v47 }
 0x743   : > { %5299 = vrot.lane.b32.xlu0 %v4995_v0, %s12338_s16  ;;  %v3483_v0 = vpop.f32.mrf.mxu3 }
 0x744   : > { %v15075_v16 = vmul.f32 0.35355338, %v3483_v0 }
 0x745   : > { %v5286_v23 = vpop.permute.xlu2 %5285 }
 0x746   : > { %5366 = vst.msk [vmem:[#allocation2 + $0x78] sm:$0xff] %vm4390_vm2, %v5286_v23 }
 0x749   : > { %v5278_v18 = vpop.permute.xlu1 %5277  ;;  %v5120_v0 = vpop.f32.mrf.mxu1 }
 0x74a   : > { %5362 = vst.msk [vmem:[#allocation2 + $0x58] sm:$0xff] %vm4390_vm2, %v5278_v18  ;;  %v3567_v18 = vpop.f32.mrf.mxu2 }
 0x74b   : > { %v3595_v34 = vpop.f32.mrf.mxu3 }
 0x74c   : > { %8178 = vrot.lane.b32.xlu2 %v18228_v32, %s12340_s22  ;;  %v15062_v52 = vmul.f32 0.35355338, %v3595_v34 }
 0x74d   : > { %v5292_v1 = vpop.permute.xlu2 %5291 }
 0x74e   : > { %5369 = vst.msk [vmem:[#allocation2 + $0x90] sm:$0xff] %vm4390_vm2, %v5292_v1  ;;  %v3973_v1 = vsel %vm869_vm1, %v15062_v52, -inf }
 0x751   : > { %v15052_v33 = vpop.permute.xlu1 %8234 }
 0x752   : > { %18229 = vst [vmem:[#allocation165_spill] sm:$0xff] %v15052_v33  ;;  %v3679_v33 = vpop.f32.mrf.mxu2 }
 0x753   : > { %v15066_v42 = vmul.f32 0.35355338, %v3679_v33  ;;  %v3961_v33 = vsel %vm869_vm1, %v15075_v16, -inf }
 0x754   : > { %8430 = vrot.lane.b32.xlu2 %v13211_v9, %s12340_s22 }
 0x759   : > { %v15056_v47 = vpop.permute.xlu1 %8232 }
 0x75a   : > { %18230 = vst [vmem:[#allocation121_spill] sm:$0xff] %v15056_v47  ;;  %5301 = vrot.lane.b32.xlu1 %v5020_v51, %s12338_s16  ;;  %v3982_v51 = vsel %vm869_vm1, %v15066_v42, -inf  ;;  %v3791_v24 = vpop.f32.mrf.mxu2 }
 0x75c   : > { %v15060_v32 = vpop.xlane.xlu0 %3911 }
 0x761   : > { %v5284_v23 = vpop.permute.xlu1 %5283 }
 0x762   : > { %5365 = vst.msk [vmem:[#allocation2 + $0x70] sm:$0xff] %vm4390_vm2, %v5284_v23  ;;  %v3707_v23 = vpop.f32.mrf.mxu3 }
 0x763   : > { %v15071_v47 = vmul.f32 0.35355338, %v3707_v23 }
 0x765   : > { %v3985_v34 = vsel %vm869_vm1, %v15071_v47, -inf }
 0x76d   : > { %3974 = vmax.xlane.f32.xlu0 %v3973_v1  ;;  %v15077_v1 = vmul.f32 0.35355338, %v3791_v24  ;;  %v15091_v24 = vpop.permute.xlu1 %8204 }
 0x76e   : > { %18231 = vst [vmem:[#allocation184_spill] sm:$0xff] %v15091_v24 }
 0x76f   : > { %v5294_v9 = vpop.permute.xlu0 %5293 }
 0x770   : > { %5370 = vst.msk [vmem:[#allocation2 + $0x98] sm:$0xff] %vm4390_vm2, %v5294_v9  ;;  %v3994_v9 = vsel %vm869_vm1, %v15077_v1, -inf }
 0x775   : > { %3983 = vmax.xlane.f32.xlu0 %v3982_v51  ;;  %v15083_v51 = vmul.f32 0.35355338, %v3567_v18  ;;  %v15095_v18 = vpop.permute.xlu1 %8066 }
 0x776   : > { %18232 = vst [vmem:[#allocation159_spill] sm:$0xff] %v15095_v18 }
 0x777   : > { %v3970_v23 = vsel %vm869_vm1, %v15083_v51, -inf }
 0x77d   : > { %3986 = vmax.xlane.f32.xlu2 %v3985_v34  ;;  %v5220_v34 = vpop.f32.mrf.mxu1 }
 0x784   : > { %3962 = vmax.xlane.f32.xlu1 %v3961_v33  ;;  %v5095_v33 = vpop.f32.mrf.mxu0 }
 0x785   : > { %3995 = vmax.xlane.f32.xlu2 %v3994_v9  ;;  %v5492_v25 = vpop.f32.mrf.mxu1 }
 0x786   : > { %v15117_v11 = vmul.f32 0.35355338, %v5492_v25  ;;  %v3819_v25 = vpop.f32.mrf.mxu3 }
 0x789   : > { %8458 = vrot.lane.b32.xlu0 %v18039_v3, %s12340_s22 }
 0x78c   : > { %3971 = vmax.xlane.f32.xlu1 %v3970_v23  ;;  %v5195_v3 = vpop.f32.mrf.mxu0  ;;  %v15102_v23 = vpop.permute.xlu1 %8318 }
 0x78d   : > { %18233 = vst [vmem:[#allocation144_spill] sm:$0xff] %v15102_v23  ;;  %v5604_v41 = vpop.f32.mrf.mxu1 }
 0x78f   : > { %v3915_v24 = vpop.xlane.xlu2 %3914 }
 0x790   : > { %v4007_v23 = vsub.f32 %v14980_v55, %v3915_v24 }
 0x791   : > { %8456 = vrot.lane.b32.xlu0 %v18051_v14, %s12340_s22 }
 0x792   : > { %v4040_v5 = vmul.f32 1.442695, %v4007_v23 }
 0x794   : > { %v15107_v38 = vpop.permute.xlu1 %8374  ;;  %12004 = vpow2.f32 %v4040_v5 }
 0x795   : > { %18234 = vst [vmem:[#allocation104_spill] sm:$0xff] %v15107_v38  ;;  %v5716_v6 = vpop.f32.mrf.mxu1 }
 0x796   : > { %v15160_v28 = vmul.f32 0.35355338, %v5716_v6 }
 0x799   : > { %5317 = vrot.lane.b32.xlu0 %v5220_v34, %s12338_s16  ;;  %v5464_v34 = vpop.f32.mrf.mxu0 }
 0x79a   : > { %v15097_v9 = vpop.xlane.xlu0 %3938  ;;  %v15127_v23 = vpop.eup %12004 }
 0x79d   : > { %5309 = vrot.lane.b32.xlu2 %v5120_v0, %s12338_s16 }
 0x7a1   : > { %v5576_v29 = vpop.f32.mrf.mxu0 }
 0x7a2   : > { %v15104_v14 = vpop.xlane.xlu0 %3947 }
 0x7a5   : > { %8372 = vrot.lane.b32.xlu1 %v18028_v20, %s12340_s22  ;;  %5315 = vrot.lane.b32.xlu2 %v5195_v3, %s12338_s16  ;;  %v15110_v20 = vmul.f32 0.35355338, %v5604_v41  ;;  %v3924_v3 = vpop.xlane.xlu2 %3923 }
 0x7a7   : > { %v6332_v10 = vsel %vm869_vm1, %v15110_v20, -inf }
 0x7ac   : > { %v3927_v63 = vpop.xlane.xlu1 %3926 }
 0x7ad   : > { %5307 = vrot.lane.b32.xlu1 %v5095_v33, %s12338_s16  ;;  %v5688_v33 = vpop.f32.mrf.mxu0  ;;  %v15120_v41 = vpop.xlane.xlu2 %3950  ;;  %v4011_v7 = vsub.f32 %v15030_v21, %v3927_v63 }
 0x7ae   : > { %v15115_v38 = vmul.f32 0.35355338, %v5688_v33  ;;  %v5828_v33 = vpop.f32.mrf.mxu1 }
 0x7b0   : > { %v6341_v55 = vsel %vm869_vm1, %v15115_v38, -inf }
 0x7b4   : > { %v3936_v18 = vpop.xlane.xlu1 %3935 }
 0x7b5   : > { %v5300_v0 = vpop.permute.xlu0 %5299  ;;  %v5800_v5 = vpop.f32.mrf.mxu0 }
 0x7b6   : > { %5373 = vst.msk [vmem:[#allocation2 + $0xb0] sm:$0xff] %vm4390_vm2, %v5300_v0  ;;  %v4010_v0 = vsub.f32 %v14991_v31, %v3924_v3  ;;  %v15129_v31 = vmul.f32 0.35355338, %v5576_v29  ;;  %v15131_v3 = vmul.f32 0.35355338, %v3819_v25  ;;  %v5940_v35 = vpop.f32.mrf.mxu1 }
 0x7b7   : > { %v15143_v29 = vmul.f32 0.35355338, %v5828_v33  ;;  %v15145_v25 = vmul.f32 0.35355338, %v5464_v34  ;;  %v15152_v13 = vmul.f32 0.35355338, %v5940_v35  ;;  %v4014_v35 = vsub.f32 %v15038_v26, %v3936_v18 }
 0x7b8   : > { %v4046_v19 = vmul.f32 1.442695, %v4010_v0  ;;  %v15135_v0 = vpop.xlane.xlu2 %3959  ;;  %v4048_v34 = vmul.f32 1.442695, %v4011_v7  ;;  %v6344_v7 = vsel %vm869_vm1, %v15160_v28, -inf }
 0x7b9   : > { %v6317_v33 = vsel %vm869_vm1, %v15145_v25, -inf  ;;  %v6368_v63 = vsel %vm869_vm1, %v15152_v13, -inf  ;;  %v4054_v6 = vmul.f32 1.442695, %v4014_v35  ;;  %v15179_v18 = vmul.f32 0.35355338, %v5800_v5 }
 0x7ba   : > { %12006 = vpow2.f32 %v4046_v19 }
 0x7bb   : > { %12008 = vpow2.f32 %v4048_v34 }
 0x7bc   : > { %12010 = vpow2.f32 %v4054_v6 }
 0x7bd   : > { %v5912_v19 = vpop.f32.mrf.mxu0 }
 0x7c0   : > { %v15141_v8 = vpop.eup %12006  ;;  %v15154_v22 = vpop.permute.xlu2 %8178 }
 0x7c1   : > { %18235 = vst [vmem:[#allocation176_spill] sm:$0xff] %v15154_v22  ;;  %v15177_v26 = vpop.eup %12008 }
 0x7c3   : > { %6333 = vmax.xlane.f32.xlu0 %v6332_v10  ;;  %v6320_v10 = vsel %vm869_vm1, %v15117_v11, -inf }
 0x7c5   : > { %v6024_v21 = vpop.f32.mrf.mxu0 }
 0x7cb   : > { %6342 = vmax.xlane.f32.xlu0 %v6341_v55  ;;  %v4105_v55 = vsel %vm869_vm1, %v15127_v23, 0.0 }
 0x7cc   : > { %v5302_v24 = vpop.permute.xlu1 %5301 }
 0x7cd   : > { %5374 = vst.msk [vmem:[#allocation2 + $0xb8] sm:$0xff] %vm4390_vm2, %v5302_v24  ;;  %v6329_v24 = vsel %vm869_vm1, %v15129_v31, -inf  ;;  %v6136_v61 = vpop.f32.mrf.mxu0 }
 0x7ce   : > { %6321 = vmax.xlane.f32.xlu2 %v6320_v10  ;;  %v3997_v10 = vsel %vm869_vm1, %v15131_v3, -inf }
 0x7d3   : > { %4106 = vadd.xlane.f32.xlu0 %v4105_v55  ;;  %v4114_v55 = vsel %vm869_vm1, %v15141_v8, 0.0 }
 0x7d6   : > { %6330 = vmax.xlane.f32.xlu2 %v6329_v24  ;;  %v6356_v24 = vsel %vm869_vm1, %v15143_v29, -inf }
 0x7d7   : > { %3998 = vmax.xlane.f32.xlu1 %v3997_v10  ;;  %v15158_v10 = vmul.f32 0.35355338, %v5912_v19  ;;  %v15173_v19 = vpop.permute.xlu2 %8430 }
 0x7d8   : > { %18236 = vst [vmem:[#allocation150_spill] sm:$0xff] %v15173_v19  ;;  %v4015_v19 = vsub.f32 %v15000_v40, %v15097_v9  ;;  %v4018_v40 = vsub.f32 %v15014_v58, %v15104_v14 }
 0x7da   : > { %v4056_v36 = vmul.f32 1.442695, %v4015_v19 }
 0x7db   : > { %4115 = vadd.xlane.f32.xlu0 %v4114_v55  ;;  %v4006_v55 = vsub.f32 %v14907_v48, %v15060_v32  ;;  %v4117_v32 = vsel %vm869_vm1, %v15177_v26, 0.0 }
 0x7de   : > { %6357 = vmax.xlane.f32.xlu2 %v6356_v24  ;;  %v6365_v24 = vsel %vm869_vm1, %v15158_v10, -inf }
 0x7df   : > { %6318 = vmax.xlane.f32.xlu1 %v6317_v33  ;;  %v15169_v33 = vmul.f32 0.35355338, %v6024_v21  ;;  %v6353_v21 = vsel %vm869_vm1, %v15179_v18, -inf }
 0x7e0   : > { %v15175_v34 = vpop.xlane.xlu0 %3974 }
 0x7e1   : > { %v6377_v48 = vsel %vm869_vm1, %v15169_v33, -inf }
 0x7e3   : > { %6369 = vmax.xlane.f32.xlu0 %v6368_v63  ;;  %v4038_v63 = vmul.f32 1.442695, %v4006_v55  ;;  %v15189_v55 = vpop.eup %12010 }
 0x7e5   : > { %12012 = vpow2.f32 %v4038_v63  ;;  %v6052_v63 = vpop.f32.mrf.mxu1 }
 0x7e6   : > { %6366 = vmax.xlane.f32.xlu2 %v6365_v24  ;;  %12014 = vpow2.f32 %v4056_v36 }
 0x7e7   : > { %6345 = vmax.xlane.f32.xlu1 %v6344_v7  ;;  %v4126_v7 = vsel %vm869_vm1, %v15189_v55, 0.0 }
 0x7e8   : > { %v15193_v24 = vpop.xlane.xlu0 %3983 }
 0x7eb   : > { %6378 = vmax.xlane.f32.xlu0 %v6377_v48  ;;  %v15191_v5 = vpop.eup %12012 }
 0x7ec   : > { %v4102_v6 = vsel %vm869_vm1, %v15191_v5, 0.0 }
 0x7ee   : > { %4118 = vadd.xlane.f32.xlu2 %v4117_v32  ;;  %v15201_v32 = vmul.f32 0.35355338, %v6052_v63 }
 0x7ef   : > { %6354 = vmax.xlane.f32.xlu1 %v6353_v21 }
 0x7f0   : > { %v15187_v35 = vpop.xlane.xlu2 %3986  ;;  %v6380_v22 = vsel %vm869_vm1, %v15201_v32, -inf }
 0x7f6   : > { %4127 = vadd.xlane.f32.xlu2 %v4126_v7 }
 0x7f7   : > { %4103 = vadd.xlane.f32.xlu1 %v4102_v6  ;;  %v15212_v6 = vmul.f32 0.35355338, %v6136_v61  ;;  %v3963_v9 = vpop.xlane.xlu1 %3962 }
 0x7f8   : > { %v15199_v48 = vpop.xlane.xlu2 %3995 }
 0x7fb   : > { %v15203_v21 = vpop.permute.xlu0 %8458 }
 0x7fc   : > { %18237 = vst [vmem:[#allocation191_spill] sm:$0xff] %v15203_v21  ;;  %v6389_v21 = vsel %vm869_vm1, %v15212_v6, -inf }
 0x7ff   : > { %8428 = vrot.lane.b32.xlu0 %v13209_v46, %s12340_s22  ;;  %6381 = vmax.xlane.f32.xlu1 %v6380_v22  ;;  %v4062_v46 = vmul.f32 1.442695, %v4018_v40  ;;  %v15221_v22 = vpop.eup %12014  ;;  %v3972_v61 = vpop.xlane.xlu1 %3971 }
 0x800   : > { %v5310_v7 = vpop.permute.xlu2 %5309  ;;  %v4129_v14 = vsel %vm869_vm1, %v15221_v22, 0.0 }
 0x801   : > { %5378 = vst.msk [vmem:[#allocation2 + $0xd8] sm:$0xff] %vm4390_vm2, %v5310_v7  ;;  %12016 = vpow2.f32 %v4062_v46 }
 0x803   : > { %v15214_v63 = vpop.permute.xlu0 %8456 }
 0x804   : > { %18238 = vst [vmem:[#allocation132_spill] sm:$0xff] %v15214_v63 }
 0x807   : > { %6390 = vmax.xlane.f32.xlu1 %v6389_v21  ;;  %v15228_v36 = vpop.eup %12016 }
 0x808   : > { %v5316_v2 = vpop.permute.xlu2 %5315  ;;  %v4138_v58 = vsel %vm869_vm1, %v15228_v36, 0.0 }
 0x809   : > { %5381 = vst.msk [vmem:[#allocation2 + $0xf0] sm:$0xff] %vm4390_vm2, %v5316_v2  ;;  %v4019_v2 = vsub.f32 %v15008_v54, %v15120_v41 }
 0x80b   : > { %v5318_v19 = vpop.permute.xlu0 %5317  ;;  %v4064_v46 = vmul.f32 1.442695, %v4019_v2 }
 0x80c   : > { %5382 = vst.msk [vmem:[#allocation2 + $0xf8] sm:$0xff] %vm4390_vm2, %v5318_v19 }
 0x80d   : > { %12018 = vpow2.f32 %v4064_v46  ;;  %v4023_v46 = vsub.f32 %v15075_v16, %v3963_v9 }
 0x80e   : > { %8486 = vrot.lane.b32.xlu2 %v18064_v53, %s12340_s22  ;;  %v4022_v53 = vsub.f32 %v15022_v60, %v15135_v0 }
 0x80f   : > { %4130 = vadd.xlane.f32.xlu1 %v4129_v14  ;;  %v6164_v14 = vpop.f32.mrf.mxu1 }
 0x810   : > { %v4070_v40 = vmul.f32 1.442695, %v4022_v53  ;;  %v15249_v0 = vmul.f32 0.35355338, %v6164_v14  ;;  %v4026_v14 = vsub.f32 %v15083_v51, %v3972_v61  ;;  %v4027_v51 = vsub.f32 %v15062_v52, %v15175_v34 }
 0x811   : > { %v4030_v52 = vsub.f32 %v15066_v42, %v15193_v24 }
 0x812   : > { %12020 = vpow2.f32 %v4070_v40  ;;  %v4078_v9 = vmul.f32 1.442695, %v4026_v14 }
 0x813   : > { %v15239_v19 = vpop.eup %12018 }
 0x814   : > { %v4141_v63 = vsel %vm869_vm1, %v15239_v19, 0.0 }
 0x817   : > { %4139 = vadd.xlane.f32.xlu1 %v4138_v58  ;;  %v15234_v21 = vpop.permute.xlu1 %8372  ;;  %v18240_v58 = vld [vmem:[#allocation86_spill] sm:$0xff]  ;;  %v6276_v60 = vpop.f32.mrf.mxu1 }
 0x818   : > { %18239 = vst [vmem:[#allocation188_spill] sm:$0xff] %v15234_v21  ;;  %v15243_v54 = vpop.eup %12020  ;;  %v15251_v2 = vmul.f32 0.35355338, %v6276_v60  ;;  %v4072_v21 = vmul.f32 1.442695, %v4023_v46 }
 0x819   : > { %v4150_v41 = vsel %vm869_vm1, %v15243_v54, 0.0 }
 0x81a   : > { %18241 = vst [vmem:[#allocation167_spill] sm:$0xff] %v15251_v2  ;;  %v6404_v40 = vsel %vm869_vm1, %v15251_v2, -inf  ;;  %12022 = vpow2.f32 %v4072_v21  ;;  %v11595_v2 = vunpack.i.h.bf16 %v18246_v43 }
 0x81b   : > { %12024 = vpow2.f32 %v4078_v9 }
 0x81f   : > { %v5308_v7 = vpop.permute.xlu1 %5307 }
 0x820   : > { %5377 = vst.msk [vmem:[#allocation2 + $0xd0] sm:$0xff] %vm4390_vm2, %v5308_v7  ;;  %v6248_v7 = vpop.f32.mrf.mxu0 }
 0x829   : > { %4142 = vadd.xlane.f32.xlu0 %v4141_v63  ;;  %v6392_v63 = vsel %vm869_vm1, %v15249_v0, -inf }
 0x830   : > { %8176 = vrot.lane.b32.xlu1 %v18240_v58, %s12340_s22  ;;  %v15260_v58 = vmul.f32 0.35355338, %v6248_v7 }
 0x831   : > { %4151 = vadd.xlane.f32.xlu0 %v4150_v41 }
 0x832   : > { %18242 = vst [vmem:[#allocation194_spill] sm:$0xff] %v15260_v58  ;;  %v6401_v16 = vsel %vm869_vm1, %v15260_v58, -inf }
 0x836   : > { %v15254_v53 = vpop.xlane.xlu0 %6333 }
 0x837   : > { %6393 = vmax.xlane.f32.xlu2 %v6392_v63  ;;  %v15269_v63 = vpop.eup %12022 }
 0x838   : > { %v4153_v46 = vsel %vm869_vm1, %v15269_v63, 0.0  ;;  %v15279_v7 = vpop.eup %12024 }
 0x839   : > { %6405 = vmax.xlane.f32.xlu0 %v6404_v40  ;;  %v4080_v40 = vmul.f32 1.442695, %v4027_v51 }
 0x83e   : > { %v15263_v41 = vpop.xlane.xlu0 %6342 }
 0x83f   : > { %6402 = vmax.xlane.f32.xlu2 %v6401_v16  ;;  %v18243_v16 = vld [vmem:[#allocation109_spill] sm:$0xff] }
 0x841   : > { %v15267_v60 = vpop.xlane.xlu2 %6321 }
 0x846   : > { %v4107_v17 = vpop.xlane.xlu0 %4106 }
 0x847   : > { %12026 = vrcp.f32 %v4107_v17  ;;  %4154 = vadd.xlane.f32.xlu2 %v4153_v46  ;;  %v4162_v17 = vsel %vm869_vm1, %v15279_v7, 0.0  ;;  %v18244_v46 = vld [vmem:[#allocation122_spill] sm:$0xff] }
 0x848   : > { %v11575_v58 = vunpack.i.h.bf16 %v18244_v46  ;;  %12028 = vpow2.f32 %v4080_v40 }
 0x849   : > { %v15275_v61 = vpop.xlane.xlu2 %6330 }
 0x84a   : > { %v15277_v21 = vpop.xlane.xlu1 %3998 }
 0x84d   : > { %v12027_v14 = vpop.eup %12026  ;;  %8290 = vrot.lane.b32.xlu0 %v18243_v16, %s12340_s22  ;;  %v4086_v16 = vmul.f32 1.442695, %v4030_v52  ;;  %v4031_v52 = vsub.f32 %v15071_v47, %v15187_v35  ;;  %v4034_v47 = vsub.f32 %v15077_v1, %v15199_v48 }
 0x84e   : > { %v15284_v9 = vmul.f32 %v12027_v14, %v15127_v23  ;;  %v15295_v23 = vpop.eup %12028  ;;  %v4116_v35 = vpop.xlane.xlu0 %4115 }
 0x84f   : > { %4163 = vadd.xlane.f32.xlu2 %v4162_v17  ;;  %12030 = vpow2.f32 %v4086_v16  ;;  %v4165_v17 = vsel %vm869_vm1, %v15295_v23, 0.0  ;;  %v18245_v16 = vld [vmem:[#allocation105_spill] sm:$0xff]  ;;  %v4088_v57 = vmul.f32 1.442695, %v4031_v52 }
 0x850   : > { %11208 = vmatmul.msk.f32.vlgmr.msrb.gmra.mxu3 %vm869_vm1, %v15284_v9 }
 0x851   : > { %4668 = vmatpush.msrb.mxu3 %v11575_v58  ;;  %v15293_v34 = vpop.xlane.xlu2 %6357 }
 0x852   : > { %v6319_v51 = vpop.xlane.xlu1 %6318 }
 0x855   : > { %v15301_v15 = vpop.eup %12030 }
 0x856   : > { %v4174_v24 = vsel %vm869_vm1, %v15301_v15, 0.0 }
 0x859   : > { %v15297_v14 = vpop.xlane.xlu2 %6366 }
 0x85a   : > { %4166 = vadd.xlane.f32.xlu1 %v4165_v17  ;;  %v6346_v40 = vpop.xlane.xlu1 %6345 }
 0x861   : > { %v4119_v42 = vpop.xlane.xlu2 %4118 }
 0x862   : > { %12032 = vrcp.f32 %v4119_v42  ;;  %4175 = vadd.xlane.f32.xlu1 %v4174_v24  ;;  %v6355_v58 = vpop.xlane.xlu1 %6354  ;;  %v4094_v24 = vmul.f32 1.442695, %v4034_v47 }
 0x867   : > { %8288 = vrot.lane.b32.xlu2 %v18245_v16, %s12340_s22 }
 0x868   : > { %v12033_v30 = vpop.eup %12032 }
 0x869   : > { %v15310_v17 = vmul.f32 %v12033_v30, %v15177_v26  ;;  %v4128_v1 = vpop.xlane.xlu2 %4127 }
 0x86a   : > { %v4104_v39 = vpop.xlane.xlu1 %4103 }
 0x86b   : > { %12034 = vrcp.f32 %v4104_v39  ;;  %11212 = vmatmul.msk.f32.vlgmr.msra.gmra.mxu3 %vm869_vm1, %v15310_v17  ;;  %v11574_v39 = vunpack.i.l.bf16 %v18244_v46 }
 0x86c   : > { %4768 = vmatpush.msra.mxu3 %v11595_v2  ;;  %12036 = vpow2.f32 %v4088_v57  ;;  %v6409_v57 = vsub.f32 %v15145_v25, %v6319_v51  ;;  %v6418_v25 = vsub.f32 %v15160_v28, %v6346_v40  ;;  %v18247_v28 = vld [vmem:[#allocation171_spill] sm:$0xff] }
 0x86d   : > { %12038 = vrcp.f32 %v4116_v35  ;;  %v11614_v40 = vunpack.i.l.bf16 %v18247_v28 }
 0x86e   : > { %12040 = vpow2.f32 %v4094_v24 }
 0x86f   : > { %12042 = vrcp.f32 %v4128_v1 }
 0x871   : > { %v12035_v42 = vpop.eup %12034 }
 0x872   : > { %v15318_v52 = vmul.f32 %v12035_v42, %v15191_v5  ;;  %v15320_v30 = vpop.xlane.xlu1 %6381  ;;  %v15322_v26 = vpop.eup %12036  ;;  %v6443_v5 = vmul.f32 1.442695, %v6409_v57  ;;  %v11594_v42 = vunpack.i.l.bf16 %v18246_v43 }
 0x873   : > { %v4177_v48 = vsel %vm869_vm1, %v15322_v26, 0.0  ;;  %v12039_v2 = vpop.eup %12038  ;;  %v15347_v57 = vpop.xlane.xlu0 %6369 }
 0x874   : > { %11207 = vmatmul.msk.f32.vlgmr.msrb.gmra.mxu2 %vm869_vm1, %v15318_v52  ;;  %v15331_v47 = vmul.f32 %v12039_v2, %v15141_v8  ;;  %v15335_v46 = vpop.eup %12040  ;;  %12044 = vpow2.f32 %v6443_v5  ;;  %v4035_v8 = vsub.f32 %v15131_v3, %v15277_v21  ;;  %v6421_v3 = vsub.f32 %v15179_v18, %v6355_v58 }
 0x875   : > { %4643 = vmatpush.msrb.mxu2 %v11574_v39  ;;  %v4186_v51 = vsel %vm869_vm1, %v15335_v46, 0.0  ;;  %v12043_v24 = vpop.eup %12042  ;;  %v6461_v39 = vmul.f32 1.442695, %v6418_v25  ;;  %v6414_v21 = vsub.f32 %v15110_v20, %v15254_v53  ;;  %v11615_v18 = vunpack.i.h.bf16 %v18247_v28 }
 0x876   : > { %v4096_v43 = vmul.f32 1.442695, %v4035_v8  ;;  %v15350_v1 = vmul.f32 %v12043_v24, %v15189_v55 }
 0x877   : > { %4178 = vadd.xlane.f32.xlu0 %v4177_v48  ;;  %v6453_v25 = vmul.f32 1.442695, %v6414_v21 }
 0x87a   : > { %v15333_v35 = vpop.xlane.xlu1 %6390  ;;  %v15352_v2 = vpop.eup %12044 }
 0x87b   : > { %8484 = vrot.lane.b32.xlu1 %v18036_v12, %s12340_s22  ;;  %v6509_v55 = vsel %vm869_vm1, %v15352_v2, 0.0  ;;  %v15370_v20 = vpop.xlane.xlu0 %6378 }
 0x87c   : > { %11211 = vmatmul.msk.f32.vlgmr.msra.gmra.mxu2 %vm869_vm1, %v15331_v47 }
 0x87d   : > { %4743 = vmatpush.msra.mxu2 %v11594_v42  ;;  %v6467_v42 = vmul.f32 1.442695, %v6421_v3  ;;  %v18248_v3 = vld [vmem:[#allocation187_spill] sm:$0xff] }
 0x87e   : > { %v11634_v21 = vunpack.i.l.bf16 %v18248_v3 }
 0x87f   : > { %4187 = vadd.xlane.f32.xlu0 %v4186_v51 }
 0x882   : > { %v4131_v48 = vpop.xlane.xlu1 %4130 }
 0x883   : > { %12046 = vrcp.f32 %v4131_v48 }
 0x884   : > { %11215 = vmatmul.msk.f32.vlgmr.msrb.gmra.mxu2 %vm869_vm1, %v15350_v1  ;;  %12048 = vpow2.f32 %v6461_v39 }
 0x885   : > { %4843 = vmatpush.msrb.mxu2 %v11614_v40  ;;  %12050 = vpow2.f32 %v4096_v43 }
 0x887   : > { %6510 = vadd.xlane.f32.xlu0 %v6509_v55  ;;  %v15390_v55 = vpop.permute.xlu0 %8428 }
 0x889   : > { %v12047_v5 = vpop.eup %12046 }
 0x88a   : > { %v15363_v8 = vmul.f32 %v12047_v5, %v15221_v22  ;;  %v4140_v51 = vpop.xlane.xlu1 %4139  ;;  %v15365_v24 = vpop.eup %12048  ;;  %v6417_v22 = vsub.f32 %v15115_v38, %v15263_v41  ;;  %v6410_v38 = vsub.f32 %v15117_v11, %v15267_v60  ;;  %v6413_v11 = vsub.f32 %v15129_v31, %v15275_v61 }
 0x88b   : > { %12052 = vrcp.f32 %v4140_v51  ;;  %v15368_v58 = vpop.eup %12050  ;;  %v6536_v53 = vsel %vm869_vm1, %v15365_v24, 0.0  ;;  %v11635_v61 = vunpack.i.h.bf16 %v18248_v3 }
 0x88c   : > { %11216 = vmatmul.msk.f32.vlgmr.msrb.gmra.mxu3 %vm869_vm1, %v15363_v8  ;;  %12054 = vpow2.f32 %v6467_v42  ;;  %v4189_v39 = vsel %vm869_vm1, %v15368_v58, 0.0  ;;  %v6459_v48 = vmul.f32 1.442695, %v6417_v22  ;;  %v6445_v5 = vmul.f32 1.442695, %v6410_v38 }
 0x88d   : > { %4868 = vmatpush.msrb.mxu3 %v11615_v18  ;;  %12056 = vpow2.f32 %v6453_v25  ;;  %v6451_v51 = vmul.f32 1.442695, %v6413_v11 }
 0x88e   : > { %12058 = vpow2.f32 %v6459_v48 }
 0x88f   : > { %6537 = vadd.xlane.f32.xlu0 %v6536_v53  ;;  %12060 = vpow2.f32 %v6445_v5  ;;  %v15406_v53 = vpop.permute.xlu2 %8486  ;;  %v18249_v5 = vld [vmem:[#allocation192_spill] sm:$0xff] }
 0x890   : > { %4190 = vadd.xlane.f32.xlu2 %v4189_v39 }
 0x891   : > { %v12053_v43 = vpop.eup %12052 }
 0x892   : > { %v15381_v28 = vmul.f32 %v12053_v43, %v15228_v36  ;;  %v15383_v40 = vpop.eup %12054 }
 0x893   : > { %v15388_v41 = vpop.eup %12056  ;;  %v6545_v36 = vsel %vm869_vm1, %v15383_v40, 0.0 }
 0x894   : > { %11219 = vmatmul.msk.f32.vlgmr.msra.gmra.mxu2 %vm869_vm1, %v15381_v28  ;;  %v6524_v42 = vsel %vm869_vm1, %v15388_v41, 0.0  ;;  %v15400_v60 = vpop.eup %12058 }
 0x895   : > { %4943 = vmatpush.msra.mxu2 %v11634_v21  ;;  %v6533_v18 = vsel %vm869_vm1, %v15400_v60, 0.0  ;;  %v15404_v22 = vpop.eup %12060 }
 0x896   : > { %v6512_v31 = vsel %vm869_vm1, %v15404_v22, 0.0 }
 0x897   : > { %6546 = vadd.xlane.f32.xlu0 %v6545_v36 }
 0x898   : > { %6525 = vadd.xlane.f32.xlu2 %v6524_v42  ;;  %v11654_v42 = vunpack.i.l.bf16 %v18249_v5 }
 0x89c   : > { %v4143_v25 = vpop.xlane.xlu0 %4142 }
 0x89d   : > { %12062 = vrcp.f32 %v4143_v25 }
 0x89e   : > { %12064 = vpow2.f32 %v6451_v51 }
 0x8a0   : > { %6534 = vadd.xlane.f32.xlu2 %v6533_v18  ;;  %v11655_v18 = vunpack.i.h.bf16 %v18249_v5 }
 0x8a3   : > { %v12063_v39 = vpop.eup %12062 }
 0x8a4   : > { %v15409_v43 = vmul.f32 %v12063_v39, %v15239_v19  ;;  %v4152_v48 = vpop.xlane.xlu0 %4151  ;;  %v15416_v21 = vpop.eup %12064  ;;  %v6430_v39 = vsub.f32 %v15201_v32, %v15320_v30  ;;  %v6433_v32 = vsub.f32 %v15212_v6, %v15333_v35 }
 0x8a5   : > { %12066 = vrcp.f32 %v4152_v48  ;;  %6513 = vadd.xlane.f32.xlu1 %v6512_v31  ;;  %v6521_v3 = vsel %vm869_vm1, %v15416_v21, 0.0  ;;  %v15442_v48 = vpop.permute.xlu1 %8176 }
 0x8a6   : > { %11220 = vmatmul.msk.f32.vlgmr.msra.gmra.mxu3 %vm869_vm1, %v15409_v43 }
 0x8a7   : > { %4968 = vmatpush.msra.mxu3 %v11635_v61  ;;  %v18250_v61 = vld [vmem:[#allocation93_spill] sm:$0xff] }
 0x8aa   : > { %v15418_v38 = vpop.xlane.xlu2 %6393 }
 0x8ab   : > { %v12067_v36 = vpop.eup %12066  ;;  %4302 = vrot.lane.b32.xlu0 %v15331_v47, %s12338_s16 }
 0x8ac   : > { %v15423_v19 = vmul.f32 %v12067_v36, %v15243_v54  ;;  %v11534_v36 = vunpack.i.l.bf16 %v18250_v61 }
 0x8ad   : > { %6522 = vadd.xlane.f32.xlu1 %v6521_v3  ;;  %v6491_v3 = vmul.f32 1.442695, %v6433_v32 }
 0x8ae   : > { %11223 = vmatmul.msk.f32.vlgmr.msrb.gmra.mxu2 %vm869_vm1, %v15423_v19 }
 0x8af   : > { %5043 = vmatpush.msrb.mxu2 %v11654_v42 }
 0x8b2   : > { %v15430_v11 = vpop.xlane.xlu2 %6402 }
 0x8b8   : > { %4294 = vrot.lane.b32.xlu2 %v15318_v52, %s12338_s16  ;;  %v6485_v52 = vmul.f32 1.442695, %v6430_v39 }
 0x8ba   : > { %v4155_v25 = vpop.xlane.xlu2 %4154 }
 0x8bb   : > { %12068 = vrcp.f32 %v4155_v25 }
 0x8c1   : > { %v12069_v47 = vpop.eup %12068 }
 0x8c2   : > { %v15435_v54 = vmul.f32 %v12069_v47, %v15269_v63  ;;  %v4164_v51 = vpop.xlane.xlu2 %4163  ;;  %v11535_v47 = vunpack.i.h.bf16 %v18250_v61 }
 0x8c3   : > { %12070 = vrcp.f32 %v4164_v51  ;;  %v15470_v51 = vpop.xlane.xlu0 %6405 }
 0x8c4   : > { %11224 = vmatmul.msk.f32.vlgmr.msrb.gmra.mxu3 %vm869_vm1, %v15435_v54  ;;  %12072 = vpow2.f32 %v6485_v52 }
 0x8c5   : > { %5068 = vmatpush.msrb.mxu3 %v11655_v18 }
 0x8c6   : > { %4296 = vrot.lane.b32.xlu1 %v15284_v9, %s12338_s16  ;;  %v6426_v9 = vsub.f32 %v15152_v13, %v15347_v57  ;;  %v6429_v13 = vsub.f32 %v15169_v33, %v15370_v20  ;;  %v6422_v33 = vsub.f32 %v15143_v29, %v15293_v34  ;;  %v18251_v20 = vld [vmem:[#allocation103_spill] sm:$0xff]  ;;  %v6425_v29 = vsub.f32 %v15158_v10, %v15297_v14 }
 0x8c8   : > { %v6483_v18 = vmul.f32 1.442695, %v6429_v13 }
 0x8c9   : > { %v12071_v31 = vpop.eup %12070 }
 0x8ca   : > { %v15447_v63 = vmul.f32 %v12071_v31, %v15279_v7  ;;  %v15456_v5 = vpop.eup %12072  ;;  %v6477_v7 = vmul.f32 1.442695, %v6426_v9 }
 0x8cb   : > { %v6572_v25 = vsel %vm869_vm1, %v15456_v5, 0.0  ;;  %v15487_v32 = vpop.permute.xlu0 %8290 }
 0x8cc   : > { %11227 = vmatmul.msk.f32.vlgmr.msra.gmra.mxu2 %vm869_vm1, %v15447_v63 }
 0x8cd   : > { %5143 = vmatpush.msra.mxu2 %v11534_v36  ;;  %v4167_v30 = vpop.xlane.xlu1 %4166  ;;  %v6469_v36 = vmul.f32 1.442695, %v6422_v33  ;;  %v18254_v33 = vld [vmem:[#allocation123_spill] sm:$0xff] }
 0x8ce   : > { %12074 = vrcp.f32 %v4167_v30  ;;  %v6475_v30 = vmul.f32 1.442695, %v6425_v29 }
 0x8cf   : > { %12076 = vpow2.f32 %v6491_v3 }
 0x8d4   : > { %v12075_v42 = vpop.eup %12074 }
 0x8d5   : > { %v15461_v6 = vmul.f32 %v12075_v42, %v15295_v23  ;;  %6573 = vadd.xlane.f32.xlu0 %v6572_v25  ;;  %v4176_v35 = vpop.xlane.xlu1 %4175  ;;  %v15468_v57 = vpop.eup %12076 }
 0x8d6   : > { %12078 = vrcp.f32 %v4176_v35  ;;  %v6581_v39 = vsel %vm869_vm1, %v15468_v57, 0.0  ;;  %v18252_v35 = vld [vmem:[#allocation126_spill] sm:$0xff] }
 0x8d7   : > { %12080 = vpow2.f32 %v6477_v7  ;;  %11228 = vmatmul.msk.f32.vlgmr.msra.gmra.mxu3 %vm869_vm1, %v15461_v6 }
 0x8d8   : > { %5168 = vmatpush.msra.mxu3 %v11535_v47  ;;  %12082 = vpow2.f32 %v6483_v18  ;;  %v15512_v18 = vpop.permute.xlu2 %8288 }
 0x8d9   : > { %12084 = vpow2.f32 %v6469_v36  ;;  %v18256_v36 = vld [vmem:[#allocation162_spill] sm:$0xff] }
 0x8dc   : > { %v12079_v23 = vpop.eup %12078 }
 0x8dd   : > { %v15474_v52 = vpop.eup %12080  ;;  %v15477_v31 = vmul.f32 %v12079_v23, %v15301_v15  ;;  %6582 = vadd.xlane.f32.xlu0 %v6581_v39  ;;  %v18253_v23 = vld [vmem:[#allocation146_spill] sm:$0xff] }
 0x8de   : > { %v6560_v61 = vsel %vm869_vm1, %v15474_v52, 0.0  ;;  %v15489_v15 = vpop.eup %12082 }
 0x8df   : > { %11231 = vmatmul.msk.f32.vlgmr.msrb.gmra.mxu2 %vm869_vm1, %v15477_v31  ;;  %v6569_v34 = vsel %vm869_vm1, %v15489_v15, 0.0  ;;  %v15495_v3 = vpop.eup %12084 }
 0x8e0   : > { %11239 = vmatpush.xpose.msk.msrb.mxu2 %vm869_vm1, %v18251_v20  ;;  %v6548_v7 = vsel %vm869_vm1, %v15495_v3, 0.0 }
 0x8e1   : > { %6561 = vadd.xlane.f32.xlu2 %v6560_v61  ;;  %v18255_v61 = vld [vmem:[#allocation75_spill] sm:$0xff] }
 0x8e9   : > { %6570 = vadd.xlane.f32.xlu2 %v6569_v34 }
 0x8ea   : > { %v4179_v9 = vpop.xlane.xlu0 %4178 }
 0x8eb   : > { %12086 = vrcp.f32 %v4179_v9  ;;  %v18258_v9 = vld [vmem:[#allocation170_spill] sm:$0xff] }
 0x8ec   : > { %12088 = vpow2.f32 %v6475_v30  ;;  %v18257_v30 = vld [vmem:[#allocation96_spill] sm:$0xff] }
 0x8f0   : > { %6549 = vadd.xlane.f32.xlu1 %v6548_v7  ;;  %v18259_v7 = vld [vmem:[#allocation148_spill] sm:$0xff] }
 0x8f1   : > { %v12087_v42 = vpop.eup %12086  ;;  %4320 = vrot.lane.b32.xlu0 %v15409_v43, %s12338_s16 }
 0x8f2   : > { %v4255_v10 = vmul.f32 %v12087_v42, %v15322_v26  ;;  %v4188_v14 = vpop.xlane.xlu0 %4187  ;;  %v15502_v25 = vpop.eup %12088 }
 0x8f3   : > { %12090 = vrcp.f32 %v4188_v14  ;;  %v6557_v47 = vsel %vm869_vm1, %v15502_v25, 0.0  ;;  %v18261_v14 = vld [vmem:[#allocation213_spill] sm:$0xff] }
 0x8f4   : > { %11232 = vmatmul.msk.f32.vlgmr.msrb.gmra.mxu3 %vm869_vm1, %v4255_v10 }
 0x8f5   : > { %11241 = vmatpush.xpose.msk.msrb.mxu3 %vm869_vm1, %v18252_v35  ;;  %v18262_v35 = vld [vmem:[#allocation77_spill] sm:$0xff] }
 0x8f8   : > { %6558 = vadd.xlane.f32.xlu1 %v6557_v47  ;;  %v18263_v47 = vld [vmem:[#allocation164_spill] sm:$0xff] }
 0x8f9   : > { %v12091_v13 = vpop.eup %12090  ;;  %4326 = vrot.lane.b32.xlu0 %v15423_v19, %s12338_s16 }
 0x8fa   : > { %v4258_v43 = vmul.f32 %v12091_v13, %v15335_v46  ;;  %v6511_v26 = vpop.xlane.xlu0 %6510  ;;  %v11684_v46 = vunpack.i.l.bf16 %v14735_v62  ;;  %v18265_v13 = vld [vmem:[#allocation216_spill] sm:$0xff] }
 0x8fb   : > { %12092 = vrcp.f32 %v6511_v26 }
 0x8fc   : > { %11235 = vmatmul.msk.f32.vlgmr.msra.gmra.mxu2 %vm869_vm1, %v4258_v43 }
 0x8fd   : > { %11247 = vmatpush.xpose.msk.msra.mxu2 %vm869_vm1, %v18253_v23  ;;  %v18266_v23 = vld [vmem:[#allocation99_spill] sm:$0xff] }
 0x901   : > { %v12093_v39 = vpop.eup %12092  ;;  %8400 = vrot.lane.b32.xlu0 %v18254_v33, %s12340_s22  ;;  %4312 = vrot.lane.b32.xlu2 %v15363_v8, %s12338_s16 }
 0x902   : > { %v15522_v19 = vmul.f32 %v12093_v39, %v15352_v2  ;;  %v6538_v8 = vpop.xlane.xlu0 %6537 }
 0x903   : > { %v4191_v20 = vpop.xlane.xlu2 %4190 }
 0x904   : > { %12094 = vrcp.f32 %v4191_v20  ;;  %11240 = vmatmul.msk.f32.vlgmr.msrb.gmra.mxu2 %vm869_vm1, %v18255_v61  ;;  %11305 = vmatmul.msk.f32.vlgmr.msrb.gmra.mxu0 %vm869_vm1, %v15522_v19  ;;  %v18268_v20 = vld [vmem:[#allocation201_spill] sm:$0xff] }
 0x905   : > { %11255 = vmatpush.xpose.msk.msrb.mxu2 %vm869_vm1, %v18256_v36  ;;  %7094 = vmatpush.msrb.mxu0 %v11684_v46  ;;  %v11685_v46 = vunpack.i.h.bf16 %v14735_v62  ;;  %v18270_v62 = vld [vmem:[#allocation205_spill] sm:$0xff] }
 0x909   : > { %8570 = vrot.lane.b32.xlu0 %v18080_v44, %s12340_s22  ;;  %4318 = vrot.lane.b32.xlu2 %v15381_v28, %s12338_s16  ;;  %v15546_v44 = vpop.permute.xlu1 %8484  ;;  %v18260_v28 = vld [vmem:[#allocation120_spill] sm:$0xff] }
 0x90a   : > { %v12095_v2 = vpop.eup %12094  ;;  %v6547_v42 = vpop.xlane.xlu0 %6546 }
 0x90b   : > { %v15536_v29 = vmul.f32 %v12095_v2, %v15368_v58  ;;  %v6526_v34 = vpop.xlane.xlu2 %6525 }
 0x90c   : > { %11248 = vmatmul.msk.f32.vlgmr.msra.gmra.mxu2 %vm869_vm1, %v18257_v30  ;;  %v11694_v30 = vunpack.i.l.bf16 %v14594_v4 }
 0x90d   : > { %11263 = vmatpush.xpose.msk.msra.mxu2 %vm869_vm1, %v18258_v9  ;;  %11236 = vmatmul.msk.f32.vlgmr.msra.gmra.mxu3 %vm869_vm1, %v15536_v29 }
 0x90e   : > { %11249 = vmatpush.xpose.msk.msra.mxu3 %vm869_vm1, %v18259_v7  ;;  %v18273_v7 = vld [vmem:[#allocation130_spill] sm:$0xff] }
 0x911   : > { %4344 = vrot.lane.b32.xlu0 %v4255_v10, %s12338_s16  ;;  %4304 = vrot.lane.b32.xlu1 %v15310_v17, %s12338_s16  ;;  %v18264_v17 = vld [vmem:[#allocation153_spill] sm:$0xff] }
 0x912   : > { %8514 = vrot.lane.b32.xlu2 %v18046_v50, %s12340_s22 }
 0x913   : > { %v6535_v58 = vpop.xlane.xlu2 %6534 }
 0x914   : > { %11256 = vmatmul.msk.f32.vlgmr.msrb.gmra.mxu2 %vm869_vm1, %v18260_v28  ;;  %v11704_v28 = vunpack.i.l.bf16 %v18273_v7 }
 0x915   : > { %11271 = vmatpush.xpose.msk.msrb.mxu2 %vm869_vm1, %v18261_v14  ;;  %11242 = vmatmul.msk.f32.vlgmr.msrb.gmra.mxu3 %vm869_vm1, %v18262_v35  ;;  %v18275_v35 = vld [vmem:[#allocation43_spill] sm:$0xff] }
 0x916   : > { %11257 = vmatpush.xpose.msk.msrb.mxu3 %vm869_vm1, %v18263_v47  ;;  %v18279_v47 = vld [vmem:[#allocation173_spill] sm:$0xff] }
 0x918   : > { %v6514_v10 = vpop.xlane.xlu1 %6513 }
 0x919   : > { %4350 = vrot.lane.b32.xlu0 %v4258_v43, %s12338_s16  ;;  %12096 = vrcp.f32 %v6514_v10  ;;  %4310 = vrot.lane.b32.xlu1 %v15350_v1, %s12338_s16  ;;  %v18267_v43 = vld [vmem:[#allocation180_spill] sm:$0xff]  ;;  %v18280_v10 = vld [vmem:[#allocation26_spill] sm:$0xff] }
 0x91a   : > { %8568 = vrot.lane.b32.xlu2 %v18048_v27, %s12340_s22  ;;  %12098 = vrcp.f32 %v6526_v34  ;;  %v11695_v34 = vunpack.i.h.bf16 %v14594_v4  ;;  %v18272_v4 = vld [vmem:[#allocation155_spill] sm:$0xff] }
 0x91b   : > { %v4295_v50 = vpop.permute.xlu2 %4294 }
 0x91c   : > { %4391 = vst.msk [vmem:[%s13813_s20] sm:$0xff] %vm4390_vm2, %v4295_v50  ;;  %11264 = vmatmul.msk.f32.vlgmr.msra.gmra.mxu2 %vm869_vm1, %v18264_v17  ;;  %v18281_v50 = vld [vmem:[#allocation41_spill] sm:$0xff] }
 0x91d   : > { %11279 = vmatpush.xpose.msk.msra.mxu2 %vm869_vm1, %v18265_v13  ;;  %v4303_v26 = vpop.permute.xlu0 %4302  ;;  %11250 = vmatmul.msk.f32.vlgmr.msra.gmra.mxu3 %vm869_vm1, %v18266_v23  ;;  %v11736_v17 = vpack.i.bf16 %v18281_v50, %v18280_v10  ;;  %v18282_v23 = vld [vmem:[#allocation140_spill] sm:$0xff] }
 0x91e   : > { %4395 = vst.msk [vmem:[%s13813_s20 + $0x20] sm:$0xff] %vm4390_vm2, %v4303_v26  ;;  %11265 = vmatpush.xpose.msk.msra.mxu3 %vm869_vm1, %v18267_v43  ;;  %v11714_v43 = vunpack.i.l.bf16 %v18282_v23  ;;  %v18290_v50 = vld [vmem:[#allocation152_spill] sm:$0xff] }
 0x91f   : > { %v12097_v1 = vpop.eup %12096 }
 0x920   : > { %v15579_v27 = vmul.f32 %v12097_v1, %v15404_v22  ;;  %v6523_v39 = vpop.xlane.xlu1 %6522  ;;  %v12099_v61 = vpop.eup %12098  ;;  %v18269_v22 = vld [vmem:[#allocation138_spill] sm:$0xff] }
 0x921   : > { %8540 = vrot.lane.b32.xlu0 %v18067_v49, %s12340_s22  ;;  %12100 = vrcp.f32 %v6523_v39  ;;  %v15595_v36 = vmul.f32 %v12099_v61, %v15388_v41  ;;  %v18271_v41 = vld [vmem:[#allocation217_spill] sm:$0xff]  ;;  %v18283_v1 = vld [vmem:[#allocation194_spill] sm:$0xff] }
 0x922   : > { %11306 = vmatmul.msk.f32.vlgmr.msra.gmra.mxu1 %vm869_vm1, %v15579_v27  ;;  %12102 = vrcp.f32 %v6538_v8  ;;  %v6437_v39 = vsub.f32 %v18283_v1, %v15430_v11  ;;  %v18285_v61 = vld [vmem:[#allocation197_spill] sm:$0xff]  ;;  %v18287_v11 = vld [vmem:[#allocation166_spill] sm:$0xff] }
 0x923   : > { %7119 = vmatpush.msra.mxu1 %v11685_v46  ;;  %12104 = vrcp.f32 %v6535_v58  ;;  %v11705_v58 = vunpack.i.h.bf16 %v18273_v7  ;;  %v18284_v46 = vld [vmem:[#allocation199_spill] sm:$0xff] }
 0x924   : > { %11272 = vmatmul.msk.f32.vlgmr.msrb.gmra.mxu2 %vm869_vm1, %v18268_v20  ;;  %12106 = vrcp.f32 %v6547_v42  ;;  %v11669_v20 = vunpack.i.l.bf16 %v18284_v46 }
 0x925   : > { %11287 = vmatpush.xpose.msk.msrb.mxu2 %vm869_vm1, %v14416_v37  ;;  %11258 = vmatmul.msk.f32.vlgmr.msrb.gmra.mxu3 %vm869_vm1, %v18269_v22  ;;  %v18286_v22 = vld [vmem:[#allocation134_spill] sm:$0xff] }
 0x926   : > { %11273 = vmatpush.xpose.msk.msrb.mxu3 %vm869_vm1, %v18270_v62 }
 0x927   : > { %v12101_v49 = vpop.eup %12100 }
 0x928   : > { %v15598_v2 = vmul.f32 %v12101_v49, %v15416_v21  ;;  %v12103_v37 = vpop.eup %12102 }
 0x929   : > { %8626 = vrot.lane.b32.xlu0 %v18065_v56, %s12340_s22  ;;  %v12105_v21 = vpop.eup %12104  ;;  %v6434_v56 = vsub.f32 %v15249_v0, %v15418_v38  ;;  %v6642_v8 = vmul.f32 %v12103_v37, %v15365_v24 }
 0x92a   : > { %11309 = vmatmul.msk.f32.vlgmr.msra.gmra.mxu0 %vm869_vm1, %v15598_v2  ;;  %11310 = vmatmul.msk.f32.vlgmr.msrb.gmra.mxu1 %vm869_vm1, %v15595_v36  ;;  %v15620_v9 = vmul.f32 %v12105_v21, %v15400_v60  ;;  %v18277_v60 = vld [vmem:[#allocation147_spill] sm:$0xff]  ;;  %v12107_v38 = vpop.eup %12106 }
 0x92b   : > { %7194 = vmatpush.msra.mxu0 %v11694_v30  ;;  %7219 = vmatpush.msrb.mxu1 %v11695_v34  ;;  %v6493_v24 = vmul.f32 1.442695, %v6434_v56  ;;  %v6645_v13 = vmul.f32 %v12107_v38, %v15383_v40  ;;  %v6499_v40 = vmul.f32 1.442695, %v6437_v39  ;;  %v18289_v56 = vld [vmem:[#allocation206_spill] sm:$0xff] }
 0x92c   : > { %11280 = vmatmul.msk.f32.vlgmr.msra.gmra.mxu2 %vm869_vm1, %v18271_v41  ;;  %v18288_v41 = vld [vmem:[#allocation210_spill] sm:$0xff] }
 0x92d   : > { %11295 = vmatpush.xpose.msk.msra.mxu2 %vm869_vm1, %v14697_v59  ;;  %11266 = vmatmul.msk.f32.vlgmr.msra.gmra.mxu3 %vm869_vm1, %v18272_v4  ;;  %v18274_v59 = vld [vmem:[#allocation167_spill] sm:$0xff]  ;;  %12108 = vpow2.f32 %v6493_v24  ;;  %v11670_v4 = vunpack.i.h.bf16 %v18284_v46 }
 0x92e   : > { %11281 = vmatpush.xpose.msk.msra.mxu3 %vm869_vm1, %v14234_v45  ;;  %v6438_v14 = vsub.f32 %v18274_v59, %v15470_v51  ;;  %v18276_v45 = vld [vmem:[#allocation198_spill] sm:$0xff]  ;;  %v18278_v51 = vld [vmem:[#allocation207_spill] sm:$0xff]  ;;  %v4470_v59 = vpop.f32.mrf.mxu3 }
 0x92f   : > { %v11659_v0 = vunpack.i.l.bf16 %v18276_v45  ;;  %v11660_v37 = vunpack.i.h.bf16 %v18276_v45 }
 0x930   : > { %v6501_v42 = vmul.f32 1.442695, %v6438_v14 }
 0x931   : > { %8652 = vrot.lane.b32.xlu0 %v18275_v35, %s12340_s22 }
 0x932   : > { %11313 = vmatmul.msk.f32.vlgmr.msrb.gmra.mxu0 %vm869_vm1, %v15620_v9  ;;  %11314 = vmatmul.msk.f32.vlgmr.msra.gmra.mxu1 %vm869_vm1, %v6642_v8  ;;  %12110 = vpow2.f32 %v6501_v42 }
 0x933   : > { %7294 = vmatpush.msrb.mxu0 %v11704_v28  ;;  %7319 = vmatpush.msra.mxu1 %v11705_v58  ;;  %v15653_v62 = vpop.eup %12108  ;;  %12112 = vpow2.f32 %v6499_v40  ;;  %v15677_v58 = vpop.f32.mrf.mxu2  ;;  %v18292_v40 = vld [vmem:[#allocation182_spill] sm:$0xff] }
 0x934   : > { %11288 = vmatmul.msk.f32.vlgmr.msrb.gmra.mxu2 %vm869_vm1, %v18277_v60  ;;  %v6584_v30 = vsel %vm869_vm1, %v15653_v62, 0.0 }
 0x935   : > { %6844 = vmatpush.msrb.mxu2 %v11659_v0  ;;  %11274 = vmatmul.msk.f32.vlgmr.msrb.gmra.mxu3 %vm869_vm1, %v18278_v51 }
 0x936   : > { %11289 = vmatpush.xpose.msk.msrb.mxu3 %vm869_vm1, %v18279_v47  ;;  %v15682_v0 = vpop.f32.mrf.mxu3 }
 0x938   : > { %v4297_v26 = vpop.permute.xlu1 %4296  ;;  %v15657_v49 = vpop.eup %12110 }
 0x939   : > { %11737 = vrot.lane.b32.xlu0 %v11736_v17, %s12341_s23  ;;  %4392 = vst.msk [vmem:[%s13813_s20 + $0x8] sm:$0xff] %vm4390_vm2, %v4297_v26  ;;  %v6596_v34 = vsel %vm869_vm1, %v15657_v49, 0.0  ;;  %v15668_v21 = vpop.eup %12112 }
 0x93a   : > { %11317 = vmatmul.msk.f32.vlgmr.msra.gmra.mxu0 %vm869_vm1, %v6645_v13 }
 0x93b   : > { %7394 = vmatpush.msra.mxu0 %v11714_v43  ;;  %v4545_v45 = vpop.f32.mrf.mxu2 }
 0x93c   : > { %11296 = vmatmul.msk.f32.vlgmr.msra.gmra.mxu2 %vm869_vm1, %v18285_v61  ;;  %v18291_v61 = vld [vmem:[#allocation39_spill] sm:$0xff] }
 0x93d   : > { %6944 = vmatpush.msra.mxu2 %v11669_v20  ;;  %11282 = vmatmul.msk.f32.vlgmr.msra.gmra.mxu3 %vm869_vm1, %v18286_v22  ;;  %v11724_v22 = vunpack.i.l.bf16 %v18292_v40 }
 0x93e   : > { %11297 = vmatpush.xpose.msk.msra.mxu3 %vm869_vm1, %v18287_v11  ;;  %v15696_v47 = vpop.f32.mrf.mxu3  ;;  %v18293_v11 = vld [vmem:[#allocation125_spill] sm:$0xff] }
 0x941   : > { %6701 = vrot.lane.b32.xlu0 %v15579_v27, %s12342_s24  ;;  %v6593_v27 = vsel %vm869_vm1, %v15668_v21, 0.0 }
 0x943   : > { %6597 = vadd.xlane.f32.xlu2 %v6596_v34  ;;  %6585 = vadd.xlane.f32.xlu1 %v6584_v30  ;;  %v15694_v51 = vpop.f32.mrf.mxu2 }
 0x945   : > { %11290 = vmatmul.msk.f32.vlgmr.msrb.gmra.mxu3 %vm869_vm1, %v18288_v41  ;;  %v18294_v41 = vld [vmem:[#allocation208_spill] sm:$0xff] }
 0x946   : > { %6869 = vmatpush.msrb.mxu3 %v11660_v37  ;;  %v4770_v39 = vpop.f32.mrf.mxu3 }
 0x948   : > { %v6574_v7 = vpop.xlane.xlu0 %6573 }
 0x949   : > { %6717 = vrot.lane.b32.xlu0 %v6642_v8, %s12342_s24  ;;  %12114 = vrcp.f32 %v6574_v7 }
 0x94b   : > { %6594 = vadd.xlane.f32.xlu1 %v6593_v27  ;;  %v15714_v1 = vpop.f32.mrf.mxu2  ;;  %v11735_v27 = vunpack.i.h.bf16 %v18294_v41 }
 0x94d   : > { %11298 = vmatmul.msk.f32.vlgmr.msra.gmra.mxu3 %vm869_vm1, %v18289_v56  ;;  %v18295_v56 = vld [vmem:[#allocation27_spill] sm:$0xff] }
 0x94e   : > { %6969 = vmatpush.msra.mxu3 %v11670_v4  ;;  %v15732_v34 = vpop.f32.mrf.mxu3  ;;  %v11734_v4 = vunpack.i.l.bf16 %v18294_v41  ;;  %v18301_v41 = vld [vmem:[#allocation102_spill] sm:$0xff] }
 0x94f   : > { %v12115_v38 = vpop.eup %12114 }
 0x950   : > { %v6583_v8 = vpop.xlane.xlu0 %6582  ;;  %v6654_v42 = vmul.f32 %v12115_v38, %v15456_v5  ;;  %v11715_v5 = vunpack.i.h.bf16 %v18282_v23  ;;  %v18298_v38 = vld [vmem:[#allocation36_spill] sm:$0xff] }
 0x951   : > { %6723 = vrot.lane.b32.xlu0 %v6645_v13, %s12342_s24 }
 0x954   : > { %v6562_v28 = vpop.xlane.xlu2 %6561 }
 0x959   : > { %5257 = vrot.lane.b32.xlu0 %v4470_v59, %s12338_s16  ;;  %v18296_v59 = vld [vmem:[#allocation84_spill] sm:$0xff] }
 0x95a   : > { %v15748_v7 = vpop.f32.mrf.mxu3 }
 0x95b   : > { %4336 = vrot.lane.b32.xlu2 %v15461_v6, %s12338_s16 }
 0x95c   : > { %v6571_v14 = vpop.xlane.xlu2 %6570 }
 0x961   : > { %5263 = vrot.lane.b32.xlu0 %v4545_v45, %s12338_s16 }
 0x963   : > { %v4321_v24 = vpop.permute.xlu0 %4320  ;;  %4342 = vrot.lane.b32.xlu2 %v15477_v31, %s12338_s16  ;;  %v6550_v60 = vpop.xlane.xlu1 %6549 }
 0x964   : > { %4404 = vst.msk [vmem:[%s13813_s20 + $0x68] sm:$0xff] %vm4390_vm2, %v4321_v24  ;;  %12116 = vrcp.f32 %v6550_v60  ;;  %4328 = vrot.lane.b32.xlu1 %v15435_v54, %s12338_s16  ;;  %v4313_v6 = vpop.permute.xlu2 %4312 }
 0x965   : > { %4400 = vst.msk [vmem:[%s13813_s20 + $0x48] sm:$0xff] %vm4390_vm2, %v4313_v6  ;;  %12118 = vrcp.f32 %v6583_v8  ;;  %v18299_v6 = vld [vmem:[#allocation158_spill] sm:$0xff] }
 0x966   : > { %12120 = vrcp.f32 %v6562_v28 }
 0x969   : > { %6741 = vrot.lane.b32.xlu0 %v6654_v42, %s12342_s24 }
 0x96a   : > { %v12117_v31 = vpop.eup %12116 }
 0x96b   : > { %v15700_v10 = vmul.f32 %v12117_v31, %v15495_v3  ;;  %v4327_v54 = vpop.permute.xlu0 %4326  ;;  %8598 = vrot.lane.b32.xlu2 %v18290_v50, %s12340_s22  ;;  %v6559_v17 = vpop.xlane.xlu1 %6558 }
 0x96c   : > { %v12119_v13 = vpop.eup %12118  ;;  %4407 = vst.msk [vmem:[%s13813_s20 + $0x80] sm:$0xff] %vm4390_vm2, %v4327_v54  ;;  %12122 = vrcp.f32 %v6559_v17  ;;  %4334 = vrot.lane.b32.xlu1 %v15447_v63, %s12338_s16  ;;  %v4319_v26 = vpop.permute.xlu2 %4318 }
 0x96d   : > { %4403 = vst.msk [vmem:[%s13813_s20 + $0x60] sm:$0xff] %vm4390_vm2, %v4319_v26  ;;  %11318 = vmatmul.msk.f32.vlgmr.msrb.gmra.mxu1 %vm869_vm1, %v15700_v10  ;;  %v6657_v3 = vmul.f32 %v12119_v13, %v15468_v57  ;;  %v12121_v43 = vpop.eup %12120  ;;  %12124 = vrcp.f32 %v6571_v14  ;;  %v11725_v57 = vunpack.i.h.bf16 %v18292_v40  ;;  %v18300_v40 = vld [vmem:[#allocation136_spill] sm:$0xff] }
 0x96e   : > { %7419 = vmatpush.msrb.mxu1 %v11715_v5  ;;  %v15718_v46 = vmul.f32 %v12121_v43, %v15474_v52 }
 0x971   : > { %6747 = vrot.lane.b32.xlu0 %v6657_v3, %s12342_s24 }
 0x972   : > { %v12123_v23 = vpop.eup %12122 }
 0x973   : > { %v6649_v63 = vmul.f32 %v12123_v23, %v15502_v25  ;;  %v15721_v20 = vpop.permute.xlu0 %8400  ;;  %8624 = vrot.lane.b32.xlu2 %v18291_v61, %s12340_s22  ;;  %v12125_v52 = vpop.eup %12124 }
 0x974   : > { %8402 = vrot.lane.b32.xlu1 %v18293_v11, %s12340_s22  ;;  %v4845_v25 = vpop.f32.mrf.mxu2  ;;  %v6653_v30 = vmul.f32 %v12125_v52, %v15489_v15  ;;  %v15789_v31 = vpop.permute.xlu2 %8514 }
 0x975   : > { %11321 = vmatmul.msk.f32.vlgmr.msrb.gmra.mxu0 %vm869_vm1, %v6649_v63  ;;  %11322 = vmatmul.msk.f32.vlgmr.msra.gmra.mxu1 %vm869_vm1, %v15718_v46 }
 0x976   : > { %7494 = vmatpush.msrb.mxu0 %v11724_v22  ;;  %7519 = vmatpush.msra.mxu1 %v11725_v57 }
 0x977   : > { %v5070_v14 = vpop.f32.mrf.mxu3 }
 0x979   : > { %5281 = vrot.lane.b32.xlu0 %v4770_v39, %s12338_s16 }
 0x97b   : > { %v15736_v37 = vpop.permute.xlu0 %8570  ;;  %6699 = vrot.lane.b32.xlu2 %v15522_v19, %s12342_s24 }
 0x97c   : > { %8512 = vrot.lane.b32.xlu1 %v18295_v56, %s12340_s22  ;;  %v15746_v15 = vpop.f32.mrf.mxu2  ;;  %v15801_v50 = vpop.permute.xlu2 %8568  ;;  %v18305_v56 = vld [vmem:[#allocation159_spill] sm:$0xff] }
 0x97d   : > { %11325 = vmatmul.msk.f32.vlgmr.msra.gmra.mxu0 %vm869_vm1, %v6653_v30  ;;  %11326 = vmatmul.msk.f32.vlgmr.msrb.gmra.mxu1 %vm869_vm1, %v6654_v42 }
 0x97e   : > { %7594 = vmatpush.msra.mxu0 %v11734_v4  ;;  %7619 = vmatpush.msrb.mxu1 %v11735_v27  ;;  %v18302_v27 = vld [vmem:[#allocation92_spill] sm:$0xff]  ;;  %v18304_v4 = vld [vmem:[#allocation83_spill] sm:$0xff] }
 0x981   : > { %5287 = vrot.lane.b32.xlu0 %v4845_v25, %s12338_s16 }
 0x983   : > { %v4345_v19 = vpop.permute.xlu0 %4344  ;;  %6707 = vrot.lane.b32.xlu2 %v15598_v2, %s12342_s24  ;;  %v4305_v28 = vpop.permute.xlu1 %4304 }
 0x984   : > { %4416 = vst.msk [vmem:[%s13813_s20 + $0xc8] sm:$0xff] %vm4390_vm2, %v4345_v19  ;;  %4352 = vrot.lane.b32.xlu1 %v15536_v29, %s12338_s16  ;;  %v15762_v8 = vpop.f32.mrf.mxu2  ;;  %v18297_v29 = vld [vmem:[#allocation145_spill] sm:$0xff]  ;;  %v18306_v19 = vld [vmem:[#allocation204_spill] sm:$0xff] }
 0x985   : > { %4396 = vst.msk [vmem:[%s13813_s20 + $0x28] sm:$0xff] %vm4390_vm2, %v4305_v28  ;;  %11329 = vmatmul.msk.f32.vlgmr.msrb.gmra.mxu0 %vm869_vm1, %v6657_v3 }
 0x986   : > { %11339 = vmatpush.xpose.msk.msrb.mxu0 %vm869_vm1, %v18296_v59 }
 0x989   : > { %5305 = vrot.lane.b32.xlu0 %v5070_v14, %s12338_s16  ;;  %v18307_v14 = vld [vmem:[#allocation112_spill] sm:$0xff] }
 0x98b   : > { %v4351_v45 = vpop.permute.xlu0 %4350  ;;  %5255 = vrot.lane.b32.xlu2 %v15677_v58, %s12338_s16  ;;  %v4311_v2 = vpop.permute.xlu1 %4310 }
 0x98c   : > { %4419 = vst.msk [vmem:[%s13813_s20 + $0xe0] sm:$0xff] %vm4390_vm2, %v4351_v45  ;;  %8542 = vrot.lane.b32.xlu1 %v18297_v29, %s12340_s22  ;;  %v5145_v24 = vpop.f32.mrf.mxu2  ;;  %v18308_v45 = vld [vmem:[#allocation178_spill] sm:$0xff]  ;;  %v18310_v29 = vld [vmem:[#allocation149_spill] sm:$0xff] }
 0x98d   : > { %4399 = vst.msk [vmem:[%s13813_s20 + $0x40] sm:$0xff] %vm4390_vm2, %v4311_v2  ;;  %v18309_v2 = vld [vmem:[#allocation176_spill] sm:$0xff] }
 0x991   : > { %5311 = vrot.lane.b32.xlu0 %v5145_v24, %s12338_s16 }
 0x993   : > { %v15774_v60 = vpop.permute.xlu0 %8540  ;;  %6725 = vrot.lane.b32.xlu2 %v15700_v10, %s12342_s24  ;;  %v15793_v10 = vpop.f32.mrf.mxu3 }
 0x994   : > { %8596 = vrot.lane.b32.xlu1 %v18298_v38, %s12340_s22  ;;  %v15803_v17 = vpop.f32.mrf.mxu2 }
 0x99b   : > { %v15780_v58 = vpop.permute.xlu0 %8626  ;;  %6731 = vrot.lane.b32.xlu2 %v6649_v63, %s12342_s24 }
 0x99c   : > { %8654 = vrot.lane.b32.xlu1 %v18299_v6, %s12340_s22  ;;  %v5520_v3 = vpop.f32.mrf.mxu2 }
 0x99d   : > { %v15816_v39 = vmul.f32 0.35355338, %v5520_v3  ;;  %v18314_v3 = vld [vmem:[#allocation184_spill] sm:$0xff] }
 0x99f   : > { %v6323_v57 = vsel %vm869_vm1, %v15816_v39, -inf }
 0x9a3   : > { %v15785_v42 = vpop.permute.xlu0 %8652  ;;  %5273 = vrot.lane.b32.xlu2 %v15696_v47, %s12338_s16  ;;  %v5436_v47 = vpop.f32.mrf.mxu3 }
 0x9a4   : > { %6709 = vrot.lane.b32.xlu1 %v15595_v36, %s12342_s24  ;;  %v15809_v36 = vmul.f32 0.35355338, %v5436_v47  ;;  %v18312_v47 = vld [vmem:[#allocation143_spill] sm:$0xff] }
 0x9ab   : > { %v15795_v54 = vpop.permute.xlu0 %11737  ;;  %5279 = vrot.lane.b32.xlu2 %v15714_v1, %s12338_s16 }
 0x9ac   : > { %6715 = vrot.lane.b32.xlu1 %v15620_v9, %s12342_s24  ;;  %v6314_v9 = vsel %vm869_vm1, %v15809_v36, -inf }
 0x9b3   : > { %v6702_v13 = vpop.permute.xlu0 %6701 }
 0x9b4   : > { %6795 = vst.msk [vmem:[%s13813_s20 + $0x18] sm:$0xff] %vm6791_vm3, %v6702_v13  ;;  %6733 = vrot.lane.b32.xlu1 %v15718_v46, %s12342_s24  ;;  %v18313_v13 = vld [vmem:[#allocation144_spill] sm:$0xff] }
 0x9b6   : > { %v6598_v5 = vpop.xlane.xlu2 %6597  ;;  %v6586_v26 = vpop.xlane.xlu1 %6585 }
 0x9b7   : > { %12126 = vrcp.f32 %v6586_v26 }
 0x9b8   : > { %12128 = vrcp.f32 %v6598_v5 }
 0x9bb   : > { %6315 = vmax.xlane.f32.xlu0 %v6314_v9  ;;  %v6718_v43 = vpop.permute.xlu0 %6717 }
 0x9bc   : > { %6803 = vst.msk [vmem:[%s13813_s20 + $0x58] sm:$0xff] %vm6791_vm3, %v6718_v43  ;;  %6739 = vrot.lane.b32.xlu1 %v6653_v30, %s12342_s24 }
 0x9bd   : > { %v12127_v1 = vpop.eup %12126 }
 0x9be   : > { %v4337_v23 = vpop.permute.xlu2 %4336  ;;  %v6595_v46 = vpop.xlane.xlu1 %6594  ;;  %v6658_v63 = vmul.f32 %v12127_v1, %v15653_v62 }
 0x9bf   : > { %4412 = vst.msk [vmem:[%s13813_s20 + $0xa8] sm:$0xff] %vm4390_vm2, %v4337_v23  ;;  %12130 = vrcp.f32 %v6595_v46  ;;  %v12129_v11 = vpop.eup %12128  ;;  %v18316_v46 = vld [vmem:[#allocation113_spill] sm:$0xff] }
 0x9c0   : > { %6749 = vrot.lane.b32.xlu2 %v6658_v63, %s12342_s24  ;;  %11330 = vmatmul.msk.f32.vlgmr.msra.gmra.mxu1 %vm869_vm1, %v6658_v63  ;;  %v6662_v30 = vmul.f32 %v12129_v11, %v15657_v49  ;;  %v15932_v11 = vmul.f32 0.35355338, %v15803_v17 }
 0x9c1   : > { %11341 = vmatpush.xpose.msk.msra.mxu1 %vm869_vm1, %v18300_v40 }
 0x9c3   : > { %6324 = vmax.xlane.f32.xlu0 %v6323_v57  ;;  %v6724_v22 = vpop.permute.xlu0 %6723 }
 0x9c4   : > { %6806 = vst.msk [vmem:[%s13813_s20 + $0x70] sm:$0xff] %vm6791_vm3, %v6724_v22  ;;  %5265 = vrot.lane.b32.xlu1 %v15682_v0, %s12338_s16 }
 0x9c5   : > { %v12131_v52 = vpop.eup %12130 }
 0x9c6   : > { %v4343_v62 = vpop.permute.xlu2 %4342  ;;  %v6661_v25 = vmul.f32 %v12131_v52, %v15668_v21  ;;  %v18303_v21 = vld [vmem:[#allocation64_spill] sm:$0xff] }
 0x9c7   : > { %4415 = vst.msk [vmem:[%s13813_s20 + $0xc0] sm:$0xff] %vm4390_vm2, %v4343_v62 }
 0x9c8   : > { %11333 = vmatmul.msk.f32.vlgmr.msra.gmra.mxu0 %vm869_vm1, %v6661_v25  ;;  %6755 = vrot.lane.b32.xlu2 %v6661_v25, %s12342_s24 }
 0x9c9   : > { %11334 = vmatmul.msk.f32.vlgmr.msrb.gmra.mxu1 %vm869_vm1, %v6662_v30  ;;  %11347 = vmatpush.xpose.msk.msra.mxu0 %vm869_vm1, %v18301_v41 }
 0x9ca   : > { %11349 = vmatpush.xpose.msk.msrb.mxu1 %vm869_vm1, %v18302_v27 }
 0x9cb   : > { %v5258_v0 = vpop.permute.xlu0 %5257 }
 0x9cc   : > { %5352 = vst.msk [vmem:[#allocation2 + $0x8] sm:$0xff] %vm4390_vm2, %v5258_v0  ;;  %5271 = vrot.lane.b32.xlu1 %v15694_v51, %s12338_s16  ;;  %v6896_v51 = vpop.f32.mrf.mxu0 }
 0x9ce   : > { %v15845_v49 = vpop.permute.xlu2 %8598 }
 0x9d0   : > { %11340 = vmatmul.msk.f32.vlgmr.msrb.gmra.mxu0 %vm869_vm1, %v18303_v21  ;;  %5297 = vrot.lane.b32.xlu2 %v15748_v7, %s12338_s16 }
 0x9d1   : > { %11342 = vmatmul.msk.f32.vlgmr.msra.gmra.mxu1 %vm869_vm1, %v18304_v4  ;;  %11355 = vmatpush.xpose.msk.msrb.mxu0 %vm869_vm1, %v18305_v56 }
 0x9d2   : > { %11357 = vmatpush.xpose.msk.msra.mxu1 %vm869_vm1, %v18306_v19  ;;  %v11740_v19 = vunpack.i.h.bf16 %v15795_v54 }
 0x9d3   : > { %v5264_v28 = vpop.permute.xlu0 %5263 }
 0x9d4   : > { %5355 = vst.msk [vmem:[#allocation2 + $0x20] sm:$0xff] %vm4390_vm2, %v5264_v28  ;;  %6757 = vrot.lane.b32.xlu1 %v6662_v30, %s12342_s24  ;;  %v6921_v30 = vpop.f32.mrf.mxu1  ;;  %v6996_v56 = vpop.f32.mrf.mxu0 }
 0x9d6   : > { %v15859_v59 = vpop.permute.xlu2 %8624  ;;  %v4329_v7 = vpop.permute.xlu1 %4328 }
 0x9d7   : > { %7660 = vrot.lane.b32.xlu0 %v6896_v51, %s12342_s24  ;;  %4408 = vst.msk [vmem:[%s13813_s20 + $0x88] sm:$0xff] %vm4390_vm2, %v4329_v7 }
 0x9d8   : > { %11348 = vmatmul.msk.f32.vlgmr.msra.gmra.mxu0 %vm869_vm1, %v18307_v14  ;;  %5303 = vrot.lane.b32.xlu2 %v15762_v8, %s12338_s16  ;;  %v18311_v8 = vld [vmem:[#allocation133_spill] sm:$0xff] }
 0x9d9   : > { %11350 = vmatmul.msk.f32.vlgmr.msrb.gmra.mxu1 %vm869_vm1, %v18308_v45  ;;  %11363 = vmatpush.xpose.msk.msra.mxu0 %vm869_vm1, %v18309_v2 }
 0x9da   : > { %11365 = vmatpush.xpose.msk.msrb.mxu1 %vm869_vm1, %v18310_v29 }
 0x9db   : > { %v6742_v24 = vpop.permute.xlu0 %6741 }
 0x9dc   : > { %6815 = vst.msk [vmem:[%s13813_s20 + $0xb8] sm:$0xff] %vm6791_vm3, %v6742_v24  ;;  %5289 = vrot.lane.b32.xlu1 %v15732_v34, %s12338_s16  ;;  %v15894_v34 = vpop.f32.mrf.mxu3  ;;  %v7021_v7 = vpop.f32.mrf.mxu1 }
 0x9dd   : > { %v15972_v29 = vpop.f32.mrf.mxu0 }
 0x9de   : > { %v6700_v38 = vpop.permute.xlu2 %6699  ;;  %v4335_v6 = vpop.permute.xlu1 %4334 }
 0x9df   : > { %6794 = vst.msk [vmem:[%s13813_s20 + $0x10] sm:$0xff] %vm6791_vm3, %v6700_v38 }
 0x9e0   : > { %4411 = vst.msk [vmem:[%s13813_s20 + $0xa0] sm:$0xff] %vm4390_vm2, %v4335_v6  ;;  %11356 = vmatmul.msk.f32.vlgmr.msrb.gmra.mxu0 %vm869_vm1, %v18311_v8 }
 0x9e1   : > { %11358 = vmatmul.msk.f32.vlgmr.msra.gmra.mxu1 %vm869_vm1, %v18312_v47  ;;  %11371 = vmatpush.xpose.msk.msrb.mxu0 %vm869_vm1, %v15487_v32  ;;  %v18315_v32 = vld [vmem:[#allocation150_spill] sm:$0xff] }
 0x9e2   : > { %11373 = vmatpush.xpose.msk.msra.mxu1 %vm869_vm1, %v18313_v13 }
 0x9e3   : > { %v6748_v5 = vpop.permute.xlu0 %6747 }
 0x9e4   : > { %6818 = vst.msk [vmem:[%s13813_s20 + $0xd0] sm:$0xff] %vm6791_vm3, %v6748_v5  ;;  %5295 = vrot.lane.b32.xlu1 %v15746_v15, %s12338_s16  ;;  %v15908_v15 = vpop.f32.mrf.mxu2  ;;  %v5660_v23 = vpop.f32.mrf.mxu3 }
 0x9e5   : > { %v15947_v41 = vmul.f32 0.35355338, %v5660_v23  ;;  %v15977_v24 = vmul.f32 0.35355338, %v15908_v15  ;;  %v7121_v38 = vpop.f32.mrf.mxu1  ;;  %v7196_v13 = vpop.f32.mrf.mxu0 }
 0x9e6   : > { %v6708_v26 = vpop.permute.xlu2 %6707  ;;  %v8403_v9 = vpop.permute.xlu1 %8402 }
 0x9e7   : > { %6798 = vst.msk [vmem:[%s13813_s20 + $0x30] sm:$0xff] %vm6791_vm3, %v6708_v26 }
 0x9e8   : > { %11364 = vmatmul.msk.f32.vlgmr.msra.gmra.mxu0 %vm869_vm1, %v15442_v48 }
 0x9e9   : > { %11366 = vmatmul.msk.f32.vlgmr.msrb.gmra.mxu1 %vm869_vm1, %v18314_v3  ;;  %11379 = vmatpush.xpose.msk.msra.mxu0 %vm869_vm1, %v8403_v9 }
 0x9ea   : > { %11381 = vmatpush.xpose.msk.msrb.mxu1 %vm869_vm1, %v18315_v32 }
 0x9eb   : > { %v5282_v43 = vpop.permute.xlu0 %5281 }
 0x9ec   : > { %5364 = vst.msk [vmem:[#allocation2 + $0x68] sm:$0xff] %vm4390_vm2, %v5282_v43  ;;  %5313 = vrot.lane.b32.xlu1 %v15793_v10, %s12338_s16  ;;  %v5744_v57 = vpop.f32.mrf.mxu2  ;;  %s17416_s16 = scalar_lea.vmem %s17607_s7, %s10980_s28 }
 0x9ed   : > { %v15958_v4 = vmul.f32 0.35355338, %v5744_v57 }
 0x9ee   : > { %v5256_v1 = vpop.permute.xlu2 %5255  ;;  %v8513_v48 = vpop.permute.xlu1 %8512 }
 0x9ef   : > { %5351 = vst.msk [vmem:[#allocation2] sm:$0xff] %vm4390_vm2, %v5256_v1  ;;  %v6347_v14 = vsel %vm869_vm1, %v15958_v4, -inf }
 0x9f0   : > { %11372 = vmatmul.msk.f32.vlgmr.msrb.gmra.mxu0 %vm869_vm1, %v15512_v18  ;;  %v5772_v18 = vpop.f32.mrf.mxu3 }
 0x9f1   : > { %11374 = vmatmul.msk.f32.vlgmr.msra.gmra.mxu1 %vm869_vm1, %v18316_v46  ;;  %11387 = vmatpush.xpose.msk.msrb.mxu0 %vm869_vm1, %v15789_v31  ;;  %v15928_v22 = vmul.f32 0.35355338, %v5772_v18 }
 0x9f2   : > { %v15999_v15 = vpop.f32.mrf.mxu0 }
 0x9f3   : > { %v5288_v63 = vpop.permute.xlu0 %5287 }
 0x9f4   : > { %5367 = vst.msk [vmem:[#allocation2 + $0x80] sm:$0xff] %vm4390_vm2, %v5288_v63 }
 0x9f6   : > { %v6726_v10 = vpop.permute.xlu2 %6725  ;;  %v4353_v40 = vpop.permute.xlu1 %4352 }
 0x9f7   : > { %6807 = vst.msk [vmem:[%s13813_s20 + $0x78] sm:$0xff] %vm6791_vm3, %v6726_v10 }
 0x9f8   : > { %4420 = vst.msk [vmem:[%s13813_s20 + $0xe8] sm:$0xff] %vm4390_vm2, %v4353_v40  ;;  %11380 = vmatmul.msk.f32.vlgmr.msra.gmra.mxu0 %vm869_vm1, %v15721_v20  ;;  %v5856_v20 = vpop.f32.mrf.mxu2  ;;  %v5884_v8 = vpop.f32.mrf.mxu3 }
 0x9f9   : > { %11382 = vmatmul.msk.f32.vlgmr.msrb.gmra.mxu1 %vm869_vm1, %v15390_v55  ;;  %11395 = vmatpush.xpose.msk.msra.mxu0 %vm869_vm1, %v15780_v58  ;;  %v6350_v55 = vsel %vm869_vm1, %v15928_v22, -inf  ;;  %v6311_v58 = vsel %vm869_vm1, %v15932_v11, -inf  ;;  %v15944_v25 = vmul.f32 0.35355338, %v5856_v20  ;;  %v15986_v5 = vmul.f32 0.35355338, %v5884_v8 }
 0x9fa   : > { %v16010_v63 = vpop.f32.mrf.mxu0 }
 0x9fb   : > { %v5306_v31 = vpop.permute.xlu0 %5305  ;;  %v6359_v21 = vsel %vm869_vm1, %v15944_v25, -inf  ;;  %v6362_v9 = vsel %vm869_vm1, %v15986_v5, -inf }
 0x9fc   : > { %5376 = vst.msk [vmem:[#allocation2 + $0xc8] sm:$0xff] %vm4390_vm2, %v5306_v31 }
 0x9fe   : > { %v6732_v52 = vpop.permute.xlu2 %6731  ;;  %v8543_v62 = vpop.permute.xlu1 %8542 }
 0x9ff   : > { %6810 = vst.msk [vmem:[%s13813_s20 + $0x90] sm:$0xff] %vm6791_vm3, %v6732_v52  ;;  %11389 = vmatpush.xpose.msk.msra.mxu1 %vm869_vm1, %v8543_v62 }
 0xa00   : > { %11388 = vmatmul.msk.f32.vlgmr.msrb.gmra.mxu0 %vm869_vm1, %v8513_v48  ;;  %v5968_v3 = vpop.f32.mrf.mxu2  ;;  %v5996_v31 = vpop.f32.mrf.mxu3 }
 0xa01   : > { %6351 = vmax.xlane.f32.xlu0 %v6350_v55  ;;  %6312 = vmax.xlane.f32.xlu2 %v6311_v58  ;;  %v15997_v43 = vmul.f32 0.35355338, %v5968_v3 }
 0xa02   : > { %11390 = vmatmul.msk.f32.vlgmr.msra.gmra.mxu1 %vm869_vm1, %v15774_v60  ;;  %v6338_v60 = vsel %vm869_vm1, %v15947_v41, -inf  ;;  %v16018_v52 = vpop.f32.mrf.mxu0 }
 0xa03   : > { %v5312_v17 = vpop.permute.xlu0 %5311  ;;  %v6371_v23 = vsel %vm869_vm1, %v15997_v43, -inf  ;;  %18318 = vst [vmem:[#allocation151_spill] sm:$0xff] %v16018_v52 }
 0xa04   : > { %5379 = vst.msk [vmem:[#allocation2 + $0xe0] sm:$0xff] %vm4390_vm2, %v5312_v17 }
 0xa06   : > { %v5274_v27 = vpop.permute.xlu2 %5273  ;;  %v15949_v0 = vpop.permute.xlu1 %8596 }
 0xa07   : > { %5360 = vst.msk [vmem:[#allocation2 + $0x48] sm:$0xff] %vm4390_vm2, %v5274_v27 }
 0xa08   : > { %11396 = vmatmul.msk.f32.vlgmr.msra.gmra.mxu0 %vm869_vm1, %v15859_v59  ;;  %v15964_v59 = vmul.f32 0.35355338, %v15894_v34  ;;  %v15988_v34 = vpop.f32.mrf.mxu1  ;;  %v6080_v58 = vpop.f32.mrf.mxu2 }
 0xa09   : > { %6360 = vmax.xlane.f32.xlu0 %v6359_v21  ;;  %6339 = vmax.xlane.f32.xlu2 %v6338_v60  ;;  %v6108_v21 = vpop.f32.mrf.mxu3 }
 0xa0a   : > { %v6326_v45 = vsel %vm869_vm1, %v15964_v59, -inf }
 0xa0e   : > { %v5280_v28 = vpop.permute.xlu2 %5279  ;;  %v8655_v51 = vpop.permute.xlu1 %8654 }
 0xa0f   : > { %5363 = vst.msk [vmem:[#allocation2 + $0x60] sm:$0xff] %vm4390_vm2, %v5280_v28  ;;  %11397 = vmatpush.xpose.msk.msrb.mxu1 %vm869_vm1, %v8655_v51 }
 0xa10   : > { %v16002_v48 = vpop.f32.mrf.mxu1 }
 0xa11   : > { %6348 = vmax.xlane.f32.xlu2 %v6347_v14 }
 0xa12   : > { %11398 = vmatmul.msk.f32.vlgmr.msrb.gmra.mxu1 %vm869_vm1, %v15785_v42  ;;  %v6335_v42 = vsel %vm869_vm1, %v15977_v24, -inf }
 0xa13   : > { %9320 = vmatpush.msra.mxu1 %v11740_v19 }
 0xa16   : > { %6327 = vmax.xlane.f32.xlu1 %v6326_v45  ;;  %v6710_v2 = vpop.permute.xlu1 %6709  ;;  %v6192_v45 = vpop.f32.mrf.mxu2 }
 0xa17   : > { %6799 = vst.msk [vmem:[%s13813_s20 + $0x38] sm:$0xff] %vm6791_vm3, %v6710_v2  ;;  %v16046_v2 = vmul.f32 0.35355338, %v5996_v31 }
 0xa18   : > { %v16013_v40 = vpop.f32.mrf.mxu1 }
 0xa19   : > { %18317 = vst [vmem:[#allocation51_spill] sm:$0xff] %v16013_v40 }
 0xa1a   : > { %v6750_v6 = vpop.permute.xlu2 %6749 }
 0xa1b   : > { %6819 = vst.msk [vmem:[%s13813_s20 + $0xd8] sm:$0xff] %vm6791_vm3, %v6750_v6 }
 0xa1d   : > { %7678 = vrot.lane.b32.xlu0 %v7121_v38, %s12342_s24 }
 0xa1e   : > { %6336 = vmax.xlane.f32.xlu1 %v6335_v42  ;;  %v6716_v47 = vpop.permute.xlu1 %6715 }
 0xa1f   : > { %6802 = vst.msk [vmem:[%s13813_s20 + $0x50] sm:$0xff] %vm6791_vm3, %v6716_v47 }
 0xa22   : > { %v6756_v26 = vpop.permute.xlu2 %6755 }
 0xa23   : > { %6822 = vst.msk [vmem:[%s13813_s20 + $0xf0] sm:$0xff] %vm6791_vm3, %v6756_v26 }
 0xa25   : > { %7684 = vrot.lane.b32.xlu0 %v7196_v13, %s12342_s24  ;;  %v6374_v13 = vsel %vm869_vm1, %v16046_v2, -inf }
 0xa26   : > { %6363 = vmax.xlane.f32.xlu1 %v6362_v9  ;;  %v6734_v32 = vpop.permute.xlu1 %6733 }
 0xa27   : > { %6811 = vst.msk [vmem:[%s13813_s20 + $0x98] sm:$0xff] %vm6791_vm3, %v6734_v32 }
 0xa29   : > { %7662 = vrot.lane.b32.xlu2 %v6921_v30, %s12342_s24 }
 0xa2a   : > { %v5298_v1 = vpop.permute.xlu2 %5297 }
 0xa2b   : > { %5372 = vst.msk [vmem:[#allocation2 + $0xa8] sm:$0xff] %vm4390_vm2, %v5298_v1 }
 0xa2e   : > { %6372 = vmax.xlane.f32.xlu1 %v6371_v23  ;;  %v6740_v46 = vpop.permute.xlu1 %6739  ;;  %v16015_v18 = vpop.xlane.xlu0 %6315 }
 0xa2f   : > { %6814 = vst.msk [vmem:[%s13813_s20 + $0xb0] sm:$0xff] %vm6791_vm3, %v6740_v46  ;;  %v6220_v46 = vpop.f32.mrf.mxu3 }
 0xa31   : > { %7668 = vrot.lane.b32.xlu2 %v6996_v56, %s12342_s24  ;;  %v16032_v56 = vmul.f32 0.35355338, %v6108_v21 }
 0xa32   : > { %v5304_v10 = vpop.permute.xlu2 %5303 }
 0xa33   : > { %5375 = vst.msk [vmem:[#allocation2 + $0xc0] sm:$0xff] %vm4390_vm2, %v5304_v10  ;;  %v6386_v14 = vsel %vm869_vm1, %v16032_v56, -inf  ;;  %v16068_v10 = vmul.f32 0.35355338, %v6220_v46 }
 0xa35   : > { %v6398_v31 = vsel %vm869_vm1, %v16068_v10, -inf }
 0xa36   : > { %v5266_v57 = vpop.permute.xlu1 %5265  ;;  %v16023_v20 = vpop.xlane.xlu0 %6324 }
 0xa37   : > { %5356 = vst.msk [vmem:[#allocation2 + $0x28] sm:$0xff] %vm4390_vm2, %v5266_v57 }
 0xa3d   : > { %v16020_v62 = vpop.f32.mrf.mxu1 }
 0xa3e   : > { %18319 = vst [vmem:[#allocation193_spill] sm:$0xff] %v16020_v62  ;;  %v5272_v55 = vpop.permute.xlu1 %5271 }
 0xa3f   : > { %5359 = vst.msk [vmem:[#allocation2 + $0x40] sm:$0xff] %vm4390_vm2, %v5272_v55 }
 0xa45   : > { %v16025_v17 = vpop.f32.mrf.mxu0 }
 0xa46   : > { %18320 = vst [vmem:[#allocation177_spill] sm:$0xff] %v16025_v17  ;;  %v16027_v30 = vpop.f32.mrf.mxu1  ;;  %v6758_v27 = vpop.permute.xlu1 %6757 }
 0xa47   : > { %18321 = vst [vmem:[#allocation196_spill] sm:$0xff] %v16027_v30  ;;  %7670 = vrot.lane.b32.xlu1 %v7021_v7, %s12342_s24  ;;  %v16044_v7 = vmul.f32 0.35355338, %v6192_v45 }
 0xa48   : > { %6823 = vst.msk [vmem:[%s13813_s20 + $0xf8] sm:$0xff] %vm6791_vm3, %v6758_v27 }
 0xa49   : > { %v7661_v60 = vpop.permute.xlu0 %7660  ;;  %v6395_v42 = vsel %vm869_vm1, %v16044_v7, -inf }
 0xa4a   : > { %7754 = vst.msk [vmem:[#allocation2 + $0x10] sm:$0xff] %vm6791_vm3, %v7661_v60 }
 0xa4d   : > { %v16035_v19 = vpop.f32.mrf.mxu0 }
 0xa4e   : > { %v16037_v28 = vpop.f32.mrf.mxu1  ;;  %v5290_v51 = vpop.permute.xlu1 %5289 }
 0xa4f   : > { %5368 = vst.msk [vmem:[#allocation2 + $0x88] sm:$0xff] %vm4390_vm2, %v5290_v51  ;;  %6387 = vmax.xlane.f32.xlu0 %v6386_v14  ;;  %7676 = vrot.lane.b32.xlu1 %v15972_v29, %s12342_s24  ;;  %v16057_v29 = vmul.f32 0.35355338, %v6080_v58 }
 0xa51   : > { %v6383_v1 = vsel %vm869_vm1, %v16057_v29, -inf }
 0xa55   : > { %v7977_v8 = vpop.f32.mrf.mxu0 }
 0xa56   : > { %v16048_v38 = vpop.f32.mrf.mxu1  ;;  %v5296_v6 = vpop.permute.xlu1 %5295  ;;  %v16053_v47 = vmul.f32 0.35355338, %v7977_v8 }
 0xa57   : > { %5371 = vst.msk [vmem:[#allocation2 + $0xa0] sm:$0xff] %vm4390_vm2, %v5296_v6  ;;  %6396 = vmax.xlane.f32.xlu0 %v6395_v42 }
 0xa58   : > { %v8730_v9 = vsel %vm869_vm1, %v16053_v47, -inf }
 0xa5a   : > { %6375 = vmax.xlane.f32.xlu2 %v6374_v13  ;;  %v18322_v13 = vld [vmem:[#allocation29_spill] sm:$0xff] }
 0xa5d   : > { %v8089_v27 = vpop.f32.mrf.mxu0 }
 0xa5e   : > { %v5314_v26 = vpop.permute.xlu1 %5313  ;;  %v8117_v3 = vpop.f32.mrf.mxu1 }
 0xa5f   : > { %5380 = vst.msk [vmem:[#allocation2 + $0xe8] sm:$0xff] %vm4390_vm2, %v5314_v26  ;;  %8731 = vmax.xlane.f32.xlu0 %v8730_v9  ;;  %v16062_v32 = vmul.f32 0.35355338, %v8117_v3  ;;  %v18323_v26 = vld [vmem:[#allocation44_spill] sm:$0xff] }
 0xa60   : > { %v11741_v9 = vpack.i.bf16 %v18323_v26, %v18322_v13 }
 0xa61   : > { %v8745_v23 = vsel %vm869_vm1, %v16062_v32, -inf }
 0xa62   : > { %6384 = vmax.xlane.f32.xlu2 %v6383_v1 }
 0xa65   : > { %v16086_v51 = vpop.f32.mrf.mxu0 }
 0xa66   : > { %v8229_v45 = vpop.f32.mrf.mxu1 }
 0xa67   : > { %8746 = vmax.xlane.f32.xlu0 %v8745_v23 }
 0xa6d   : > { %v8313_v3 = vpop.f32.mrf.mxu0 }
 0xa74   : > { %v16070_v57 = vpop.xlane.xlu2 %6312  ;;  %v16076_v55 = vpop.xlane.xlu0 %6351 }
 0xa79   : > { %6399 = vmax.xlane.f32.xlu1 %v6398_v31 }
 0xa7a   : > { %7686 = vrot.lane.b32.xlu2 %v15988_v34, %s12342_s24 }
 0xa7c   : > { %v16078_v58 = vpop.xlane.xlu2 %6339  ;;  %v16084_v60 = vpop.xlane.xlu0 %6360 }
 0xa82   : > { %7692 = vrot.lane.b32.xlu2 %v15999_v15, %s12342_s24 }
 0xa84   : > { %v16082_v21 = vpop.xlane.xlu2 %6348 }
 0xa89   : > { %v6328_v14 = vpop.xlane.xlu1 %6327 }
 0xa8a   : > { %v6412_v6 = vsub.f32 %v15964_v59, %v6328_v14  ;;  %7700 = vrot.lane.b32.xlu2 %v16010_v63, %s12342_s24  ;;  %v16101_v63 = vpop.f32.mrf.mxu1 }
 0xa8c   : > { %v6449_v34 = vmul.f32 1.442695, %v6412_v6  ;;  %v7663_v42 = vpop.permute.xlu2 %7662 }
 0xa8d   : > { %7755 = vst.msk [vmem:[#allocation2 + $0x18] sm:$0xff] %vm6791_vm3, %v7663_v42  ;;  %v16112_v42 = vpop.f32.mrf.mxu0 }
 0xa8e   : > { %12132 = vpow2.f32 %v6449_v34 }
 0xa8f   : > { %v7679_v8 = vpop.permute.xlu0 %7678 }
 0xa90   : > { %7763 = vst.msk [vmem:[#allocation2 + $0x58] sm:$0xff] %vm6791_vm3, %v7679_v8 }
 0xa91   : > { %v6337_v15 = vpop.xlane.xlu1 %6336 }
 0xa92   : > { %v6415_v1 = vsub.f32 %v15977_v24, %v6337_v15  ;;  %7694 = vrot.lane.b32.xlu1 %v16002_v48, %s12342_s24  ;;  %11742 = vrot.lane.b32.xlu2 %v11741_v9, %s12341_s23  ;;  %v18324_v24 = vld [vmem:[#allocation57_spill] sm:$0xff]  ;;  %v18325_v48 = vld [vmem:[#allocation47_spill] sm:$0xff]  ;;  %v8453_v15 = vpop.f32.mrf.mxu1 }
 0xa93   : > { %v11746_v6 = vpack.i.bf16 %v18325_v48, %v18324_v24  ;;  %v16116_v13 = vmul.f32 0.35355338, %v8453_v15 }
 0xa94   : > { %v16099_v59 = vpop.eup %12132  ;;  %v6455_v23 = vmul.f32 1.442695, %v6415_v1  ;;  %v7669_v46 = vpop.permute.xlu2 %7668 }
 0xa95   : > { %v6518_v31 = vsel %vm869_vm1, %v16099_v59, 0.0  ;;  %7758 = vst.msk [vmem:[#allocation2 + $0x30] sm:$0xff] %vm6791_vm3, %v7669_v46  ;;  %v8781_v26 = vsel %vm869_vm1, %v16116_v13, -inf  ;;  %v8537_v9 = vpop.f32.mrf.mxu0 }
 0xa96   : > { %12134 = vpow2.f32 %v6455_v23  ;;  %6519 = vadd.xlane.f32.xlu0 %v6518_v31  ;;  %v16120_v23 = vmul.f32 0.35355338, %v8537_v9 }
 0xa97   : > { %v7685_v14 = vpop.permute.xlu0 %7684 }
 0xa98   : > { %7766 = vst.msk [vmem:[#allocation2 + $0x70] sm:$0xff] %vm6791_vm3, %v7685_v14  ;;  %v8790_v31 = vsel %vm869_vm1, %v16120_v23, -inf }
 0xa99   : > { %v6364_v1 = vpop.xlane.xlu1 %6363 }
 0xa9a   : > { %11747 = vrot.lane.b32.xlu1 %v11746_v6, %s12341_s23  ;;  %v6424_v46 = vsub.f32 %v15986_v5, %v6364_v1  ;;  %v8565_v14 = vpop.f32.mrf.mxu1 }
 0xa9b   : > { %v16125_v48 = vmul.f32 0.35355338, %v8565_v14 }
 0xa9c   : > { %v16110_v34 = vpop.eup %12134  ;;  %v6473_v24 = vmul.f32 1.442695, %v6424_v46 }
 0xa9d   : > { %v6527_v8 = vsel %vm869_vm1, %v16110_v34, 0.0  ;;  %v8793_v15 = vsel %vm869_vm1, %v16125_v48, -inf }
 0xa9e   : > { %6528 = vadd.xlane.f32.xlu0 %v6527_v8  ;;  %12136 = vpow2.f32 %v6473_v24 }
 0xaa1   : > { %v6373_v6 = vpop.xlane.xlu1 %6372 }
 0xaa2   : > { %v6427_v8 = vsub.f32 %v15997_v43, %v6373_v6  ;;  %v6408_v6 = vsub.f32 %v15809_v36, %v16015_v18  ;;  %v6411_v36 = vsub.f32 %v15816_v39, %v16023_v20  ;;  %v6407_v39 = vsub.f32 %v15932_v11, %v16070_v57 }
 0xaa3   : > { %v6420_v11 = vsub.f32 %v15928_v22, %v16076_v55  ;;  %v6423_v22 = vsub.f32 %v15944_v25, %v16084_v60  ;;  %v6416_v55 = vsub.f32 %v15947_v41, %v16078_v58  ;;  %v6419_v41 = vsub.f32 %v15958_v4, %v16082_v21 }
 0xaa4   : > { %v6479_v9 = vmul.f32 1.442695, %v6427_v8  ;;  %v16132_v1 = vpop.eup %12136 }
 0xaa5   : > { %v6554_v43 = vsel %vm869_vm1, %v16132_v1, 0.0 }
 0xaa6   : > { %8782 = vmax.xlane.f32.xlu0 %v8781_v26  ;;  %v16130_v26 = vmul.f32 0.35355338, %v8089_v27  ;;  %12138 = vpow2.f32 %v6479_v9  ;;  %v16142_v27 = vmul.f32 0.35355338, %v8229_v45  ;;  %v6441_v45 = vmul.f32 1.442695, %v6408_v6 }
 0xaa7   : > { %v16156_v9 = vmul.f32 0.35355338, %v16037_v28  ;;  %v16169_v28 = vmul.f32 0.35355338, %v16048_v38  ;;  %v16182_v38 = vmul.f32 0.35355338, %v16086_v51 }
 0xaa8   : > { %v8742_v46 = vsel %vm869_vm1, %v16130_v26, -inf  ;;  %v8757_v8 = vsel %vm869_vm1, %v16142_v27, -inf  ;;  %12140 = vpow2.f32 %v6441_v45  ;;  %v18326_v45 = vld [vmem:[#allocation72_spill] sm:$0xff]  ;;  %v6465_v51 = vmul.f32 1.442695, %v6420_v11 }
 0xaa9   : > { %v8733_v6 = vsel %vm869_vm1, %v16169_v28, -inf  ;;  %v16210_v11 = vmul.f32 0.35355338, %v16101_v63  ;;  %v6463_v63 = vmul.f32 1.442695, %v6419_v41 }
 0xaac   : > { %v16144_v24 = vpop.eup %12138 }
 0xaae   : > { %8791 = vmax.xlane.f32.xlu0 %v8790_v31  ;;  %v16140_v31 = vmul.f32 0.35355338, %v16035_v19  ;;  %v6563_v19 = vsel %vm869_vm1, %v16144_v24, 0.0 }
 0xab6   : > { %8794 = vmax.xlane.f32.xlu0 %v8793_v15  ;;  %v8718_v15 = vsel %vm869_vm1, %v16140_v31, -inf }
 0xab9   : > { %v7671_v5 = vpop.permute.xlu1 %7670 }
 0xaba   : > { %7759 = vst.msk [vmem:[#allocation2 + $0x38] sm:$0xff] %vm6791_vm3, %v7671_v5  ;;  %v16158_v5 = vmul.f32 0.35355338, %v8313_v3  ;;  %v16171_v3 = vpop.eup %12140 }
 0xabb   : > { %8743 = vmax.xlane.f32.xlu2 %v8742_v46  ;;  %v8721_v46 = vsel %vm869_vm1, %v16156_v9, -inf  ;;  %v6506_v20 = vsel %vm869_vm1, %v16171_v3, 0.0 }
 0xabc   : > { %v8766_v18 = vsel %vm869_vm1, %v16158_v5, -inf }
 0xabe   : > { %6555 = vadd.xlane.f32.xlu0 %v6554_v43  ;;  %v6447_v43 = vmul.f32 1.442695, %v6411_v36  ;;  %v18327_v36 = vld [vmem:[#allocation63_spill] sm:$0xff] }
 0xac0   : > { %12142 = vpow2.f32 %v6447_v43 }
 0xac1   : > { %v7677_v14 = vpop.permute.xlu1 %7676 }
 0xac2   : > { %7762 = vst.msk [vmem:[#allocation2 + $0x50] sm:$0xff] %vm6791_vm3, %v7677_v14 }
 0xac3   : > { %8758 = vmax.xlane.f32.xlu2 %v8757_v8  ;;  %v6439_v8 = vmul.f32 1.442695, %v6407_v39  ;;  %v16196_v39 = vmul.f32 0.35355338, %v16112_v42  ;;  %v6471_v42 = vmul.f32 1.442695, %v6423_v22 }
 0xac4   : > { %8719 = vmax.xlane.f32.xlu1 %v8718_v15 }
 0xac5   : > { %12144 = vpow2.f32 %v6439_v8 }
 0xac6   : > { %6564 = vadd.xlane.f32.xlu0 %v6563_v19  ;;  %v16184_v19 = vpop.eup %12142  ;;  %12146 = vpow2.f32 %v6465_v51 }
 0xac7   : > { %v6515_v57 = vsel %vm869_vm1, %v16184_v19, 0.0  ;;  %12148 = vpow2.f32 %v6471_v42 }
 0xacb   : > { %8767 = vmax.xlane.f32.xlu2 %v8766_v18  ;;  %v11756_v18 = vpack.i.bf16 %v18327_v36, %v18326_v45  ;;  %v6388_v45 = vpop.xlane.xlu0 %6387  ;;  %v6457_v36 = vmul.f32 1.442695, %v6416_v55 }
 0xacc   : > { %8722 = vmax.xlane.f32.xlu1 %v8721_v46  ;;  %v8754_v46 = vsel %vm869_vm1, %v16182_v38, -inf  ;;  %v6432_v58 = vsub.f32 %v16032_v56, %v6388_v45 }
 0xacd   : > { %v16166_v14 = vpop.xlane.xlu2 %6375  ;;  %12150 = vpow2.f32 %v6457_v36 }
 0xace   : > { %12152 = vpow2.f32 %v6463_v63 }
 0xad3   : > { %6507 = vadd.xlane.f32.xlu2 %v6506_v20  ;;  %v16199_v20 = vpop.eup %12144  ;;  %v6397_v51 = vpop.xlane.xlu0 %6396 }
 0xad4   : > { %8734 = vmax.xlane.f32.xlu1 %v8733_v6  ;;  %v8778_v6 = vsel %vm869_vm1, %v16196_v39, -inf  ;;  %v6503_v8 = vsel %vm869_vm1, %v16199_v20, 0.0  ;;  %v16213_v25 = vpop.eup %12146  ;;  %v6435_v56 = vsub.f32 %v16044_v7, %v6397_v51 }
 0xad5   : > { %v16179_v15 = vpop.xlane.xlu2 %6384  ;;  %v6542_v60 = vsel %vm869_vm1, %v16213_v25, 0.0  ;;  %v16222_v22 = vpop.eup %12148 }
 0xad6   : > { %v16225_v4 = vpop.eup %12150  ;;  %v6495_v45 = vmul.f32 1.442695, %v6435_v56 }
 0xad7   : > { %v16233_v36 = vpop.eup %12152 }
 0xada   : > { %11757 = vrot.lane.b32.xlu0 %v11756_v18, %s12341_s23 }
 0xadb   : > { %6516 = vadd.xlane.f32.xlu2 %v6515_v57  ;;  %v8769_v57 = vsel %vm869_vm1, %v16210_v11, -inf }
 0xadc   : > { %8755 = vmax.xlane.f32.xlu1 %v8754_v46  ;;  %v6489_v46 = vmul.f32 1.442695, %v6432_v58 }
 0xadd   : > { %v7687_v43 = vpop.permute.xlu2 %7686 }
 0xade   : > { %7767 = vst.msk [vmem:[#allocation2 + $0x78] sm:$0xff] %vm6791_vm3, %v7687_v43  ;;  %12154 = vpow2.f32 %v6489_v46 }
 0xadf   : > { %12156 = vpow2.f32 %v6495_v45  ;;  %v8732_v45 = vpop.xlane.xlu0 %8731 }
 0xae3   : > { %8779 = vmax.xlane.f32.xlu2 %v8778_v6  ;;  %v6551_v6 = vsel %vm869_vm1, %v16222_v22, 0.0 }
 0xae4   : > { %6504 = vadd.xlane.f32.xlu1 %v6503_v8  ;;  %v6530_v8 = vsel %vm869_vm1, %v16225_v4, 0.0 }
 0xae5   : > { %v7693_v18 = vpop.permute.xlu2 %7692 }
 0xae6   : > { %7770 = vst.msk [vmem:[#allocation2 + $0x90] sm:$0xff] %vm6791_vm3, %v7693_v18  ;;  %v16235_v18 = vpop.eup %12154 }
 0xae7   : > { %v6578_v7 = vsel %vm869_vm1, %v16235_v18, 0.0  ;;  %v16241_v41 = vpop.eup %12156 }
 0xaeb   : > { %6543 = vadd.xlane.f32.xlu2 %v6542_v60  ;;  %v6587_v60 = vsel %vm869_vm1, %v16241_v41, 0.0 }
 0xaec   : > { %8770 = vmax.xlane.f32.xlu1 %v8769_v57  ;;  %v6400_v55 = vpop.xlane.xlu1 %6399 }
 0xaed   : > { %v7701_v43 = vpop.permute.xlu2 %7700  ;;  %v6436_v21 = vsub.f32 %v16068_v10, %v6400_v55  ;;  %v6539_v10 = vsel %vm869_vm1, %v16233_v36, 0.0  ;;  %v18329_v55 = vld [vmem:[#allocation35_spill] sm:$0xff] }
 0xaee   : > { %7774 = vst.msk [vmem:[#allocation2 + $0xb0] sm:$0xff] %vm6791_vm3, %v7701_v43  ;;  %v18328_v43 = vld [vmem:[#allocation59_spill] sm:$0xff] }
 0xaef   : > { %v6497_v42 = vmul.f32 1.442695, %v6436_v21  ;;  %v11751_v56 = vpack.i.bf16 %v18329_v55, %v18328_v43  ;;  %v18330_v21 = vld [vmem:[#allocation78_spill] sm:$0xff] }
 0xaf1   : > { %12158 = vpow2.f32 %v6497_v42 }
 0xaf3   : > { %6552 = vadd.xlane.f32.xlu2 %v6551_v6  ;;  %v18331_v6 = vld [vmem:[#allocation54_spill] sm:$0xff] }
 0xaf4   : > { %6531 = vadd.xlane.f32.xlu1 %v6530_v8  ;;  %v11761_v8 = vpack.i.bf16 %v18331_v6, %v18330_v21 }
 0xaf5   : > { %v16259_v42 = vpop.permute.xlu2 %11742 }
 0xaf7   : > { %v16243_v58 = vpop.eup %12158 }
 0xaf8   : > { %v6590_v57 = vsel %vm869_vm1, %v16243_v58, 0.0 }
 0xafb   : > { %6579 = vadd.xlane.f32.xlu2 %v6578_v7  ;;  %v6428_v7 = vsub.f32 %v16046_v2, %v16166_v14 }
 0xafc   : > { %6540 = vadd.xlane.f32.xlu1 %v6539_v10  ;;  %v8747_v10 = vpop.xlane.xlu0 %8746 }
 0xb03   : > { %6588 = vadd.xlane.f32.xlu2 %v6587_v60 }
 0xb04   : > { %v7695_v63 = vpop.permute.xlu1 %7694  ;;  %6591 = vadd.xlane.f32.xlu0 %v6590_v57  ;;  %v6481_v57 = vmul.f32 1.442695, %v6428_v7 }
 0xb05   : > { %7771 = vst.msk [vmem:[#allocation2 + $0x98] sm:$0xff] %vm6791_vm3, %v7695_v63  ;;  %v6431_v63 = vsub.f32 %v16057_v29, %v16179_v15 }
 0xb06   : > { %12160 = vpow2.f32 %v6481_v57 }
 0xb07   : > { %v6487_v21 = vmul.f32 1.442695, %v6431_v63 }
 0xb0c   : > { %v16250_v46 = vpop.permute.xlu1 %11747 }
 0xb0d   : > { %v11749_v51 = vunpack.i.l.bf16 %v16250_v46 }
 0xb0f   : > { %9420 = vmatpush.msrb.mxu1 %v11749_v51  ;;  %v6520_v51 = vpop.xlane.xlu0 %6519 }
 0xb15   : > { %11752 = vrot.lane.b32.xlu1 %v11751_v56, %s12341_s23 }
 0xb17   : > { %v16275_v29 = vpop.xlane.xlu0 %6528 }
 0xb18   : > { %11762 = vrot.lane.b32.xlu0 %v11761_v8, %s12341_s23  ;;  %v16268_v8 = vpop.eup %12160 }
 0xb19   : > { %v6566_v14 = vsel %vm869_vm1, %v16268_v8, 0.0 }
 0xb2e   : > { %v16263_v60 = vpop.xlane.xlu2 %8743 }
 0xb36   : > { %v8759_v43 = vpop.xlane.xlu2 %8758 }
 0xb37   : > { %v8720_v55 = vpop.xlane.xlu1 %8719  ;;  %v8823_v56 = vsub.f32 %v16142_v27, %v8759_v43 }
 0xb38   : > { %v8810_v2 = vsub.f32 %v16140_v31, %v8720_v55  ;;  %v8814_v31 = vsub.f32 %v16053_v47, %v8732_v45 }
 0xb39   : > { %v8870_v6 = vmul.f32 1.442695, %v8823_v56 }
 0xb3a   : > { %v8844_v15 = vmul.f32 1.442695, %v8810_v2 }
 0xb3b   : > { %12162 = vpow2.f32 %v8870_v6  ;;  %v8852_v6 = vmul.f32 1.442695, %v8814_v31 }
 0xb3c   : > { %12164 = vpow2.f32 %v6487_v21 }
 0xb3d   : > { %12166 = vpow2.f32 %v8844_v15 }
 0xb3e   : > { %v16273_v7 = vpop.xlane.xlu2 %8767 }
 0xb3f   : > { %v8723_v57 = vpop.xlane.xlu1 %8722  ;;  %6567 = vadd.xlane.f32.xlu1 %v6566_v14 }
 0xb40   : > { %v8811_v27 = vsub.f32 %v16156_v9, %v8723_v57 }
 0xb41   : > { %v16278_v63 = vpop.eup %12162 }
 0xb42   : > { %v8846_v43 = vmul.f32 1.442695, %v8811_v27  ;;  %v16280_v56 = vpop.eup %12164  ;;  %v8949_v55 = vsel %vm869_vm1, %v16278_v63, 0.0  ;;  %v16290_v27 = vpop.xlane.xlu0 %8782 }
 0xb43   : > { %8950 = vadd.xlane.f32.xlu2 %v8949_v55  ;;  %v6575_v21 = vsel %vm869_vm1, %v16280_v56, 0.0  ;;  %v16288_v57 = vpop.eup %12166 }
 0xb44   : > { %12168 = vpow2.f32 %v8846_v43  ;;  %v8819_v43 = vsub.f32 %v16062_v32, %v8747_v10 }
 0xb46   : > { %v6508_v2 = vpop.xlane.xlu2 %6507 }
 0xb47   : > { %v8735_v14 = vpop.xlane.xlu1 %8734  ;;  %6576 = vadd.xlane.f32.xlu1 %v6575_v21  ;;  %12170 = vrcp.f32 %v6508_v2  ;;  %v18332_v2 = vld [vmem:[#allocation168_spill] sm:$0xff] }
 0xb48   : > { %v8815_v9 = vsub.f32 %v16169_v28, %v8735_v14  ;;  %12172 = vpow2.f32 %v8852_v6  ;;  %v8910_v28 = vsel %vm869_vm1, %v16288_v57, 0.0  ;;  %v11680_v6 = vunpack.i.h.bf16 %v18332_v2 }
 0xb4a   : > { %v8854_v47 = vmul.f32 1.442695, %v8815_v9  ;;  %v16292_v45 = vpop.eup %12168  ;;  %v8862_v9 = vmul.f32 1.442695, %v8819_v43 }
 0xb4b   : > { %v8913_v15 = vsel %vm869_vm1, %v16292_v45, 0.0 }
 0xb4c   : > { %12174 = vpow2.f32 %v8854_v47  ;;  %8914 = vadd.xlane.f32.xlu0 %v8913_v15 }
 0xb4d   : > { %v12171_v31 = vpop.eup %12170  ;;  %12176 = vrcp.f32 %v6520_v51  ;;  %v16311_v51 = vpop.xlane.xlu0 %8791 }
 0xb4e   : > { %v16300_v55 = vmul.f32 %v12171_v31, %v16171_v3  ;;  %v16305_v14 = vpop.eup %12172  ;;  %12178 = vpow2.f32 %v8862_v9  ;;  %v6517_v47 = vpop.xlane.xlu2 %6516 }
 0xb4f   : > { %8911 = vadd.xlane.f32.xlu1 %v8910_v28  ;;  %v16302_v21 = vpop.xlane.xlu1 %8755  ;;  %v8922_v3 = vsel %vm869_vm1, %v16305_v14, 0.0  ;;  %v18333_v28 = vld [vmem:[#allocation181_spill] sm:$0xff] }
 0xb50   : > { %11304 = vmatmul.msk.f32.vlgmr.msrb.gmra.mxu3 %vm869_vm1, %v16300_v55  ;;  %v11689_v52 = vunpack.i.l.bf16 %v18333_v28 }
 0xb51   : > { %7069 = vmatpush.msrb.mxu3 %v11680_v6  ;;  %v11690_v6 = vunpack.i.h.bf16 %v18333_v28 }
 0xb52   : > { %v16309_v32 = vpop.eup %12174 }
 0xb53   : > { %v12177_v10 = vpop.eup %12176  ;;  %v8925_v15 = vsel %vm869_vm1, %v16309_v32, 0.0 }
 0xb54   : > { %8923 = vadd.xlane.f32.xlu0 %v8922_v3  ;;  %v6636_v43 = vmul.f32 %v12177_v10, %v16099_v59  ;;  %v16320_v30 = vpop.eup %12178  ;;  %v11679_v10 = vunpack.i.l.bf16 %v18332_v2 }
 0xb55   : > { %v16322_v62 = vpop.xlane.xlu0 %8794  ;;  %v8937_v9 = vsel %vm869_vm1, %v16320_v30, 0.0 }
 0xb57   : > { %8926 = vadd.xlane.f32.xlu1 %v8925_v15  ;;  %v6505_v31 = vpop.xlane.xlu1 %6504  ;;  %v16330_v15 = vpop.xlane.xlu2 %8779 }
 0xb58   : > { %12180 = vrcp.f32 %v6505_v31  ;;  %11308 = vmatmul.msk.f32.vlgmr.msra.gmra.mxu3 %vm869_vm1, %v6636_v43 }
 0xb59   : > { %7169 = vmatpush.msra.mxu3 %v11690_v6  ;;  %12182 = vrcp.f32 %v6517_v47 }
 0xb5a   : > { %12184 = vrcp.f32 %v16275_v29 }
 0xb5d   : > { %v6556_v40 = vpop.xlane.xlu0 %6555 }
 0xb5e   : > { %v12181_v17 = vpop.eup %12180 }
 0xb5f   : > { %v6631_v3 = vmul.f32 %v12181_v17, %v16199_v20  ;;  %8938 = vadd.xlane.f32.xlu1 %v8937_v9  ;;  %v16327_v59 = vpop.xlane.xlu1 %8770  ;;  %v12183_v31 = vpop.eup %12182 }
 0xb60   : > { %v6635_v47 = vmul.f32 %v12183_v31, %v16184_v19  ;;  %v6544_v17 = vpop.xlane.xlu2 %6543  ;;  %v12185_v20 = vpop.eup %12184  ;;  %v18334_v19 = vld [vmem:[#allocation161_spill] sm:$0xff] }
 0xb61   : > { %11303 = vmatmul.msk.f32.vlgmr.msrb.gmra.mxu2 %vm869_vm1, %v6631_v3  ;;  %v6639_v9 = vmul.f32 %v12185_v20, %v16110_v34  ;;  %v11700_v31 = vunpack.i.h.bf16 %v18334_v19  ;;  %v11699_v28 = vunpack.i.l.bf16 %v18334_v19 }
 0xb62   : > { %7044 = vmatpush.msrb.mxu2 %v11679_v10 }
 0xb67   : > { %v6532_v6 = vpop.xlane.xlu1 %6531 }
 0xb68   : > { %12186 = vrcp.f32 %v6532_v6  ;;  %6695 = vrot.lane.b32.xlu0 %v6631_v3, %s12342_s24  ;;  %v6565_v3 = vpop.xlane.xlu0 %6564 }
 0xb69   : > { %11307 = vmatmul.msk.f32.vlgmr.msra.gmra.mxu2 %vm869_vm1, %v6635_v47  ;;  %12188 = vrcp.f32 %v6544_v17 }
 0xb6a   : > { %7144 = vmatpush.msra.mxu2 %v11689_v52  ;;  %v6553_v52 = vpop.xlane.xlu2 %6552 }
 0xb6e   : > { %v12187_v2 = vpop.eup %12186 }
 0xb6f   : > { %v6541_v10 = vpop.xlane.xlu1 %6540  ;;  %v6640_v29 = vmul.f32 %v12187_v2, %v16225_v4  ;;  %v12189_v34 = vpop.eup %12188 }
 0xb70   : > { %12190 = vrcp.f32 %v6541_v10  ;;  %6705 = vrot.lane.b32.xlu0 %v6636_v43, %s12342_s24  ;;  %v18335_v43 = vld [vmem:[#allocation137_spill] sm:$0xff]  ;;  %v6644_v20 = vmul.f32 %v12189_v34, %v16213_v25  ;;  %v16353_v10 = vpop.permute.xlu0 %11757 }
 0xb71   : > { %11311 = vmatmul.msk.f32.vlgmr.msrb.gmra.mxu2 %vm869_vm1, %v6639_v9  ;;  %6713 = vrot.lane.b32.xlu2 %v6640_v29, %s12342_s24  ;;  %12192 = vrcp.f32 %v6556_v40  ;;  %v11709_v17 = vunpack.i.l.bf16 %v18335_v43  ;;  %v11710_v2 = vunpack.i.h.bf16 %v18335_v43 }
 0xb72   : > { %11312 = vmatmul.msk.f32.vlgmr.msrb.gmra.mxu3 %vm869_vm1, %v6640_v29  ;;  %7244 = vmatpush.msrb.mxu2 %v11699_v28  ;;  %12194 = vrcp.f32 %v6553_v52  ;;  %v18337_v29 = vld [vmem:[#allocation81_spill] sm:$0xff] }
 0xb73   : > { %7269 = vmatpush.msrb.mxu3 %v11700_v31  ;;  %12196 = vrcp.f32 %v6565_v3  ;;  %v18338_v31 = vld [vmem:[#allocation200_spill] sm:$0xff] }
 0xb74   : > { %v11719_v28 = vunpack.i.l.bf16 %v18338_v31  ;;  %v11720_v52 = vunpack.i.h.bf16 %v18338_v31 }
 0xb76   : > { %v12191_v4 = vpop.eup %12190 }
 0xb77   : > { %v6643_v6 = vmul.f32 %v12191_v4, %v16233_v36  ;;  %v12193_v40 = vpop.eup %12192  ;;  %v18339_v4 = vld [vmem:[#allocation62_spill] sm:$0xff] }
 0xb78   : > { %6697 = vrot.lane.b32.xlu1 %v16300_v55, %s12342_s24  ;;  %6711 = vrot.lane.b32.xlu0 %v6639_v9, %s12342_s24  ;;  %v12195_v36 = vpop.eup %12194  ;;  %v6648_v55 = vmul.f32 %v12193_v40, %v16132_v1  ;;  %v18336_v9 = vld [vmem:[#allocation90_spill] sm:$0xff]  ;;  %v6592_v34 = vpop.xlane.xlu0 %6591 }
 0xb79   : > { %6719 = vrot.lane.b32.xlu2 %v6643_v6, %s12342_s24  ;;  %11315 = vmatmul.msk.f32.vlgmr.msra.gmra.mxu2 %vm869_vm1, %v6643_v6  ;;  %v6647_v25 = vmul.f32 %v12195_v36, %v16222_v22  ;;  %v11766_v19 = vpack.i.bf16 %v18337_v29, %v18336_v9  ;;  %v12197_v1 = vpop.eup %12196  ;;  %v11729_v6 = vunpack.i.l.bf16 %v18339_v4 }
 0xb7a   : > { %11316 = vmatmul.msk.f32.vlgmr.msra.gmra.mxu3 %vm869_vm1, %v6644_v20  ;;  %7344 = vmatpush.msra.mxu2 %v11709_v17 }
 0xb7b   : > { %7369 = vmatpush.msra.mxu3 %v11710_v2 }
 0xb80   : > { %6703 = vrot.lane.b32.xlu1 %v6635_v47, %s12342_s24  ;;  %6729 = vrot.lane.b32.xlu0 %v6648_v55, %s12342_s24  ;;  %v6651_v47 = vmul.f32 %v12197_v1, %v16144_v24  ;;  %v8822_v24 = vsub.f32 %v16182_v38, %v16302_v21  ;;  %v6580_v38 = vpop.xlane.xlu2 %6579 }
 0xb81   : > { %11767 = vrot.lane.b32.xlu2 %v11766_v19, %s12341_s23  ;;  %11319 = vmatmul.msk.f32.vlgmr.msrb.gmra.mxu2 %vm869_vm1, %v6647_v25 }
 0xb82   : > { %11320 = vmatmul.msk.f32.vlgmr.msrb.gmra.mxu3 %vm869_vm1, %v6648_v55  ;;  %7444 = vmatpush.msrb.mxu2 %v11719_v28  ;;  %v8868_v2 = vmul.f32 1.442695, %v8822_v24  ;;  %v8827_v55 = vsub.f32 %v16210_v11, %v16327_v59  ;;  %v11730_v28 = vunpack.i.h.bf16 %v18339_v4 }
 0xb83   : > { %7469 = vmatpush.msrb.mxu3 %v11720_v52 }
 0xb84   : > { %12198 = vpow2.f32 %v8868_v2  ;;  %v18341_v2 = vld [vmem:[#allocation111_spill] sm:$0xff] }
 0xb87   : > { %v16369_v22 = vpop.permute.xlu1 %11752 }
 0xb88   : > { %v11755_v3 = vunpack.i.h.bf16 %v16369_v22  ;;  %6721 = vrot.lane.b32.xlu1 %v6644_v20, %s12342_s24  ;;  %6735 = vrot.lane.b32.xlu0 %v6651_v47, %s12342_s24  ;;  %v8818_v20 = vsub.f32 %v16130_v26, %v16263_v60  ;;  %v6589_v52 = vpop.xlane.xlu2 %6588 }
 0xb89   : > { %11323 = vmatmul.msk.f32.vlgmr.msra.gmra.mxu2 %vm869_vm1, %v6651_v47 }
 0xb8a   : > { %9295 = vmatpush.msrb.mxu0 %v11755_v3  ;;  %v16377_v43 = vpop.permute.xlu0 %11762  ;;  %7544 = vmatpush.msra.mxu2 %v11729_v6  ;;  %v8860_v40 = vmul.f32 1.442695, %v8818_v20  ;;  %v16385_v36 = vpop.eup %12198 }
 0xb8b   : > { %v11765_v17 = vunpack.i.h.bf16 %v16377_v43  ;;  %v8946_v9 = vsel %vm869_vm1, %v16385_v36, 0.0 }
 0xb8c   : > { %12200 = vpow2.f32 %v8860_v40 }
 0xb8d   : > { %9395 = vmatpush.msra.mxu0 %v11765_v17 }
 0xb90   : > { %6727 = vrot.lane.b32.xlu1 %v6647_v25, %s12342_s24  ;;  %v8878_v25 = vmul.f32 1.442695, %v8827_v55 }
 0xb92   : > { %v16391_v29 = vpop.eup %12200  ;;  %12202 = vpow2.f32 %v8878_v25  ;;  %v11759_v25 = vunpack.i.l.bf16 %v16353_v10 }
 0xb93   : > { %v8934_v26 = vsel %vm869_vm1, %v16391_v29, 0.0 }
 0xb98   : > { %v16395_v60 = vpop.eup %12202 }
 0xb99   : > { %v8961_v11 = vsel %vm869_vm1, %v16395_v60, 0.0 }
 0xbaa   : > { %8947 = vadd.xlane.f32.xlu2 %v8946_v9 }
 0xbb2   : > { %v6568_v21 = vpop.xlane.xlu1 %6567  ;;  %8935 = vadd.xlane.f32.xlu0 %v8934_v26 }
 0xbb3   : > { %12204 = vrcp.f32 %v6568_v21 }
 0xbb4   : > { %12206 = vrcp.f32 %v6580_v38 }
 0xbb6   : > { %v8951_v4 = vpop.xlane.xlu2 %8950 }
 0xbb9   : > { %v12205_v19 = vpop.eup %12204 }
 0xbba   : > { %v6652_v59 = vmul.f32 %v12205_v19, %v16268_v8  ;;  %v6577_v31 = vpop.xlane.xlu1 %6576  ;;  %8962 = vadd.xlane.f32.xlu1 %v8961_v11  ;;  %v12207_v1 = vpop.eup %12206  ;;  %v18344_v11 = vld [vmem:[#allocation95_spill] sm:$0xff] }
 0xbbb   : > { %12208 = vrcp.f32 %v6577_v31  ;;  %v6656_v17 = vmul.f32 %v12207_v1, %v16235_v18 }
 0xbbc   : > { %12210 = vrcp.f32 %v6592_v34  ;;  %11324 = vmatmul.msk.f32.vlgmr.msra.gmra.mxu3 %vm869_vm1, %v6652_v59  ;;  %v18340_v34 = vld [vmem:[#allocation212_spill] sm:$0xff] }
 0xbbd   : > { %7569 = vmatpush.msra.mxu3 %v11730_v28  ;;  %12212 = vrcp.f32 %v6589_v52 }
 0xbbf   : > { %v8915_v47 = vpop.xlane.xlu0 %8914 }
 0xbc0   : > { %12214 = vrcp.f32 %v8915_v47 }
 0xbc1   : > { %v12209_v3 = vpop.eup %12208 }
 0xbc2   : > { %v12211_v6 = vpop.eup %12210  ;;  %v6655_v8 = vmul.f32 %v12209_v3, %v16280_v56  ;;  %v8912_v24 = vpop.xlane.xlu1 %8911  ;;  %6737 = vrot.lane.b32.xlu2 %v6652_v59, %s12342_s24  ;;  %v18345_v59 = vld [vmem:[#allocation67_spill] sm:$0xff] }
 0xbc3   : > { %12216 = vrcp.f32 %v8912_v24  ;;  %v6660_v20 = vmul.f32 %v12211_v6, %v16243_v58  ;;  %v12213_v18 = vpop.eup %12212  ;;  %v11771_v31 = vpack.i.bf16 %v18345_v59, %v18344_v11  ;;  %v18346_v3 = vld [vmem:[#allocation211_spill] sm:$0xff]  ;;  %v18347_v6 = vld [vmem:[#allocation189_spill] sm:$0xff]  ;;  %v8826_v11 = vsub.f32 %v16158_v5, %v16273_v7  ;;  %v18362_v5 = vld [vmem:[#allocation70_spill] sm:$0xff] }
 0xbc4   : > { %11327 = vmatmul.msk.f32.vlgmr.msrb.gmra.mxu2 %vm869_vm1, %v6655_v8  ;;  %11328 = vmatmul.msk.f32.vlgmr.msrb.gmra.mxu3 %vm869_vm1, %v6656_v17  ;;  %v6659_v38 = vmul.f32 %v12213_v18, %v16241_v41  ;;  %v18342_v41 = vld [vmem:[#allocation32_spill] sm:$0xff]  ;;  %v18351_v18 = vld [vmem:[#allocation33_spill] sm:$0xff] }
 0xbc5   : > { %11335 = vmatpush.xpose.msk.msrb.mxu2 %vm869_vm1, %v18340_v34  ;;  %11337 = vmatpush.xpose.msk.msrb.mxu3 %vm869_vm1, %v18341_v2  ;;  %v18363_v7 = vld [vmem:[#allocation104_spill] sm:$0xff] }
 0xbc6   : > { %v12215_v40 = vpop.eup %12214  ;;  %6753 = vrot.lane.b32.xlu0 %v6660_v20, %s12342_s24 }
 0xbc7   : > { %v16414_v56 = vmul.f32 %v12215_v40, %v16292_v45  ;;  %v8924_v55 = vpop.xlane.xlu0 %8923 }
 0xbc8   : > { %12218 = vrcp.f32 %v8924_v55  ;;  %v18352_v55 = vld [vmem:[#allocation30_spill] sm:$0xff] }
 0xbc9   : > { %v12217_v9 = vpop.eup %12216  ;;  %11402 = vmatmul.msk.f32.vlgmr.msra.gmra.mxu1 %vm869_vm1, %v16414_v56 }
 0xbca   : > { %v16419_v21 = vmul.f32 %v12217_v9, %v16288_v57  ;;  %v8927_v58 = vpop.xlane.xlu1 %8926  ;;  %9520 = vmatpush.msra.mxu1 %v11759_v25  ;;  %6743 = vrot.lane.b32.xlu2 %v6655_v8, %s12342_s24  ;;  %v18343_v57 = vld [vmem:[#allocation141_spill] sm:$0xff]  ;;  %v18348_v8 = vld [vmem:[#allocation156_spill] sm:$0xff] }
 0xbcb   : > { %12220 = vrcp.f32 %v8927_v58  ;;  %v6714_v45 = vpop.permute.xlu2 %6713 }
 0xbcc   : > { %11331 = vmatmul.msk.f32.vlgmr.msra.gmra.mxu2 %vm869_vm1, %v6659_v38  ;;  %11332 = vmatmul.msk.f32.vlgmr.msra.gmra.mxu3 %vm869_vm1, %v6660_v20  ;;  %6801 = vst.msk [vmem:[%s13813_s20 + $0x48] sm:$0xff] %vm6791_vm3, %v6714_v45  ;;  %v18350_v20 = vld [vmem:[#allocation135_spill] sm:$0xff] }
 0xbcd   : > { %11343 = vmatpush.xpose.msk.msra.mxu2 %vm869_vm1, %v18342_v41  ;;  %11345 = vmatpush.xpose.msk.msra.mxu3 %vm869_vm1, %v18343_v57  ;;  %v18354_v41 = vld [vmem:[#allocation119_spill] sm:$0xff] }
 0xbce   : > { %11401 = vmatmul.msk.f32.vlgmr.msrb.gmra.mxu0 %vm869_vm1, %v16419_v21  ;;  %v12219_v26 = vpop.eup %12218  ;;  %v18355_v57 = vld [vmem:[#allocation87_spill] sm:$0xff] }
 0xbcf   : > { %v16441_v1 = vmul.f32 %v12219_v26, %v16305_v14  ;;  %v18359_v26 = vld [vmem:[#allocation100_spill] sm:$0xff] }
 0xbd1   : > { %v12221_v19 = vpop.eup %12220 }
 0xbd2   : > { %v16437_v28 = vmul.f32 %v12221_v19, %v16309_v32  ;;  %v8939_v52 = vpop.xlane.xlu1 %8938  ;;  %v18349_v32 = vld [vmem:[#allocation79_spill] sm:$0xff] }
 0xbd3   : > { %12222 = vrcp.f32 %v8939_v52  ;;  %11772 = vrot.lane.b32.xlu1 %v11771_v31, %s12341_s23  ;;  %v6720_v47 = vpop.permute.xlu2 %6719  ;;  %v8649_v52 = vpop.f32.mrf.mxu0 }
 0xbd4   : > { %11336 = vmatmul.msk.f32.vlgmr.msrb.gmra.mxu2 %vm869_vm1, %v18346_v3  ;;  %11338 = vmatmul.msk.f32.vlgmr.msrb.gmra.mxu3 %vm869_vm1, %v18347_v6  ;;  %6804 = vst.msk [vmem:[%s13813_s20 + $0x60] sm:$0xff] %vm6791_vm3, %v6720_v47  ;;  %12224 = vrcp.f32 %v8951_v4  ;;  %v18360_v3 = vld [vmem:[#allocation185_spill] sm:$0xff] }
 0xbd5   : > { %11351 = vmatpush.xpose.msk.msrb.mxu2 %vm869_vm1, %v18348_v8  ;;  %11353 = vmatpush.xpose.msk.msrb.mxu3 %vm869_vm1, %v18349_v32  ;;  %v18361_v6 = vld [vmem:[#allocation73_spill] sm:$0xff]  ;;  %v8876_v32 = vmul.f32 1.442695, %v8826_v11  ;;  %v18369_v11 = vld [vmem:[#allocation114_spill] sm:$0xff] }
 0xbd6   : > { %11405 = vmatmul.msk.f32.vlgmr.msra.gmra.mxu0 %vm869_vm1, %v16441_v1  ;;  %11406 = vmatmul.msk.f32.vlgmr.msrb.gmra.mxu1 %vm869_vm1, %v16437_v28 }
 0xbd9   : > { %v12223_v14 = vpop.eup %12222 }
 0xbda   : > { %v16458_v24 = vmul.f32 %v12223_v14, %v16320_v30  ;;  %v6696_v34 = vpop.permute.xlu0 %6695  ;;  %v18353_v30 = vld [vmem:[#allocation42_spill] sm:$0xff]  ;;  %v12225_v4 = vpop.eup %12224  ;;  %v16515_v14 = vmul.f32 0.35355338, %v8649_v52  ;;  %v11739_v52 = vunpack.i.l.bf16 %v15795_v54  ;;  %v11745_v54 = vunpack.i.h.bf16 %v16259_v42 }
 0xbdb   : > { %6745 = vrot.lane.b32.xlu1 %v6656_v17, %s12342_s24  ;;  %6792 = vst.msk [vmem:[%s13813_s20] sm:$0xff] %vm6791_vm3, %v6696_v34  ;;  %v16463_v2 = vpop.permute.xlu2 %11767  ;;  %v8831_v17 = vsub.f32 %v16116_v13, %v16290_v27  ;;  %v16480_v58 = vmul.f32 %v12225_v4, %v16278_v63  ;;  %v18356_v13 = vld [vmem:[#allocation165_spill] sm:$0xff]  ;;  %v18357_v27 = vld [vmem:[#allocation48_spill] sm:$0xff]  ;;  %v18358_v63 = vld [vmem:[#allocation110_spill] sm:$0xff] }
 0xbdc   : > { %11344 = vmatmul.msk.f32.vlgmr.msra.gmra.mxu2 %vm869_vm1, %v18350_v20  ;;  %11346 = vmatmul.msk.f32.vlgmr.msra.gmra.mxu3 %vm869_vm1, %v18351_v18  ;;  %v11769_v40 = vunpack.i.l.bf16 %v16463_v2  ;;  %v11776_v19 = vpack.i.bf16 %v18359_v26, %v18358_v63  ;;  %v18366_v4 = vld [vmem:[#allocation191_spill] sm:$0xff] }
 0xbdd   : > { %11359 = vmatpush.xpose.msk.msra.mxu2 %vm869_vm1, %v18352_v55  ;;  %11361 = vmatpush.xpose.msk.msra.mxu3 %vm869_vm1, %v18353_v30  ;;  %v8886_v9 = vmul.f32 1.442695, %v8831_v17  ;;  %v8802_v55 = vsel %vm869_vm1, %v16515_v14, -inf  ;;  %v18364_v30 = vld [vmem:[#allocation121_spill] sm:$0xff]  ;;  %v18365_v17 = vld [vmem:[#allocation154_spill] sm:$0xff] }
 0xbde   : > { %11410 = vmatmul.msk.f32.vlgmr.msra.gmra.mxu1 %vm869_vm1, %v16458_v24 }
 0xbdf   : > { %9620 = vmatpush.msrb.mxu1 %v11769_v40  ;;  %12226 = vpow2.f32 %v8886_v9 }
 0xbe0   : > { %12228 = vpow2.f32 %v8876_v32 }
 0xbe2   : > { %v6706_v25 = vpop.permute.xlu0 %6705 }
 0xbe3   : > { %6751 = vrot.lane.b32.xlu1 %v6659_v38, %s12342_s24  ;;  %6797 = vst.msk [vmem:[%s13813_s20 + $0x28] sm:$0xff] %vm6791_vm3, %v6706_v25  ;;  %v6871_v38 = vpop.f32.mrf.mxu3 }
 0xbe4   : > { %v16484_v45 = vpop.f32.mrf.mxu2  ;;  %11352 = vmatmul.msk.f32.vlgmr.msrb.gmra.mxu2 %vm869_vm1, %v18354_v41  ;;  %11354 = vmatmul.msk.f32.vlgmr.msrb.gmra.mxu3 %vm869_vm1, %v18355_v57 }
 0xbe5   : > { %11367 = vmatpush.xpose.msk.msrb.mxu2 %vm869_vm1, %v18356_v13  ;;  %11369 = vmatpush.xpose.msk.msrb.mxu3 %vm869_vm1, %v18357_v27  ;;  %v16509_v8 = vpop.eup %12226 }
 0xbe6   : > { %11414 = vmatmul.msk.f32.vlgmr.msrb.gmra.mxu1 %vm869_vm1, %v16480_v58  ;;  %v8973_v20 = vsel %vm869_vm1, %v16509_v8, 0.0  ;;  %v16534_v25 = vpop.eup %12228 }
 0xbe7   : > { %v8958_v27 = vsel %vm869_vm1, %v16534_v25, 0.0 }
 0xbea   : > { %v6698_v59 = vpop.permute.xlu1 %6697  ;;  %v6712_v31 = vpop.permute.xlu0 %6711 }
 0xbeb   : > { %6793 = vst.msk [vmem:[%s13813_s20 + $0x8] sm:$0xff] %vm6791_vm3, %v6698_v59  ;;  %11777 = vrot.lane.b32.xlu1 %v11776_v19, %s12341_s23  ;;  %v6971_v34 = vpop.f32.mrf.mxu3  ;;  %v18370_v59 = vld [vmem:[#allocation86_spill] sm:$0xff] }
 0xbec   : > { %6800 = vst.msk [vmem:[%s13813_s20 + $0x40] sm:$0xff] %vm6791_vm3, %v6712_v31  ;;  %v6946_v47 = vpop.f32.mrf.mxu2  ;;  %11360 = vmatmul.msk.f32.vlgmr.msra.gmra.mxu2 %vm869_vm1, %v18360_v3  ;;  %11362 = vmatmul.msk.f32.vlgmr.msra.gmra.mxu3 %vm869_vm1, %v18361_v6  ;;  %v11781_v31 = vpack.i.bf16 %v18370_v59, %v18369_v11  ;;  %v18371_v3 = vld [vmem:[#allocation132_spill] sm:$0xff]  ;;  %v18373_v6 = vld [vmem:[#allocation118_spill] sm:$0xff] }
 0xbed   : > { %11375 = vmatpush.xpose.msk.msra.mxu2 %vm869_vm1, %v18362_v5  ;;  %11377 = vmatpush.xpose.msk.msra.mxu3 %vm869_vm1, %v18363_v7  ;;  %v11750_v7 = vunpack.i.h.bf16 %v16250_v46 }
 0xbf0   : > { %8974 = vadd.xlane.f32.xlu0 %v8973_v20 }
 0xbf2   : > { %v6704_v18 = vpop.permute.xlu1 %6703  ;;  %v6730_v40 = vpop.permute.xlu0 %6729 }
 0xbf3   : > { %6796 = vst.msk [vmem:[%s13813_s20 + $0x20] sm:$0xff] %vm6791_vm3, %v6704_v18  ;;  %7658 = vrot.lane.b32.xlu1 %v6871_v38, %s12342_s24  ;;  %8803 = vmax.xlane.f32.xlu2 %v8802_v55  ;;  %v18367_v38 = vld [vmem:[#allocation175_spill] sm:$0xff] }
 0xbf4   : > { %6809 = vst.msk [vmem:[%s13813_s20 + $0x88] sm:$0xff] %vm6791_vm3, %v6730_v40  ;;  %11368 = vmatmul.msk.f32.vlgmr.msrb.gmra.mxu2 %vm869_vm1, %v18364_v30  ;;  %11370 = vmatmul.msk.f32.vlgmr.msrb.gmra.mxu3 %vm869_vm1, %v18365_v17  ;;  %v7046_v9 = vpop.f32.mrf.mxu2 }
 0xbf5   : > { %11383 = vmatpush.xpose.msk.msrb.mxu2 %vm869_vm1, %v18366_v4  ;;  %11385 = vmatpush.xpose.msk.msrb.mxu3 %vm869_vm1, %v15406_v53  ;;  %v7071_v41 = vpop.f32.mrf.mxu3  ;;  %v18368_v53 = vld [vmem:[#allocation188_spill] sm:$0xff] }
 0xbfa   : > { %v6722_v57 = vpop.permute.xlu1 %6721  ;;  %v6736_v13 = vpop.permute.xlu0 %6735 }
 0xbfb   : > { %6805 = vst.msk [vmem:[%s13813_s20 + $0x68] sm:$0xff] %vm6791_vm3, %v6722_v57  ;;  %7664 = vrot.lane.b32.xlu1 %v6946_v47, %s12342_s24  ;;  %8959 = vadd.xlane.f32.xlu2 %v8958_v27  ;;  %v11744_v47 = vunpack.i.l.bf16 %v16259_v42 }
 0xbfc   : > { %6812 = vst.msk [vmem:[%s13813_s20 + $0xa0] sm:$0xff] %vm6791_vm3, %v6736_v13  ;;  %11376 = vmatmul.msk.f32.vlgmr.msra.gmra.mxu2 %vm869_vm1, %v18367_v38  ;;  %11378 = vmatmul.msk.f32.vlgmr.msra.gmra.mxu3 %vm869_vm1, %v18368_v53  ;;  %v7146_v63 = vpop.f32.mrf.mxu2 }
 0xbfd   : > { %11391 = vmatpush.xpose.msk.msra.mxu2 %vm869_vm1, %v15736_v37  ;;  %11393 = vmatpush.xpose.msk.msra.mxu3 %vm869_vm1, %v15845_v49  ;;  %v7171_v26 = vpop.f32.mrf.mxu3  ;;  %v18372_v49 = vld [vmem:[#allocation128_spill] sm:$0xff] }
 0xbfe   : > { %v11786_v5 = vpack.i.bf16 %v18373_v6, %v18372_v49 }
 0xc02   : > { %v6728_v19 = vpop.permute.xlu1 %6727 }
 0xc03   : > { %6808 = vst.msk [vmem:[%s13813_s20 + $0x80] sm:$0xff] %vm6791_vm3, %v6728_v19  ;;  %7682 = vrot.lane.b32.xlu1 %v7171_v26, %s12342_s24 }
 0xc04   : > { %11384 = vmatmul.msk.f32.vlgmr.msrb.gmra.mxu2 %vm869_vm1, %v18371_v3  ;;  %11782 = vrot.lane.b32.xlu0 %v11781_v31, %s12341_s23  ;;  %v7246_v37 = vpop.f32.mrf.mxu2 }
 0xc05   : > { %11386 = vmatmul.msk.f32.vlgmr.msrb.gmra.mxu3 %vm869_vm1, %v15546_v44  ;;  %9245 = vmatpush.msrb.mxu2 %v11739_v52 }
 0xc06   : > { %9270 = vmatpush.msrb.mxu3 %v11744_v47 }
 0xc0b   : > { %7688 = vrot.lane.b32.xlu1 %v7246_v37, %s12342_s24 }
 0xc0c   : > { %11392 = vmatmul.msk.f32.vlgmr.msra.gmra.mxu2 %vm869_vm1, %v15801_v50  ;;  %11787 = vrot.lane.b32.xlu0 %v11786_v5, %s12341_s23  ;;  %v7271_v50 = vpop.f32.mrf.mxu3  ;;  %v7346_v46 = vpop.f32.mrf.mxu2 }
 0xc0d   : > { %11394 = vmatmul.msk.f32.vlgmr.msra.gmra.mxu3 %vm869_vm1, %v15949_v0  ;;  %9345 = vmatpush.msra.mxu2 %v11745_v54 }
 0xc0e   : > { %9370 = vmatpush.msra.mxu3 %v11750_v7 }
 0xc13   : > { %7656 = vrot.lane.b32.xlu2 %v16484_v45, %s12342_s24 }
 0xc14   : > { %7666 = vrot.lane.b32.xlu0 %v6971_v34, %s12342_s24 }
 0xc1b   : > { %7674 = vrot.lane.b32.xlu2 %v7071_v41, %s12342_s24 }
 0xc1c   : > { %7672 = vrot.lane.b32.xlu0 %v7046_v9, %s12342_s24 }
 0xc1d   : > { %v8948_v44 = vpop.xlane.xlu2 %8947 }
 0xc23   : > { %7680 = vrot.lane.b32.xlu2 %v7146_v63, %s12342_s24 }
 0xc24   : > { %7690 = vrot.lane.b32.xlu0 %v7271_v50, %s12342_s24 }
 0xc25   : > { %v6738_v0 = vpop.permute.xlu2 %6737  ;;  %v8936_v45 = vpop.xlane.xlu0 %8935 }
 0xc26   : > { %6813 = vst.msk [vmem:[%s13813_s20 + $0xa8] sm:$0xff] %vm6791_vm3, %v6738_v0  ;;  %12230 = vrcp.f32 %v8936_v45 }
 0xc2c   : > { %7696 = vrot.lane.b32.xlu0 %v7346_v46, %s12342_s24  ;;  %v12231_v18 = vpop.eup %12230 }
 0xc2d   : > { %v6744_v42 = vpop.permute.xlu2 %6743  ;;  %v8963_v34 = vpop.xlane.xlu1 %8962  ;;  %v16592_v30 = vmul.f32 %v12231_v18, %v16391_v29 }
 0xc2e   : > { %6816 = vst.msk [vmem:[%s13813_s20 + $0xc0] sm:$0xff] %vm6791_vm3, %v6744_v42  ;;  %12232 = vrcp.f32 %v8963_v34 }
 0xc2f   : > { %12234 = vrcp.f32 %v8948_v44 }
 0xc34   : > { %v12233_v63 = vpop.eup %12232 }
 0xc35   : > { %v16616_v11 = vmul.f32 %v12233_v63, %v16395_v60 }
 0xc37   : > { %18374 = vst [vmem:[#allocation169_spill] sm:$0xff] %v16616_v11 }
 0xc38   : > { %v6754_v32 = vpop.permute.xlu0 %6753 }
 0xc39   : > { %6821 = vst.msk [vmem:[%s13813_s20 + $0xe8] sm:$0xff] %vm6791_vm3, %v6754_v32 }
 0xc3f   : > { %v7371_v20 = vpop.f32.mrf.mxu3 }
 0xc40   : > { %7698 = vrot.lane.b32.xlu2 %v7371_v20, %s12342_s24 }
 0xc45   : > { %v16588_v40 = vpop.permute.xlu1 %11772 }
 0xc46   : > { %v11775_v55 = vunpack.i.h.bf16 %v16588_v40 }
 0xc47   : > { %v16594_v17 = vpop.f32.mrf.mxu2  ;;  %v16596_v4 = vpop.f32.mrf.mxu3 }
 0xc48   : > { %9495 = vmatpush.msrb.mxu0 %v11775_v55  ;;  %v12235_v55 = vpop.eup %12234 }
 0xc49   : > { %11409 = vmatmul.msk.f32.vlgmr.msrb.gmra.mxu0 %vm869_vm1, %v16592_v30 }
 0xc4d   : > { %v6746_v9 = vpop.permute.xlu1 %6745 }
 0xc4e   : > { %6817 = vst.msk [vmem:[%s13813_s20 + $0xc8] sm:$0xff] %vm6791_vm3, %v6746_v9 }
 0xc4f   : > { %v16602_v41 = vpop.f32.mrf.mxu2  ;;  %v16604_v57 = vpop.f32.mrf.mxu3 }
 0xc55   : > { %v6752_v13 = vpop.permute.xlu1 %6751 }
 0xc56   : > { %6820 = vst.msk [vmem:[%s13813_s20 + $0xe0] sm:$0xff] %vm6791_vm3, %v6752_v13 }
 0xc57   : > { %v7809_v29 = vpop.f32.mrf.mxu2  ;;  %v7837_v27 = vpop.f32.mrf.mxu3 }
 0xc58   : > { %v16608_v38 = vmul.f32 0.35355338, %v7837_v27  ;;  %v16624_v3 = vmul.f32 0.35355338, %v7809_v29 }
 0xc5a   : > { %v8715_v53 = vsel %vm869_vm1, %v16608_v38, -inf  ;;  %v8712_v5 = vsel %vm869_vm1, %v16624_v3, -inf }
 0xc5b   : > { %8716 = vmax.xlane.f32.xlu0 %v8715_v53 }
 0xc5d   : > { %v16612_v26 = vpop.permute.xlu1 %11777 }
 0xc5e   : > { %v11779_v19 = vunpack.i.l.bf16 %v16612_v26 }
 0xc5f   : > { %v7921_v59 = vpop.f32.mrf.mxu2  ;;  %v7949_v31 = vpop.f32.mrf.mxu3 }
 0xc60   : > { %9720 = vmatpush.msra.mxu1 %v11779_v19  ;;  %v16618_v52 = vmul.f32 0.35355338, %v7949_v31  ;;  %v16631_v54 = vmul.f32 0.35355338, %v7921_v59  ;;  %v16654_v19 = vmul.f32 %v12235_v55, %v16385_v36 }
 0xc61   : > { %11418 = vmatmul.msk.f32.vlgmr.msra.gmra.mxu1 %vm869_vm1, %v16616_v11 }
 0xc62   : > { %v8727_v47 = vsel %vm869_vm1, %v16618_v52, -inf  ;;  %v8724_v32 = vsel %vm869_vm1, %v16631_v54, -inf }
 0xc63   : > { %8728 = vmax.xlane.f32.xlu0 %v8727_v47  ;;  %v8975_v50 = vpop.xlane.xlu0 %8974 }
 0xc64   : > { %12236 = vrcp.f32 %v8975_v50 }
 0xc65   : > { %v7659_v37 = vpop.permute.xlu1 %7658 }
 0xc66   : > { %7753 = vst.msk [vmem:[#allocation2 + $0x8] sm:$0xff] %vm6791_vm3, %v7659_v37  ;;  %v16627_v49 = vpop.xlane.xlu2 %8803 }
 0xc67   : > { %v8033_v60 = vpop.f32.mrf.mxu2  ;;  %v8061_v6 = vpop.f32.mrf.mxu3 }
 0xc68   : > { %v16642_v20 = vmul.f32 0.35355338, %v8033_v60  ;;  %v16664_v37 = vmul.f32 0.35355338, %v8061_v6 }
 0xc69   : > { %8713 = vmax.xlane.f32.xlu2 %v8712_v5 }
 0xc6a   : > { %v8736_v63 = vsel %vm869_vm1, %v16642_v20, -inf  ;;  %v12237_v36 = vpop.eup %12236  ;;  %v8739_v6 = vsel %vm869_vm1, %v16664_v37, -inf }
 0xc6d   : > { %v7665_v7 = vpop.permute.xlu1 %7664 }
 0xc6e   : > { %7756 = vst.msk [vmem:[#allocation2 + $0x20] sm:$0xff] %vm6791_vm3, %v7665_v7  ;;  %v16634_v0 = vpop.xlane.xlu2 %8959 }
 0xc6f   : > { %v8145_v46 = vpop.f32.mrf.mxu2  ;;  %v8173_v45 = vpop.f32.mrf.mxu3 }
 0xc70   : > { %v16636_v42 = vmul.f32 0.35355338, %v8145_v46  ;;  %v16644_v9 = vmul.f32 0.35355338, %v8173_v45 }
 0xc71   : > { %8725 = vmax.xlane.f32.xlu2 %v8724_v32 }
 0xc72   : > { %v8748_v34 = vsel %vm869_vm1, %v16636_v42, -inf  ;;  %v8751_v31 = vsel %vm869_vm1, %v16644_v9, -inf }
 0xc73   : > { %8749 = vmax.xlane.f32.xlu1 %v8748_v34  ;;  %v16676_v34 = vmul.f32 %v12237_v36, %v16509_v8 }
 0xc75   : > { %v7683_v18 = vpop.permute.xlu1 %7682  ;;  %18375 = vst [vmem:[#allocation68_spill] sm:$0xff] %v16676_v34 }
 0xc76   : > { %7765 = vst.msk [vmem:[#allocation2 + $0x68] sm:$0xff] %vm6791_vm3, %v7683_v18  ;;  %v16647_v44 = vpop.permute.xlu0 %11782  ;;  %v7657_v13 = vpop.permute.xlu2 %7656 }
 0xc77   : > { %v11785_v29 = vunpack.i.h.bf16 %v16647_v44  ;;  %7752 = vst.msk [vmem:[#allocation2] sm:$0xff] %vm6791_vm3, %v7657_v13  ;;  %v8257_v27 = vpop.f32.mrf.mxu2  ;;  %v8285_v53 = vpop.f32.mrf.mxu3 }
 0xc78   : > { %v16656_v59 = vmul.f32 0.35355338, %v8257_v27  ;;  %v16667_v5 = vmul.f32 0.35355338, %v8285_v53 }
 0xc79   : > { %8737 = vmax.xlane.f32.xlu2 %v8736_v63  ;;  %9595 = vmatpush.msra.mxu0 %v11785_v29 }
 0xc7a   : > { %11413 = vmatmul.msk.f32.vlgmr.msra.gmra.mxu0 %vm869_vm1, %v16654_v19  ;;  %v8760_v47 = vsel %vm869_vm1, %v16656_v59, -inf  ;;  %v8763_v18 = vsel %vm869_vm1, %v16667_v5, -inf }
 0xc7b   : > { %8752 = vmax.xlane.f32.xlu1 %v8751_v31  ;;  %8761 = vmax.xlane.f32.xlu0 %v8760_v47 }
 0xc7d   : > { %v7689_v60 = vpop.permute.xlu1 %7688 }
 0xc7e   : > { %7768 = vst.msk [vmem:[#allocation2 + $0x80] sm:$0xff] %vm6791_vm3, %v7689_v60  ;;  %v16669_v7 = vpop.permute.xlu0 %11787  ;;  %v7675_v50 = vpop.permute.xlu2 %7674 }
 0xc7f   : > { %v11789_v46 = vunpack.i.l.bf16 %v16669_v7  ;;  %7761 = vst.msk [vmem:[#allocation2 + $0x48] sm:$0xff] %vm6791_vm3, %v7675_v50  ;;  %v8369_v45 = vpop.f32.mrf.mxu2  ;;  %v8397_v32 = vpop.f32.mrf.mxu3 }
 0xc80   : > { %v16682_v55 = vmul.f32 0.35355338, %v8369_v45  ;;  %v16692_v47 = vmul.f32 0.35355338, %v8397_v32 }
 0xc81   : > { %8740 = vmax.xlane.f32.xlu2 %v8739_v6  ;;  %9820 = vmatpush.msrb.mxu1 %v11789_v46 }
 0xc82   : > { %11422 = vmatmul.msk.f32.vlgmr.msrb.gmra.mxu1 %vm869_vm1, %v16676_v34  ;;  %v8772_v8 = vsel %vm869_vm1, %v16682_v55, -inf  ;;  %v8775_v50 = vsel %vm869_vm1, %v16692_v47, -inf }
 0xc83   : > { %8764 = vmax.xlane.f32.xlu0 %v8763_v18 }
 0xc86   : > { %v7667_v13 = vpop.permute.xlu0 %7666  ;;  %v7681_v29 = vpop.permute.xlu2 %7680 }
 0xc87   : > { %7757 = vst.msk [vmem:[#allocation2 + $0x28] sm:$0xff] %vm6791_vm3, %v7667_v13  ;;  %v8481_v27 = vpop.f32.mrf.mxu2 }
 0xc88   : > { %v8509_v53 = vpop.f32.mrf.mxu3  ;;  %7764 = vst.msk [vmem:[#allocation2 + $0x60] sm:$0xff] %vm6791_vm3, %v7681_v29  ;;  %v16688_v63 = vmul.f32 0.35355338, %v8481_v27 }
 0xc89   : > { %8773 = vmax.xlane.f32.xlu2 %v8772_v8  ;;  %v16694_v60 = vmul.f32 0.35355338, %v8509_v53 }
 0xc8a   : > { %v8784_v31 = vsel %vm869_vm1, %v16688_v63, -inf }
 0xc8b   : > { %8785 = vmax.xlane.f32.xlu1 %v8784_v31  ;;  %v8787_v45 = vsel %vm869_vm1, %v16694_v60, -inf }
 0xc8e   : > { %v7673_v36 = vpop.permute.xlu0 %7672 }
 0xc8f   : > { %7760 = vst.msk [vmem:[#allocation2 + $0x40] sm:$0xff] %vm6791_vm3, %v7673_v36  ;;  %v8593_v6 = vpop.f32.mrf.mxu2 }
 0xc90   : > { %v8621_v46 = vpop.f32.mrf.mxu3  ;;  %v16703_v32 = vmul.f32 0.35355338, %v8593_v6 }
 0xc91   : > { %8776 = vmax.xlane.f32.xlu2 %v8775_v50  ;;  %v16701_v18 = vmul.f32 0.35355338, %v8621_v46 }
 0xc92   : > { %v8796_v53 = vsel %vm869_vm1, %v16703_v32, -inf }
 0xc93   : > { %8788 = vmax.xlane.f32.xlu1 %v8787_v45  ;;  %v8799_v29 = vsel %vm869_vm1, %v16701_v18, -inf }
 0xc96   : > { %v7691_v13 = vpop.permute.xlu0 %7690 }
 0xc97   : > { %7769 = vst.msk [vmem:[#allocation2 + $0x88] sm:$0xff] %vm6791_vm3, %v7691_v13 }
 0xc99   : > { %8800 = vmax.xlane.f32.xlu2 %v8799_v29 }
 0xc9a   : > { %v7699_v27 = vpop.permute.xlu2 %7698 }
 0xc9b   : > { %7773 = vst.msk [vmem:[#allocation2 + $0xa8] sm:$0xff] %vm6791_vm3, %v7699_v27  ;;  %8797 = vmax.xlane.f32.xlu1 %v8796_v53 }
 0xc9e   : > { %v7697_v8 = vpop.permute.xlu0 %7696 }
 0xc9f   : > { %7772 = vst.msk [vmem:[#allocation2 + $0xa0] sm:$0xff] %vm6791_vm3, %v7697_v8 }
 0xcce   : > { %v8717_v31 = vpop.xlane.xlu0 %8716 }
 0xccf   : > { %v8809_v36 = vsub.f32 %v16608_v38, %v8717_v31 }
 0xcd1   : > { %v8842_v50 = vmul.f32 1.442695, %v8809_v36 }
 0xcd3   : > { %12238 = vpow2.f32 %v8842_v50 }
 0xcd6   : > { %v8729_v46 = vpop.xlane.xlu0 %8728 }
 0xcd7   : > { %v8813_v45 = vsub.f32 %v16618_v52, %v8729_v46 }
 0xcd9   : > { %v16714_v6 = vpop.eup %12238  ;;  %v8850_v13 = vmul.f32 1.442695, %v8813_v45 }
 0xcda   : > { %v8907_v29 = vsel %vm869_vm1, %v16714_v6, 0.0 }
 0xcdb   : > { %12240 = vpow2.f32 %v8850_v13  ;;  %8908 = vadd.xlane.f32.xlu2 %v8907_v29 }
 0xcdc   : > { %v8714_v27 = vpop.xlane.xlu2 %8713 }
 0xcdd   : > { %v8808_v53 = vsub.f32 %v16624_v3, %v8714_v27 }
 0xcdf   : > { %v8840_v8 = vmul.f32 1.442695, %v8808_v53 }
 0xce1   : > { %12242 = vpow2.f32 %v8840_v8  ;;  %v16719_v11 = vpop.eup %12240 }
 0xce2   : > { %v8919_v38 = vsel %vm869_vm1, %v16719_v11, 0.0 }
 0xce3   : > { %8920 = vadd.xlane.f32.xlu2 %v8919_v38 }
 0xce4   : > { %v8726_v52 = vpop.xlane.xlu2 %8725 }
 0xce5   : > { %v8812_v31 = vsub.f32 %v16631_v54, %v8726_v52 }
 0xce6   : > { %v8750_v36 = vpop.xlane.xlu1 %8749 }
 0xce7   : > { %v16724_v50 = vpop.eup %12242  ;;  %v8848_v46 = vmul.f32 1.442695, %v8812_v31  ;;  %v8820_v45 = vsub.f32 %v16636_v42, %v8750_v36 }
 0xce8   : > { %v8904_v3 = vsel %vm869_vm1, %v16724_v50, 0.0 }
 0xce9   : > { %12244 = vpow2.f32 %v8848_v46  ;;  %v8864_v13 = vmul.f32 1.442695, %v8820_v45  ;;  %8905 = vadd.xlane.f32.xlu0 %v8904_v3 }
 0xceb   : > { %12246 = vpow2.f32 %v8864_v13 }
 0xcec   : > { %v8738_v29 = vpop.xlane.xlu2 %8737 }
 0xced   : > { %v8816_v27 = vsub.f32 %v16642_v20, %v8738_v29 }
 0xcee   : > { %v8762_v54 = vpop.xlane.xlu0 %8761  ;;  %v8753_v20 = vpop.xlane.xlu1 %8752 }
 0xcef   : > { %v16730_v53 = vpop.eup %12244  ;;  %v8856_v8 = vmul.f32 1.442695, %v8816_v27 }
 0xcf0   : > { %v8916_v38 = vsel %vm869_vm1, %v16730_v53, 0.0 }
 0xcf1   : > { %v16734_v52 = vpop.eup %12246  ;;  %12248 = vpow2.f32 %v8856_v8  ;;  %8917 = vadd.xlane.f32.xlu1 %v8916_v38 }
 0xcf2   : > { %v8940_v42 = vsel %vm869_vm1, %v16734_v52, 0.0 }
 0xcf3   : > { %8941 = vadd.xlane.f32.xlu0 %v8940_v42 }
 0xcf4   : > { %v8741_v31 = vpop.xlane.xlu2 %8740 }
 0xcf5   : > { %v8817_v36 = vsub.f32 %v16664_v37, %v8741_v31  ;;  %v8821_v37 = vsub.f32 %v16644_v9, %v8753_v20  ;;  %v18376_v9 = vld [vmem:[#allocation131_spill] sm:$0xff] }
 0xcf6   : > { %v8765_v3 = vpop.xlane.xlu0 %8764  ;;  %v11791_v20 = vpack.i.bf16 %v18245_v16, %v18376_v9 }
 0xcf7   : > { %v16739_v46 = vpop.eup %12248  ;;  %v8858_v45 = vmul.f32 1.442695, %v8817_v36  ;;  %v8825_v13 = vsub.f32 %v16667_v5, %v8765_v3  ;;  %v8677_v5 = vpop.f32.mrf.mxu1 }
 0xcf8   : > { %v8928_v29 = vsel %vm869_vm1, %v16739_v46, 0.0 }
 0xcf9   : > { %12250 = vpow2.f32 %v8858_v45  ;;  %8929 = vadd.xlane.f32.xlu1 %v8928_v29  ;;  %v8874_v27 = vmul.f32 1.442695, %v8825_v13  ;;  %v8866_v13 = vmul.f32 1.442695, %v8821_v37  ;;  %v16755_v29 = vmul.f32 0.35355338, %v8677_v5 }
 0xcfb   : > { %12252 = vpow2.f32 %v8874_v27 }
 0xcfc   : > { %v8774_v8 = vpop.xlane.xlu2 %8773 }
 0xcfd   : > { %v8828_v38 = vsub.f32 %v16682_v55, %v8774_v8  ;;  %v8824_v8 = vsub.f32 %v16656_v59, %v8762_v54 }
 0xcfe   : > { %v8786_v34 = vpop.xlane.xlu1 %8785 }
 0xcff   : > { %v16745_v42 = vpop.eup %12250  ;;  %v8880_v31 = vmul.f32 1.442695, %v8828_v38  ;;  %v8832_v45 = vsub.f32 %v16688_v63, %v8786_v34  ;;  %v8805_v34 = vsel %vm869_vm1, %v16755_v29, -inf  ;;  %v8834_v63 = vsub.f32 %v16120_v23, %v16311_v51 }
 0xd00   : > { %v8931_v36 = vsel %vm869_vm1, %v16745_v42, 0.0  ;;  %v8872_v37 = vmul.f32 1.442695, %v8824_v8  ;;  %v8835_v23 = vsub.f32 %v16125_v48, %v16322_v62 }
 0xd01   : > { %8932 = vadd.xlane.f32.xlu2 %v8931_v36  ;;  %v16750_v3 = vpop.eup %12252  ;;  %12254 = vpow2.f32 %v8880_v31  ;;  %v8888_v27 = vmul.f32 1.442695, %v8832_v45  ;;  %v8892_v59 = vmul.f32 1.442695, %v8834_v63 }
 0xd02   : > { %v8955_v55 = vsel %vm869_vm1, %v16750_v3, 0.0  ;;  %12256 = vpow2.f32 %v8866_v13  ;;  %v8894_v9 = vmul.f32 1.442695, %v8835_v23 }
 0xd03   : > { %8956 = vadd.xlane.f32.xlu1 %v8955_v55  ;;  %12258 = vpow2.f32 %v8888_v27 }
 0xd04   : > { %12260 = vpow2.f32 %v8872_v37  ;;  %v8777_v62 = vpop.xlane.xlu2 %8776 }
 0xd05   : > { %12262 = vpow2.f32 %v8892_v59  ;;  %v8829_v8 = vsub.f32 %v16692_v47, %v8777_v62  ;;  %v8838_v47 = vsub.f32 %v16515_v14, %v16627_v49 }
 0xd06   : > { %v8789_v31 = vpop.xlane.xlu1 %8788 }
 0xd07   : > { %11792 = vrot.lane.b32.xlu0 %v11791_v20, %s12341_s23  ;;  %v16761_v38 = vpop.eup %12254  ;;  %v8833_v54 = vsub.f32 %v16694_v60, %v8789_v31  ;;  %v8882_v37 = vmul.f32 1.442695, %v8829_v8  ;;  %v8830_v31 = vsub.f32 %v16196_v39, %v16330_v15  ;;  %v8900_v23 = vmul.f32 1.442695, %v8838_v47 }
 0xd08   : > { %v8964_v16 = vsel %vm869_vm1, %v16761_v38, 0.0  ;;  %v16769_v36 = vpop.eup %12256  ;;  %v11796_v39 = vpack.i.bf16 %v18254_v33, %v18036_v12  ;;  %v18378_v12 = vld [vmem:[#allocation38_spill] sm:$0xff] }
 0xd09   : > { %8806 = vmax.xlane.f32.xlu2 %v8805_v34  ;;  %v16772_v5 = vpop.eup %12258  ;;  %v8943_v45 = vsel %vm869_vm1, %v16769_v36, 0.0  ;;  %v8890_v51 = vmul.f32 1.442695, %v8833_v54  ;;  %v8884_v59 = vmul.f32 1.442695, %v8830_v31 }
 0xd0a   : > { %v8976_v13 = vsel %vm869_vm1, %v16772_v5, 0.0  ;;  %v16780_v55 = vpop.eup %12260 }
 0xd0b   : > { %8965 = vadd.xlane.f32.xlu1 %v8964_v16  ;;  %12264 = vpow2.f32 %v8890_v51  ;;  %v16782_v60 = vpop.eup %12262  ;;  %v8952_v20 = vsel %vm869_vm1, %v16780_v55, 0.0 }
 0xd0c   : > { %12266 = vpow2.f32 %v8894_v9  ;;  %v8982_v27 = vsel %vm869_vm1, %v16782_v60, 0.0  ;;  %v8801_v51 = vpop.xlane.xlu2 %8800 }
 0xd0d   : > { %12268 = vpow2.f32 %v8882_v37  ;;  %v8837_v9 = vsub.f32 %v16701_v18, %v8801_v51  ;;  %v16826_v37 = vpop.f32.mrf.mxu0 }
 0xd0e   : > { %12270 = vpow2.f32 %v8884_v59  ;;  %v8798_v62 = vpop.xlane.xlu1 %8797 }
 0xd0f   : > { %12272 = vpow2.f32 %v8900_v23  ;;  %v8898_v14 = vmul.f32 1.442695, %v8837_v9  ;;  %v8836_v8 = vsub.f32 %v16703_v32, %v8798_v62 }
 0xd11   : > { %8944 = vadd.xlane.f32.xlu2 %v8943_v45  ;;  %v16788_v48 = vpop.eup %12264  ;;  %12274 = vpow2.f32 %v8898_v14  ;;  %v9322_v14 = vpop.f32.mrf.mxu1 }
 0xd12   : > { %v16791_v34 = vpop.eup %12266  ;;  %v8979_v63 = vsel %vm869_vm1, %v16788_v48, 0.0 }
 0xd13   : > { %8977 = vadd.xlane.f32.xlu1 %v8976_v13  ;;  %v8985_v16 = vsel %vm869_vm1, %v16791_v34, 0.0  ;;  %v16799_v54 = vpop.eup %12268 }
 0xd14   : > { %v8967_v45 = vsel %vm869_vm1, %v16799_v54, 0.0  ;;  %v16805_v13 = vpop.eup %12270 }
 0xd15   : > { %v8970_v15 = vsel %vm869_vm1, %v16805_v13, 0.0  ;;  %v16813_v49 = vpop.eup %12272  ;;  %v16834_v23 = vpop.f32.mrf.mxu0 }
 0xd17   : > { %v16819_v18 = vpop.eup %12274 }
 0xd18   : > { %v8991_v33 = vsel %vm869_vm1, %v16819_v18, 0.0 }
 0xd19   : > { %8953 = vadd.xlane.f32.xlu2 %v8952_v20  ;;  %v18377_v20 = vld [vmem:[#allocation31_spill] sm:$0xff] }
 0xd1b   : > { %8983 = vadd.xlane.f32.xlu1 %v8982_v27  ;;  %v8994_v27 = vsel %vm869_vm1, %v16813_v49, 0.0 }
 0xd21   : > { %8980 = vadd.xlane.f32.xlu2 %v8979_v63 }
 0xd23   : > { %8986 = vadd.xlane.f32.xlu1 %v8985_v16  ;;  %v8896_v16 = vmul.f32 1.442695, %v8836_v8  ;;  %v16861_v8 = vpop.f32.mrf.mxu1 }
 0xd31   : > { %8968 = vadd.xlane.f32.xlu0 %v8967_v45  ;;  %v11760_v45 = vunpack.i.h.bf16 %v16353_v10  ;;  %v11770_v10 = vunpack.i.h.bf16 %v16463_v2 }
 0xd39   : > { %8971 = vadd.xlane.f32.xlu0 %v8970_v15  ;;  %11797 = vrot.lane.b32.xlu2 %v11796_v39, %s12341_s23 }
 0xd3c   : > { %11802 = vrot.lane.b32.xlu1 %v18377_v20, %s12341_s23  ;;  %v16848_v20 = vpop.f32.mrf.mxu0 }
 0xd41   : > { %8995 = vadd.xlane.f32.xlu0 %v8994_v27 }
 0xd44   : > { %11807 = vrot.lane.b32.xlu1 %v18378_v12, %s12341_s23  ;;  %v9597_v12 = vpop.f32.mrf.mxu0 }
 0xd49   : > { %8992 = vadd.xlane.f32.xlu0 %v8991_v33 }
 0xd4e   : > { %v8909_v63 = vpop.xlane.xlu2 %8908 }
 0xd4f   : > { %12276 = vrcp.f32 %v8909_v63 }
 0xd50   : > { %12278 = vpow2.f32 %v8896_v16 }
 0xd55   : > { %v12277_v31 = vpop.eup %12276 }
 0xd56   : > { %v16829_v59 = vmul.f32 %v12277_v31, %v16714_v6  ;;  %v8921_v47 = vpop.xlane.xlu2 %8920  ;;  %v16836_v51 = vpop.eup %12278 }
 0xd57   : > { %12280 = vrcp.f32 %v8921_v47  ;;  %v8988_v39 = vsel %vm869_vm1, %v16836_v51, 0.0  ;;  %v16873_v31 = vpop.f32.mrf.mxu1 }
 0xd58   : > { %11400 = vmatmul.msk.f32.vlgmr.msrb.gmra.mxu3 %vm869_vm1, %v16829_v59 }
 0xd59   : > { %9470 = vmatpush.msrb.mxu3 %v11760_v45 }
 0xd5c   : > { %v8906_v32 = vpop.xlane.xlu0 %8905 }
 0xd5d   : > { %12282 = vrcp.f32 %v8906_v32  ;;  %9975 = vrot.lane.b32.xlu0 %v18291_v61, %s12341_s23  ;;  %v12281_v9 = vpop.eup %12280 }
 0xd5e   : > { %v16841_v6 = vmul.f32 %v12281_v9, %v16719_v11  ;;  %v11754_v11 = vunpack.i.l.bf16 %v16369_v22 }
 0xd60   : > { %11404 = vmatmul.msk.f32.vlgmr.msra.gmra.mxu3 %vm869_vm1, %v16841_v6 }
 0xd61   : > { %9570 = vmatpush.msra.mxu3 %v11770_v10 }
 0xd62   : > { %8989 = vadd.xlane.f32.xlu2 %v8988_v39 }
 0xd63   : > { %v12283_v15 = vpop.eup %12282 }
 0xd64   : > { %v16851_v61 = vmul.f32 %v12283_v15, %v16724_v50  ;;  %v8918_v27 = vpop.xlane.xlu1 %8917  ;;  %v11764_v50 = vunpack.i.l.bf16 %v16377_v43  ;;  %v11774_v43 = vunpack.i.l.bf16 %v16588_v40  ;;  %v11780_v15 = vunpack.i.h.bf16 %v16612_v26 }
 0xd65   : > { %12284 = vrcp.f32 %v8918_v27  ;;  %10063 = vrot.lane.b32.xlu0 %v9322_v14, %s12343_s25  ;;  %v11784_v14 = vunpack.i.l.bf16 %v16647_v44 }
 0xd66   : > { %11399 = vmatmul.msk.f32.vlgmr.msrb.gmra.mxu2 %vm869_vm1, %v16851_v61  ;;  %v8942_v22 = vpop.xlane.xlu0 %8941 }
 0xd67   : > { %9445 = vmatpush.msrb.mxu2 %v11754_v11 }
 0xd6b   : > { %v12285_v2 = vpop.eup %12284 }
 0xd6c   : > { %v16858_v33 = vmul.f32 %v12285_v2, %v16730_v53  ;;  %v8930_v62 = vpop.xlane.xlu1 %8929  ;;  %v18379_v2 = vld [vmem:[#allocation51_spill] sm:$0xff] }
 0xd6d   : > { %12286 = vrcp.f32 %v8930_v62  ;;  %10085 = vrot.lane.b32.xlu0 %v9597_v12, %s12343_s25 }
 0xd6e   : > { %11403 = vmatmul.msk.f32.vlgmr.msra.gmra.mxu2 %vm869_vm1, %v16858_v33  ;;  %12288 = vrcp.f32 %v16634_v0 }
 0xd6f   : > { %9545 = vmatpush.msra.mxu2 %v11764_v50  ;;  %12290 = vrcp.f32 %v8942_v22  ;;  %v11790_v50 = vunpack.i.h.bf16 %v16669_v7 }
 0xd73   : > { %v12287_v63 = vpop.eup %12286 }
 0xd74   : > { %v16868_v53 = vmul.f32 %v12287_v63, %v16739_v46  ;;  %v8933_v16 = vpop.xlane.xlu2 %8932  ;;  %v12289_v47 = vpop.eup %12288 }
 0xd75   : > { %12292 = vrcp.f32 %v8933_v16  ;;  %v12291_v45 = vpop.eup %12290  ;;  %v16878_v46 = vmul.f32 %v12289_v47, %v16534_v25  ;;  %v16895_v25 = vpop.f32.mrf.mxu1 }
 0xd76   : > { %11407 = vmatmul.msk.f32.vlgmr.msrb.gmra.mxu2 %vm869_vm1, %v16868_v53  ;;  %v16881_v40 = vmul.f32 %v12291_v45, %v16734_v52  ;;  %v8957_v27 = vpop.xlane.xlu1 %8956 }
 0xd77   : > { %9645 = vmatpush.msrb.mxu2 %v11774_v43 }
 0xd79   : > { %v11793_v32 = vpop.permute.xlu0 %11792 }
 0xd7a   : > { %v11795_v9 = vunpack.i.h.bf16 %v11793_v32  ;;  %10000 = vrot.lane.b32.xlu2 %v18275_v35, %s12341_s23  ;;  %v11794_v7 = vunpack.i.l.bf16 %v11793_v32 }
 0xd7b   : > { %v12293_v0 = vpop.eup %12292 }
 0xd7c   : > { %v16884_v10 = vmul.f32 %v12293_v0, %v16745_v42  ;;  %9695 = vmatpush.msrb.mxu0 %v11795_v9  ;;  %v8807_v39 = vpop.xlane.xlu2 %8806 }
 0xd7d   : > { %v8839_v11 = vsub.f32 %v16755_v29, %v8807_v39  ;;  %11417 = vmatmul.msk.f32.vlgmr.msrb.gmra.mxu0 %vm869_vm1, %v16878_v46  ;;  %v16903_v29 = vpop.f32.mrf.mxu1 }
 0xd7e   : > { %11408 = vmatmul.msk.f32.vlgmr.msrb.gmra.mxu3 %vm869_vm1, %v16884_v10  ;;  %11411 = vmatmul.msk.f32.vlgmr.msra.gmra.mxu2 %vm869_vm1, %v16881_v40  ;;  %v8966_v52 = vpop.xlane.xlu1 %8965 }
 0xd7f   : > { %v8902_v35 = vmul.f32 1.442695, %v8839_v11  ;;  %9670 = vmatpush.msrb.mxu3 %v11780_v15  ;;  %9745 = vmatpush.msra.mxu2 %v11784_v14  ;;  %v18380_v14 = vld [vmem:[#allocation151_spill] sm:$0xff] }
 0xd81   : > { %12294 = vpow2.f32 %v8902_v35 }
 0xd82   : > { %10061 = vrot.lane.b32.xlu2 %v16826_v37, %s12343_s25 }
 0xd84   : > { %v8945_v26 = vpop.xlane.xlu2 %8944 }
 0xd85   : > { %12296 = vrcp.f32 %v8945_v26  ;;  %v9822_v63 = vpop.f32.mrf.mxu1 }
 0xd86   : > { %12298 = vrcp.f32 %v8957_v27  ;;  %v8978_v16 = vpop.xlane.xlu1 %8977 }
 0xd87   : > { %v16899_v44 = vpop.eup %12294 }
 0xd88   : > { %v8997_v42 = vsel %vm869_vm1, %v16899_v44, 0.0 }
 0xd89   : > { %8998 = vadd.xlane.f32.xlu1 %v8997_v42 }
 0xd8a   : > { %7702 = vrot.lane.b32.xlu2 %v18379_v2, %s12342_s24 }
 0xd8b   : > { %v12297_v12 = vpop.eup %12296 }
 0xd8c   : > { %v16908_v62 = vmul.f32 %v12297_v12, %v16769_v36  ;;  %v8954_v37 = vpop.xlane.xlu2 %8953  ;;  %v12299_v22 = vpop.eup %12298 }
 0xd8d   : > { %12300 = vrcp.f32 %v8954_v37  ;;  %v16915_v47 = vmul.f32 %v12299_v22, %v16750_v3 }
 0xd8e   : > { %11412 = vmatmul.msk.f32.vlgmr.msra.gmra.mxu3 %vm869_vm1, %v16908_v62  ;;  %12302 = vrcp.f32 %v8966_v52  ;;  %v8984_v0 = vpop.xlane.xlu1 %8983 }
 0xd8f   : > { %9770 = vmatpush.msra.mxu3 %v11790_v50  ;;  %12304 = vrcp.f32 %v8978_v16 }
 0xd92   : > { %10103 = vrot.lane.b32.xlu2 %v9822_v63, %s12343_s25 }
 0xd93   : > { %v12301_v43 = vpop.eup %12300 }
 0xd94   : > { %v16918_v36 = vmul.f32 %v12301_v43, %v16780_v55  ;;  %v8981_v45 = vpop.xlane.xlu2 %8980  ;;  %v12303_v9 = vpop.eup %12302 }
 0xd95   : > { %v16927_v3 = vmul.f32 %v12303_v9, %v16761_v38  ;;  %v12305_v32 = vpop.eup %12304 }
 0xd96   : > { %11415 = vmatmul.msk.f32.vlgmr.msrb.gmra.mxu2 %vm869_vm1, %v16918_v36  ;;  %11416 = vmatmul.msk.f32.vlgmr.msrb.gmra.mxu3 %vm869_vm1, %v16915_v47  ;;  %v8987_v27 = vpop.xlane.xlu1 %8986 }
 0xd97   : > { %9845 = vmatpush.msrb.mxu2 %v11794_v7 }
 0xd9a   : > { %7704 = vrot.lane.b32.xlu2 %v16594_v17, %s12342_s24  ;;  %v16936_v17 = vmul.f32 %v12305_v32, %v16772_v5 }
 0xd9c   : > { %v11798_v55 = vpop.permute.xlu2 %11797 }
 0xd9d   : > { %v11800_v39 = vunpack.i.h.bf16 %v11798_v55  ;;  %v11799_v15 = vunpack.i.l.bf16 %v11798_v55  ;;  %v10217_v55 = vld [vmem:[%s17605_s5] sm:$0xff] }
 0xd9e   : > { %11419 = vmatmul.msk.f32.vlgmr.msra.gmra.mxu2 %vm869_vm1, %v16927_v3 }
 0xd9f   : > { %9795 = vmatpush.msra.mxu0 %v11800_v39  ;;  %9870 = vmatpush.msrb.mxu3 %v11799_v15 }
 0xda2   : > { %7708 = vrot.lane.b32.xlu1 %v18380_v14, %s12342_s24  ;;  %10069 = vrot.lane.b32.xlu2 %v16834_v23, %s12343_s25 }
 0xda4   : > { %v8969_v38 = vpop.xlane.xlu0 %8968 }
 0xda5   : > { %12306 = vrcp.f32 %v8969_v38 }
 0xda6   : > { %11423 = vmatmul.msk.f32.vlgmr.msrb.gmra.mxu2 %vm869_vm1, %v16936_v17  ;;  %12308 = vrcp.f32 %v8987_v27 }
 0xda7   : > { %12310 = vrcp.f32 %v8981_v45 }
 0xdab   : > { %v12307_v11 = vpop.eup %12306 }
 0xdac   : > { %v16941_v35 = vmul.f32 %v12307_v11, %v16799_v54  ;;  %v8972_v26 = vpop.xlane.xlu0 %8971  ;;  %v12309_v52 = vpop.eup %12308 }
 0xdad   : > { %12312 = vrcp.f32 %v8972_v26  ;;  %v12311_v2 = vpop.eup %12310  ;;  %v16946_v12 = vmul.f32 %v12309_v52, %v16791_v34 }
 0xdae   : > { %11420 = vmatmul.msk.f32.vlgmr.msra.gmra.mxu3 %vm869_vm1, %v16941_v35  ;;  %v11803_v5 = vpop.permute.xlu1 %11802  ;;  %12314 = vrcp.f32 %v8984_v0  ;;  %v16951_v54 = vmul.f32 %v12311_v2, %v16788_v48  ;;  %v10218_v0 = vld [vmem:[%s17605_s5 + $0x8] sm:$0xff] }
 0xdaf   : > { %v11805_v23 = vunpack.i.h.bf16 %v11803_v5  ;;  %v11804_v42 = vunpack.i.l.bf16 %v11803_v5 }
 0xdb1   : > { %9895 = vmatpush.msrb.mxu0 %v11804_v42  ;;  %9920 = vmatpush.msra.mxu1 %v11805_v23 }
 0xdb2   : > { %11426 = vmatmul.msk.f32.vlgmr.msra.gmra.mxu1 %vm869_vm1, %v16946_v12 }
 0xdb3   : > { %v12313_v37 = vpop.eup %12312 }
 0xdb4   : > { %v16954_v50 = vmul.f32 %v12313_v37, %v16805_v13  ;;  %v8996_v22 = vpop.xlane.xlu0 %8995  ;;  %v12315_v43 = vpop.eup %12314  ;;  %v10220_v13 = vld [vmem:[%s17605_s5 + $0x18] sm:$0xff] }
 0xdb5   : > { %v16961_v45 = vmul.f32 %v12315_v43, %v16782_v60  ;;  %v10219_v60 = vld [vmem:[%s17605_s5 + $0x10] sm:$0xff] }
 0xdb6   : > { %11421 = vmatmul.msk.f32.vlgmr.msra.gmra.mxu0 %vm869_vm1, %v16954_v50  ;;  %11424 = vmatmul.msk.f32.vlgmr.msrb.gmra.mxu3 %vm869_vm1, %v16951_v54  ;;  %v11808_v34 = vpop.permute.xlu1 %11807 }
 0xdb7   : > { %v11810_v63 = vunpack.i.h.bf16 %v11808_v34  ;;  %v11809_v16 = vunpack.i.l.bf16 %v11808_v34 }
 0xdb9   : > { %9945 = vmatpush.msra.mxu2 %v11809_v16  ;;  %9970 = vmatpush.msra.mxu3 %v11810_v63 }
 0xdbb   : > { %11469 = vmatpush.msrb.mxu2 %v10220_v13  ;;  %11470 = vmatpush.msrb.mxu3 %v10220_v13 }
 0xdbc   : > { %v8993_v48 = vpop.xlane.xlu0 %8992 }
 0xdbd   : > { %12316 = vrcp.f32 %v8993_v48  ;;  %11471 = vmatpush.msrb.mxu2 %v10219_v60  ;;  %11472 = vmatpush.msrb.mxu3 %v10219_v60 }
 0xdbe   : > { %11425 = vmatmul.msk.f32.vlgmr.msrb.gmra.mxu0 %vm869_vm1, %v16961_v45  ;;  %12318 = vrcp.f32 %v8996_v22 }
 0xdbf   : > { %11473 = vmatpush.msrb.mxu2 %v10218_v0  ;;  %11474 = vmatpush.msrb.mxu3 %v10218_v0 }
 0xdc1   : > { %11475 = vmatpush.msrb.mxu2 %v10217_v55  ;;  %11476 = vmatpush.msrb.mxu3 %v10217_v55 }
 0xdc3   : > { %v12317_v7 = vpop.eup %12316 }
 0xdc4   : > { %v16969_v9 = vmul.f32 %v12317_v7, %v16819_v18  ;;  %v12319_v18 = vpop.eup %12318 }
 0xdc5   : > { %v16983_v39 = vmul.f32 %v12319_v18, %v16813_v49  ;;  %v18381_v18 = vld [vmem:[#allocation193_spill] sm:$0xff] }
 0xdc6   : > { %11428 = vmatmul.msk.f32.vlgmr.msra.gmra.mxu3 %vm869_vm1, %v16969_v9 }
 0xdcf   : > { %v9976_v15 = vpop.permute.xlu0 %9975 }
 0xdd0   : > { %9995 = vmatpush.msra.mxu0 %v9976_v15 }
 0xdd1   : > { %11429 = vmatmul.msk.f32.vlgmr.msra.gmra.mxu0 %vm869_vm1, %v16983_v39 }
 0xdd2   : > { %10333 = vmatpush.msrb.mxu0 %v10220_v13 }
 0xdd4   : > { %10334 = vmatpush.msrb.mxu0 %v10219_v60 }
 0xdd5   : > { %v8990_v32 = vpop.xlane.xlu2 %8989 }
 0xdd6   : > { %12320 = vrcp.f32 %v8990_v32  ;;  %10335 = vmatpush.msrb.mxu0 %v10218_v0 }
 0xdd7   : > { %v10064_v14 = vpop.permute.xlu0 %10063 }
 0xdd8   : > { %10156 = vst.msk [vmem:[#allocation2 + $0x18] sm:$0xff] %vm9192_vm4, %v10064_v14  ;;  %10336 = vmatpush.msrb.mxu0 %v10217_v55 }
 0xddb   : > { %v9272_v23 = vpop.f32.mrf.mxu3 }
 0xddc   : > { %v12321_v38 = vpop.eup %12320 }
 0xddd   : > { %v16989_v27 = vmul.f32 %v12321_v38, %v16836_v51  ;;  %v10001_v49 = vpop.permute.xlu2 %10000 }
 0xdde   : > { %10020 = vmatpush.msrb.mxu1 %v10001_v49 }
 0xddf   : > { %v10086_v11 = vpop.permute.xlu0 %10085  ;;  %11427 = vmatmul.msk.f32.vlgmr.msra.gmra.mxu2 %vm869_vm1, %v16989_v27 }
 0xde0   : > { %10167 = vst.msk [vmem:[#allocation2 + $0x70] sm:$0xff] %vm9192_vm4, %v10086_v11 }
 0xde3   : > { %v9372_v63 = vpop.f32.mrf.mxu3 }
 0xde5   : > { %v10062_v26 = vpop.permute.xlu2 %10061 }
 0xde6   : > { %10155 = vst.msk [vmem:[#allocation2 + $0x10] sm:$0xff] %vm9192_vm4, %v10062_v26 }
 0xde7   : > { %v16995_v52 = vld [vmem:[#allocation2 + $0x70] sm:$0xff] }
 0xde8   : > { %11445 = vmatmul.msk.f32.vlgmr.msrb.gmra.mxu2 %vm446_vm0, %v16995_v52 }
 0xde9   : > { %v9247_v5 = vpop.f32.mrf.mxu2 }
 0xdea   : > { %10057 = vrot.lane.b32.xlu0 %v9247_v5, %s12343_s25 }
 0xded   : > { %v7703_v51 = vpop.permute.xlu2 %7702 }
 0xdee   : > { %7775 = vst.msk [vmem:[#allocation2 + $0xb8] sm:$0xff] %vm6791_vm3, %v7703_v51 }
 0xdf1   : > { %v9347_v42 = vpop.f32.mrf.mxu2 }
 0xdf2   : > { %10059 = vrot.lane.b32.xlu0 %v9272_v23, %s12343_s25  ;;  %10065 = vrot.lane.b32.xlu1 %v9347_v42, %s12343_s25  ;;  %v18383_v42 = vld [vmem:[#allocation196_spill] sm:$0xff] }
 0xdf5   : > { %v10104_v2 = vpop.permute.xlu2 %10103 }
 0xdf6   : > { %10176 = vst.msk [vmem:[#allocation2 + $0xb8] sm:$0xff] %vm9192_vm4, %v10104_v2 }
 0xdfa   : > { %10087 = vrot.lane.b32.xlu0 %v16895_v25, %s12343_s25  ;;  %v9447_v25 = vpop.f32.mrf.mxu2 }
 0xdfc   : > { %v8999_v37 = vpop.xlane.xlu1 %8998 }
 0xdfd   : > { %12322 = vrcp.f32 %v8999_v37  ;;  %v7705_v22 = vpop.permute.xlu2 %7704  ;;  %v17006_v34 = vld [vmem:[#allocation2 + $0xb8] sm:$0xff] }
 0xdfe   : > { %7776 = vst.msk [vmem:[#allocation2 + $0xc0] sm:$0xff] %vm6791_vm3, %v7705_v22  ;;  %11454 = vmatmul.msk.f32.vlgmr.msrb.gmra.mxu3 %vm446_vm0, %v17006_v34  ;;  %v17072_v22 = vld [vmem:[#allocation2 + $0x10] sm:$0xff] }
 0xe01   : > { %v9472_v13 = vpop.f32.mrf.mxu3 }
 0xe02   : > { %7706 = vrot.lane.b32.xlu0 %v16596_v4, %s12342_s24  ;;  %v9547_v7 = vpop.f32.mrf.mxu2 }
 0xe03   : > { %v12323_v16 = vpop.eup %12322 }
 0xe04   : > { %v17014_v43 = vmul.f32 %v12323_v16, %v16899_v44 }
 0xe05   : > { %v10070_v48 = vpop.permute.xlu2 %10069 }
 0xe06   : > { %10159 = vst.msk [vmem:[#allocation2 + $0x30] sm:$0xff] %vm9192_vm4, %v10070_v48  ;;  %11430 = vmatmul.msk.f32.vlgmr.msrb.gmra.mxu1 %vm869_vm1, %v17014_v43  ;;  %v17086_v48 = vld [vmem:[#allocation2 + $0x18] sm:$0xff] }
 0xe0a   : > { %10071 = vrot.lane.b32.xlu0 %v16861_v8, %s12343_s25  ;;  %v9697_v8 = vpop.f32.mrf.mxu0 }
 0xe11   : > { %v9572_v60 = vpop.f32.mrf.mxu3 }
 0xe12   : > { %10067 = vrot.lane.b32.xlu0 %v9372_v63, %s12343_s25 }
 0xe14   : > { %v7709_v4 = vpop.permute.xlu1 %7708 }
 0xe15   : > { %7778 = vst.msk [vmem:[#allocation2 + $0xd0] sm:$0xff] %vm6791_vm3, %v7709_v4 }
 0xe19   : > { %v9647_v44 = vpop.f32.mrf.mxu2  ;;  %v9672_v0 = vpop.f32.mrf.mxu3 }
 0xe1a   : > { %10089 = vrot.lane.b32.xlu1 %v9647_v44, %s12343_s25  ;;  %10091 = vrot.lane.b32.xlu2 %v9672_v0, %s12343_s25 }
 0xe21   : > { %v9747_v55 = vpop.f32.mrf.mxu2 }
 0xe22   : > { %7710 = vrot.lane.b32.xlu2 %v18381_v18, %s12342_s24 }
 0xe29   : > { %v9847_v15 = vpop.f32.mrf.mxu2 }
 0xe2a   : > { %10105 = vrot.lane.b32.xlu1 %v9847_v15, %s12343_s25 }
 0xe2f   : > { %v9922_v38 = vpop.f32.mrf.mxu1 }
 0xe31   : > { %v9772_v32 = vpop.f32.mrf.mxu3 }
 0xe32   : > { %10073 = vrot.lane.b32.xlu1 %v9447_v25, %s12343_s25 }
 0xe33   : > { %v9797_v14 = vpop.f32.mrf.mxu0 }
 0xe39   : > { %v9872_v49 = vpop.f32.mrf.mxu3 }
 0xe3a   : > { %10107 = vrot.lane.b32.xlu2 %v9872_v49, %s12343_s25  ;;  %10111 = vrot.lane.b32.xlu1 %v9922_v38, %s12343_s25 }
 0xe3b   : > { %v9897_v11 = vpop.f32.mrf.mxu0 }
 0xe3c   : > { %10109 = vrot.lane.b32.xlu0 %v9897_v11, %s12343_s25 }
 0xe42   : > { %10075 = vrot.lane.b32.xlu2 %v9472_v13, %s12343_s25  ;;  %10095 = vrot.lane.b32.xlu1 %v16903_v29, %s12343_s25 }
 0xe44   : > { %10093 = vrot.lane.b32.xlu0 %v9697_v8, %s12343_s25 }
 0xe49   : > { %v9972_v29 = vpop.f32.mrf.mxu3 }
 0xe4a   : > { %10097 = vrot.lane.b32.xlu2 %v9747_v55, %s12343_s25  ;;  %7714 = vrot.lane.b32.xlu1 %v16604_v57, %s12342_s24 }
 0xe4c   : > { %7712 = vrot.lane.b32.xlu0 %v16602_v41, %s12342_s24 }
 0xe4e   : > { %v9997_v26 = vpop.f32.mrf.mxu0 }
 0xe52   : > { %10079 = vrot.lane.b32.xlu1 %v16873_v31, %s12343_s25 }
 0xe54   : > { %10077 = vrot.lane.b32.xlu0 %v16848_v20, %s12343_s25  ;;  %v18382_v20 = vld [vmem:[#allocation177_spill] sm:$0xff] }
 0xe5a   : > { %10117 = vrot.lane.b32.xlu1 %v9997_v26, %s12343_s25 }
 0xe5c   : > { %v10058_v5 = vpop.permute.xlu0 %10057  ;;  %10115 = vrot.lane.b32.xlu0 %v9972_v29, %s12343_s25 }
 0xe5d   : > { %10153 = vst.msk [vmem:[#allocation2] sm:$0xff] %vm9192_vm4, %v10058_v5 }
 0xe62   : > { %v9947_v51 = vpop.f32.mrf.mxu2  ;;  %10101 = vrot.lane.b32.xlu1 %v9797_v14, %s12343_s25 }
 0xe63   : > { %10113 = vrot.lane.b32.xlu2 %v9947_v51, %s12343_s25 }
 0xe64   : > { %v10060_v41 = vpop.permute.xlu0 %10059  ;;  %v10066_v57 = vpop.permute.xlu1 %10065  ;;  %10099 = vrot.lane.b32.xlu0 %v9772_v32, %s12343_s25  ;;  %v17051_v31 = vld [vmem:[#allocation2] sm:$0xff] }
 0xe65   : > { %10154 = vst.msk [vmem:[#allocation2 + $0x8] sm:$0xff] %vm9192_vm4, %v10060_v41  ;;  %11431 = vmatmul.msk.f32.vlgmr.msrb.gmra.mxu0 %vm446_vm0, %v17051_v31 }
 0xe66   : > { %10157 = vst.msk [vmem:[#allocation2 + $0x20] sm:$0xff] %vm9192_vm4, %v10066_v57 }
 0xe6a   : > { %9096 = vrot.lane.b32.xlu1 %v16851_v61, %s12343_s25 }
 0xe6b   : > { %7716 = vrot.lane.b32.xlu2 %v18382_v20, %s12342_s24 }
 0xe6c   : > { %v10088_v23 = vpop.permute.xlu0 %10087  ;;  %7718 = vrot.lane.b32.xlu0 %v18383_v42, %s12342_s24  ;;  %v17063_v2 = vld [vmem:[#allocation2 + $0x8] sm:$0xff] }
 0xe6d   : > { %10168 = vst.msk [vmem:[#allocation2 + $0x78] sm:$0xff] %vm9192_vm4, %v10088_v23  ;;  %11432 = vmatmul.msk.f32.gmra.mxu0 %vm446_vm0, %v17063_v2 }
 0xe72   : > { %9102 = vrot.lane.b32.xlu1 %v16414_v56, %s12343_s25 }
 0xe73   : > { %10081 = vrot.lane.b32.xlu2 %v9547_v7, %s12343_s25 }
 0xe74   : > { %v7707_v61 = vpop.permute.xlu0 %7706  ;;  %v10092_v37 = vpop.permute.xlu2 %10091  ;;  %10083 = vrot.lane.b32.xlu0 %v9572_v60, %s12343_s25  ;;  %v17074_v63 = vld [vmem:[#allocation2 + $0x78] sm:$0xff] }
 0xe75   : > { %7777 = vst.msk [vmem:[#allocation2 + $0xc8] sm:$0xff] %vm6791_vm3, %v7707_v61  ;;  %11433 = vmatmul.msk.f32.gmra.mxu0 %vm446_vm0, %v17072_v22  ;;  %11446 = vmatmul.msk.f32.gmra.mxu2 %vm446_vm0, %v17074_v63 }
 0xe76   : > { %10170 = vst.msk [vmem:[#allocation2 + $0x88] sm:$0xff] %vm9192_vm4, %v10092_v37 }
 0xe7a   : > { %9108 = vrot.lane.b32.xlu1 %v16441_v1, %s12343_s25 }
 0xe7c   : > { %v10072_v56 = vpop.permute.xlu0 %10071  ;;  %v7711_v16 = vpop.permute.xlu2 %7710  ;;  %9100 = vrot.lane.b32.xlu0 %v16419_v21, %s12343_s25  ;;  %v17097_v21 = vld [vmem:[#allocation2 + $0x20] sm:$0xff] }
 0xe7d   : > { %10160 = vst.msk [vmem:[#allocation2 + $0x38] sm:$0xff] %vm9192_vm4, %v10072_v56  ;;  %11434 = vmatmul.msk.f32.gmra.mxu0 %vm446_vm0, %v17086_v48 }
 0xe7e   : > { %7779 = vst.msk [vmem:[#allocation2 + $0xd8] sm:$0xff] %vm6791_vm3, %v7711_v16 }
 0xe82   : > { %9114 = vrot.lane.b32.xlu1 %v16884_v10, %s12343_s25 }
 0xe83   : > { %v10022_v25 = vpop.f32.mrf.mxu1 }
 0xe84   : > { %v10068_v13 = vpop.permute.xlu0 %10067  ;;  %10119 = vrot.lane.b32.xlu2 %v10022_v25, %s12343_s25  ;;  %9106 = vrot.lane.b32.xlu0 %v16841_v6, %s12343_s25 }
 0xe85   : > { %10158 = vst.msk [vmem:[#allocation2 + $0x28] sm:$0xff] %vm9192_vm4, %v10068_v13  ;;  %11435 = vmatmul.msk.f32.gmra.mxu0 %vm446_vm0, %v17097_v21 }
 0xe8a   : > { %9120 = vrot.lane.b32.xlu1 %v16881_v40, %s12343_s25  ;;  %v17136_v40 = vld [vmem:[#allocation2 + $0x88] sm:$0xff] }
 0xe8c   : > { %v10090_v1 = vpop.permute.xlu1 %10089  ;;  %9098 = vrot.lane.b32.xlu2 %v16829_v59, %s12343_s25  ;;  %9112 = vrot.lane.b32.xlu0 %v16868_v53, %s12343_s25  ;;  %v17108_v10 = vld [vmem:[#allocation2 + $0x28] sm:$0xff]  ;;  %v17119_v59 = vld [vmem:[#allocation2 + $0x30] sm:$0xff] }
 0xe8d   : > { %10169 = vst.msk [vmem:[#allocation2 + $0x80] sm:$0xff] %vm9192_vm4, %v10090_v1  ;;  %11436 = vmatmul.msk.f32.gmra.mxu0 %vm446_vm0, %v17108_v10 }
 0xe92   : > { %9126 = vrot.lane.b32.xlu1 %v16480_v58, %s12343_s25 }
 0xe94   : > { %v10108_v6 = vpop.permute.xlu2 %10107  ;;  %9104 = vrot.lane.b32.xlu2 %v16858_v33, %s12343_s25  ;;  %9118 = vrot.lane.b32.xlu0 %v16458_v24, %s12343_s25  ;;  %v17121_v53 = vld [vmem:[#allocation2 + $0x80] sm:$0xff]  ;;  %v17134_v24 = vld [vmem:[#allocation2 + $0x38] sm:$0xff] }
 0xe95   : > { %10178 = vst.msk [vmem:[#allocation2 + $0xc8] sm:$0xff] %vm9192_vm4, %v10108_v6  ;;  %11437 = vmatmul.msk.f32.gmra.mxu0 %vm446_vm0, %v17119_v59  ;;  %11447 = vmatmul.msk.f32.gmra.mxu2 %vm446_vm0, %v17121_v53 }
 0xe9a   : > { %9132 = vrot.lane.b32.xlu1 %v16878_v46, %s12343_s25 }
 0xe9c   : > { %v10076_v58 = vpop.permute.xlu2 %10075  ;;  %v10106_v33 = vpop.permute.xlu1 %10105  ;;  %9110 = vrot.lane.b32.xlu2 %v16437_v28, %s12343_s25  ;;  %9124 = vrot.lane.b32.xlu0 %v16654_v19, %s12343_s25 }
 0xe9d   : > { %10162 = vst.msk [vmem:[#allocation2 + $0x48] sm:$0xff] %vm9192_vm4, %v10076_v58  ;;  %11438 = vmatmul.msk.f32.gmra.mxu0 %vm446_vm0, %v17134_v24  ;;  %11448 = vmatmul.msk.f32.gmra.mxu2 %vm446_vm0, %v17136_v40 }
 0xe9e   : > { %10177 = vst.msk [vmem:[#allocation2 + $0xc0] sm:$0xff] %vm9192_vm4, %v10106_v33 }
 0xea2   : > { %9138 = vrot.lane.b32.xlu1 %v16941_v35, %s12343_s25 }
 0xea4   : > { %v10098_v28 = vpop.permute.xlu2 %10097  ;;  %v10074_v46 = vpop.permute.xlu1 %10073  ;;  %9116 = vrot.lane.b32.xlu2 %v16592_v30, %s12343_s25  ;;  %9130 = vrot.lane.b32.xlu0 %v16915_v47, %s12343_s25  ;;  %v17165_v47 = vld [vmem:[#allocation2 + $0xc8] sm:$0xff] }
 0xea5   : > { %10173 = vst.msk [vmem:[#allocation2 + $0xa0] sm:$0xff] %vm9192_vm4, %v10098_v28  ;;  %v17151_v19 = vld [vmem:[#allocation2 + $0xc0] sm:$0xff]  ;;  %v17179_v7 = vld [vmem:[#allocation2 + $0x48] sm:$0xff] }
 0xea6   : > { %10161 = vst.msk [vmem:[#allocation2 + $0x40] sm:$0xff] %vm9192_vm4, %v10074_v46  ;;  %11455 = vmatmul.msk.f32.gmra.mxu3 %vm446_vm0, %v17151_v19 }
 0xeaa   : > { %9144 = vrot.lane.b32.xlu1 %v16936_v17, %s12343_s25 }
 0xeac   : > { %v10112_v35 = vpop.permute.xlu1 %10111  ;;  %9122 = vrot.lane.b32.xlu2 %v16908_v62, %s12343_s25  ;;  %9136 = vrot.lane.b32.xlu0 %v16927_v3, %s12343_s25  ;;  %v18384_v3 = vld [vmem:[#allocation68_spill] sm:$0xff]  ;;  %v17226_v49 = vld [vmem:[#allocation2 + $0xa0] sm:$0xff] }
 0xead   : > { %10180 = vst.msk [vmem:[#allocation2 + $0xd8] sm:$0xff] %vm9192_vm4, %v10112_v35  ;;  %v17163_v30 = vld [vmem:[#allocation2 + $0x40] sm:$0xff] }
 0xeae   : > { %11439 = vmatmul.msk.f32.gmra.mxu0 %vm446_vm0, %v17163_v30  ;;  %11456 = vmatmul.msk.f32.gmra.mxu3 %vm446_vm0, %v17165_v47  ;;  %v10110_v17 = vpop.permute.xlu0 %10109 }
 0xeaf   : > { %10179 = vst.msk [vmem:[#allocation2 + $0xd0] sm:$0xff] %vm9192_vm4, %v10110_v17  ;;  %v17295_v17 = vld [vmem:[%s17606_s6] ss:$0 sm:$0xff] }
 0xeb2   : > { %9150 = vrot.lane.b32.xlu1 %v16946_v12, %s12343_s25  ;;  %v18385_v12 = vld [vmem:[#allocation169_spill] sm:$0xff] }
 0xeb4   : > { %v10096_v62 = vpop.permute.xlu1 %10095  ;;  %9128 = vrot.lane.b32.xlu2 %v16918_v36, %s12343_s25  ;;  %9142 = vrot.lane.b32.xlu0 %v18384_v3, %s12343_s25  ;;  %v17197_v18 = vld [vmem:[#allocation2 + $0xd8] sm:$0xff] }
 0xeb5   : > { %10172 = vst.msk [vmem:[#allocation2 + $0x98] sm:$0xff] %vm9192_vm4, %v10096_v62 }
 0xeb6   : > { %11440 = vmatmul.msk.f32.gmra.mxu0 %vm446_vm0, %v17179_v7  ;;  %v10094_v60 = vpop.permute.xlu0 %10093  ;;  %v17183_v4 = vld [vmem:[#allocation2 + $0xd0] sm:$0xff] }
 0xeb7   : > { %10171 = vst.msk [vmem:[#allocation2 + $0x90] sm:$0xff] %vm9192_vm4, %v10094_v60  ;;  %11457 = vmatmul.msk.f32.gmra.mxu3 %vm446_vm0, %v17183_v4 }
 0xeba   : > { %9156 = vrot.lane.b32.xlu1 %v16983_v39, %s12343_s25 }
 0xebc   : > { %v7715_v36 = vpop.permute.xlu1 %7714  ;;  %9134 = vrot.lane.b32.xlu2 %v18385_v12, %s12343_s25  ;;  %9148 = vrot.lane.b32.xlu0 %v16961_v45, %s12343_s25  ;;  %v17211_v8 = vld [vmem:[#allocation2 + $0x98] sm:$0xff] }
 0xebd   : > { %7781 = vst.msk [vmem:[#allocation2 + $0xe8] sm:$0xff] %vm6791_vm3, %v7715_v36  ;;  %v10114_v44 = vpop.permute.xlu2 %10113 }
 0xebe   : > { %v7713_v0 = vpop.permute.xlu0 %7712  ;;  %v17195_v55 = vld [vmem:[#allocation2 + $0x90] sm:$0xff] }
 0xebf   : > { %7780 = vst.msk [vmem:[#allocation2 + $0xe0] sm:$0xff] %vm6791_vm3, %v7713_v0  ;;  %11449 = vmatmul.msk.f32.gmra.mxu2 %vm446_vm0, %v17195_v55  ;;  %11458 = vmatmul.msk.f32.gmra.mxu3 %vm446_vm0, %v17197_v18 }
 0xec0   : > { %10181 = vst.msk [vmem:[#allocation2 + $0xe0] sm:$0xff] %vm9192_vm4, %v10114_v44 }
 0xec4   : > { %v10080_v39 = vpop.permute.xlu1 %10079  ;;  %9140 = vrot.lane.b32.xlu2 %v16954_v50, %s12343_s25  ;;  %9154 = vrot.lane.b32.xlu0 %v16969_v9, %s12343_s25 }
 0xec5   : > { %10164 = vst.msk [vmem:[#allocation2 + $0x58] sm:$0xff] %vm9192_vm4, %v10080_v39  ;;  %v7717_v45 = vpop.permute.xlu2 %7716 }
 0xec6   : > { %7782 = vst.msk [vmem:[#allocation2 + $0xf0] sm:$0xff] %vm6791_vm3, %v7717_v45  ;;  %v10078_v15 = vpop.permute.xlu0 %10077 }
 0xec7   : > { %10163 = vst.msk [vmem:[#allocation2 + $0x50] sm:$0xff] %vm9192_vm4, %v10078_v15  ;;  %11450 = vmatmul.msk.f32.gmra.mxu2 %vm446_vm0, %v17211_v8  ;;  %v17216_v32 = vld [vmem:[#allocation2 + $0xe0] sm:$0xff] }
 0xec8   : > { %11459 = vmatmul.msk.f32.gmra.mxu3 %vm446_vm0, %v17216_v32 }
 0xecc   : > { %9146 = vrot.lane.b32.xlu2 %v16951_v54, %s12343_s25  ;;  %v10118_v50 = vpop.permute.xlu1 %10117  ;;  %v17236_v26 = vld [vmem:[#allocation2 + $0x58] sm:$0xff] }
 0xecd   : > { %10183 = vst.msk [vmem:[#allocation2 + $0xf0] sm:$0xff] %vm9192_vm4, %v10118_v50  ;;  %v10082_v9 = vpop.permute.xlu2 %10081 }
 0xece   : > { %10165 = vst.msk [vmem:[#allocation2 + $0x60] sm:$0xff] %vm9192_vm4, %v10082_v9  ;;  %v10116_v14 = vpop.permute.xlu0 %10115  ;;  %v17224_v38 = vld [vmem:[#allocation2 + $0x50] sm:$0xff] }
 0xecf   : > { %10182 = vst.msk [vmem:[#allocation2 + $0xe8] sm:$0xff] %vm9192_vm4, %v10116_v14  ;;  %11441 = vmatmul.msk.f32.gmra.mxu0 %vm446_vm0, %v17224_v38  ;;  %11451 = vmatmul.msk.f32.gmra.mxu2 %vm446_vm0, %v17226_v49 }
 0xed4   : > { %9152 = vrot.lane.b32.xlu2 %v16989_v27, %s12343_s25  ;;  %v10102_v54 = vpop.permute.xlu1 %10101  ;;  %v17258_v20 = vld [vmem:[#allocation2 + $0xf0] sm:$0xff] }
 0xed5   : > { %10175 = vst.msk [vmem:[#allocation2 + $0xb0] sm:$0xff] %vm9192_vm4, %v10102_v54  ;;  %v17249_v41 = vld [vmem:[#allocation2 + $0x60] sm:$0xff] }
 0xed6   : > { %v10100_v11 = vpop.permute.xlu0 %10099  ;;  %v17238_v29 = vld [vmem:[#allocation2 + $0xe8] sm:$0xff] }
 0xed7   : > { %10174 = vst.msk [vmem:[#allocation2 + $0xa8] sm:$0xff] %vm9192_vm4, %v10100_v11  ;;  %11442 = vmatmul.msk.f32.gmra.mxu0 %vm446_vm0, %v17236_v26  ;;  %11460 = vmatmul.msk.f32.gmra.mxu3 %vm446_vm0, %v17238_v29 }
 0xedc   : > { %9158 = vrot.lane.b32.xlu2 %v17014_v43, %s12343_s25  ;;  %v9097_v27 = vpop.permute.xlu1 %9096  ;;  %v17265_v37 = vld [vmem:[#allocation2 + $0xb0] sm:$0xff] }
 0xedd   : > { %9193 = vst.msk [vmem:[%s13813_s20] sm:$0xff] %vm9192_vm4, %v9097_v27 }
 0xede   : > { %v10120_v5 = vpop.permute.xlu2 %10119  ;;  %v7719_v51 = vpop.permute.xlu0 %7718  ;;  %v17251_v57 = vld [vmem:[#allocation2 + $0xa8] sm:$0xff] }
 0xedf   : > { %7783 = vst.msk [vmem:[#allocation2 + $0xf8] sm:$0xff] %vm6791_vm3, %v7719_v51  ;;  %11443 = vmatmul.msk.f32.gmra.mxu0 %vm446_vm0, %v17249_v41  ;;  %11452 = vmatmul.msk.f32.gmra.mxu2 %vm446_vm0, %v17251_v57 }
 0xee0   : > { %10184 = vst.msk [vmem:[#allocation2 + $0xf8] sm:$0xff] %vm9192_vm4, %v10120_v5  ;;  %11461 = vmatmul.msk.f32.gmra.mxu3 %vm446_vm0, %v17258_v20 }
 0xee2   : > { %v10338_v43 = vpop.f32.mrf.mxu0 }
 0xee3   : > { %v10339_v44 = vadd.f32 %v17295_v17, %v10338_v43 }
 0xee4   : > { %v9103_v23 = vpop.permute.xlu1 %9102 }
 0xee5   : > { %9196 = vst.msk [vmem:[%s13813_s20 + $0x18] sm:$0xff] %vm9192_vm4, %v9103_v23  ;;  %v10434_v50 = vmax.f32 %v10339_v44, 0.0 }
 0xee6   : > { %v9099_v42 = vpop.permute.xlu2 %9098  ;;  %v10084_v61 = vpop.permute.xlu0 %10083 }
 0xee7   : > { %9194 = vst.msk [vmem:[%s13813_s20 + $0x8] sm:$0xff] %vm9192_vm4, %v9099_v42  ;;  %11453 = vmatmul.msk.f32.gmra.mxu2 %vm446_vm0, %v17265_v37  ;;  %v17271_v56 = vld [vmem:[#allocation2 + $0xf8] sm:$0xff]  ;;  %v10466_v23 = vadd.f32 %v10434_v50, %v17051_v31 }
 0xee8   : > { %10166 = vst.msk [vmem:[#allocation2 + $0x68] sm:$0xff] %vm9192_vm4, %v10084_v61  ;;  %11462 = vmatmul.msk.f32.gmra.mxu3 %vm446_vm0, %v17271_v56 }
 0xeea   : > { %v10341_v16 = vpop.f32.mrf.mxu0 }
 0xeeb   : > { %v10342_v3 = vadd.f32 %v17295_v17, %v10341_v16  ;;  %v18386_v16 = vld [vmem:[#allocation5_spill] sm:$0xff] }
 0xeec   : > { %v9109_v25 = vpop.permute.xlu1 %9108 }
 0xeed   : > { %9199 = vst.msk [vmem:[%s13813_s20 + $0x30] sm:$0xff] %vm9192_vm4, %v9109_v25  ;;  %v10435_v39 = vmax.f32 %v10342_v3, 0.0  ;;  %v18387_v25 = vld [vmem:[#allocation7_spill] sm:$0xff] }
 0xeee   : > { %v9105_v13 = vpop.permute.xlu2 %9104  ;;  %v9101_v1 = vpop.permute.xlu0 %9100 }
 0xeef   : > { %9197 = vst.msk [vmem:[%s13813_s20 + $0x20] sm:$0xff] %vm9192_vm4, %v9105_v13  ;;  %v17280_v6 = vld [vmem:[#allocation2 + $0x68] sm:$0xff]  ;;  %v10467_v11 = vadd.f32 %v10435_v39, %v17063_v2 }
 0xef0   : > { %9195 = vst.msk [vmem:[%s13813_s20 + $0x10] sm:$0xff] %vm9192_vm4, %v9101_v1  ;;  %11444 = vmatmul.msk.f32.gmra.mxu0 %vm446_vm0, %v17280_v6 }
 0xef1   : > { %v10499_v2 = vadd.f32 %v10467_v11, %v18386_v16 }
 0xef2   : > { %v10344_v58 = vpop.f32.mrf.mxu0 }
 0xef3   : > { %v10345_v60 = vadd.f32 %v17295_v17, %v10344_v58  ;;  %v18388_v58 = vld [vmem:[#allocation3_spill] sm:$0xff] }
 0xef4   : > { %v9115_v33 = vpop.permute.xlu1 %9114 }
 0xef5   : > { %9202 = vst.msk [vmem:[%s13813_s20 + $0x48] sm:$0xff] %vm9192_vm4, %v9115_v33  ;;  %v10436_v45 = vmax.f32 %v10345_v60, 0.0  ;;  %v18389_v33 = vld [vmem:[#allocation9_spill] sm:$0xff]  ;;  %v12344_v60 = vmov 8.0  }
 0xef6   : > { %v9111_v28 = vpop.permute.xlu2 %9110  ;;  %v9107_v46 = vpop.permute.xlu0 %9106  ;;  %12324 = vrcp.f32 %v12344_v60 }
 0xef7   : > { %9200 = vst.msk [vmem:[%s13813_s20 + $0x38] sm:$0xff] %vm9192_vm4, %v9111_v28  ;;  %v10468_v5 = vadd.f32 %v10436_v45, %v17072_v22  ;;  %v10498_v22 = vadd.f32 %v10466_v23, %v18388_v58 }
 0xef8   : > { %9198 = vst.msk [vmem:[%s13813_s20 + $0x28] sm:$0xff] %vm9192_vm4, %v9107_v46  ;;  %v18390_v46 = vld [vmem:[#allocation11_spill] sm:$0xff] }
 0xef9   : > { %v10500_v13 = vadd.f32 %v10468_v5, %v18387_v25 }
 0xefa   : > { %v10347_v35 = vpop.f32.mrf.mxu0 }
 0xefb   : > { %v10348_v0 = vadd.f32 %v17295_v17, %v10347_v35 }
 0xefc   : > { %v9121_v62 = vpop.permute.xlu1 %9120 }
 0xefd   : > { %9205 = vst.msk [vmem:[%s13813_s20 + $0x60] sm:$0xff] %vm9192_vm4, %v9121_v62  ;;  %v10437_v9 = vmax.f32 %v10348_v0, 0.0  ;;  %v17325_v62 = vpop.f32.mrf.mxu2  ;;  %v10530_v0 = vsel %vm446_vm0, %v10498_v22, 0.0 }
 0xefe   : > { %v9117_v36 = vpop.permute.xlu2 %9116  ;;  %v9113_v12 = vpop.permute.xlu0 %9112  ;;  %v10531_v11 = vrot.slane %v10530_v0, 4 }
 0xeff   : > { %9203 = vst.msk [vmem:[%s13813_s20 + $0x50] sm:$0xff] %vm9192_vm4, %v9117_v36  ;;  %v10469_v42 = vadd.f32 %v10437_v9, %v17086_v48  ;;  %v10544_v36 = vsel %vm446_vm0, %v10500_v13, 0.0 }
 0xf00   : > { %9201 = vst.msk [vmem:[%s13813_s20 + $0x40] sm:$0xff] %vm9192_vm4, %v9113_v12  ;;  %v10545_v9 = vrot.slane %v10544_v36, 4 }
 0xf01   : > { %v10501_v28 = vadd.f32 %v10469_v42, %v18389_v33 }
 0xf02   : > { %v10350_v15 = vpop.f32.mrf.mxu0 }
 0xf03   : > { %v10351_v14 = vadd.f32 %v17295_v17, %v10350_v15  ;;  %v10551_v39 = vsel %vm446_vm0, %v10501_v28, 0.0 }
 0xf04   : > { %v9127_v54 = vpop.permute.xlu1 %9126 }
 0xf05   : > { %v10438_v27 = vmax.f32 %v10351_v14, 0.0  ;;  %9208 = vst.msk [vmem:[%s13813_s20 + $0x78] sm:$0xff] %vm9192_vm4, %v9127_v54  ;;  %v18391_v14 = vld [vmem:[#allocation13_spill] sm:$0xff]  ;;  %v17344_v25 = vpop.f32.mrf.mxu2 }
 0xf06   : > { %v9123_v51 = vpop.permute.xlu2 %9122  ;;  %v9119_v43 = vpop.permute.xlu0 %9118 }
 0xf07   : > { %9206 = vst.msk [vmem:[%s13813_s20 + $0x68] sm:$0xff] %vm9192_vm4, %v9123_v51  ;;  %v10470_v61 = vadd.f32 %v10438_v27, %v17097_v21  ;;  %v10537_v21 = vsel %vm446_vm0, %v10499_v2, 0.0  ;;  %v10552_v27 = vrot.slane %v10551_v39, 4  ;;  %v10546_v2 = vadd.f32 %v10545_v9, %v10544_v36 }
 0xf08   : > { %9204 = vst.msk [vmem:[%s13813_s20 + $0x58] sm:$0xff] %vm9192_vm4, %v9119_v43  ;;  %v10538_v15 = vrot.slane %v10537_v21, 4 }
 0xf09   : > { %v10502_v48 = vadd.f32 %v10470_v61, %v18390_v46  ;;  %v10553_v58 = vadd.f32 %v10552_v27, %v10551_v39 }
 0xf0a   : > { %v10353_v1 = vpop.f32.mrf.mxu0  ;;  %v10539_v42 = vadd.f32 %v10538_v15, %v10537_v21  ;;  %v10547_v21 = vrot.slane %v10546_v2, 2 }
 0xf0b   : > { %v10354_v31 = vadd.f32 %v17295_v17, %v10353_v1  ;;  %v10558_v50 = vsel %vm446_vm0, %v10502_v48, 0.0  ;;  %v10532_v1 = vadd.f32 %v10531_v11, %v10530_v0 }
 0xf0c   : > { %v9133_v35 = vpop.permute.xlu1 %9132  ;;  %v10559_v51 = vrot.slane %v10558_v50, 4  ;;  %v10540_v48 = vrot.slane %v10539_v42, 2 }
 0xf0d   : > { %v10439_v3 = vmax.f32 %v10354_v31, 0.0  ;;  %9211 = vst.msk [vmem:[%s13813_s20 + $0x90] sm:$0xff] %vm9192_vm4, %v9133_v35  ;;  %v10533_v36 = vrot.slane %v10532_v1, 2 }
 0xf0e   : > { %v9129_v12 = vpop.permute.xlu2 %9128  ;;  %v9125_v44 = vpop.permute.xlu0 %9124  ;;  %v10560_v31 = vadd.f32 %v10559_v51, %v10558_v50 }
 0xf0f   : > { %v10471_v45 = vadd.f32 %v10439_v3, %v17108_v10  ;;  %9209 = vst.msk [vmem:[%s13813_s20 + $0x80] sm:$0xff] %vm9192_vm4, %v9129_v12  ;;  %v17342_v10 = vpop.eup %12324  ;;  %v18392_v3 = vld [vmem:[#allocation15_spill] sm:$0xff]  ;;  %v10554_v12 = vrot.slane %v10553_v58, 2 }
 0xf10   : > { %9207 = vst.msk [vmem:[%s13813_s20 + $0x70] sm:$0xff] %vm9192_vm4, %v9125_v44  ;;  %v10755_v28 = vmul.f32 8.0, %v17342_v10  ;;  %v10561_v39 = vrot.slane %v10560_v31, 2  ;;  %vm10759_vm5 = vweird.f32 %v17342_v10 }
 0xf11   : > { %v10503_v54 = vadd.f32 %v10471_v45, %v18391_v14  ;;  %v10555_v51 = vadd.f32 %v10554_v12, %v10553_v58 }
 0xf12   : > { %v10356_v5 = vpop.f32.mrf.mxu0  ;;  %v10756_v0 = vsub.f32 1.0, %v10755_v28  ;;  %v10407_v28 = vpop.f32.mrf.mxu3 }
 0xf13   : > { %v10565_v43 = vsel %vm446_vm0, %v10503_v54, 0.0  ;;  %v10357_v23 = vadd.f32 %v17295_v17, %v10356_v5  ;;  %v10548_v54 = vadd.f32 %v10547_v21, %v10546_v2  ;;  %v10534_v5 = vadd.f32 %v10533_v36, %v10532_v1  ;;  %v18393_v1 = vld [vmem:[#allocation16_spill] sm:$0xff] }
 0xf14   : > { %v10566_v61 = vrot.slane %v10565_v43, 4  ;;  %v9139_v16 = vpop.permute.xlu1 %9138  ;;  %v10556_v21 = vrot.slane %v10555_v51, 1 }
 0xf15   : > { %v10440_v13 = vmax.f32 %v10357_v23, 0.0  ;;  %9214 = vst.msk [vmem:[%s13813_s20 + $0xa8] sm:$0xff] %vm9192_vm4, %v9139_v16  ;;  %v10757_v16 = vmul.f32 %v17342_v10, %v10756_v0 }
 0xf16   : > { %v9135_v22 = vpop.permute.xlu2 %9134  ;;  %v9131_v33 = vpop.permute.xlu0 %9130  ;;  %v10567_v35 = vadd.f32 %v10566_v61, %v10565_v43 }
 0xf17   : > { %v10472_v46 = vadd.f32 %v10440_v13, %v17119_v59  ;;  %9212 = vst.msk [vmem:[%s13813_s20 + $0x98] sm:$0xff] %vm9192_vm4, %v9135_v22  ;;  %v10541_v59 = vadd.f32 %v10540_v48, %v10539_v42  ;;  %v10562_v42 = vadd.f32 %v10561_v39, %v10560_v31  ;;  %v10535_v48 = vrot.slane %v10534_v5, 1 }
 0xf18   : > { %9210 = vst.msk [vmem:[%s13813_s20 + $0x88] sm:$0xff] %vm9192_vm4, %v9131_v33  ;;  %v10568_v50 = vrot.slane %v10567_v35, 2  ;;  %v17357_v11 = vpop.f32.mrf.mxu2 }
 0xf19   : > { %v10504_v60 = vadd.f32 %v10472_v46, %v18392_v3  ;;  %v10542_v2 = vrot.slane %v10541_v59, 1  ;;  %v10549_v46 = vrot.slane %v10548_v54, 1  ;;  %v10563_v31 = vrot.slane %v10562_v42, 1 }
 0xf1a   : > { %v10359_v44 = vpop.f32.mrf.mxu0  ;;  %v10569_v22 = vadd.f32 %v10568_v50, %v10567_v35 }
 0xf1b   : > { %v10572_v45 = vsel %vm446_vm0, %v10504_v60, 0.0  ;;  %v10360_v15 = vadd.f32 %v17295_v17, %v10359_v44  ;;  %v10543_v60 = vadd.f32 %v10542_v2, %v10541_v59  ;;  %v10550_v0 = vadd.f32 %v10549_v46, %v10548_v54 }
 0xf1c   : > { %v10573_v9 = vrot.slane %v10572_v45, 4  ;;  %v9145_v14 = vpop.permute.xlu1 %9144  ;;  %v10570_v36 = vrot.slane %v10569_v22, 1  ;;  %v10564_v59 = vadd.f32 %v10563_v31, %v10562_v42  ;;  %v10387_v31 = vadd.f32 %v17295_v17, %v17357_v11 }
 0xf1d   : > { %v10441_v27 = vmax.f32 %v10360_v15, 0.0  ;;  %9217 = vst.msk [vmem:[%s13813_s20 + $0xc0] sm:$0xff] %vm9192_vm4, %v9145_v14  ;;  %v10557_v15 = vadd.f32 %v10556_v21, %v10555_v51 }
 0xf1e   : > { %v10574_v43 = vadd.f32 %v10573_v9, %v10572_v45  ;;  %v9141_v23 = vpop.permute.xlu2 %9140  ;;  %v9137_v61 = vpop.permute.xlu0 %9136  ;;  %v10536_v45 = vadd.f32 %v10535_v48, %v10534_v5  ;;  %v10381_v5 = vadd.f32 %v17295_v17, %v17325_v62 }
 0xf1f   : > { %v10473_v13 = vadd.f32 %v10441_v27, %v17134_v24  ;;  %9215 = vst.msk [vmem:[%s13813_s20 + $0xb0] sm:$0xff] %vm9192_vm4, %v9141_v23  ;;  %v10758_v24 = vadd.f32 %v17342_v10, %v10757_v16 }
 0xf20   : > { %v10575_v33 = vrot.slane %v10574_v43, 2  ;;  %9213 = vst.msk [vmem:[%s13813_s20 + $0xa0] sm:$0xff] %vm9192_vm4, %v9137_v61  ;;  %v10389_v61 = vpop.f32.mrf.mxu2  ;;  %v10448_v21 = vmax.f32 %v10381_v5, 0.0 }
 0xf21   : > { %v10505_v58 = vadd.f32 %v10473_v13, %v18393_v1  ;;  %v17379_v27 = vsel %vm10759_vm5, %v17342_v10, %v10758_v24 }
 0xf22   : > { %v10576_v3 = vadd.f32 %v10575_v33, %v10574_v43  ;;  %v10762_v54 = vmul.f32 %v17379_v27, %v10543_v60  ;;  %v10571_v43 = vadd.f32 %v10570_v36, %v10569_v22  ;;  %v10763_v51 = vmul.f32 %v17379_v27, %v10550_v0 }
 0xf23   : > { %v10579_v35 = vsel %vm446_vm0, %v10505_v58, 0.0  ;;  %v10761_v42 = vmul.f32 %v17379_v27, %v10536_v45  ;;  %v10764_v13 = vmul.f32 %v17379_v27, %v10557_v15  ;;  %v10408_v22 = vadd.f32 %v17295_v17, %v10407_v28 }
 0xf24   : > { %v10580_v12 = vrot.slane %v10579_v35, 4  ;;  %v9151_v44 = vpop.permute.xlu1 %9150  ;;  %v10577_v39 = vrot.slane %v10576_v3, 1  ;;  %v10765_v62 = vmul.f32 %v17379_v27, %v10564_v59  ;;  %v10390_v33 = vadd.f32 %v17295_v17, %v10389_v61 }
 0xf25   : > { %9220 = vst.msk [vmem:[%s13813_s20 + $0xd8] sm:$0xff] %vm9192_vm4, %v9151_v44  ;;  %v10826_v46 = vsel %vm10825_vm6, %v10762_v54, %v10761_v42  ;;  %v10766_v1 = vmul.f32 %v17379_v27, %v10571_v43  ;;  %v10480_v15 = vadd.f32 %v10448_v21, %v16995_v52  ;;  %v18394_v52 = vld [vmem:[#allocation23_spill] sm:$0xff] }
 0xf26   : > { %v10581_v50 = vadd.f32 %v10580_v12, %v10579_v35  ;;  %v9147_v9 = vpop.permute.xlu2 %9146  ;;  %v9143_v14 = vpop.permute.xlu0 %9142  ;;  %v10578_v16 = vadd.f32 %v10577_v39, %v10576_v3  ;;  %v10828_v3 = vsel %vm10827_vm7, %v10763_v51, %v10826_v46  ;;  %v10457_v12 = vmax.f32 %v10408_v22, 0.0 }
 0xf27   : > { %9218 = vst.msk [vmem:[%s13813_s20 + $0xc8] sm:$0xff] %vm9192_vm4, %v9147_v9  ;;  %v10830_v28 = vsel %vm10829_vm8, %v10764_v13, %v10828_v3  ;;  %v10451_v0 = vmax.f32 %v10390_v33, 0.0  ;;  %v10512_v5 = vadd.f32 %v10480_v15, %v18394_v52 }
 0xf28   : > { %v10582_v23 = vrot.slane %v10581_v50, 2  ;;  %9216 = vst.msk [vmem:[%s13813_s20 + $0xb8] sm:$0xff] %vm9192_vm4, %v9143_v14  ;;  %v10767_v24 = vmul.f32 %v17379_v27, %v10578_v16  ;;  %v10832_v44 = vsel %vm10831_vm9, %v10765_v62, %v10830_v28  ;;  %v10450_v14 = vmax.f32 %v10387_v31, 0.0  ;;  %v18396_v62 = vld [vmem:[#allocation28_spill] sm:$0xff] }
 0xf29   : > { %v10410_v10 = vpop.f32.mrf.mxu3  ;;  %v10834_v45 = vsel %vm10833_vm10, %v10766_v1, %v10832_v44  ;;  %v10489_v43 = vadd.f32 %v10457_v12, %v17006_v34  ;;  %v18398_v12 = vld [vmem:[#allocation24_spill] sm:$0xff] }
 0xf2a   : > { %v10583_v2 = vadd.f32 %v10582_v23, %v10581_v50  ;;  %v10384_v50 = vadd.f32 %v17295_v17, %v17344_v25  ;;  %v10836_v9 = vsel %vm10835_vm11, %v10767_v24, %v10834_v45  ;;  %v10483_v23 = vadd.f32 %v10451_v0, %v17136_v40 }
 0xf2b   : > { %v10362_v39 = vpop.f32.mrf.mxu0  ;;  %v10411_v61 = vadd.f32 %v17295_v17, %v10410_v10  ;;  %v10482_v16 = vadd.f32 %v10450_v14, %v17121_v53  ;;  %v10628_v10 = vsel %vm446_vm0, %v10512_v5, 0.0  ;;  %v18397_v53 = vld [vmem:[#allocation25_spill] sm:$0xff] }
 0xf2c   : > { %v10584_v58 = vrot.slane %v10583_v2, 1  ;;  %v9157_v48 = vpop.permute.xlu1 %9156  ;;  %v10449_v51 = vmax.f32 %v10384_v50, 0.0  ;;  %v10515_v33 = vadd.f32 %v10483_v23, %v18396_v62  ;;  %v10363_v34 = vadd.f32 %v17295_v17, %v10362_v39 }
 0xf2d   : > { %9223 = vst.msk [vmem:[%s13813_s20 + $0xf0] sm:$0xff] %vm9192_vm4, %v9157_v48  ;;  %v10458_v40 = vmax.f32 %v10411_v61, 0.0  ;;  %v10514_v48 = vadd.f32 %v10482_v16, %v18397_v53 }
 0xf2e   : > { %v10585_v35 = vadd.f32 %v10584_v58, %v10583_v2  ;;  %v9153_v60 = vpop.permute.xlu2 %9152  ;;  %v9149_v36 = vpop.permute.xlu0 %9148  ;;  %v18395_v2 = vld [vmem:[#allocation53_spill] sm:$0xff]  ;;  %v10481_v46 = vadd.f32 %v10449_v51, %v17074_v63  ;;  %v10649_v24 = vsel %vm446_vm0, %v10515_v33, 0.0  ;;  %v10442_v28 = vmax.f32 %v10363_v34, 0.0 }
 0xf2f   : > { %9221 = vst.msk [vmem:[%s13813_s20 + $0xe0] sm:$0xff] %vm9192_vm4, %v9153_v60  ;;  %v10521_v22 = vadd.f32 %v10489_v43, %v18395_v2  ;;  %v10490_v60 = vadd.f32 %v10458_v40, %v17151_v19  ;;  %v10642_v45 = vsel %vm446_vm0, %v10514_v48, 0.0  ;;  %v18400_v43 = vld [vmem:[#allocation65_spill] sm:$0xff] }
 0xf30   : > { %v10768_v11 = vmul.f32 %v17379_v27, %v10585_v35  ;;  %9219 = vst.msk [vmem:[%s13813_s20 + $0xd0] sm:$0xff] %vm9192_vm4, %v9149_v36  ;;  %v10629_v35 = vrot.slane %v10628_v10, 4  ;;  %v10513_v44 = vadd.f32 %v10481_v46, %v18398_v12  ;;  %v10474_v15 = vadd.f32 %v10442_v28, %v17163_v30 }
 0xf31   : > { %v10413_v54 = vpop.f32.mrf.mxu3  ;;  %v10691_v3 = vsel %vm446_vm0, %v10521_v22, 0.0  ;;  %v10643_v19 = vrot.slane %v10642_v45, 4 }
 0xf32   : > { %v10838_v59 = vsel %vm10837_vm12, %v10768_v11, %v10836_v9  ;;  %v10414_v25 = vadd.f32 %v17295_v17, %v10413_v54  ;;  %v10692_v39 = vrot.slane %v10691_v3, 4  ;;  %v10650_v11 = vrot.slane %v10649_v24, 4  ;;  %v18399_v9 = vld [vmem:[#allocation56_spill] sm:$0xff] }
 0xf33   : > { %10864 = vst.msk [vmem:[%s17416_s16] sm:$0xff] %vm446_vm0, %v10838_v59  ;;  %v10365_v58 = vpop.f32.mrf.mxu0  ;;  %v10630_v50 = vadd.f32 %v10629_v35, %v10628_v10  ;;  %v10522_v14 = vadd.f32 %v10490_v60, %v18399_v9  ;;  %v10635_v54 = vsel %vm446_vm0, %v10513_v44, 0.0  ;;  %v10644_v33 = vadd.f32 %v10643_v19, %v10642_v45 }
 0xf34   : > { %v10459_v1 = vmax.f32 %v10414_v25, 0.0  ;;  %v10366_v36 = vadd.f32 %v17295_v17, %v10365_v58  ;;  %v10693_v52 = vadd.f32 %v10692_v39, %v10691_v3  ;;  %v18401_v25 = vld [vmem:[#allocation17_spill] sm:$0xff]  ;;  %v10636_v2 = vrot.slane %v10635_v54, 4  ;;  %v18404_v39 = vld [vmem:[#allocation34_spill] sm:$0xff] }
 0xf35   : > { %v10506_v16 = vadd.f32 %v10474_v15, %v18401_v25  ;;  %v10698_v22 = vsel %vm446_vm0, %v10522_v14, 0.0  ;;  %v18405_v25 = vld [vmem:[#allocation6_spill] sm:$0xff] }
 0xf36   : > { %v9159_v42 = vpop.permute.xlu2 %9158  ;;  %v9155_v13 = vpop.permute.xlu0 %9154  ;;  %v10491_v63 = vadd.f32 %v10459_v1, %v17165_v47  ;;  %v10443_v59 = vmax.f32 %v10366_v36, 0.0  ;;  %v10651_v47 = vadd.f32 %v10650_v11, %v10649_v24  ;;  %v10694_v46 = vrot.slane %v10693_v52, 2  ;;  %v18403_v24 = vld [vmem:[#allocation18_spill] sm:$0xff] }
 0xf37   : > { %9224 = vst.msk [vmem:[%s13813_s20 + $0xf8] sm:$0xff] %vm9192_vm4, %v9159_v42  ;;  %v10699_v58 = vrot.slane %v10698_v22, 4  ;;  %v10586_v53 = vsel %vm446_vm0, %v10506_v16, 0.0  ;;  %v10637_v35 = vadd.f32 %v10636_v2, %v10635_v54 }
 0xf38   : > { %9222 = vst.msk [vmem:[%s13813_s20 + $0xe8] sm:$0xff] %vm9192_vm4, %v9155_v13  ;;  %v10523_v23 = vadd.f32 %v10491_v63, %v18400_v43  ;;  %v10631_v13 = vrot.slane %v10630_v50, 2  ;;  %v10475_v62 = vadd.f32 %v10443_v59, %v17179_v7  ;;  %v10652_v1 = vrot.slane %v10651_v47, 2 }
 0xf39   : > { %v10645_v7 = vrot.slane %v10644_v33, 2  ;;  %v10695_v36 = vadd.f32 %v10694_v46, %v10693_v52  ;;  %v10587_v44 = vrot.slane %v10586_v53, 4  ;;  %v10638_v54 = vrot.slane %v10637_v35, 2 }
 0xf3a   : > { %v10416_v21 = vpop.f32.mrf.mxu3  ;;  %v10705_v34 = vsel %vm446_vm0, %v10523_v23, 0.0  ;;  %v10507_v28 = vadd.f32 %v10475_v62, %v18403_v24  ;;  %v10653_v12 = vadd.f32 %v10652_v1, %v10651_v47 }
 0xf3b   : > { %v10417_v31 = vadd.f32 %v17295_v17, %v10416_v21  ;;  %v10706_v3 = vrot.slane %v10705_v34, 4  ;;  %v10646_v19 = vadd.f32 %v10645_v7, %v10644_v33  ;;  %v10696_v23 = vrot.slane %v10695_v36, 1 }
 0xf3c   : > { %v10588_v52 = vadd.f32 %v10587_v44, %v10586_v53 }
 0xf3d   : > { %v10460_v0 = vmax.f32 %v10417_v31, 0.0  ;;  %v10632_v31 = vadd.f32 %v10631_v13, %v10630_v50  ;;  %v10707_v15 = vadd.f32 %v10706_v3, %v10705_v34  ;;  %v10647_v62 = vrot.slane %v10646_v19, 1 }
 0xf3e   : > { %v10697_v34 = vadd.f32 %v10696_v23, %v10695_v36 }
 0xf3f   : > { %v10492_v61 = vadd.f32 %v10460_v0, %v17183_v4  ;;  %v18402_v4 = vld [vmem:[#allocation4_spill] sm:$0xff]  ;;  %v10700_v0 = vadd.f32 %v10699_v58, %v10698_v22  ;;  %v10633_v59 = vrot.slane %v10632_v31, 1  ;;  %v10708_v16 = vrot.slane %v10707_v15, 2 }
 0xf40   : > { %v10639_v22 = vadd.f32 %v10638_v54, %v10637_v35  ;;  %v10648_v7 = vadd.f32 %v10647_v62, %v10646_v19 }
 0xf41   : > { %v10524_v40 = vadd.f32 %v10492_v61, %v18402_v4  ;;  %v10654_v61 = vrot.slane %v10653_v12, 1  ;;  %v10701_v47 = vrot.slane %v10700_v0, 2  ;;  %v17475_v2 = vadd.f32 %v10633_v59, %v10632_v31 }
 0xf42   : > { %v10392_v5 = vpop.f32.mrf.mxu2  ;;  %v10419_v51 = vpop.f32.mrf.mxu3  ;;  %v10640_v35 = vrot.slane %v10639_v22, 1  ;;  %v10777_v54 = vmul.f32 %v17379_v27, %v10648_v7 }
 0xf43   : > { %v10393_v42 = vadd.f32 %v17295_v17, %v10392_v5  ;;  %v10420_v30 = vadd.f32 %v17295_v17, %v10419_v51  ;;  %v10712_v60 = vsel %vm446_vm0, %v10524_v40, 0.0  ;;  %v10655_v4 = vadd.f32 %v10654_v61, %v10653_v12 }
 0xf44   : > { %v10713_v9 = vrot.slane %v10712_v60, 4  ;;  %v10589_v40 = vrot.slane %v10588_v52, 2  ;;  %v10702_v1 = vadd.f32 %v10701_v47, %v10700_v0  ;;  %v17488_v59 = vadd.f32 %v10640_v35, %v10639_v22 }
 0xf45   : > { %v10452_v10 = vmax.f32 %v10393_v42, 0.0  ;;  %v10461_v21 = vmax.f32 %v10420_v30, 0.0 }
 0xf46   : > { %v10714_v42 = vadd.f32 %v10713_v9, %v10712_v60  ;;  %v10590_v12 = vadd.f32 %v10589_v40, %v10588_v52  ;;  %v18406_v9 = vld [vmem:[#allocation37_spill] sm:$0xff] }
 0xf47   : > { %v10484_v48 = vadd.f32 %v10452_v10, %v17195_v55  ;;  %v10493_v11 = vadd.f32 %v10461_v21, %v17197_v18  ;;  %v10593_v55 = vsel %vm446_vm0, %v10507_v28, 0.0  ;;  %v10709_v21 = vadd.f32 %v10708_v16, %v10707_v15 }
 0xf48   : > { %v10594_v5 = vrot.slane %v10593_v55, 4  ;;  %v10715_v3 = vrot.slane %v10714_v42, 2  ;;  %v10591_v23 = vrot.slane %v10590_v12, 1 }
 0xf49   : > { %v10516_v45 = vadd.f32 %v10484_v48, %v18404_v39  ;;  %v10525_v18 = vadd.f32 %v10493_v11, %v18405_v25  ;;  %v17483_v39 = vmul.f32 %v17379_v27, %v10697_v34  ;;  %v10703_v11 = vrot.slane %v10702_v1, 1 }
 0xf4a   : > { %v10395_v63 = vpop.f32.mrf.mxu2  ;;  %v10595_v58 = vadd.f32 %v10594_v5, %v10593_v55  ;;  %v10710_v55 = vrot.slane %v10709_v21, 1 }
 0xf4b   : > { %v10396_v14 = vadd.f32 %v17295_v17, %v10395_v63  ;;  %v10422_v43 = vpop.f32.mrf.mxu3  ;;  %v10656_v51 = vsel %vm446_vm0, %v10516_v45, 0.0  ;;  %v10719_v53 = vsel %vm446_vm0, %v10525_v18, 0.0  ;;  %v10778_v45 = vmul.f32 %v17379_v27, %v10655_v4 }
 0xf4c   : > { %v10368_v50 = vpop.f32.mrf.mxu0  ;;  %v10423_v13 = vadd.f32 %v17295_v17, %v10422_v43  ;;  %v10657_v10 = vrot.slane %v10656_v51, 4  ;;  %v10720_v63 = vrot.slane %v10719_v53, 4  ;;  %v10596_v15 = vrot.slane %v10595_v58, 2 }
 0xf4d   : > { %v10453_v30 = vmax.f32 %v10396_v14, 0.0  ;;  %v10369_v33 = vadd.f32 %v17295_v17, %v10368_v50  ;;  %v10704_v25 = vadd.f32 %v10703_v11, %v10702_v1  ;;  %v10711_v16 = vadd.f32 %v10710_v55, %v10709_v21 }
 0xf4e   : > { %v10462_v28 = vmax.f32 %v10423_v13, 0.0  ;;  %v10658_v44 = vadd.f32 %v10657_v10, %v10656_v51  ;;  %v10721_v52 = vadd.f32 %v10720_v63, %v10719_v53  ;;  %v17494_v51 = vsel %vm10825_vm6, %v10778_v45, %v10777_v54  ;;  %v18407_v13 = vld [vmem:[#allocation8_spill] sm:$0xff] }
 0xf4f   : > { %v10485_v24 = vadd.f32 %v10453_v30, %v17211_v8  ;;  %v10444_v60 = vmax.f32 %v10369_v33, 0.0  ;;  %v10716_v8 = vadd.f32 %v10715_v3, %v10714_v42  ;;  %v10597_v18 = vadd.f32 %v10596_v15, %v10595_v58  ;;  %v18409_v33 = vld [vmem:[#allocation40_spill] sm:$0xff] }
 0xf50   : > { %v10494_v50 = vadd.f32 %v10462_v28, %v17216_v32  ;;  %v10659_v61 = vrot.slane %v10658_v44, 2  ;;  %v10592_v10 = vadd.f32 %v10591_v23, %v10590_v12  ;;  %v10722_v1 = vrot.slane %v10721_v52, 2 }
 0xf51   : > { %v10517_v14 = vadd.f32 %v10485_v24, %v18406_v9  ;;  %v10476_v19 = vadd.f32 %v10444_v60, %v17224_v38  ;;  %v10717_v42 = vrot.slane %v10716_v8, 1  ;;  %v10785_v53 = vmul.f32 %v17379_v27, %v10704_v25 }
 0xf52   : > { %v10398_v46 = vpop.f32.mrf.mxu2  ;;  %v10526_v38 = vadd.f32 %v10494_v50, %v18407_v13  ;;  %v10786_v24 = vmul.f32 %v17379_v27, %v10711_v16  ;;  %v10598_v28 = vrot.slane %v10597_v18, 1 }
 0xf53   : > { %v10399_v48 = vadd.f32 %v17295_v17, %v10398_v46  ;;  %v10663_v30 = vsel %vm446_vm0, %v10517_v14, 0.0  ;;  %v10660_v46 = vadd.f32 %v10659_v61, %v10658_v44  ;;  %v17512_v44 = vmul.f32 %v17379_v27, %v10592_v10 }
 0xf54   : > { %v10371_v31 = vpop.f32.mrf.mxu0  ;;  %v10726_v35 = vsel %vm446_vm0, %v10526_v38, 0.0  ;;  %v10599_v54 = vadd.f32 %v10598_v28, %v10597_v18  ;;  %v10853_v23 = vsel %vm10825_vm6, %v10786_v24, %v10785_v53 }
 0xf55   : > { %v10454_v36 = vmax.f32 %v10399_v48, 0.0  ;;  %v10372_v0 = vadd.f32 %v17295_v17, %v10371_v31  ;;  %v10664_v48 = vrot.slane %v10663_v30, 4  ;;  %v10718_v31 = vadd.f32 %v10717_v42, %v10716_v8  ;;  %v18412_v8 = vld [vmem:[#allocation21_spill] sm:$0xff] }
 0xf56   : > { %v10661_v63 = vrot.slane %v10660_v46, 1  ;;  %v17525_v38 = vmul.f32 %v17379_v27, %v10599_v54 }
 0xf57   : > { %v10486_v43 = vadd.f32 %v10454_v36, %v17226_v49  ;;  %v10445_v47 = vmax.f32 %v10372_v0, 0.0  ;;  %v18408_v49 = vld [vmem:[#allocation19_spill] sm:$0xff]  ;;  %v18410_v36 = vld [vmem:[#allocation10_spill] sm:$0xff]  ;;  %v18411_v0 = vld [vmem:[#allocation20_spill] sm:$0xff]  ;;  %v10665_v15 = vadd.f32 %v10664_v48, %v10663_v30  ;;  %v10787_v61 = vmul.f32 %v17379_v27, %v10718_v31 }
 0xf58   : > { %v10508_v62 = vadd.f32 %v10476_v19, %v18408_v49  ;;  %v10727_v19 = vrot.slane %v10726_v35, 4 }
 0xf59   : > { %v10518_v34 = vadd.f32 %v10486_v43, %v18409_v33  ;;  %v10477_v58 = vadd.f32 %v10445_v47, %v17236_v26  ;;  %v10666_v42 = vrot.slane %v10665_v15, 2  ;;  %v17528_v33 = vsel %vm10827_vm7, %v10787_v61, %v10853_v23  ;;  %v18415_v23 = vld [vmem:[#allocation50_spill] sm:$0xff] }
 0xf5a   : > { %v10425_v5 = vpop.f32.mrf.mxu3  ;;  %v10600_v7 = vsel %vm446_vm0, %v10508_v62, 0.0 }
 0xf5b   : > { %v10426_v32 = vadd.f32 %v17295_v17, %v10425_v5  ;;  %v10670_v60 = vsel %vm446_vm0, %v10518_v34, 0.0  ;;  %v10509_v45 = vadd.f32 %v10477_v58, %v18411_v0  ;;  %v10601_v43 = vrot.slane %v10600_v7, 4 }
 0xf5c   : > { %v10374_v22 = vpop.f32.mrf.mxu0  ;;  %v10662_v5 = vadd.f32 %v10661_v63, %v10660_v46  ;;  %v10667_v48 = vadd.f32 %v10666_v42, %v10665_v15 }
 0xf5d   : > { %v10463_v4 = vmax.f32 %v10426_v32, 0.0  ;;  %v10375_v40 = vadd.f32 %v17295_v17, %v10374_v22  ;;  %v10607_v32 = vsel %vm446_vm0, %v10509_v45, 0.0  ;;  %v10728_v22 = vadd.f32 %v10727_v19, %v10726_v35 }
 0xf5e   : > { %v10602_v49 = vadd.f32 %v10601_v43, %v10600_v7  ;;  %v10608_v34 = vrot.slane %v10607_v32, 4  ;;  %v17533_v46 = vmul.f32 %v17379_v27, %v10662_v5 }
 0xf5f   : > { %v10495_v21 = vadd.f32 %v10463_v4, %v17238_v29  ;;  %v10446_v3 = vmax.f32 %v10375_v40, 0.0  ;;  %v10723_v29 = vadd.f32 %v10722_v1, %v10721_v52  ;;  %v18413_v4 = vld [vmem:[#allocation46_spill] sm:$0xff]  ;;  %v10729_v35 = vrot.slane %v10728_v22, 2 }
 0xf60   : > { %v10603_v7 = vrot.slane %v10602_v49, 2 }
 0xf61   : > { %v10527_v12 = vadd.f32 %v10495_v21, %v18410_v36  ;;  %v10478_v26 = vadd.f32 %v10446_v3, %v17249_v41  ;;  %v10671_v41 = vrot.slane %v10670_v60, 4  ;;  %v10724_v25 = vrot.slane %v10723_v29, 1  ;;  %v18414_v3 = vld [vmem:[#allocation12_spill] sm:$0xff] }
 0xf62   : > { %v10401_v11 = vpop.f32.mrf.mxu2  ;;  %v10604_v42 = vadd.f32 %v10603_v7, %v10602_v49 }
 0xf63   : > { %v10733_v55 = vsel %vm446_vm0, %v10527_v12, 0.0  ;;  %v10510_v9 = vadd.f32 %v10478_v26, %v18412_v8  ;;  %v10402_v14 = vadd.f32 %v17295_v17, %v10401_v11  ;;  %v10428_v50 = vpop.f32.mrf.mxu3  ;;  %v10672_v62 = vadd.f32 %v10671_v41, %v10670_v60 }
 0xf64   : > { %v10429_v47 = vadd.f32 %v17295_v17, %v10428_v50  ;;  %v10734_v16 = vrot.slane %v10733_v55, 4  ;;  %v10725_v1 = vadd.f32 %v10724_v25, %v10723_v29  ;;  %v10730_v50 = vadd.f32 %v10729_v35, %v10728_v22 }
 0xf65   : > { %v10455_v52 = vmax.f32 %v10402_v14, 0.0  ;;  %v10614_v30 = vsel %vm446_vm0, %v10510_v9, 0.0  ;;  %v10673_v60 = vrot.slane %v10672_v62, 2 }
 0xf66   : > { %v10464_v13 = vmax.f32 %v10429_v47, 0.0  ;;  %v10615_v58 = vrot.slane %v10614_v30, 4 }
 0xf67   : > { %v10487_v18 = vadd.f32 %v10455_v52, %v17251_v57  ;;  %v10735_v57 = vadd.f32 %v10734_v16, %v10733_v55  ;;  %v10668_v55 = vrot.slane %v10667_v48, 1  ;;  %v10674_v54 = vadd.f32 %v10673_v60, %v10672_v62 }
 0xf68   : > { %v10496_v10 = vadd.f32 %v10464_v13, %v17258_v20  ;;  %v10609_v20 = vadd.f32 %v10608_v34, %v10607_v32  ;;  %v10616_v45 = vadd.f32 %v10615_v58, %v10614_v30  ;;  %v18416_v30 = vld [vmem:[#allocation14_spill] sm:$0xff]  ;;  %v10731_v13 = vrot.slane %v10730_v50, 1 }
 0xf69   : > { %v10519_v40 = vadd.f32 %v10487_v18, %v18413_v4  ;;  %v10736_v0 = vrot.slane %v10735_v57, 2  ;;  %v10675_v22 = vrot.slane %v10674_v54, 1 }
 0xf6a   : > { %v10404_v53 = vpop.f32.mrf.mxu2  ;;  %v10528_v24 = vadd.f32 %v10496_v10, %v18414_v3  ;;  %v10610_v41 = vrot.slane %v10609_v20, 2  ;;  %v10617_v25 = vrot.slane %v10616_v45, 2  ;;  %v18417_v10 = vld [vmem:[#allocation22_spill] sm:$0xff]  ;;  %v10788_v3 = vmul.f32 %v17379_v27, %v10725_v1 }
 0xf6b   : > { %v10677_v21 = vsel %vm446_vm0, %v10519_v40, 0.0  ;;  %v10405_v28 = vadd.f32 %v17295_v17, %v10404_v53  ;;  %v10431_v31 = vpop.f32.mrf.mxu3  ;;  %v10737_v5 = vadd.f32 %v10736_v0, %v10735_v57  ;;  %v10676_v35 = vadd.f32 %v10675_v22, %v10674_v54 }
 0xf6c   : > { %v10678_v36 = vrot.slane %v10677_v21, 4  ;;  %v10740_v12 = vsel %vm446_vm0, %v10528_v24, 0.0  ;;  %v10432_v63 = vadd.f32 %v17295_v17, %v10431_v31  ;;  %v10611_v4 = vadd.f32 %v10610_v41, %v10609_v20 }
 0xf6d   : > { %v10456_v26 = vmax.f32 %v10405_v28, 0.0  ;;  %v10377_v29 = vpop.f32.mrf.mxu0  ;;  %v10741_v15 = vrot.slane %v10740_v12, 4  ;;  %v10738_v58 = vrot.slane %v10737_v5, 1  ;;  %v10618_v53 = vadd.f32 %v10617_v25, %v10616_v45 }
 0xf6e   : > { %v10679_v11 = vadd.f32 %v10678_v36, %v10677_v21  ;;  %v10465_v9 = vmax.f32 %v10432_v63, 0.0  ;;  %v10378_v14 = vadd.f32 %v17295_v17, %v10377_v29  ;;  %v10669_v24 = vadd.f32 %v10668_v55, %v10667_v48 }
 0xf6f   : > { %v10488_v8 = vadd.f32 %v10456_v26, %v17265_v37  ;;  %v10742_v43 = vadd.f32 %v10741_v15, %v10740_v12  ;;  %v10605_v31 = vrot.slane %v10604_v42, 1  ;;  %v10732_v36 = vadd.f32 %v10731_v13, %v10730_v50 }
 0xf70   : > { %v10680_v19 = vrot.slane %v10679_v11, 2  ;;  %v10497_v52 = vadd.f32 %v10465_v9, %v17271_v56  ;;  %v10447_v47 = vmax.f32 %v10378_v14, 0.0  ;;  %v10612_v20 = vrot.slane %v10611_v4, 1 }
 0xf71   : > { %v10520_v61 = vadd.f32 %v10488_v8, %v18415_v23  ;;  %v10743_v16 = vrot.slane %v10742_v43, 2  ;;  %v10739_v63 = vadd.f32 %v10738_v58, %v10737_v5  ;;  %v10619_v29 = vrot.slane %v10618_v53, 1 }
 0xf72   : > { %v10681_v32 = vadd.f32 %v10680_v19, %v10679_v11  ;;  %v10529_v18 = vadd.f32 %v10497_v52, %v18416_v30  ;;  %v10479_v17 = vadd.f32 %v10447_v47, %v17280_v6  ;;  %v10847_v1 = vsel %vm10827_vm7, %v17533_v46, %v17494_v51 }
 0xf73   : > { %v10684_v37 = vsel %vm446_vm0, %v10520_v61, 0.0  ;;  %v10744_v62 = vadd.f32 %v10743_v16, %v10742_v43  ;;  %v10780_v48 = vmul.f32 %v17379_v27, %v10669_v24  ;;  %v10606_v55 = vadd.f32 %v10605_v31, %v10604_v42 }
 0xf74   : > { %v10685_v34 = vrot.slane %v10684_v37, 4  ;;  %v10682_v40 = vrot.slane %v10681_v32, 1  ;;  %v10747_v56 = vsel %vm446_vm0, %v10529_v18, 0.0  ;;  %v10511_v57 = vadd.f32 %v10479_v17, %v18417_v10 }
 0xf75   : > { %v10748_v49 = vrot.slane %v10747_v56, 4  ;;  %v10745_v28 = vrot.slane %v10744_v62, 1  ;;  %v10781_v8 = vmul.f32 %v17379_v27, %v10676_v35  ;;  %v10789_v50 = vmul.f32 %v17379_v27, %v10732_v36 }
 0xf76   : > { %v10686_v21 = vadd.f32 %v10685_v34, %v10684_v37  ;;  %v10621_v6 = vsel %vm446_vm0, %v10511_v57, 0.0  ;;  %v10683_v12 = vadd.f32 %v10682_v40, %v10681_v32  ;;  %v10613_v54 = vadd.f32 %v10612_v20, %v10611_v4 }
 0xf77   : > { %v10749_v60 = vadd.f32 %v10748_v49, %v10747_v56  ;;  %v10622_v26 = vrot.slane %v10621_v6, 4  ;;  %v10746_v11 = vadd.f32 %v10745_v28, %v10744_v62  ;;  %v10790_v41 = vmul.f32 %v17379_v27, %v10739_v63 }
 0xf78   : > { %v10687_v7 = vrot.slane %v10686_v21, 2  ;;  %v10782_v19 = vmul.f32 %v17379_v27, %v10683_v12  ;;  %v10620_v23 = vadd.f32 %v10619_v29, %v10618_v53  ;;  %v10855_v46 = vsel %vm10829_vm8, %v10788_v3, %v17528_v33 }
 0xf79   : > { %v10750_v45 = vrot.slane %v10749_v60, 2  ;;  %v10623_v15 = vadd.f32 %v10622_v26, %v10621_v6  ;;  %v10848_v52 = vsel %vm10829_vm8, %v10780_v48, %v10847_v1  ;;  %v10791_v47 = vmul.f32 %v17379_v27, %v10746_v11 }
 0xf7a   : > { %v10688_v0 = vadd.f32 %v10687_v7, %v10686_v21  ;;  %v10771_v25 = vmul.f32 %v17379_v27, %v10606_v55  ;;  %v10849_v32 = vsel %vm10831_vm9, %v10781_v8, %v10848_v52  ;;  %v10856_v37 = vsel %vm10831_vm9, %v10789_v50, %v10855_v46 }
 0xf7b   : > { %v10751_v14 = vadd.f32 %v10750_v45, %v10749_v60  ;;  %v10624_v43 = vrot.slane %v10623_v15, 2  ;;  %v10772_v30 = vmul.f32 %v17379_v27, %v10613_v54  ;;  %v10850_v33 = vsel %vm10833_vm10, %v10782_v19, %v10849_v32 }
 0xf7c   : > { %v10689_v9 = vrot.slane %v10688_v0, 1  ;;  %v10857_v17 = vsel %vm10833_vm10, %v10790_v41, %v10856_v37  ;;  %v10773_v13 = vmul.f32 %v17379_v27, %v10620_v23  ;;  %v10839_v34 = vsel %vm10825_vm6, %v17525_v38, %v17512_v44 }
 0xf7d   : > { %v10752_v51 = vrot.slane %v10751_v14, 1  ;;  %v10625_v5 = vadd.f32 %v10624_v43, %v10623_v15  ;;  %v10858_v4 = vsel %vm10835_vm11, %v10791_v47, %v10857_v17  ;;  %v10840_v10 = vsel %vm10827_vm7, %v10771_v25, %v10839_v34 }
 0xf7e   : > { %v10690_v61 = vadd.f32 %v10689_v9, %v10688_v0  ;;  %v10841_v58 = vsel %vm10829_vm8, %v10772_v30, %v10840_v10  ;;  %v10775_v44 = vmul.f32 %v17379_v27, %v17475_v2 }
 0xf7f   : > { %v10753_v42 = vadd.f32 %v10752_v51, %v10751_v14  ;;  %v10626_v18 = vrot.slane %v10625_v5, 1  ;;  %v10842_v38 = vsel %vm10831_vm9, %v10773_v13, %v10841_v58 }
 0xf80   : > { %v10783_v16 = vmul.f32 %v17379_v27, %v10690_v61 }
 0xf81   : > { %v10792_v62 = vmul.f32 %v17379_v27, %v10753_v42  ;;  %v10627_v56 = vadd.f32 %v10626_v18, %v10625_v5 }
 0xf82   : > { %v10851_v22 = vsel %vm10835_vm11, %v10783_v16, %v10850_v33 }
 0xf83   : > { %v10852_v40 = vsel %vm10837_vm12, %v17483_v39, %v10851_v22  ;;  %v10859_v57 = vsel %vm10837_vm12, %v10792_v62, %v10858_v4  ;;  %v10774_v53 = vmul.f32 %v17379_v27, %v10627_v56  ;;  %v10776_v39 = vmul.f32 %v17379_v27, %v17488_v59 }
 0xf84   : > { %10866 = vst.msk [vmem:[%s17416_s16 + $0x10] sm:$0xff] %vm446_vm0, %v10852_v40 }
 0xf85   : > { %10867 = vst.msk [vmem:[%s17416_s16 + $0x18] sm:$0xff] %vm446_vm0, %v10859_v57  ;;  %v10843_v21 = vsel %vm10833_vm10, %v10774_v53, %v10842_v38 }
 0xf86   : > { %v10844_v49 = vsel %vm10835_vm11, %v10775_v44, %v10843_v21 }
 0xf87   : > { %v10845_v3 = vsel %vm10837_vm12, %v10776_v39, %v10844_v49 }
 0xf88   : > { %10865 = vst.msk [vmem:[%s17416_s16 + $0x8] sm:$0xff] %vm446_vm0, %v10845_v3 }
 0xf89 PF: > { %s19_s27 = sadd.s32 1, %s12332_s27  }
 0xf8a   : > { %p16_p5 = scmp.ge.s32.totalorder %s19_s27, 6  }
 0xf8c   :  { %18 = sbr.rel (!%p16_p5) target bundleno = 1 (0x1), region = 93 }

</bundles_post_ra>
